<compile_context>
chip_gen: v7x
topology: tpu7x:2x2x1
jax: 0.10.0
libtpu: 0.0.40
codegen_flags: <defaults>
</compile_context>

<pallas_src>
import math
from functools import partial

import numpy as np
import jax
import jax.numpy as jnp
from jax import lax
from jax.experimental import pallas as pl
from jax.experimental.pallas import tpu as pltpu


def _round_up(x, m):
    return (x + m - 1) // m * m


def _vmem_capacity_bytes():
    """Physical VMEM per core; conservative 64 MiB (v7x) fallback."""
    try:
        return int(pltpu.get_tpu_info().vmem_capacity_bytes)
    except Exception:
        return 64 * (1 << 20)


# --------------------------------------------------------------------------- #
# Kernels.  Activation layout is transposed: H on sublanes, batch on lanes, so
# hidden layers are plain `W @ act` MXU matmuls in the PyTorch (out, in) weight
# layout and the final neuron-sum is a lane-dense (1, tile_n) row store.
# --------------------------------------------------------------------------- #
def _sinnn_first_only_kernel(x_ref, w0_ref, o_ref, *, w_0):
    """num_hidden_layers == 1 path: first Linear + sin + sum only."""
    act = jnp.sin(w_0 * (w0_ref[...] * x_ref[...]))       # VPU outer product (K == 1)
    o_ref[...] = jnp.sum(act, axis=0, keepdims=True)


def _sinnn_resident_kernel(x_ref, w0_ref, w_ref, o_ref, act_ref, *, w_0,
                           num_layers, unroll):
    """Resident-weight path: one grid step per batch tile, layers looped in-kernel.

    x_ref:   (1, T)             f32  -- batch across lanes
    w0_ref:  (h_pad, 1)         f32  -- first Linear weight column (resident)
    w_ref:   (L, h_pad, h_pad)  f32  -- full hidden weight stack (VMEM resident)
    o_ref:   (1, T)             f32  -- lane-dense per-sample sums
    act_ref: (h_pad, T)         f32  -- activation scratch
    """
    # First Linear has in_features == 1: broadcast multiply on the VPU.
    act_ref[...] = jnp.sin(w_0 * (w0_ref[...] * x_ref[...]))

    if unroll:
        # Fully unrolled for small L: static weight slices, scheduler-visible.
        for i in range(num_layers):
            act_ref[...] = jnp.sin(
                jnp.dot(w_ref[i], act_ref[...], preferred_element_type=jnp.float32)
            )
    else:
        def body(i, carry):
            act_ref[...] = jnp.sin(
                jnp.dot(w_ref[i], act_ref[...], preferred_element_type=jnp.float32)
            )
            return carry

        lax.fori_loop(0, num_layers, body, 0)

    # Reduce over neurons (sublanes) -> lane-dense (1, T) row.
    o_ref[...] = jnp.sum(act_ref[...], axis=0, keepdims=True)


def _sinnn_streamed_kernel(x_ref, w0_ref, w_ref, o_ref, act_ref, *, w_0):
    """Streamed fallback: grid = (nb, L), one hidden weight block per step.

    NOTE: the activation carry in act_ref is only correct with the layer axis
    INNERMOST and marked 'arbitrary'; do not reorder the grid to (L, nb) or
    mark the layer axis 'parallel'.
    """
    l = pl.program_id(1)

    @pl.when(l == 0)
    def _():
        act_ref[...] = jnp.sin(w_0 * (w0_ref[...] * x_ref[...]))

    # Weights may be bf16 (stream-bandwidth win); activations stay f32.
    act_ref[...] = jnp.sin(
        jnp.dot(w_ref[0], act_ref[...], preferred_element_type=jnp.float32)
    )

    @pl.when(l == pl.num_programs(1) - 1)
    def _():
        o_ref[...] = jnp.sum(act_ref[...], axis=0, keepdims=True)


# --------------------------------------------------------------------------- #
# Wrapper.
# --------------------------------------------------------------------------- #
def linear_sin_forward(x, w0, hidden_weights, w_0=10.0, *,
                       stream_weight_dtype=jnp.bfloat16,
                       force_streamed=False):
    """x: (N, 1) f32; w0: (H, 1); hidden_weights: list of (out_i, in_i) (PyTorch layout)."""
    x = jnp.asarray(x, jnp.float32)
    w0 = jnp.asarray(w0, jnp.float32)
    N = int(x.shape[0])
    H = int(w0.shape[0])
    L = len(hidden_weights)

    MIB = 1 << 20

    # ---- padded sizes ------------------------------------------------------
    dims = [H] + [int(d) for w in hidden_weights for d in w.shape]
    h_pad = _round_up(max(dims), 8)
    # Always pad batch to a 512-lane multiple; zero columns are exact
    # (sin(0) == 0 propagates through every layer and contributes 0 to sums).
    n_pad = _round_up(max(N, 1), 512)

    vmem_cap = _vmem_capacity_bytes()
    # Scoped-VMEM ceiling with headroom: ~100 MiB on 128-MiB parts (v5e/v6e),
    # ~56 MiB on v7x's 64-MiB parts.
    ceiling = max(24 * MIB, min(vmem_cap - 8 * MIB, 100 * MIB))

    # ---- batch tile --------------------------------------------------------
    tile_n = 512
    if n_pad % 1024 == 0 and n_pad // 1024 >= 2 and h_pad * 1024 * 4 <= vmem_cap // 4:
        # Larger tiles only when the batch still splits into >= 2 tiles
        # (keeps both v7x TensorCores busy on the 'parallel' axis).
        tile_n = 1024

    # ---- inputs in kernel layout (batch across lanes) ----------------------
    x_row = jnp.zeros((1, n_pad), jnp.float32).at[0, :N].set(x[:, 0])
    w0_col = jnp.zeros((h_pad, 1), jnp.float32).at[:H, :].set(w0)

    # ---- num_hidden_layers == 1: first Linear + sin + sum only -------------
    if L == 0:
        nb = n_pad // tile_n
        y_row = pl.pallas_call(
            partial(_sinnn_first_only_kernel, w_0=float(w_0)),
            out_shape=jax.ShapeDtypeStruct((1, n_pad), jnp.float32),
            grid_spec=pltpu.PrefetchScalarGridSpec(
                num_scalar_prefetch=0,
                grid=(nb,),
                in_specs=[
                    pl.BlockSpec((1, tile_n), lambda b: (0, b)),
                    pl.BlockSpec((h_pad, 1), lambda b: (0, 0)),
                ],
                out_specs=pl.BlockSpec((1, tile_n), lambda b: (0, b)),
            ),
            compiler_params=pltpu.CompilerParams(
                dimension_semantics=("parallel",),
                vmem_limit_bytes=int(min(ceiling, 32 * MIB)),
            ),
        )(x_row, w0_col)
        return y_row[0, :N].reshape(N, 1)

    # ---- hidden-weight stack without per-layer dynamic-update-slice --------
    def stack_weights(dtype):
        shapes = [tuple(int(s) for s in w.shape) for w in hidden_weights]
        if all(s == (h_pad, h_pad) for s in shapes):
            return jnp.stack([jnp.asarray(w, dtype) for w in hidden_weights])
        # 'decreasing' mode / non-multiple-of-8 H: pad once on host.
        buf = np.zeros((L, h_pad, h_pad), np.float32)
        for i, w in enumerate(hidden_weights):
            wi = np.asarray(w, np.float32)
            buf[i, : wi.shape[0], : wi.shape[1]] = wi
        return jnp.asarray(buf, dtype)

    weight_bytes_f32 = L * h_pad * h_pad * 4

    def io_bytes(tn):
        # double-buffered (1, tn) x/out rows + resident (h_pad, 1) w0 column
        return 2 * (2 * tn * 4) + 2 * h_pad * 4

    def act_bytes(tn):
        return h_pad * tn * 4

    # Default Pallas double-buffering allocates 2 copies of the resident weight
    # block even though it is fetched only once, hence the 2x in the check.
    resident_need = 2 * weight_bytes_f32 + act_bytes(tile_n) + io_bytes(tile_n)
    use_resident = (not force_streamed) and resident_need <= min(ceiling, vmem_cap // 2)

    if use_resident:
        nb = n_pad // tile_n
        hlt = stack_weights(jnp.float32)
        vmem_limit = int(min(ceiling, max(32 * MIB, int(1.25 * resident_need))))
        y_row = pl.pallas_call(
            partial(_sinnn_resident_kernel, w_0=float(w_0),
                    num_layers=L, unroll=(L <= 16)),
            out_shape=jax.ShapeDtypeStruct((1, n_pad), jnp.float32),
            grid_spec=pltpu.PrefetchScalarGridSpec(
                num_scalar_prefetch=0,
                grid=(nb,),
                in_specs=[
                    pl.BlockSpec((1, tile_n), lambda b: (0, b)),
                    pl.BlockSpec((h_pad, 1), lambda b: (0, 0)),
                    # Constant index_map: whole weight stack DMA'd from HBM
                    # exactly once, resident across all batch tiles.
                    pl.BlockSpec((L, h_pad, h_pad), lambda b: (0, 0, 0)),
                ],
                out_specs=pl.BlockSpec((1, tile_n), lambda b: (0, b)),
                scratch_shapes=[pltpu.VMEM((h_pad, tile_n), jnp.float32)],
            ),
            compiler_params=pltpu.CompilerParams(
                dimension_semantics=("parallel",),
                vmem_limit_bytes=vmem_limit,
            ),
        )(x_row, w0_col, hlt)
        return y_row[0, :N].reshape(N, 1)

    # ---- streamed fallback (weight stack too large for VMEM residency) -----
    wdtype = jnp.dtype(stream_weight_dtype)
    wbytes = wdtype.itemsize

    def streamed_need(tn, nbuf):
        return nbuf * h_pad * h_pad * wbytes + act_bytes(tn) + io_bytes(tn)

    nbuf = 3 if streamed_need(tile_n, 3) <= int(0.9 * ceiling) else 2
    while streamed_need(tile_n, nbuf) > ceiling and tile_n > 128:
        tile_n //= 2
    # TODO(synk): K-tile the hidden matmul (and/or a layer-outer variant with a
    # resident (h_pad, n_pad) activation so weights stream from HBM only once)
    # for H large enough that a single (h_pad, h_pad) weight block strains VMEM.
    nb = n_pad // tile_n
    vmem_limit = int(min(ceiling, max(32 * MIB,
                                      int(1.25 * streamed_need(tile_n, nbuf)))))

    hlt = stack_weights(wdtype)

    w_spec = pl.BlockSpec((1, h_pad, h_pad), lambda b, l: (l, 0, 0))
    if nbuf == 3:
        try:
            w_spec = pl.BlockSpec((1, h_pad, h_pad), lambda b, l: (l, 0, 0),
                                  pipeline_mode=pl.Buffered(3))
        except TypeError:
            pass  # older Pallas without pipeline_mode: default double-buffering

    y_row = pl.pallas_call(
        partial(_sinnn_streamed_kernel, w_0=float(w_0)),
        out_shape=jax.ShapeDtypeStruct((1, n_pad), jnp.float32),
        grid_spec=pltpu.PrefetchScalarGridSpec(
            num_scalar_prefetch=0,
            grid=(nb, L),  # layer axis innermost + 'arbitrary' (act carry!)
            in_specs=[
                pl.BlockSpec((1, tile_n), lambda b, l: (0, b)),
                pl.BlockSpec((h_pad, 1), lambda b, l: (0, 0)),
                w_spec,
            ],
            out_specs=pl.BlockSpec((1, tile_n), lambda b, l: (0, b)),
            scratch_shapes=[pltpu.VMEM((h_pad, tile_n), jnp.float32)],
        ),
        compiler_params=pltpu.CompilerParams(
            dimension_semantics=("parallel", "arbitrary"),
            vmem_limit_bytes=vmem_limit,
        ),
    )(x_row, w0_col, hlt)
    return y_row[0, :N].reshape(N, 1)


# --------------------------------------------------------------------------- #
# Parameter construction (mirrors the PyTorch __init__) and pure-JAX reference.
# --------------------------------------------------------------------------- #
def make_params(key, num_neuron, num_hidden_layers, mode="constant"):
    k0, key = jax.random.split(key)
    w0 = jax.random.uniform(k0, (num_neuron, 1), jnp.float32, minval=-1.0, maxval=1.0)
    hidden = []
    current = num_neuron
    for _ in range(max(num_hidden_layers - 1, 0)):
        if mode == "constant":
            nxt = current
        elif mode == "decreasing":
            nxt = current - 1 if current > 5 else 5
        else:
            raise ValueError("Mode must be 'constant' or 'decreasing'")
        bound = math.sqrt(6.0 / current)
        kh, key = jax.random.split(key)
        hidden.append(jax.random.uniform(kh, (nxt, current), jnp.float32,
                                         minval=-bound, maxval=bound))
        current = nxt
    return w0, hidden


def reference_forward(x, w0, hidden_weights, w_0=10.0):
    hp = lax.Precision.HIGHEST
    out = jnp.sin(w_0 * jnp.dot(x, w0.T, precision=hp))
    for w in hidden_weights:
        out = jnp.sin(jnp.dot(out, w.T, precision=hp))
    return jnp.sum(out, axis=1, keepdims=True)


if __name__ == "__main__":
    # Small shapes consistent with the module: batch=8, num_neuron=32,
    # num_hidden_layers=4 (=> 3 extra hidden Linear layers), w_0=10.
    N, H, W0_SCALE = 8, 32, 10.0

    key = jax.random.PRNGKey(0)
    kx, kp, kp2 = jax.random.split(key, 3)
    x = jax.random.uniform(kx, (N, 1), jnp.float32, minval=-1.0, maxval=1.0)

    # constant mode, 3 hidden layers -> resident-weight fast path
    w0, hidden = make_params(kp, H, 4, mode="constant")
    y = jax.block_until_ready(linear_sin_forward(x, w0, hidden, w_0=W0_SCALE))
    y_ref = reference_forward(x, w0, hidden, w_0=W0_SCALE)
    assert y.shape == (N, 1)
    assert jnp.allclose(y, y_ref, atol=1e-3, rtol=1e-3)

    # decreasing mode (non-square hidden weights, padded to square on host)
    w0d, hiddend = make_params(kp2, H, 3, mode="decreasing")
    yd = jax.block_until_ready(linear_sin_forward(x, w0d, hiddend, w_0=W0_SCALE))
    yd_ref = reference_forward(x, w0d, hiddend, w_0=W0_SCALE)
    assert jnp.allclose(yd, yd_ref, atol=1e-3, rtol=1e-3)

    # num_hidden_layers == 1 path (first Linear + sin + sum only)
    y0 = jax.block_until_ready(linear_sin_forward(x, w0, [], w_0=W0_SCALE))
    y0_ref = reference_forward(x, w0, [], w_0=W0_SCALE)
    assert jnp.allclose(y0, y0_ref, atol=1e-3, rtol=1e-3)

    # streamed fallback path (forced; f32 weights so tolerance matches)
    ys = jax.block_until_ready(
        linear_sin_forward(x, w0, hidden, w_0=W0_SCALE,
                           force_streamed=True, stream_weight_dtype=jnp.float32))
    assert jnp.allclose(ys, y_ref, atol=1e-3, rtol=1e-3)

    print("KERNEL_OK")
</pallas_src>

<mosaic_0001>
module attributes {stable_mosaic.version = 11 : i64} {
  func.func @_sinnn_resident_kernel(%arg0: i32, %arg1: memref<1x512xf32, #tpu.memory_space<vmem>>, %arg2: memref<32x1xf32, #tpu.memory_space<vmem>>, %arg3: memref<3x32x32xf32, #tpu.memory_space<vmem>>, %arg4: memref<1x512xf32, #tpu.memory_space<vmem>>, %arg5: memref<32x512xf32, #tpu.memory_space<vmem>>) attributes {dimension_semantics = [#tpu.dimension_semantics<parallel>], iteration_bounds = array<i64: 1>, scalar_prefetch = 0 : i64, scratch_operands = 1 : i64, tpu.core_type = #tpu.core_type<tc>, window_params = [{transform_indices = @transform_0, window_bounds = array<i64: 1, 512>}, {pipeline_mode = #tpu.pipeline_mode<synchronous>, transform_indices = @transform_1, window_bounds = array<i64: 32, 1>}, {pipeline_mode = #tpu.pipeline_mode<synchronous>, transform_indices = @transform_2, window_bounds = array<i64: 3, 32, 32>}, {transform_indices = @transform_3, window_bounds = array<i64: 1, 512>}]} {
    %c0 = arith.constant 0 : index
    %c0_0 = arith.constant 0 : index
    %0 = vector.load %arg2[%c0, %c0_0] : memref<32x1xf32, #tpu.memory_space<vmem>>, vector<32x1xf32>
    %c0_1 = arith.constant 0 : index
    %c0_2 = arith.constant 0 : index
    %1 = vector.load %arg1[%c0_1, %c0_2] : memref<1x512xf32, #tpu.memory_space<vmem>>, vector<1x512xf32>
    %2 = vector.broadcast %0 : vector<32x1xf32> to vector<32x512xf32>
    %3 = vector.broadcast %1 : vector<1x512xf32> to vector<32x512xf32>
    %4 = arith.mulf %2, %3 : vector<32x512xf32>
    %cst = arith.constant 1.000000e+01 : f32
    %5 = vector.broadcast %cst : f32 to vector<32x512xf32>
    %6 = arith.mulf %5, %4 : vector<32x512xf32>
    %7 = math.sin %6 : vector<32x512xf32>
    %c0_3 = arith.constant 0 : index
    %c0_4 = arith.constant 0 : index
    %8 = vector.load %arg5[%c0_3, %c0_4] : memref<32x512xf32, #tpu.memory_space<vmem>>, vector<32x512xf32>
    tpu.vector_store %arg5[%c0_3, %c0_4], %7 {strides = array<i32>} : memref<32x512xf32, #tpu.memory_space<vmem>>, vector<32x512xf32>,
    %c0_5 = arith.constant 0 : index
    %c0_6 = arith.constant 0 : index
    %c0_7 = arith.constant 0 : index
    %9 = vector.load %arg3[%c0_5, %c0_6, %c0_7] : memref<3x32x32xf32, #tpu.memory_space<vmem>>, vector<1x32x32xf32>
    %10 = vector.shape_cast %9 : vector<1x32x32xf32> to vector<32x32xf32>
    %c0_8 = arith.constant 0 : index
    %c0_9 = arith.constant 0 : index
    %11 = vector.load %arg5[%c0_8, %c0_9] : memref<32x512xf32, #tpu.memory_space<vmem>>, vector<32x512xf32>
    %cst_10 = arith.constant dense<0.000000e+00> : vector<32x512xf32>
    %12 = tpu.matmul %10, %11, %cst_10 {dimension_numbers = #tpu.dot_dimension_numbers<[1], [0], [0], [1], [0, 0, 1, 1], [], []>} : vector<32x32xf32>, vector<32x512xf32>, vector<32x512xf32> -> vector<32x512xf32>
    %13 = math.sin %12 : vector<32x512xf32>
    %c0_11 = arith.constant 0 : index
    %c0_12 = arith.constant 0 : index
    %14 = vector.load %arg5[%c0_11, %c0_12] : memref<32x512xf32, #tpu.memory_space<vmem>>, vector<32x512xf32>
    tpu.vector_store %arg5[%c0_11, %c0_12], %13 {strides = array<i32>} : memref<32x512xf32, #tpu.memory_space<vmem>>, vector<32x512xf32>,
    %c1 = arith.constant 1 : index
    %c0_13 = arith.constant 0 : index
    %c0_14 = arith.constant 0 : index
    %15 = vector.load %arg3[%c1, %c0_13, %c0_14] : memref<3x32x32xf32, #tpu.memory_space<vmem>>, vector<1x32x32xf32>
    %16 = vector.shape_cast %15 : vector<1x32x32xf32> to vector<32x32xf32>
    %c0_15 = arith.constant 0 : index
    %c0_16 = arith.constant 0 : index
    %17 = vector.load %arg5[%c0_15, %c0_16] : memref<32x512xf32, #tpu.memory_space<vmem>>, vector<32x512xf32>
    %cst_17 = arith.constant dense<0.000000e+00> : vector<32x512xf32>
    %18 = tpu.matmul %16, %17, %cst_17 {dimension_numbers = #tpu.dot_dimension_numbers<[1], [0], [0], [1], [0, 0, 1, 1], [], []>} : vector<32x32xf32>, vector<32x512xf32>, vector<32x512xf32> -> vector<32x512xf32>
    %19 = math.sin %18 : vector<32x512xf32>
    %c0_18 = arith.constant 0 : index
    %c0_19 = arith.constant 0 : index
    %20 = vector.load %arg5[%c0_18, %c0_19] : memref<32x512xf32, #tpu.memory_space<vmem>>, vector<32x512xf32>
    tpu.vector_store %arg5[%c0_18, %c0_19], %19 {strides = array<i32>} : memref<32x512xf32, #tpu.memory_space<vmem>>, vector<32x512xf32>,
    %c2 = arith.constant 2 : index
    %c0_20 = arith.constant 0 : index
    %c0_21 = arith.constant 0 : index
    %21 = vector.load %arg3[%c2, %c0_20, %c0_21] : memref<3x32x32xf32, #tpu.memory_space<vmem>>, vector<1x32x32xf32>
    %22 = vector.shape_cast %21 : vector<1x32x32xf32> to vector<32x32xf32>
    %c0_22 = arith.constant 0 : index
    %c0_23 = arith.constant 0 : index
    %23 = vector.load %arg5[%c0_22, %c0_23] : memref<32x512xf32, #tpu.memory_space<vmem>>, vector<32x512xf32>
    %cst_24 = arith.constant dense<0.000000e+00> : vector<32x512xf32>
    %24 = tpu.matmul %22, %23, %cst_24 {dimension_numbers = #tpu.dot_dimension_numbers<[1], [0], [0], [1], [0, 0, 1, 1], [], []>} : vector<32x32xf32>, vector<32x512xf32>, vector<32x512xf32> -> vector<32x512xf32>
    %25 = math.sin %24 : vector<32x512xf32>
    %c0_25 = arith.constant 0 : index
    %c0_26 = arith.constant 0 : index
    %26 = vector.load %arg5[%c0_25, %c0_26] : memref<32x512xf32, #tpu.memory_space<vmem>>, vector<32x512xf32>
    tpu.vector_store %arg5[%c0_25, %c0_26], %25 {strides = array<i32>} : memref<32x512xf32, #tpu.memory_space<vmem>>, vector<32x512xf32>,
    %c0_27 = arith.constant 0 : index
    %c0_28 = arith.constant 0 : index
    %27 = vector.load %arg5[%c0_27, %c0_28] : memref<32x512xf32, #tpu.memory_space<vmem>>, vector<32x512xf32>
    %cst_29 = arith.constant dense<0.000000e+00> : vector<512xf32>
    %28 = vector.multi_reduction <add>, %27, %cst_29 [0] : vector<32x512xf32> to vector<512xf32>
    %29 = vector.shape_cast %28 : vector<512xf32> to vector<1x512xf32>
    %c0_30 = arith.constant 0 : index
    %c0_31 = arith.constant 0 : index
    %30 = vector.load %arg4[%c0_30, %c0_31] : memref<1x512xf32, #tpu.memory_space<vmem>>, vector<1x512xf32>
    tpu.vector_store %arg4[%c0_30, %c0_31], %29 {strides = array<i32>} : memref<1x512xf32, #tpu.memory_space<vmem>>, vector<1x512xf32>,
    return
  }
  func.func @transform_0(%arg0: i32) -> (i32, i32) {
    %c0_i32 = arith.constant 0 : i32
    %c0_i32_0 = arith.constant 0 : i32
    return %c0_i32, %arg0 : i32, i32
  }
  func.func @transform_1(%arg0: i32) -> (i32, i32) {
    %c0_i32 = arith.constant 0 : i32
    %c0_i32_0 = arith.constant 0 : i32
    %c0_i32_1 = arith.constant 0 : i32
    return %c0_i32, %c0_i32_0 : i32, i32
  }
  func.func @transform_2(%arg0: i32) -> (i32, i32, i32) {
    %c0_i32 = arith.constant 0 : i32
    %c0_i32_0 = arith.constant 0 : i32
    %c0_i32_1 = arith.constant 0 : i32
    %c0_i32_2 = arith.constant 0 : i32
    return %c0_i32, %c0_i32_0, %c0_i32_1 : i32, i32, i32
  }
  func.func @transform_3(%arg0: i32) -> (i32, i32) {
    %c0_i32 = arith.constant 0 : i32
    %c0_i32_0 = arith.constant 0 : i32
    return %c0_i32, %arg0 : i32, i32
  }
}

</mosaic_0001>

<bundles_post_ra>
// kernel: tpu_custom_call.1
= control target key start
LH: loop header
LB: loop body
LE: loop exit
PB: predicated region body
PF: predicated region fallthrough
CT: control target
= control target key end

     0   :  { %8 = vsyncpa [#allocation4], 0  ;;  %s14806_s0 = inlined_call_operand.vmem [shape: f32[1,512], index: 0, kind: input, shape index: {}]   ;;  %s14807_s1 = inlined_call_operand.vmem [shape: f32[32,1], index: 1, kind: input, shape index: {}]   ;;  %s14808_s2 = inlined_call_operand.hbm [shape: f32[3,32,32], index: 2, kind: input, shape index: {}]   ;;  %s14809_s3 = inlined_call_operand.hbm [shape: f32[1,512], index: 3, kind: output, shape index: {}]  }
   0x1   :  { %9 = vsyncpa [#allocation5], 0  ;;  %s8464_s12 = smov [#allocation3]   ;;  %s8416_s16 = scalar_lea.hbm %s14808_s2, 1536 }
   0x2   :  { %s19_s13 = sshll.u32 %s8464_s12, 4  ;;  %p8417_p0 = scmp.ne.s32.totalorder %s14808_s2, %s8416_s16  ;;  %s20_s13 = int_to_ptr.vmem [resolvable:$true] %s19_s13 }
   0x3   :  { %p8420_p1 = scmp.lt.u32.totalorder %s8416_s16, %s14808_s2 }
   0x5   :  { %p8422_p2 = pnand %p8420_p1, %p8417_p0 }
   0x7   :  { %8425 = shalt.err (!%p8422_p2)
}
   0x8   :  { %s8426_s21 = scalar_lea.vmem %s20_s13, 1536  ;;  %p8431_p4 = scmp.lt.s32.totalorder %s20_s13, %s20_s13 }
   0x9   :  { %p8427_p3 = scmp.ne.s32.totalorder %s20_s13, %s8426_s21  ;;  %p8432_p5 = scmp.lt.s32.totalorder %s8426_s21, %s8426_s21 }
   0xb   :  { %p8433_p6 = por %p8432_p5, %p8431_p4 }
   0xd   :  { %p8434_p7 = pnand %p8433_p6, %p8427_p3 }
   0xf   :  { %8437 = shalt.err (!%p8434_p7)
}
  0x10   :  { %s8465_s22 = smov 128   ;;  %s8466_s23 = smov 8  }
  0x11   :  { %25 = dma.hbm_to_vmem [thread:$0]  %s14808_s2, 1536, %s20_s13, [#allocation4], %s8465_s22, %s8465_s22, %s8466_s23  }
  0x12   :  { %8460 = dma.done.wait [#allocation4], 1536  }
  0x13   :  { %8461 = vsyncadd [#allocation4], 4294965760  ;;  %v8467_v0 = vmov 0   ;;  %v31_v1 = vld [vmem:[%s14807_s1 + $0x10] sm:$0xff]  ;;  %v29_v2 = vld [vmem:[%s14807_s1] sm:$0xff]  ;;  %v14810_v5 = vlaneseq }
  0x14   :  { %8159 = vset.pattern.permute.xlu1 %v8467_v0  ;;  %8158 = vset.pattern.permute.xlu0 %v8467_v0  ;;  %v32_v3 = vld [vmem:[%s14807_s1 + $0x18] sm:$0xff]  ;;  %v30_v4 = vld [vmem:[%s14807_s1 + $0x8] sm:$0xff]  ;;  %v33_v9 = vld [vmem:[%s14806_s0] sm:$0xf]  ;;  %s8476_s0 = smov [#allocation6]  }
  0x15   :  { %46 = vperm.xlu1 %8159, %v31_v1   ;;  %36 = vperm.xlu0 %8158, %v29_v2   ;;  %v8522_v6 = vshrl.u32 %v14810_v5, 7  ;;  %s7552_s1 = sshll.u32 %s8476_s0, 4  ;;  %s7553_s1 = int_to_ptr.vmem [resolvable:$true] %s7552_s1 }
  0x16   :  { %s8438_s8 = scalar_lea.vmem %s7553_s1, 64  ;;  %p8443_p9 = scmp.lt.s32.totalorder %s7553_s1, %s7553_s1 }
  0x17   :  { %14971 = vst [vmem:[#allocation9_spill] sm:$0xff] %v8522_v6  ;;  %v57_v7 = vsub.s32 0, %v8522_v6  ;;  %v65_v8 = vsub.s32 2, %v8522_v6  ;;  %v61_v14 = vsub.s32 1, %v8522_v6  ;;  %v69_v19 = vsub.s32 3, %v8522_v6  ;;  %p8439_p8 = scmp.ne.s32.totalorder %s7553_s1, %s8438_s8  ;;  %p8444_p10 = scmp.lt.s32.totalorder %s8438_s8, %s8438_s8 }
  0x19   :  { %51 = vperm.xlu1 %8159, %v32_v3   ;;  %41 = vperm.xlu0 %8158, %v30_v4   ;;  %v58_v10 = vrot.slane %v33_v9, %v57_v7  ;;  %v66_v11 = vrot.slane %v33_v9, %v65_v8  ;;  %v62_v20 = vrot.slane %v33_v9, %v61_v14  ;;  %p8445_p11 = por %p8444_p10, %p8443_p9 }
  0x1a   :  { %v8531_v21 = vrot.slane %v33_v9, %v69_v19 }
  0x1b   :  { %p8446_p12 = pnand %p8445_p11, %p8439_p8 }
  0x94   :  { %v47_v12 = vpop.permute.xlu1 %46  ;;  %v37_v13 = vpop.permute.xlu0 %36 }
  0x95   :  { %v83_v15 = vmul.f32 %v58_v10, %v47_v12  ;;  %v85_v16 = vmul.f32 %v66_v11, %v47_v12  ;;  %v75_v17 = vmul.f32 %v58_v10, %v37_v13  ;;  %v77_v18 = vmul.f32 %v66_v11, %v37_v13 }
  0x96   :  { %v84_v22 = vmul.f32 %v62_v20, %v47_v12  ;;  %v86_v23 = vmul.f32 %v8531_v21, %v47_v12  ;;  %v76_v28 = vmul.f32 %v62_v20, %v37_v13  ;;  %v78_v33 = vmul.f32 %v8531_v21, %v37_v13 }
  0x97   :  { %v8534_v24 = vmul.f32 10.0, %v83_v15  ;;  %v8538_v26 = vmul.f32 10.0, %v85_v16  ;;  %v8547_v35 = vmul.f32 10.0, %v75_v17  ;;  %v8551_v37 = vmul.f32 10.0, %v77_v18 }
  0x98   :  { %v8536_v25 = vmul.f32 10.0, %v84_v22  ;;  %v8540_v27 = vmul.f32 10.0, %v86_v23  ;;  %v52_v31 = vpop.permute.xlu1 %51  ;;  %v8549_v36 = vmul.f32 10.0, %v76_v28  ;;  %v42_v41 = vpop.permute.xlu0 %41  ;;  %v8553_v43 = vmul.f32 10.0, %v78_v33 }
  0x99   :  { %14972 = vst [vmem:[#allocation10_spill] sm:$0xff] %v8534_v24  ;;  %14974 = vst [vmem:[#allocation12_spill] sm:$0xff] %v8538_v26  ;;  %v942_v29 = vand.u32 2139095040, %v8534_v24  ;;  %v1150_v32 = vand.u32 2139095040, %v8538_v26  ;;  %v87_v38 = vmul.f32 %v58_v10, %v52_v31  ;;  %v110_v45 = vand.u32 2139095040, %v8547_v35 }
  0x9a   :  { %14973 = vst [vmem:[#allocation11_spill] sm:$0xff] %v8536_v25  ;;  %14975 = vst [vmem:[#allocation13_spill] sm:$0xff] %v8540_v27  ;;  %v1046_v30 = vand.u32 2139095040, %v8536_v25  ;;  %v1254_v34 = vand.u32 2139095040, %v8540_v27  ;;  %v214_v46 = vand.u32 2139095040, %v8549_v36  ;;  %v89_v47 = vmul.f32 %v66_v11, %v52_v31 }
  0x9b   :  { %v943_v39 = vshrl.u32 %v942_v29, 23  ;;  %v1151_v42 = vshrl.u32 %v1150_v32, 23  ;;  %v318_v48 = vand.u32 2139095040, %v8551_v37  ;;  %v79_v49 = vmul.f32 %v58_v10, %v42_v41 }
  0x9c   :  { %v1047_v40 = vshrl.u32 %v1046_v30, 23  ;;  %v1255_v44 = vshrl.u32 %v1254_v34, 23  ;;  %v422_v53 = vand.u32 2139095040, %v8553_v43  ;;  %v8559_v54 = vmul.f32 %v66_v11, %v42_v41 }
  0x9d   :  { %v7593_v50 = vadd.s32 4294967169, %v943_v39  ;;  %v7601_v52 = vadd.s32 4294967169, %v1151_v42  ;;  %v111_v56 = vshrl.u32 %v110_v45, 23  ;;  %v215_v57 = vshrl.u32 %v214_v46, 23 }
  0x9e   :  { %v7597_v51 = vadd.s32 4294967169, %v1047_v40  ;;  %v7605_v55 = vadd.s32 4294967169, %v1255_v44  ;;  %v319_v58 = vshrl.u32 %v318_v48, 23  ;;  %v88_v59 = vmul.f32 %v62_v20, %v52_v31 }
  0x9f   :  { %v949_v60 = vadd.s32 1, %v7593_v50  ;;  %v8561_v62 = vmul.f32 10.0, %v87_v38  ;;  %v80_v63 = vmul.f32 %v62_v20, %v42_v41  ;;  %v1157_v0 = vadd.s32 1, %v7601_v52 }
  0xa0   :  { %v1053_v61 = vadd.s32 1, %v7597_v51  ;;  %v423_v1 = vshrl.u32 %v422_v53, 23  ;;  %v1261_v2 = vadd.s32 1, %v7605_v55  ;;  %v7561_v3 = vadd.s32 4294967169, %v111_v56 }
  0xa1   :  { %14976 = vst [vmem:[#allocation14_spill] sm:$0xff] %v8561_v62  ;;  %v7565_v4 = vadd.s32 4294967169, %v215_v57  ;;  %v7569_v7 = vadd.s32 4294967169, %v319_v58  ;;  %v8563_v8 = vmul.f32 10.0, %v88_v59  ;;  %vm950_vm0 = vcmp.gt.s32.totalorder %v949_v60, 0 }
  0xa2   :  { %vm1054_vm1 = vcmp.gt.s32.totalorder %v1053_v61, 0  ;;  %v1358_v9 = vand.u32 2139095040, %v8561_v62  ;;  %v8566_v10 = vmul.f32 10.0, %v80_v63  ;;  %vm1158_vm2 = vcmp.gt.s32.totalorder %v1157_v0, 0 }
  0xa3   :  { %14977 = vst [vmem:[#allocation15_spill] sm:$0xff] %v8563_v8  ;;  %v7573_v11 = vadd.s32 4294967169, %v423_v1  ;;  %v90_v12 = vmul.f32 %v8531_v21, %v52_v31  ;;  %vm1262_vm3 = vcmp.gt.s32.totalorder %v1261_v2, 0  ;;  %v117_v13 = vadd.s32 1, %v7561_v3 }
  0xa4   :  { %v221_v14 = vadd.s32 1, %v7565_v4  ;;  %v951_v15 = vsel %vm950_vm0, %v949_v60, 0  ;;  %v1055_v16 = vsel %vm1054_vm1, %v1053_v61, 0  ;;  %v325_v17 = vadd.s32 1, %v7569_v7 }
  0xa5   :  { %v1462_v18 = vand.u32 2139095040, %v8563_v8  ;;  %v1159_v19 = vsel %vm1158_vm2, %v1157_v0, 0  ;;  %v8570_v20 = vmul.f32 10.0, %v89_v47  ;;  %v1359_v22 = vshrl.u32 %v1358_v9, 23 }
  0xa6   :  { %v630_v23 = vand.u32 2139095040, %v8566_v10  ;;  %v8573_v28 = vshrl.u32 %v951_v15, 5  ;;  %v1263_v29 = vsel %vm1262_vm3, %v1261_v2, 0  ;;  %v429_v30 = vadd.s32 1, %v7573_v11 }
  0xa7   :  { %14978 = vst [vmem:[#allocation16_spill] sm:$0xff] %v8570_v20  ;;  %v8575_v32 = vmul.f32 10.0, %v90_v12  ;;  %v8577_v31 = vand.u32 31, %v951_v15  ;;  %v8579_v33 = vshrl.u32 %v1055_v16, 5  ;;  %v8581_v34 = vand.u32 31, %v1055_v16 }
  0xa8   :  { %14979 = vst [vmem:[#allocation17_spill] sm:$0xff] %v8573_v28  ;;  %v82_v38 = vmul.f32 %v8531_v21, %v42_v41  ;;  %v8584_v39 = vshrl.u32 %v1159_v19, 5  ;;  %v8586_v40 = vand.u32 31, %v1159_v19  ;;  %vm118_vm4 = vcmp.gt.s32.totalorder %v117_v13, 0 }
  0xa9   :  { %14980 = vst [vmem:[#allocation18_spill] sm:$0xff] %v8575_v32  ;;  %14981 = vst [vmem:[#allocation19_spill] sm:$0xff] %v8577_v31  ;;  %v1463_v42 = vshrl.u32 %v1462_v18, 23  ;;  %vm222_vm5 = vcmp.gt.s32.totalorder %v221_v14, 0  ;;  %v7609_v44 = vadd.s32 4294967169, %v1359_v22  ;;  %v1566_v45 = vand.u32 2139095040, %v8570_v20 }
  0xaa   :  { %14982 = vst [vmem:[#allocation20_spill] sm:$0xff] %v8579_v33  ;;  %14983 = vst [vmem:[#allocation21_spill] sm:$0xff] %v8581_v34  ;;  %v631_v46 = vshrl.u32 %v630_v23, 23  ;;  %v8589_v47 = vshrl.u32 %v1263_v29, 5  ;;  %vm326_vm6 = vcmp.gt.s32.totalorder %v325_v17, 0  ;;  %v1670_v48 = vand.u32 2139095040, %v8575_v32 }
  0xab   :  { %14984 = vst [vmem:[#allocation22_spill] sm:$0xff] %v8584_v39  ;;  %14985 = vst [vmem:[#allocation23_spill] sm:$0xff] %v8586_v40  ;;  %v8592_v50 = vmul.f32 10.0, %v79_v49  ;;  %v8595_v21 = vsub.s32 32, %v8577_v31  ;;  %v8597_v41 = vand.u32 31, %v1263_v29  ;;  %vm430_vm7 = vcmp.gt.s32.totalorder %v429_v30, 0 }
  0xac   :  { %14986 = vst [vmem:[#allocation24_spill] sm:$0xff] %v8589_v47  ;;  %v8599_v51 = vmul.f32 10.0, %v82_v38  ;;  %v8602_v52 = vsub.s32 32, %v8581_v34  ;;  %v119_v53 = vsel %vm118_vm4, %v117_v13, 0  ;;  %v223_v55 = vsel %vm222_vm5, %v221_v14, 0 }
  0xad   :  { %14987 = vst [vmem:[#allocation25_spill] sm:$0xff] %v8595_v21  ;;  %14988 = vst [vmem:[#allocation26_spill] sm:$0xff] %v8597_v41  ;;  %v7613_v56 = vadd.s32 4294967169, %v1463_v42  ;;  %v327_v57 = vsel %vm326_vm6, %v325_v17, 0  ;;  %v1365_v58 = vadd.s32 1, %v7609_v44  ;;  %v1567_v59 = vshrl.u32 %v1566_v45, 23 }
  0xae   :  { %14989 = vst [vmem:[#allocation27_spill] sm:$0xff] %v8602_v52  ;;  %v7581_v60 = vadd.s32 4294967169, %v631_v46  ;;  %v431_v49 = vsel %vm430_vm7, %v429_v30, 0  ;;  %v1671_v61 = vshrl.u32 %v1670_v48, 23  ;;  %v8605_v63 = vmul.f32 10.0, %v8559_v54 }
  0xaf   :  { %v526_v0 = vand.u32 2139095040, %v8592_v50  ;;  %v8609_v1 = vsub.s32 32, %v8586_v40  ;;  %v8611_v2 = vand.u32 31, %v119_v53  ;;  %v838_v4 = vand.u32 2139095040, %v8599_v51 }
  0xb0   :  { %14990 = vst [vmem:[#allocation28_spill] sm:$0xff] %v8605_v63  ;;  %v637_v3 = vadd.s32 1, %v7581_v60  ;;  %v8615_v7 = vsub.s32 32, %v8597_v41  ;;  %v8617_v9 = vshrl.u32 %v119_v53, 5  ;;  %v225_v11 = vand.u32 31, %v223_v55 }
  0xb1   :  { %14991 = vst [vmem:[#allocation29_spill] sm:$0xff] %v8609_v1  ;;  %v1469_v12 = vadd.s32 1, %v7613_v56  ;;  %v8619_v13 = vand.u32 31, %v327_v57  ;;  %v8621_v54 = vand.u32 31, %v431_v49  ;;  %vm1366_vm8 = vcmp.gt.s32.totalorder %v1365_v58, 0 }
  0xb2   :  { %14992 = vst [vmem:[#allocation30_spill] sm:$0xff] %v8615_v7  ;;  %v7617_v14 = vadd.s32 4294967169, %v1567_v59  ;;  %v8623_v15 = vshrl.u32 %v223_v55, 5  ;;  %v7621_v16 = vadd.s32 4294967169, %v1671_v61  ;;  %v527_v17 = vshrl.u32 %v526_v0, 23 }
  0xb3   :  { %v734_v18 = vand.u32 2139095040, %v8605_v63  ;;  %v8627_v19 = vsub.s32 32, %v8611_v2  ;;  %vm638_vm9 = vcmp.gt.s32.totalorder %v637_v3, 0  ;;  %v839_v22 = vshrl.u32 %v838_v4, 23 }
  0xb4   :  { %v14811_v23 = vand.u32 2147483647, %v8549_v36  ;;  %v226_v29 = vsub.s32 32, %v225_v11  ;;  %v8630_v30 = vshrl.u32 %v327_v57, 5  ;;  %v8632_v38 = vsel %vm1366_vm8, %v1365_v58, 0 }
  0xb5   :  { %vm1470_vm10 = vcmp.gt.s32.totalorder %v1469_v12, 0  ;;  %v8635_v42 = vsub.s32 32, %v8619_v13  ;;  %v8637_v44 = vshrl.u32 %v431_v49, 5  ;;  %v8640_v45 = vsub.s32 32, %v8621_v54 }
  0xb6   :  { %v8642_v46 = vadd.s32 1, %v7617_v14  ;;  %v8644_v48 = vadd.s32 1, %v7621_v16  ;;  %v8646_v53 = vadd.s32 4294967169, %v527_v17  ;;  %v639_v55 = vsel %vm638_vm9, %v637_v3, 0 }
  0xb7   :  { %v8648_v56 = vshrl.u32 %v734_v18, 23  ;;  %v8651_v57 = vand.u32 31, %v8632_v38  ;;  %v8653_v58 = vsel %vm1470_vm10, %v1469_v12, 0  ;;  %v7589_v59 = vadd.s32 4294967169, %v839_v22 }
  0xb8   :  { %v218_v60 = vand.u32 8388607, %v14811_v23  ;;  %v14826_v49 = vmov 683565275   ;;  %v14819_v0 = vmov 2475754826  }
  0xb9   :  { %14993 = vst [vmem:[#allocation31_spill] sm:$0xff] %v8651_v57  ;;  %v228_v61 = vshll.u32 %v14826_v49, %v225_v11  ;;  %v229_v4 = vshrl.u32 %v14819_v0, %v226_v29  ;;  %v231_v14 = vshll.u32 %v14819_v0, %v225_v11  ;;  %v14834_v3 = vmov 2131351028  }
  0xba   :  { %v232_v16 = vshrl.u32 %v14834_v3, %v226_v29  ;;  %v641_v17 = vand.u32 31, %v639_v55  ;;  %v227_v18 = vshrl.u32 %v14826_v49, %v226_v29  ;;  %v234_v12 = vshll.u32 %v14834_v3, %v225_v11 }
  0xbb   :  { %v14828_v22 = vmov 2102212464   ;;  %v230_v23 = vor.u32 %v229_v4, %v228_v61  ;;  %v14832_v39 = vmov 920167782   ;;  %v219_v40 = vor.u32 8388608, %v218_v60 }
  0xbc   :  { %v235_v5 = vshrl.u32 %v14828_v22, %v226_v29  ;;  %v233_v6 = vor.u32 %v232_v16, %v231_v14  ;;  %v237_v20 = vshll.u32 %v14828_v22, %v225_v11  ;;  %v238_v1 = vshrl.u32 %v14832_v39, %v226_v29 }
  0xbd   :  { %v240_v26 = vshll.u32 %v14832_v39, %v225_v11  ;;  %v14830_v62 = vmov 1326507024   ;;  %vm243_vm11 = vcmp.lt.s32.totalorder %v8623_v15, 1  ;;  %vm245_vm12 = vcmp.lt.s32.totalorder %v8623_v15, 3 }
  0xbe   :  { %v236_v0 = vor.u32 %v235_v5, %v234_v12  ;;  %v241_v28 = vshrl.u32 %v14830_v62, %v226_v29  ;;  %v239_v49 = vor.u32 %v238_v1, %v237_v20  ;;  %vm246_vm13 = vcmp.lt.s32.totalorder %v8623_v15, 4 }
  0xbf   :  { %v247_v4 = vsel %vm243_vm11, %v227_v18, %v230_v23  ;;  %v251_v16 = vsel %vm243_vm11, %v230_v23, %v233_v6  ;;  %v642_v22 = vsub.s32 32, %v641_v17  ;;  %vm244_vm14 = vcmp.lt.s32.totalorder %v8623_v15, 2 }
  0xc0   :  { %v242_v61 = vor.u32 %v241_v28, %v240_v26  ;;  %v248_v14 = vsel %vm246_vm13, %v236_v0, 2102212464  ;;  %v252_v60 = vsel %vm246_vm13, %v239_v49, 920167782  ;;  %v255_v11 = vsel %vm243_vm11, %v233_v6, %v236_v0 }
  0xc1   :  { %v249_v5 = vsel %vm245_vm12, %v233_v6, %v248_v14  ;;  %v253_v20 = vsel %vm245_vm12, %v236_v0, %v252_v60  ;;  %v259_v29 = vshll.u32 %v219_v40, 8  ;;  %v14836_v28 = vand.u32 2147483647, %v8566_v10 }
  0xc2   :  { %v256_v1 = vsel %vm246_vm13, %v242_v61, 1326507024  ;;  %v250_v12 = vsel %vm244_vm14, %v247_v4, %v249_v5  ;;  %v254_v62 = vsel %vm244_vm14, %v251_v16, %v253_v20  ;;  %v8680_v23 = vand.u32 31, %v8653_v58 }
  0xc3   :  { %v257_v26 = vsel %vm245_vm12, %v239_v49, %v256_v1  ;;  %v8682_v14 = vmul.u32.u64.low %v259_v29, %v254_v62  ;;  %v8683_v6 = vmul.u32.u64.high %v259_v29, %v254_v62, %v8682_v14  ;;  %v640_v39 = vshrl.u32 %v639_v55, 5 }
  0xc4   :  { %14994 = vst [vmem:[#allocation32_spill] sm:$0xff] %v8680_v23  ;;  %v258_v18 = vsel %vm244_vm14, %v255_v11, %v257_v26  ;;  %v634_v40 = vand.u32 8388607, %v14836_v28  ;;  %v845_v61 = vadd.s32 1, %v7589_v59  ;;  %v266_v15 = vmul.u32 %v259_v29, %v250_v12 }
  0xc5   :  { %v8686_v3 = vmul.u32.u64.low %v259_v29, %v258_v18  ;;  %v8687_v0 = vmul.u32.u64.high %v259_v29, %v258_v18, %v8686_v3  ;;  %v14995_v49 = vmov 683565275   ;;  %v14996_v16 = vmov 2475754826  }
  0xc6   :  { %v644_v4 = vshll.u32 %v14995_v49, %v641_v17  ;;  %v645_v5 = vshrl.u32 %v14996_v16, %v642_v22  ;;  %vm1574_vm15 = vcmp.gt.s32.totalorder %v8642_v46, 0  ;;  %v647_v60 = vshll.u32 %v14996_v16, %v641_v17 }
  0xc7   :  { %v14997_v62 = vmov 2131351028   ;;  %v14998_v20 = vmov 2102212464   ;;  %v269_v3 = vadd.s32 1, %v8683_v6  ;;  %vm268_vm0 = vc.u32 %v8687_v0, %v8682_v14 }
  0xc8   :  { %v648_v11 = vshrl.u32 %v14997_v62, %v642_v22  ;;  %v650_v55 = vshll.u32 %v14997_v62, %v641_v17  ;;  %v651_v1 = vshrl.u32 %v14998_v20, %v642_v22  ;;  %v646_v26 = vor.u32 %v645_v5, %v644_v4 }
  0xc9   :  { %v653_v59 = vshll.u32 %v14998_v20, %v641_v17  ;;  %v14999_v29 = vmov 920167782   ;;  %v635_v18 = vor.u32 8388608, %v634_v40  ;;  %v270_v21 = vsel %vm268_vm0, %v269_v3, %v8683_v6 }
  0xca   :  { %v654_v12 = vshrl.u32 %v14999_v29, %v642_v22  ;;  %v649_v28 = vor.u32 %v648_v11, %v647_v60  ;;  %v652_v31 = vor.u32 %v651_v1, %v650_v55  ;;  %v656_v32 = vshll.u32 %v14999_v29, %v641_v17 }
  0xcb   :  { %v15000_v47 = vmov 1326507024   ;;  %v271_v41 = vadd.s32 %v270_v21, %v266_v15  ;;  %v643_v4 = vshrl.u32 %v14995_v49, %v642_v22  ;;  %vm659_vm1 = vcmp.lt.s32.totalorder %v640_v39, 1 }
  0xcc   :  { %v655_v24 = vor.u32 %v654_v12, %v653_v59  ;;  %v657_v7 = vshrl.u32 %v15000_v47, %v642_v22  ;;  %vm660_vm2 = vcmp.lt.s32.totalorder %v640_v39, 2  ;;  %vm661_vm3 = vcmp.lt.s32.totalorder %v640_v39, 3 }
  0xcd   :  { %vm662_vm4 = vcmp.lt.s32.totalorder %v640_v39, 4  ;;  %v667_v27 = vsel %vm659_vm1, %v646_v26, %v649_v28  ;;  %v272_v8 = vadd.s32 536870912, %v271_v41  ;;  %v671_v11 = vsel %vm659_vm1, %v649_v28, %v652_v31 }
  0xce   :  { %v658_v5 = vor.u32 %v657_v7, %v656_v32  ;;  %v664_v40 = vsel %vm662_vm4, %v652_v31, 2102212464  ;;  %v668_v60 = vsel %vm662_vm4, %v655_v24, 920167782  ;;  %v663_v55 = vsel %vm659_vm1, %v643_v4, %v646_v26 }
  0xcf   :  { %v669_v6 = vsel %vm661_vm3, %v652_v31, %v668_v60  ;;  %v675_v3 = vshll.u32 %v635_v18, 8  ;;  %v273_v17 = vshrl.u32 %v272_v8, 30  ;;  %v665_v59 = vsel %vm661_vm3, %v649_v28, %v664_v40 }
  0xd0   :  { %v672_v1 = vsel %vm662_vm4, %v658_v5, 1326507024  ;;  %v670_v21 = vsel %vm660_vm2, %v667_v27, %v669_v6  ;;  %v8709_v22 = vshrl.u32 %v8632_v38, 5  ;;  %vm846_vm5 = vcmp.gt.s32.totalorder %v845_v61, 0 }
  0xd1   :  { %v673_v15 = vsel %vm661_vm3, %v655_v24, %v672_v1  ;;  %v8712_v7 = vmul.u32.u64.low %v675_v3, %v670_v21  ;;  %v8713_v12 = vmul.u32.u64.high %v675_v3, %v670_v21, %v8712_v7  ;;  %v274_v33 = vshll.u32 %v273_v17, 30 }
  0xd2   :  { %15001 = vst [vmem:[#allocation33_spill] sm:$0xff] %v8709_v22  ;;  %v674_v32 = vsel %vm660_vm2, %v671_v11, %v673_v15  ;;  %v8720_v8 = vsub.s32 32, %v8651_v57  ;;  %v8723_v27 = vshrl.u32 %v8653_v58, 5  ;;  %v8728_v24 = vsel %vm1574_vm15, %v8642_v46, 0 }
  0xd3   :  { %v8716_v26 = vmul.u32.u64.low %v675_v3, %v674_v32  ;;  %v8717_v31 = vmul.u32.u64.high %v675_v3, %v674_v32, %v8716_v26  ;;  %15002 = vst [vmem:[#allocation34_spill] sm:$0xff] %v8728_v24  ;;  %v666_v38 = vsel %vm660_vm2, %v663_v55, %v665_v59  ;;  %v8733_v28 = vshll.u32 %v14998_v20, %v8651_v57 }
  0xd4   :  { %v8737_v18 = vshll.u32 %v14999_v29, %v8651_v57  ;;  %v8740_v4 = vsub.s32 32, %v8680_v23  ;;  %v8742_v58 = vsub.s32 %v271_v41, %v274_v33  ;;  %v8744_v5 = vsel %vm846_vm5, %v845_v61, 0 }
  0xd5   :  { %15003 = vst [vmem:[#allocation35_spill] sm:$0xff] %v8733_v28  ;;  %v297_v40 = vsub.s32 4, %v273_v17  ;;  %v685_v46 = vadd.s32 1, %v8713_v12  ;;  %v14853_v39 = vand.u32 2147483647, %v8553_v43  ;;  %v8750_v60 = vshll.u32 %v14998_v20, %v8680_v23 }
  0xd6   :  { %15004 = vst [vmem:[#allocation36_spill] sm:$0xff] %v8737_v18  ;;  %v277_v11 = vsub.s32 0, %v8742_v58  ;;  %v682_v55 = vmul.u32 %v675_v3, %v666_v38  ;;  %vm684_vm6 = vc.u32 %v8717_v31, %v8712_v7  ;;  %v8757_v33 = vshll.u32 %v14999_v29, %v8680_v23 }
  0xd7   :  { %v8760_v41 = vadd.s32 1, %v8646_v53  ;;  %v15005_v61 = vand.u32 2147483647, %v8549_v36  ;;  %v686_v1 = vsel %vm684_vm6, %v685_v46, %v8713_v12  ;;  %v8770_v3 = vand.u32 31, %v8744_v5 }
  0xd8   :  { %vm213_vm8 = vcmp.lt.s32.totalorder %v8549_v36, 0  ;;  %v7566_v59 = vmin.u32 %v277_v11, %v8742_v58  ;;  %v687_v21 = vadd.s32 %v686_v1, %v682_v55  ;;  %v267_v53 = vadd.s32 %v8682_v14, %v8687_v0 }
  0xd9   :  { %vm8764_vm7 = vcmp.le.f32.partialorder %v15005_v61, 0.7853982  ;;  %v298_v15 = vsel %vm213_vm8, %v297_v40, %v273_v17  ;;  %vm629_vm9 = vcmp.lt.s32.totalorder %v8566_v10, 0  ;;  %v426_v32 = vand.u32 8388607, %v14853_v39 }
  0xda   :  { %v446_v12 = vshrl.u32 %v14999_v29, %v8640_v45  ;;  %v279_v26 = vclz %v7566_v59  ;;  %v435_v38 = vshrl.u32 %v14995_v49, %v8640_v45  ;;  %v437_v46 = vshrl.u32 %v14996_v16, %v8640_v45 }
  0xdb   :  { %v440_v14 = vshrl.u32 %v14997_v62, %v8640_v45  ;;  %v688_v0 = vadd.s32 536870912, %v687_v21  ;;  %v436_v17 = vshll.u32 %v14995_v49, %v8621_v54  ;;  %v443_v40 = vshrl.u32 %v14998_v20, %v8640_v45 }
  0xdc   :  { %v445_v11 = vshll.u32 %v14998_v20, %v8621_v54  ;;  %v7567_v55 = vadd.s32 4294967294, %v279_v26  ;;  %v300_v61 = vsel %vm8764_vm7, 0, %v298_v15  ;;  %v15008_v1 = vand.u32 2147483647, %v8566_v10 }
  0xdd   :  { %v439_v39 = vshll.u32 %v14996_v16, %v8621_v54  ;;  %v449_v57 = vshrl.u32 %v15000_v47, %v8640_v45  ;;  %v689_v18 = vshrl.u32 %v688_v0, 30  ;;  %v427_v24 = vor.u32 8388608, %v426_v32 }
  0xde   :  { %vm8799_vm10 = vcmp.le.f32.partialorder %v15008_v1, 0.7853982  ;;  %v442_v26 = vshll.u32 %v14997_v62, %v8621_v54  ;;  %v447_v22 = vor.u32 %v446_v12, %v445_v11  ;;  %vm7568_vm11 = vcmp.lt.s32.totalorder %v7567_v55, 0 }
  0xdf   :  { %v438_v15 = vor.u32 %v437_v46, %v436_v17  ;;  %v441_v23 = vor.u32 %v440_v14, %v439_v39  ;;  %v448_v1 = vshll.u32 %v14999_v29, %v8621_v54  ;;  %vm534_vm12 = vcmp.gt.s32.totalorder %v8760_v41, 0 }
  0xe0   :  { %v282_v52 = vsel %vm7568_vm11, 0, %v7567_v55  ;;  %v690_v34 = vshll.u32 %v689_v18, 30  ;;  %v713_v25 = vsub.s32 4, %v689_v18  ;;  %v444_v63 = vor.u32 %v443_v40, %v442_v26 }
  0xe1   :  { %v283_v28 = vsub.s32 32, %v282_v52  ;;  %v287_v45 = vsub.s32 4294967266, %v282_v52  ;;  %v450_v0 = vor.u32 %v449_v57, %v448_v1  ;;  %vm454_vm13 = vcmp.lt.s32.totalorder %v8637_v44, 4 }
  0xe2   :  { %v8813_v32 = vsub.s32 %v687_v21, %v690_v34  ;;  %vm451_vm14 = vcmp.lt.s32.totalorder %v8637_v44, 1  ;;  %vm453_vm15 = vcmp.lt.s32.totalorder %v8637_v44, 3  ;;  %v460_v54 = vsel %vm454_vm13, %v447_v22, 920167782 }
  0xe3   :  { %v284_v39 = vshll.u32 %v8742_v58, %v282_v52  ;;  %v285_v12 = vshrl.u32 %v267_v53, %v283_v28  ;;  %v288_v46 = vadd.s32 127, %v287_v45  ;;  %v714_v14 = vsel %vm629_vm9, %v713_v25, %v689_v18 }
  0xe4   :  { %v693_v57 = vsub.s32 0, %v8813_v32  ;;  %v459_v34 = vsel %vm451_vm14, %v438_v15, %v441_v23  ;;  %v461_v21 = vsel %vm453_vm15, %v444_v63, %v460_v54  ;;  %v463_v17 = vsel %vm451_vm14, %v441_v23, %v444_v63 }
  0xe5   :  { %v286_v40 = vor.u32 %v285_v12, %v284_v39  ;;  %v289_v11 = vshll.u32 %v288_v46, 23  ;;  %v456_v52 = vsel %vm454_vm13, %v444_v63, 2102212464  ;;  %v464_v28 = vsel %vm454_vm13, %v450_v0, 1326507024 }
  0xe6   :  { %v7582_v25 = vmin.u32 %v693_v57, %v8813_v32  ;;  %v716_v18 = vsel %vm8799_vm10, 0, %v714_v14  ;;  %vm452_vm0 = vcmp.lt.s32.totalorder %v8637_v44, 2  ;;  %v465_v58 = vsel %vm453_vm15, %v447_v22, %v464_v28 }
  0xe7   :  { %v290_v53 = vor.u32 4788187, %v289_v11  ;;  %v462_v55 = vsel %vm452_vm0, %v459_v34, %v461_v21  ;;  %v466_v63 = vsel %vm452_vm0, %v463_v17, %v465_v58  ;;  %v467_v26 = vshll.u32 %v427_v24, 8 }
  0xe8   :  { %v304_v1 = vadd.s32 3, %v300_v61  ;;  %v695_v45 = vclz %v7582_v25  ;;  %v455_v0 = vsel %vm451_vm14, %v435_v38, %v438_v15  ;;  %v457_v54 = vsel %vm453_vm15, %v441_v23, %v456_v52 }
  0xe9   :  { %v291_v39 = vand.u32 2147483647, %v290_v53  ;;  %v293_v12 = vcvt.s32.f32 %v286_v40  ;;  %v8847_v46 = vmul.u32.u64.low %v467_v26, %v466_v63  ;;  %v8848_v22 = vmul.u32.u64.high %v467_v26, %v466_v63, %v8847_v46 }
  0xea   :  { %v7583_v14 = vadd.s32 4294967294, %v695_v45  ;;  %v720_v57 = vadd.s32 3, %v716_v18  ;;  %v8850_v34 = vmul.u32.u64.low %v467_v26, %v462_v55  ;;  %v8851_v21 = vmul.u32.u64.high %v467_v26, %v462_v55, %v8850_v34 }
  0xeb   :  { %v8857_v24 = vsel %vm534_vm12, %v8760_v41, 0  ;;  %v8860_v38 = vshrl.u32 %v8744_v5, 5  ;;  %v294_v23 = vmul.f32 %v293_v12, %v291_v39  ;;  %v835_v61 = vand.u32 2147483647, %v8599_v51 }
  0xec   :  { %v850_v15 = vsub.s32 32, %v8770_v3  ;;  %v683_v17 = vadd.s32 %v8712_v7, %v8717_v31  ;;  %vm7584_vm1 = vcmp.lt.s32.totalorder %v7583_v14, 0  ;;  %v458_v40 = vsel %vm452_vm0, %v455_v0, %v457_v54 }
  0xed   :  { %v295_v11 = vxor.u32 2147483648, %v294_v23  ;;  %v8868_v52 = vand.u32 3, %v304_v1  ;;  %v698_v41 = vsel %vm7584_vm1, 0, %v7583_v14  ;;  %vm476_vm2 = vc.u32 %v8848_v22, %v8850_v34 }
  0xee   :  { %v699_v5 = vsub.s32 32, %v698_v41  ;;  %v703_v28 = vsub.s32 4294967266, %v698_v41  ;;  %v8872_v25 = vand.u32 3, %v720_v57  ;;  %v477_v18 = vadd.s32 1, %v8851_v21 }
  0xef   :  { %v296_v7 = vsel %vm213_vm8, %v295_v11, %v294_v23  ;;  %v700_v31 = vshll.u32 %v8813_v32, %v698_v41  ;;  %v474_v44 = vmul.u32 %v467_v26, %v458_v40  ;;  %v8880_v58 = vand.u32 8388607, %v835_v61 }
  0xf0   :  { %v299_v53 = vsel %vm8764_vm7, %v8549_v36, %v296_v7  ;;  %v701_v55 = vshrl.u32 %v683_v17, %v699_v5  ;;  %v704_v63 = vadd.s32 127, %v703_v28  ;;  %v478_v1 = vsel %vm476_vm2, %v477_v18, %v8851_v21 }
  0xf1   :  { %8160 = vcosq.f32 %v299_v53  ;;  %v479_v45 = vadd.s32 %v478_v1, %v474_v44  ;;  %v853_v0 = vshrl.u32 %v14996_v16, %v850_v15  ;;  %v856_v54 = vshrl.u32 %v14997_v62, %v850_v15 }
  0xf2   :  { %8162 = vsinq.f32 %v299_v53  ;;  %v702_v32 = vor.u32 %v701_v55, %v700_v31  ;;  %v705_v26 = vshll.u32 %v704_v63, 23  ;;  %v859_v39 = vshrl.u32 %v14998_v20, %v850_v15 }
  0xf3   :  { %v480_v12 = vadd.s32 536870912, %v479_v45  ;;  %v858_v6 = vshll.u32 %v14997_v62, %v8770_v3  ;;  %v861_v46 = vshll.u32 %v14998_v20, %v8770_v3  ;;  %v862_v14 = vshrl.u32 %v14999_v29, %v850_v15 }
  0xf4   :  { %v706_v57 = vor.u32 4788187, %v705_v26  ;;  %vm421_vm3 = vcmp.lt.s32.totalorder %v8553_v43, 0  ;;  %v852_v21 = vshll.u32 %v14995_v49, %v8770_v3  ;;  %v855_v23 = vshll.u32 %v14996_v16, %v8770_v3 }
  0xf5   :  { %v865_v17 = vshrl.u32 %v15000_v47, %v850_v15  ;;  %vm310_vm4 = vcmp.eq.s32.totalorder %v8868_v52, 2  ;;  %v481_v40 = vshrl.u32 %v480_v12, 30  ;;  %v860_v11 = vor.u32 %v859_v39, %v858_v6 }
  0xf6   :  { %v863_v41 = vor.u32 %v862_v14, %v861_v46  ;;  %v864_v5 = vshll.u32 %v14999_v29, %v8770_v3  ;;  %vm307_vm5 = vcmp.eq.s32.totalorder %v8868_v52, 0  ;;  %v707_v28 = vand.u32 2147483647, %v706_v57 }
  0xf7   :  { %v709_v18 = vcvt.s32.f32 %v702_v32  ;;  %v854_v7 = vor.u32 %v853_v0, %v852_v21  ;;  %v857_v31 = vor.u32 %v856_v54, %v855_v23  ;;  %vm306_vm6 = vcmp.lt.s32.totalorder %v8868_v52, 2 }
  0xf8   :  { %v15011_v44 = vand.u32 2147483647, %v8553_v43  ;;  %v482_v55 = vshll.u32 %v481_v40, 30  ;;  %v851_v63 = vshrl.u32 %v14995_v49, %v850_v15  ;;  %v866_v1 = vor.u32 %v865_v17, %v864_v5 }
  0xf9   :  { %vm870_vm8 = vcmp.lt.s32.totalorder %v8860_v38, 4  ;;  %v710_v3 = vmul.f32 %v709_v18, %v707_v28  ;;  %v843_v26 = vor.u32 8388608, %v8880_v58  ;;  %vm867_vm11 = vcmp.lt.s32.totalorder %v8860_v38, 1 }
  0xfa   :  { %vm8907_vm7 = vcmp.le.f32.partialorder %v15011_v44, 0.7853982  ;;  %v876_v0 = vsel %vm870_vm8, %v863_v41, 920167782  ;;  %v8917_v54 = vsub.s32 %v479_v45, %v482_v55  ;;  %v505_v32 = vsub.s32 4, %v481_v40 }
  0xfb   :  { %vm868_vm12 = vcmp.lt.s32.totalorder %v8860_v38, 2  ;;  %v872_v39 = vsel %vm870_vm8, %v860_v11, 2102212464  ;;  %v711_v15 = vxor.u32 2147483648, %v710_v3  ;;  %vm869_vm13 = vcmp.lt.s32.totalorder %v8860_v38, 3  ;;  %v8161_v46 = vpop.eup %8160 }
  0xfc   :  { %v871_v12 = vsel %vm867_vm11, %v851_v63, %v854_v7  ;;  %v875_v6 = vsel %vm867_vm11, %v854_v7, %v857_v31  ;;  %v485_v58 = vsub.s32 0, %v8917_v54  ;;  %v877_v14 = vsel %vm869_vm13, %v860_v11, %v876_v0  ;;  %v8163_v21 = vpop.eup %8162 }
  0xfd   :  { %v879_v57 = vsel %vm867_vm11, %v857_v31, %v860_v11  ;;  %v880_v45 = vsel %vm870_vm8, %v866_v1, 1326507024  ;;  %v311_v23 = vxor.u32 2147483648, %v8161_v46  ;;  %v712_v17 = vsel %vm629_vm9, %v711_v15, %v710_v3 }
  0xfe   :  { %v873_v5 = vsel %vm869_vm13, %v857_v31, %v872_v39  ;;  %v881_v28 = vsel %vm869_vm13, %v863_v41, %v880_v45  ;;  %v308_v18 = vxor.u32 2147483648, %v8163_v21  ;;  %v715_v7 = vsel %vm8799_vm10, %v8566_v10, %v712_v17 }
  0xff   :  { %v7574_v44 = vmin.u32 %v485_v58, %v8917_v54  ;;  %v506_v11 = vsel %vm421_vm3, %v505_v32, %v481_v40  ;;  %v312_v55 = vsel %vm310_vm4, %v311_v23, %v8163_v21  ;;  %8164 = vcosq.f32 %v715_v7 }
 0x100   :  { %v878_v63 = vsel %vm868_vm12, %v875_v6, %v877_v14  ;;  %v882_v41 = vsel %vm868_vm12, %v879_v57, %v881_v28  ;;  %v309_v31 = vsel %vm307_vm5, %v8161_v46, %v308_v18  ;;  %8166 = vsinq.f32 %v715_v7 }
 0x101   :  { %v487_v59 = vclz %v7574_v44  ;;  %v883_v1 = vshll.u32 %v843_v26, 8  ;;  %v8944_v3 = vshrl.u32 %v14999_v29, %v8720_v8  ;;  %v313_v40 = vsel %vm306_vm6, %v309_v31, %v312_v55 }
 0x102   :  { %v508_v0 = vsel %vm8907_vm7, 0, %v506_v11  ;;  %v874_v32 = vsel %vm868_vm12, %v871_v12, %v873_v5  ;;  %v107_v46 = vand.u32 2147483647, %v8547_v35  ;;  %v8957_v26 = vand.u32 31, %v8857_v24 }
 0x103   :  { %v7575_v39 = vadd.s32 4294967294, %v487_v59  ;;  %v8952_v15 = vmul.u32.u64.low %v883_v1, %v882_v41  ;;  %v8953_v6 = vmul.u32.u64.high %v883_v1, %v882_v41, %v8952_v15  ;;  %vm303_vm9 = vweird.f32 %v8549_v36 }
 0x104   :  { %v8960_v58 = vmul.u32.u64.low %v883_v1, %v878_v63  ;;  %v8961_v52 = vmul.u32.u64.high %v883_v1, %v878_v63, %v8960_v58  ;;  %vm723_vm10 = vcmp.eq.s32.totalorder %v8872_v25, 0  ;;  %vm726_vm14 = vcmp.eq.s32.totalorder %v8872_v25, 2 }
 0x105   :  { %v475_v38 = vadd.s32 %v8850_v34, %v8848_v22  ;;  %vm7576_vm15 = vcmp.lt.s32.totalorder %v7575_v39, 0  ;;  %v314_v12 = vsel %vm303_vm9, nan, %v313_v40  ;;  %vm722_vm0 = vcmp.lt.s32.totalorder %v8872_v25, 2 }
 0x106   :  { %v490_v14 = vsel %vm7576_vm15, 0, %v7575_v39  ;;  %v8969_v57 = vadd.s32 3, %v508_v0  ;;  %v890_v45 = vmul.u32 %v883_v1, %v874_v32  ;;  %vm719_vm1 = vweird.f32 %v8566_v10 }
 0x107   :  { %v491_v36 = vsub.s32 32, %v490_v14  ;;  %v495_v21 = vsub.s32 4294967266, %v490_v14  ;;  %v8974_v23 = vand.u32 8388607, %v107_v46  ;;  %v123_v17 = vshrl.u32 %v14995_v49, %v8627_v19 }
 0x108   :  { %vm892_vm2 = vc.u32 %v8953_v6, %v8960_v58  ;;  %v893_v22 = vadd.s32 1, %v8961_v52  ;;  %v124_v34 = vshll.u32 %v14995_v49, %v8611_v2  ;;  %v125_v5 = vshrl.u32 %v14996_v16, %v8627_v19 }
 0x109   :  { %v492_v28 = vshll.u32 %v8917_v54, %v490_v14  ;;  %v493_v18 = vshrl.u32 %v475_v38, %v491_v36  ;;  %v496_v7 = vadd.s32 127, %v495_v21  ;;  %v127_v44 = vshll.u32 %v14996_v16, %v8611_v2  ;;  %v8165_v11 = vpop.eup %8164 }
 0x10a   :  { %v894_v55 = vsel %vm892_vm2, %v893_v22, %v8961_v52  ;;  %v130_v63 = vshll.u32 %v14997_v62, %v8611_v2  ;;  %v131_v41 = vshrl.u32 %v14998_v20, %v8627_v19  ;;  %v134_v31 = vshrl.u32 %v14999_v29, %v8627_v19  ;;  %v8167_v59 = vpop.eup %8166 }
 0x10b   :  { %v727_v1 = vxor.u32 2147483648, %v8165_v11  ;;  %v494_v54 = vor.u32 %v493_v18, %v492_v28  ;;  %v497_v40 = vshll.u32 %v496_v7, 23  ;;  %v895_v0 = vadd.s32 %v894_v55, %v890_v45 }
 0x10c   :  { %v724_v32 = vxor.u32 2147483648, %v8167_v59  ;;  %vm837_vm4 = vcmp.lt.s32.totalorder %v8599_v51, 0  ;;  %v126_v39 = vor.u32 %v125_v5, %v124_v34  ;;  %v128_v15 = vshrl.u32 %v14997_v62, %v8627_v19 }
 0x10d   :  { %v133_v52 = vshll.u32 %v14998_v20, %v8611_v2  ;;  %v728_v38 = vsel %vm726_vm14, %v727_v1, %v8167_v59  ;;  %v498_v14 = vor.u32 4788187, %v497_v40  ;;  %v896_v36 = vadd.s32 536870912, %v895_v0 }
 0x10e   :  { %v132_v21 = vor.u32 %v131_v41, %v130_v63  ;;  %v725_v22 = vsel %vm723_vm10, %v8165_v11, %v724_v32  ;;  %v136_v28 = vshll.u32 %v14999_v29, %v8611_v2  ;;  %v137_v34 = vshrl.u32 %v15000_v47, %v8627_v19 }
 0x10f   :  { %v135_v45 = vor.u32 %v134_v31, %v133_v52  ;;  %v729_v5 = vsel %vm722_vm0, %v725_v22, %v728_v38  ;;  %v499_v18 = vand.u32 2147483647, %v498_v14  ;;  %v501_v7 = vcvt.s32.f32 %v494_v54 }
 0x110   :  { %v897_v55 = vshrl.u32 %v896_v36, 30  ;;  %v730_v59 = vsel %vm719_vm1, nan, %v729_v5  ;;  %v129_v63 = vor.u32 %v128_v15, %v127_v44  ;;  %v138_v41 = vor.u32 %v137_v34, %v136_v28 }
 0x111   :  { %vm142_vm5 = vcmp.lt.s32.totalorder %v8617_v9, 4  ;;  %v7841_v11 = vpack.c.bf16 %v730_v59, %v314_v12  ;;  %v502_v31 = vmul.f32 %v501_v7, %v499_v18  ;;  %v115_v40 = vor.u32 8388608, %v8974_v23 }
 0x112   :  { %v898_v1 = vshll.u32 %v897_v55, 30  ;;  %v921_v2 = vsub.s32 4, %v897_v55  ;;  %vm139_vm6 = vcmp.lt.s32.totalorder %v8617_v9, 1  ;;  %vm140_vm8 = vcmp.lt.s32.totalorder %v8617_v9, 2 }
 0x113   :  { %v148_v19 = vsel %vm142_vm5, %v135_v45, 920167782  ;;  %7842 = vmatprep.subr.bf16.mxu0 %v7841_v11  ;;  %v503_v10 = vxor.u32 2147483648, %v502_v31  ;;  %vm141_vm11 = vcmp.lt.s32.totalorder %v8617_v9, 3  ;;  %v144_v12 = vsel %vm142_vm5, %v132_v21, 2102212464 }
 0x114   :  { %v9018_v25 = vsub.s32 %v895_v0, %v898_v1  ;;  %v147_v44 = vsel %vm139_vm6, %v126_v39, %v129_v63  ;;  %v149_v54 = vsel %vm141_vm11, %v132_v21, %v148_v19  ;;  %v151_v32 = vsel %vm139_vm6, %v129_v63, %v132_v21 }
 0x115   :  { %v152_v23 = vsel %vm142_vm5, %v138_v41, 1326507024  ;;  %v504_v15 = vsel %vm421_vm3, %v503_v10, %v502_v31  ;;  %v922_v0 = vsel %vm837_vm4, %v921_v2, %v897_v55  ;;  %v143_v38 = vsel %vm139_vm6, %v123_v17, %v126_v39 }
 0x116   :  { %v901_v52 = vsub.s32 0, %v9018_v25  ;;  %v507_v14 = vsel %vm8907_vm7, %v8553_v43, %v504_v15  ;;  %v145_v36 = vsel %vm141_vm11, %v129_v63, %v144_v12  ;;  %v153_v22 = vsel %vm141_vm11, %v135_v45, %v152_v23 }
 0x117   :  { %v155_v28 = vshll.u32 %v115_v40, 8  ;;  %8168 = vcosq.f32 %v507_v14  ;;  %v150_v34 = vsel %vm140_vm8, %v147_v44, %v149_v54  ;;  %v154_v5 = vsel %vm140_vm8, %v151_v32, %v153_v22 }
 0x118   :  { %v7590_v21 = vmin.u32 %v901_v52, %v9018_v25  ;;  %v538_v18 = vsub.s32 32, %v8957_v26  ;;  %v7585_v17 = vadd.s32 4294967169, %v8648_v56  ;;  %8170 = vsinq.f32 %v507_v14 }
 0x119   :  { %v9040_v39 = vmul.u32.u64.low %v155_v28, %v154_v5  ;;  %v9041_v7 = vmul.u32.u64.high %v155_v28, %v154_v5, %v9040_v39  ;;  %v9044_v53 = vand.u32 3, %v8969_v57  ;;  %vm9048_vm3 = vcmp.le.f32.partialorder %v835_v61, 0.7853982 }
 0x11a   :  { %v903_v55 = vclz %v7590_v21  ;;  %v924_v59 = vsel %vm9048_vm3, 0, %v922_v0  ;;  %v146_v56 = vsel %vm140_vm8, %v143_v38, %v145_v36  ;;  %v9062_v57 = vshrl.u32 %v15000_v47, %v8720_v8 }
 0x11b   :  { %v9056_v63 = vmul.u32.u64.low %v155_v28, %v150_v34  ;;  %v9057_v41 = vmul.u32.u64.high %v155_v28, %v150_v34, %v9056_v63  ;;  %v9066_v61 = vshrl.u32 %v14999_v29, %v8740_v4  ;;  %v523_v31 = vand.u32 2147483647, %v8592_v50 }
 0x11c   :  { %v7591_v11 = vadd.s32 4294967294, %v903_v55  ;;  %v9071_v1 = vshrl.u32 %v15000_v47, %v8740_v4  ;;  %v9074_v9 = vshrl.u32 %v8857_v24, 5  ;;  %v9076_v2 = vadd.s32 1, %v7585_v17 }
 0x11d   :  { %v891_v40 = vadd.s32 %v8960_v58, %v8953_v6  ;;  %vm518_vm7 = vcmp.eq.s32.totalorder %v9044_v53, 2  ;;  %v9081_v19 = vadd.s32 3, %v924_v59  ;;  %v162_v10 = vmul.u32 %v155_v28, %v146_v56 }
 0x11e   :  { %vm7592_vm12 = vcmp.lt.s32.totalorder %v7591_v11, 0  ;;  %vm164_vm13 = vc.u32 %v9041_v7, %v9056_v63  ;;  %v165_v44 = vadd.s32 1, %v9057_v41  ;;  %v539_v24 = vshrl.u32 %v14995_v49, %v538_v18 }
 0x11f   :  { %v906_v12 = vsel %vm7592_vm12, 0, %v7591_v11  ;;  %v540_v54 = vshll.u32 %v14995_v49, %v8957_v26  ;;  %v530_v6 = vand.u32 8388607, %v523_v31  ;;  %v541_v58 = vshrl.u32 %v14996_v16, %v538_v18 }
 0x120   :  { %v907_v32 = vsub.s32 32, %v906_v12  ;;  %v911_v23 = vsub.s32 4294967266, %v906_v12  ;;  %v908_v15 = vshll.u32 %v9018_v25, %v906_v12  ;;  %v166_v52 = vsel %vm164_vm13, %v165_v44, %v9057_v41 }
 0x121   :  { %v544_v0 = vshrl.u32 %v14997_v62, %v538_v18  ;;  %v550_v38 = vshrl.u32 %v14999_v29, %v538_v18  ;;  %v8169_v14 = vpop.eup %8168  ;;  %vm515_vm9 = vcmp.eq.s32.totalorder %v9044_v53, 0  ;;  %v167_v28 = vadd.s32 %v166_v52, %v162_v10 }
 0x122   :  { %v909_v36 = vshrl.u32 %v891_v40, %v907_v32  ;;  %v912_v22 = vadd.s32 127, %v911_v23  ;;  %v547_v21 = vshrl.u32 %v14998_v20, %v538_v18  ;;  %v519_v34 = vxor.u32 2147483648, %v8169_v14  ;;  %v8171_v39 = vpop.eup %8170 }
 0x123   :  { %vm109_vm10 = vcmp.lt.s32.totalorder %v8547_v35, 0  ;;  %v543_v25 = vshll.u32 %v14996_v16, %v8957_v26  ;;  %v549_v5 = vshll.u32 %v14998_v20, %v8957_v26  ;;  %v553_v17 = vshrl.u32 %v15000_v47, %v538_v18 }
 0x124   :  { %v910_v55 = vor.u32 %v909_v36, %v908_v15  ;;  %v913_v59 = vshll.u32 %v912_v22, 23  ;;  %v168_v56 = vadd.s32 536870912, %v167_v28  ;;  %v546_v41 = vshll.u32 %v14997_v62, %v8957_v26 }
 0x125   :  { %v531_v11 = vor.u32 8388608, %v530_v6  ;;  %v542_v40 = vor.u32 %v541_v58, %v540_v54  ;;  %v551_v10 = vor.u32 %v550_v38, %v549_v5  ;;  %v552_v12 = vshll.u32 %v14999_v29, %v8957_v26 }
 0x126   :  { %v914_v44 = vor.u32 4788187, %v913_v59  ;;  %v169_v32 = vshrl.u32 %v168_v56, 30  ;;  %v545_v23 = vor.u32 %v544_v0, %v543_v25  ;;  %v548_v52 = vor.u32 %v547_v21, %v546_v41 }
 0x127   :  { %vm514_vm14 = vcmp.lt.s32.totalorder %v9044_v53, 2  ;;  %v516_v18 = vxor.u32 2147483648, %v8171_v39  ;;  %v520_v15 = vsel %vm518_vm7, %v519_v34, %v8171_v39  ;;  %v917_v36 = vcvt.s32.f32 %v910_v55 }
 0x128   :  { %vm9113_vm15 = vcmp.le.f32.partialorder %v107_v46, 0.7853982  ;;  %v554_v54 = vor.u32 %v553_v17, %v552_v12  ;;  %vm742_vm0 = vcmp.gt.s32.totalorder %v9076_v2, 0  ;;  %v915_v26 = vand.u32 2147483647, %v914_v44 }
 0x129   :  { %v170_v58 = vshll.u32 %v169_v32, 30  ;;  %v193_v0 = vsub.s32 4, %v169_v32  ;;  %vm558_vm1 = vcmp.lt.s32.totalorder %v9074_v9, 4  ;;  %vm555_vm2 = vcmp.lt.s32.totalorder %v9074_v9, 1 }
 0x12a   :  { %vm556_vm5 = vcmp.lt.s32.totalorder %v9074_v9, 2  ;;  %vm557_vm6 = vcmp.lt.s32.totalorder %v9074_v9, 3  ;;  %v564_v38 = vsel %vm558_vm1, %v551_v10, 920167782  ;;  %v918_v22 = vmul.f32 %v917_v36, %v915_v26 }
 0x12b   :  { %v9122_v46 = vsub.s32 %v167_v28, %v170_v58  ;;  %v560_v21 = vsel %vm558_vm1, %v548_v52, 2102212464  ;;  %v563_v34 = vsel %vm555_vm2, %v542_v40, %v545_v23  ;;  %v517_v25 = vsel %vm515_vm9, %v8169_v14, %v516_v18 }
 0x12c   :  { %v565_v5 = vsel %vm557_vm6, %v548_v52, %v564_v38  ;;  %v567_v17 = vsel %vm555_vm2, %v545_v23, %v548_v52  ;;  %v568_v39 = vsel %vm558_vm1, %v554_v54, 1326507024  ;;  %v919_v55 = vxor.u32 2147483648, %v918_v22 }
 0x12d   :  { %v173_v59 = vsub.s32 0, %v9122_v46  ;;  %v194_v56 = vsel %vm109_vm10, %v193_v0, %v169_v32  ;;  %v559_v41 = vsel %vm555_vm2, %v539_v24, %v542_v40  ;;  %v561_v28 = vsel %vm557_vm6, %v545_v23, %v560_v21 }
 0x12e   :  { %v566_v12 = vsel %vm556_vm5, %v563_v34, %v565_v5  ;;  %v569_v14 = vsel %vm557_vm6, %v551_v10, %v568_v39  ;;  %v571_v44 = vshll.u32 %v531_v11, 8  ;;  %v920_v52 = vsel %vm837_vm4, %v919_v55, %v918_v22 }
 0x12f   :  { %v7562_v18 = vmin.u32 %v173_v59, %v9122_v46  ;;  %v570_v36 = vsel %vm556_vm5, %v567_v17, %v569_v14  ;;  %v315_v24 = vand.u32 2147483647, %v8551_v37  ;;  %v923_v40 = vsel %vm9048_vm3, %v8599_v51, %v920_v52 }
 0x130   :  { %v9147_v32 = vand.u32 3, %v9081_v19  ;;  %v9149_v23 = vmul.u32.u64.low %v571_v44, %v570_v36  ;;  %v9150_v10 = vmul.u32.u64.high %v571_v44, %v570_v36, %v9149_v23  ;;  %v521_v11 = vsel %vm514_vm14, %v517_v25, %v520_v15 }
 0x131   :  { %8172 = vcosq.f32 %v923_v40  ;;  %v175_v54 = vclz %v7562_v18  ;;  %v196_v26 = vsel %vm9113_vm15, 0, %v194_v56  ;;  %v562_v58 = vsel %vm556_vm5, %v559_v41, %v561_v28 }
 0x132   :  { %8174 = vsinq.f32 %v923_v40  ;;  %v9158_v45 = vmul.u32.u64.low %v571_v44, %v566_v12  ;;  %v9159_v0 = vmul.u32.u64.high %v571_v44, %v566_v12, %v9158_v45  ;;  %v9164_v19 = vor.u32 %v9066_v61, %v8750_v60 }
 0x133   :  { %vm511_vm4 = vweird.f32 %v8553_v43  ;;  %v7563_v53 = vadd.s32 4294967294, %v175_v54  ;;  %v9169_v15 = vand.u32 8388607, %v315_v24  ;;  %v1490_v38 = vor.u32 %v9071_v1, %v8757_v33  ;;  %v15021_v33 = vld [vmem:[#allocation28_spill] sm:$0xff] }
 0x134   :  { %v9176_v9 = vsel %vm742_vm0, %v9076_v2, 0  ;;  %v9178_v22 = vsel %vm511_vm4, nan, %v521_v11  ;;  %v163_v60 = vadd.s32 %v9056_v63, %v9041_v7  ;;  %vm934_vm8 = vcmp.eq.s32.totalorder %v9147_v32, 2 }
 0x135   :  { %vm7564_vm11 = vcmp.lt.s32.totalorder %v7563_v53, 0  ;;  %v9183_v43 = vadd.s32 3, %v196_v26  ;;  %v578_v61 = vmul.u32 %v571_v44, %v562_v58  ;;  %vm580_vm3 = vc.u32 %v9150_v10, %v9158_v45 }
 0x136   :  { %vm931_vm7 = vcmp.eq.s32.totalorder %v9147_v32, 0  ;;  %v178_v21 = vsel %vm7564_vm11, 0, %v7563_v53  ;;  %v581_v2 = vadd.s32 1, %v9159_v0  ;;  %v331_v34 = vshrl.u32 %v14995_v49, %v8635_v42 }
 0x137   :  { %v332_v7 = vshll.u32 %v14995_v49, %v8619_v13  ;;  %vm930_vm12 = vcmp.lt.s32.totalorder %v9147_v32, 2  ;;  %v179_v63 = vsub.s32 32, %v178_v21  ;;  %v183_v25 = vsub.s32 4294967266, %v178_v21 }
 0x138   :  { %v323_v5 = vor.u32 8388608, %v9169_v15  ;;  %v333_v17 = vshrl.u32 %v14996_v16, %v8635_v42  ;;  %vm927_vm13 = vweird.f32 %v8599_v51  ;;  %v180_v39 = vshll.u32 %v9122_v46, %v178_v21 }
 0x139   :  { %v582_v55 = vsel %vm580_vm3, %v581_v2, %v9159_v0  ;;  %v336_v59 = vshrl.u32 %v14997_v62, %v8635_v42  ;;  %v339_v56 = vshrl.u32 %v14998_v20, %v8635_v42  ;;  %v181_v41 = vshrl.u32 %v163_v60, %v179_v63 }
 0x13a   :  { %v184_v28 = vadd.s32 127, %v183_v25  ;;  %v583_v12 = vadd.s32 %v582_v55, %v578_v61  ;;  %v342_v14 = vshrl.u32 %v14999_v29, %v8635_v42  ;;  %v335_v44 = vshll.u32 %v14996_v16, %v8619_v13 }
 0x13b   :  { %v338_v46 = vshll.u32 %v14997_v62, %v8619_v13  ;;  %v341_v52 = vshll.u32 %v14998_v20, %v8619_v13  ;;  %v345_v18 = vshrl.u32 %v15000_v47, %v8635_v42  ;;  %v8173_v36 = vpop.eup %8172  ;;  %v182_v40 = vor.u32 %v181_v41, %v180_v39 }
 0x13c   :  { %v185_v23 = vshll.u32 %v184_v28, 23  ;;  %vm525_vm9 = vcmp.lt.s32.totalorder %v8592_v50, 0  ;;  %v584_v11 = vadd.s32 536870912, %v583_v12  ;;  %v334_v54 = vor.u32 %v333_v17, %v332_v7  ;;  %v8175_v26 = vpop.eup %8174 }
 0x13d   :  { %v935_v58 = vxor.u32 2147483648, %v8173_v36  ;;  %v337_v0 = vor.u32 %v336_v59, %v335_v44  ;;  %v343_v53 = vor.u32 %v342_v14, %v341_v52  ;;  %v344_v15 = vshll.u32 %v14999_v29, %v8619_v13 }
 0x13e   :  { %vm1678_vm14 = vcmp.gt.s32.totalorder %v8644_v48, 0  ;;  %v932_v60 = vxor.u32 2147483648, %v8175_v26  ;;  %v186_v61 = vor.u32 4788187, %v185_v23  ;;  %v585_v21 = vshrl.u32 %v584_v11, 30 }
 0x13f   :  { %v340_v42 = vor.u32 %v339_v56, %v338_v46  ;;  %v936_v2 = vsel %vm934_vm8, %v935_v58, %v8175_v26  ;;  %v189_v63 = vcvt.s32.f32 %v182_v40  ;;  %vm9222_vm0 = vcmp.le.f32.partialorder %v523_v31, 0.7853982 }
 0x140   :  { %v346_v25 = vor.u32 %v345_v18, %v344_v15  ;;  %vm347_vm1 = vcmp.lt.s32.totalorder %v8630_v30, 1  ;;  %v933_v13 = vsel %vm931_vm7, %v8173_v36, %v932_v60  ;;  %v187_v17 = vand.u32 2147483647, %v186_v61 }
 0x141   :  { %v586_v39 = vshll.u32 %v585_v21, 30  ;;  %vm350_vm2 = vcmp.lt.s32.totalorder %v8630_v30, 4  ;;  %vm1494_vm5 = vcmp.lt.s32.totalorder %v8723_v27, 4  ;;  %v937_v55 = vsel %vm930_vm12, %v933_v13, %v936_v2  ;;  %v15020_v2 = vld [vmem:[#allocation35_spill] sm:$0xff] }
 0x142   :  { %v609_v59 = vsub.s32 4, %v585_v21  ;;  %vm349_vm6 = vcmp.lt.s32.totalorder %v8630_v30, 3  ;;  %v356_v31 = vsel %vm350_vm2, %v343_v53, 920167782  ;;  %v938_v56 = vsel %vm927_vm13, nan, %v937_v55 }
 0x143   :  { %v190_v41 = vmul.f32 %v189_v63, %v187_v17  ;;  %v9238_v28 = vsub.s32 %v583_v12, %v586_v39  ;;  %v355_v14 = vsel %vm347_vm1, %v334_v54, %v337_v0  ;;  %v7849_v44 = vpack.c.bf16 %v938_v56, %v9178_v22 }
 0x144   :  { %vm348_vm4 = vcmp.lt.s32.totalorder %v8630_v30, 2  ;;  %v352_v32 = vsel %vm350_vm2, %v340_v42, 2102212464  ;;  %v357_v46 = vsel %vm349_vm6, %v340_v42, %v356_v31  ;;  %v351_v12 = vsel %vm347_vm1, %v331_v34, %v334_v54 }
 0x145   :  { %v191_v52 = vxor.u32 2147483648, %v190_v41  ;;  %v589_v51 = vsub.s32 0, %v9238_v28  ;;  %v359_v18 = vsel %vm347_vm1, %v337_v0, %v340_v42  ;;  %7850 = vmatprep.subr.bf16.mxu1 %v7849_v44  ;;  %v610_v22 = vsel %vm525_vm9, %v609_v59, %v585_v21 }
 0x146   :  { %v358_v36 = vsel %vm348_vm4, %v355_v14, %v357_v46  ;;  %v360_v40 = vsel %vm350_vm2, %v346_v25, 1326507024  ;;  %v363_v23 = vshll.u32 %v323_v5, 8  ;;  %v353_v34 = vsel %vm349_vm6, %v337_v0, %v352_v32 }
 0x147   :  { %v192_v11 = vsel %vm109_vm10, %v191_v52, %v190_v41  ;;  %v7578_v26 = vmin.u32 %v589_v51, %v9238_v28  ;;  %v361_v54 = vsel %vm349_vm6, %v343_v53, %v360_v40  ;;  %v745_v61 = vand.u32 31, %v9176_v9 }
 0x148   :  { %v195_v58 = vsel %vm9113_vm15, %v8547_v35, %v192_v11  ;;  %v362_v15 = vsel %vm348_vm4, %v359_v18, %v361_v54  ;;  %v9271_v60 = vmul.u32.u64.low %v363_v23, %v358_v36  ;;  %v9272_v5 = vmul.u32.u64.high %v363_v23, %v358_v36, %v9271_v60 }
 0x149   :  { %8176 = vcosq.f32 %v195_v58  ;;  %v591_v21 = vclz %v7578_v26  ;;  %v612_v0 = vsel %vm9222_vm0, 0, %v610_v22  ;;  %v1679_v53 = vsel %vm1678_vm14, %v8644_v48, 0 }
 0x14a   :  { %8178 = vsinq.f32 %v195_v58  ;;  %v9281_v6 = vmul.u32.u64.low %v363_v23, %v362_v15  ;;  %v9282_v42 = vmul.u32.u64.high %v363_v23, %v362_v15, %v9281_v6  ;;  %v9286_v63 = vor.u32 %v8944_v3, %v15020_v2 }
 0x14b   :  { %v9291_v25 = vsel %vm1494_vm5, %v9164_v19, 920167782  ;;  %v7579_v13 = vadd.s32 4294967294, %v591_v21  ;;  %v354_v17 = vsel %vm348_vm4, %v351_v12, %v353_v34  ;;  %v9300_v48 = vsel %vm1494_vm5, %v1490_v38, 1326507024 }
 0x14c   :  { %v9303_v39 = vand.u32 3, %v9183_v43  ;;  %v616_v3 = vadd.s32 3, %v612_v0  ;;  %v373_v55 = vadd.s32 1, %v9272_v5  ;;  %v9306_v59 = vshrl.u32 %v1679_v53, 5 }
 0x14d   :  { %v9308_v31 = vand.u32 31, %v1679_v53  ;;  %v746_v56 = vsub.s32 32, %v745_v61  ;;  %vm7580_vm10 = vcmp.lt.s32.totalorder %v7579_v13, 0  ;;  %v370_v41 = vmul.u32 %v363_v23, %v354_v17 }
 0x14e   :  { %v594_v30 = vsel %vm7580_vm10, 0, %v7579_v13  ;;  %vm372_vm15 = vc.u32 %v9282_v42, %v9271_v60  ;;  %v731_v1 = vand.u32 2147483647, %v15021_v33  ;;  %v579_v38 = vadd.s32 %v9158_v45, %v9150_v10 }
 0x14f   :  { %v595_v43 = vsub.s32 32, %v594_v30  ;;  %v599_v14 = vsub.s32 4294967266, %v594_v30  ;;  %v374_v44 = vsel %vm372_vm15, %v373_v55, %v9272_v5  ;;  %v9317_v32 = vshrl.u32 %v9176_v9, 5 }
 0x150   :  { %vm206_vm8 = vcmp.eq.s32.totalorder %v9303_v39, 2  ;;  %v9320_v46 = vand.u32 3, %v616_v3  ;;  %v375_v52 = vadd.s32 %v374_v44, %v370_v41  ;;  %vm203_vm11 = vcmp.eq.s32.totalorder %v9303_v39, 0 }
 0x151   :  { %v596_v51 = vshll.u32 %v9238_v28, %v594_v30  ;;  %v597_v12 = vshrl.u32 %v579_v38, %v595_v43  ;;  %v600_v18 = vadd.s32 127, %v599_v14  ;;  %v749_v10 = vshrl.u32 %v14996_v16, %v746_v56 }
 0x152   :  { %v376_v45 = vadd.s32 536870912, %v375_v52  ;;  %v738_v22 = vand.u32 8388607, %v731_v1  ;;  %v748_v9 = vshll.u32 %v14995_v49, %v745_v61  ;;  %v755_v36 = vshrl.u32 %v14998_v20, %v746_v56 }
 0x153   :  { %v8177_v40 = vpop.eup %8176  ;;  %v598_v23 = vor.u32 %v597_v12, %v596_v51  ;;  %v601_v11 = vshll.u32 %v600_v18, 23  ;;  %v752_v26 = vshrl.u32 %v14997_v62, %v746_v56  ;;  %v758_v34 = vshrl.u32 %v14999_v29, %v746_v56 }
 0x154   :  { %v8179_v28 = vpop.eup %8178  ;;  %v9331_v54 = vshrl.u32 %v376_v45, 30  ;;  %v751_v58 = vshll.u32 %v14996_v16, %v745_v61  ;;  %v754_v15 = vshll.u32 %v14997_v62, %v745_v61  ;;  %v761_v5 = vshrl.u32 %v15000_v47, %v746_v56 }
 0x155   :  { %v207_v21 = vxor.u32 2147483648, %v8177_v40  ;;  %v602_v0 = vor.u32 4788187, %v601_v11  ;;  %v750_v53 = vor.u32 %v749_v10, %v748_v9  ;;  %v757_v6 = vshll.u32 %v14998_v20, %v745_v61 }
 0x156   :  { %vm202_vm3 = vcmp.lt.s32.totalorder %v9303_v39, 2  ;;  %v204_v2 = vxor.u32 2147483648, %v8179_v28  ;;  %v378_v13 = vshll.u32 %v9331_v54, 30  ;;  %v756_v17 = vor.u32 %v755_v36, %v754_v15  ;;  %v15022_v39 = vld [vmem:[#allocation11_spill] sm:$0xff] }
 0x157   :  { %v760_v3 = vshll.u32 %v14999_v29, %v745_v61  ;;  %v603_v55 = vand.u32 2147483647, %v602_v0  ;;  %v605_v30 = vcvt.s32.f32 %v598_v23  ;;  %v753_v41 = vor.u32 %v752_v26, %v751_v58 }
 0x158   :  { %v759_v38 = vor.u32 %v758_v34, %v757_v6  ;;  %v9340_v43 = vsub.s32 %v375_v52, %v378_v13  ;;  %v739_v14 = vor.u32 8388608, %v738_v22  ;;  %v747_v44 = vshrl.u32 %v14995_v49, %v746_v56 }
 0x159   :  { %v762_v51 = vor.u32 %v761_v5, %v760_v3  ;;  %v208_v12 = vsel %vm206_vm8, %v207_v21, %v8179_v28  ;;  %v606_v18 = vmul.f32 %v605_v30, %v603_v55  ;;  %vm763_vm7 = vcmp.lt.s32.totalorder %v9317_v32, 1 }
 0x15a   :  { %vm766_vm12 = vcmp.lt.s32.totalorder %v9317_v32, 4  ;;  %v205_v61 = vsel %vm203_vm11, %v8177_v40, %v204_v2  ;;  %v381_v10 = vsub.s32 0, %v9340_v43  ;;  %vm764_vm13 = vcmp.lt.s32.totalorder %v9317_v32, 2 }
 0x15b   :  { %v768_v52 = vsel %vm766_vm12, %v756_v17, 2102212464  ;;  %v607_v45 = vxor.u32 2147483648, %v606_v18  ;;  %vm765_vm14 = vcmp.lt.s32.totalorder %v9317_v32, 3  ;;  %v771_v56 = vsel %vm763_vm7, %v750_v53, %v753_v41 }
 0x15c   :  { %v772_v22 = vsel %vm766_vm12, %v759_v38, 920167782  ;;  %v7570_v9 = vmin.u32 %v381_v10, %v9340_v43  ;;  %v775_v23 = vsel %vm763_vm7, %v753_v41, %v756_v17  ;;  %v776_v11 = vsel %vm766_vm12, %v762_v51, 1326507024 }
 0x15d   :  { %v773_v36 = vsel %vm765_vm14, %v756_v17, %v772_v22  ;;  %v608_v26 = vsel %vm525_vm9, %v607_v45, %v606_v18  ;;  %v767_v34 = vsel %vm763_vm7, %v747_v44, %v750_v53  ;;  %v769_v40 = vsel %vm765_vm14, %v753_v41, %v768_v52  ;;  %v15023_v18 = vld [vmem:[#allocation21_spill] sm:$0xff]  ;;  %v15024_v45 = vld [vmem:[#allocation27_spill] sm:$0xff] }
 0x15e   :  { %v777_v28 = vsel %vm765_vm14, %v759_v38, %v776_v11  ;;  %v611_v58 = vsel %vm9222_vm0, %v8592_v50, %v608_v26  ;;  %v383_v15 = vclz %v7570_v9  ;;  %v774_v5 = vsel %vm764_vm13, %v771_v56, %v773_v36 }
 0x15f   :  { %v779_v21 = vshll.u32 %v739_v14, 8  ;;  %v209_v0 = vsel %vm202_vm3, %v205_v61, %v208_v12  ;;  %8180 = vcosq.f32 %v611_v58  ;;  %v401_v6 = vsub.s32 4, %v9331_v54 }
 0x160   :  { %v778_v53 = vsel %vm764_vm13, %v775_v23, %v777_v28  ;;  %8182 = vsinq.f32 %v611_v58  ;;  %v7571_v2 = vadd.s32 4294967294, %v383_v15  ;;  %v770_v7 = vsel %vm764_vm13, %v767_v34, %v769_v40 }
 0x161   :  { %v9365_v13 = vmul.u32.u64.low %v779_v21, %v778_v53  ;;  %v9366_v17 = vmul.u32.u64.high %v779_v21, %v778_v53, %v9365_v13  ;;  %v9370_v3 = vmul.u32.u64.low %v779_v21, %v774_v5  ;;  %v9371_v55 = vmul.u32.u64.high %v779_v21, %v774_v5, %v9370_v3 }
 0x162   :  { %v1043_v30 = vand.u32 2147483647, %v15022_v39  ;;  %v9376_v41 = vsub.s32 32, %v9308_v31  ;;  %vm199_vm9 = vweird.f32 %v8547_v35  ;;  %vm317_vm0 = vcmp.lt.s32.totalorder %v8551_v37, 0 }
 0x163   :  { %vm7572_vm1 = vcmp.lt.s32.totalorder %v7571_v2, 0  ;;  %vm622_vm2 = vcmp.eq.s32.totalorder %v9320_v46, 2  ;;  %v371_v32 = vadd.s32 %v9271_v60, %v9282_v42  ;;  %v9386_v14 = vsel %vm317_vm0, %v401_v6, %v9331_v54 }
 0x164   :  { %v386_v38 = vsel %vm7572_vm1, 0, %v7571_v2  ;;  %v9388_v44 = vsel %vm199_vm9, nan, %v209_v0  ;;  %vm619_vm6 = vcmp.eq.s32.totalorder %v9320_v46, 0  ;;  %v786_v12 = vmul.u32 %v779_v21, %v770_v7 }
 0x165   :  { %v387_v51 = vsub.s32 32, %v386_v38  ;;  %v391_v35 = vsub.s32 4294967266, %v386_v38  ;;  %vm618_vm4 = vcmp.lt.s32.totalorder %v9320_v46, 2  ;;  %vm788_vm10 = vc.u32 %v9366_v17, %v9370_v3 }
 0x166   :  { %v789_v60 = vadd.s32 1, %v9371_v55  ;;  %v1050_v42 = vand.u32 8388607, %v1043_v30  ;;  %v1060_v54 = vshll.u32 %v14995_v49, %v15023_v18  ;;  %vm615_vm15 = vweird.f32 %v8592_v50 }
 0x167   :  { %v388_v61 = vshll.u32 %v9340_v43, %v386_v38  ;;  %v389_v10 = vshrl.u32 %v371_v32, %v387_v51  ;;  %v392_v52 = vadd.s32 127, %v391_v35  ;;  %v1061_v56 = vshrl.u32 %v14996_v16, %v15024_v45 }
 0x168   :  { %v790_v22 = vsel %vm788_vm10, %v789_v60, %v9371_v55  ;;  %v1063_v9 = vshll.u32 %v14996_v16, %v15023_v18  ;;  %v1064_v36 = vshrl.u32 %v14997_v62, %v15024_v45  ;;  %v1069_v23 = vshll.u32 %v14998_v20, %v15023_v18 }
 0x169   :  { %vm9412_vm8 = vcmp.le.f32.partialorder %v315_v24, 0.7853982  ;;  %v390_v11 = vor.u32 %v389_v10, %v388_v61  ;;  %v393_v26 = vshll.u32 %v392_v52, 23  ;;  %v791_v34 = vadd.s32 %v790_v22, %v786_v12  ;;  %v8181_v28 = vpop.eup %8180 }
 0x16a   :  { %v1066_v40 = vshll.u32 %v14997_v62, %v15023_v18  ;;  %v1067_v58 = vshrl.u32 %v14998_v20, %v15024_v45  ;;  %v1070_v15 = vshrl.u32 %v14999_v29, %v15024_v45  ;;  %v1072_v5 = vshll.u32 %v14999_v29, %v15023_v18  ;;  %v8183_v21 = vpop.eup %8182 }
 0x16b   :  { %v1073_v24 = vshrl.u32 %v15000_v47, %v15024_v45  ;;  %v623_v0 = vxor.u32 2147483648, %v8181_v28  ;;  %v394_v6 = vor.u32 4788187, %v393_v26  ;;  %v792_v53 = vadd.s32 536870912, %v791_v34 }
 0x16c   :  { %v1059_v2 = vshrl.u32 %v14995_v49, %v15024_v45  ;;  %v620_v13 = vxor.u32 2147483648, %v8183_v21  ;;  %v1062_v7 = vor.u32 %v1061_v56, %v1060_v54  ;;  %v1065_v55 = vor.u32 %v1064_v36, %v1063_v9  ;;  %v15027_v54 = vld [vmem:[#allocation20_spill] sm:$0xff] }
 0x16d   :  { %v1071_v32 = vor.u32 %v1070_v15, %v1069_v23  ;;  %v624_v38 = vsel %vm622_vm2, %v623_v0, %v8183_v21  ;;  %v395_v51 = vand.u32 2147483647, %v394_v6  ;;  %v397_v35 = vcvt.s32.f32 %v390_v11 }
 0x16e   :  { %v793_v12 = vshrl.u32 %v792_v53, 30  ;;  %v621_v60 = vsel %vm619_vm6, %v8181_v28, %v620_v13  ;;  %v1051_v18 = vor.u32 8388608, %v1050_v42  ;;  %v1068_v61 = vor.u32 %v1067_v58, %v1066_v40 }
 0x16f   :  { %v1074_v10 = vor.u32 %v1073_v24, %v1072_v5  ;;  %v625_v52 = vsel %vm618_vm4, %v621_v60, %v624_v38  ;;  %v398_v45 = vmul.f32 %v397_v35, %v395_v51  ;;  %vm1078_vm11 = vcmp.lt.s32.totalorder %v15027_v54, 4 }
 0x170   :  { %v794_v22 = vshll.u32 %v793_v12, 30  ;;  %v626_v56 = vsel %vm615_vm15, nan, %v625_v52  ;;  %vm1075_vm3 = vcmp.lt.s32.totalorder %v15027_v54, 1  ;;  %vm1077_vm7 = vcmp.lt.s32.totalorder %v15027_v54, 3 }
 0x171   :  { %v1084_v9 = vsel %vm1078_vm11, %v1071_v32, 920167782  ;;  %v7843_v42 = vpack.c.bf16 %v626_v56, %v9388_v44  ;;  %v399_v36 = vxor.u32 2147483648, %v398_v45  ;;  %v1083_v46 = vsel %vm1075_vm3, %v1062_v7, %v1065_v55 }
 0x172   :  { %v9442_v23 = vsub.s32 %v791_v34, %v794_v22  ;;  %v1694_v11 = vshrl.u32 %v14999_v29, %v9376_v41  ;;  %v404_v50 = vsel %vm9412_vm8, 0, %v9386_v14  ;;  %v1080_v26 = vsel %vm1078_vm11, %v1068_v61, 2102212464  ;;  %v15028_v22 = vld [vmem:[#allocation15_spill] sm:$0xff] }
 0x173   :  { %v1085_v40 = vsel %vm1077_vm7, %v1068_v61, %v1084_v9  ;;  %7844 = vmatpush1.bf16.msra.mxu0 %v7843_v42  ;;  %v400_v44 = vsel %vm317_vm0, %v399_v36, %v398_v45  ;;  %vm1076_vm12 = vcmp.lt.s32.totalorder %v15027_v54, 2  ;;  %v1087_v28 = vsel %vm1075_vm3, %v1065_v55, %v1068_v61 }
 0x174   :  { %v797_v34 = vsub.s32 0, %v9442_v23  ;;  %v403_v14 = vsel %vm9412_vm8, %v8551_v37, %v400_v44  ;;  %v1086_v58 = vsel %vm1076_vm12, %v1083_v46, %v1085_v40  ;;  %v1088_v15 = vsel %vm1078_vm11, %v1074_v10, 1326507024 }
 0x175   :  { %v1091_v5 = vshll.u32 %v1051_v18, 8  ;;  %v1079_v21 = vsel %vm1075_vm3, %v1059_v2, %v1062_v7  ;;  %v1081_v0 = vsel %vm1077_vm7, %v1065_v55, %v1080_v26  ;;  %v1089_v6 = vsel %vm1077_vm7, %v1071_v32, %v1088_v15 }
 0x176   :  { %v7586_v24 = vmin.u32 %v797_v34, %v9442_v23  ;;  %v408_v43 = vadd.s32 3, %v404_v50  ;;  %v1090_v53 = vsel %vm1076_vm12, %v1087_v28, %v1089_v6  ;;  %v1693_v51 = vshll.u32 %v14998_v20, %v9308_v31 }
 0x177   :  { %v9477_v13 = vmul.u32.u64.low %v1091_v5, %v1086_v58  ;;  %v9478_v38 = vmul.u32.u64.high %v1091_v5, %v1086_v58, %v9477_v13  ;;  %8184 = vcosq.f32 %v403_v14  ;;  %v817_v2 = vsub.s32 4, %v793_v12 }
 0x178   :  { %v799_v35 = vclz %v7586_v24  ;;  %v9485_v7 = vshll.u32 %v14999_v29, %v9308_v31  ;;  %v1082_v55 = vsel %vm1076_vm12, %v1079_v21, %v1081_v0  ;;  %v9492_v18 = vor.u32 %v1694_v11, %v1693_v51 }
 0x179   :  { %v9489_v32 = vmul.u32.u64.low %v1091_v5, %v1090_v53  ;;  %v9490_v60 = vmul.u32.u64.high %v1091_v5, %v1090_v53, %v9489_v32  ;;  %v9496_v61 = vshrl.u32 %v15000_v47, %v9376_v41  ;;  %8186 = vsinq.f32 %v403_v14 }
 0x17a   :  { %v7587_v10 = vadd.s32 4294967294, %v799_v35  ;;  %v9498_v52 = vand.u32 3, %v408_v43  ;;  %vm733_vm13 = vcmp.lt.s32.totalorder %v15021_v33, 0  ;;  %v1101_v45 = vadd.s32 1, %v9478_v38 }
 0x17b   :  { %v1459_v54 = vand.u32 2147483647, %v15028_v22  ;;  %v787_v56 = vadd.s32 %v9370_v3, %v9366_v17  ;;  %v818_v9 = vsel %vm733_vm13, %v817_v2, %v793_v12  ;;  %v1098_v42 = vmul.u32 %v1091_v5, %v1082_v55  ;;  %v15029_v17 = vld [vmem:[#allocation32_spill] sm:$0xff] }
 0x17c   :  { %vm7588_vm14 = vcmp.lt.s32.totalorder %v7587_v10, 0  ;;  %vm1100_vm9 = vc.u32 %v9490_v60, %v9477_v13  ;;  %v1477_v46 = vshrl.u32 %v14996_v16, %v8740_v4  ;;  %v1480_v11 = vshrl.u32 %v14997_v62, %v8740_v4 }
 0x17d   :  { %v802_v36 = vsel %vm7588_vm14, 0, %v7587_v10  ;;  %v1102_v40 = vsel %vm1100_vm9, %v1101_v45, %v9478_v38  ;;  %v1476_v3 = vshll.u32 %v14995_v49, %v15029_v17  ;;  %v1466_v12 = vand.u32 8388607, %v1459_v54 }
 0x17e   :  { %v803_v50 = vsub.s32 32, %v802_v36  ;;  %v807_v26 = vsub.s32 4294967266, %v802_v36  ;;  %v1103_v44 = vadd.s32 %v1102_v40, %v1098_v42  ;;  %v1479_v34 = vshll.u32 %v14996_v16, %v15029_v17 }
 0x17f   :  { %v1483_v28 = vshrl.u32 %v14998_v20, %v8740_v4  ;;  %v804_v14 = vshll.u32 %v9442_v23, %v802_v36  ;;  %v1482_v5 = vshll.u32 %v14997_v62, %v15029_v17  ;;  %vm9527_vm0 = vcmp.le.f32.partialorder %v731_v1, 0.7853982 }
 0x180   :  { %v805_v58 = vshrl.u32 %v787_v56, %v803_v50  ;;  %v808_v15 = vadd.s32 127, %v807_v26  ;;  %v1104_v21 = vadd.s32 536870912, %v1103_v44  ;;  %v1478_v0 = vor.u32 %v1477_v46, %v1476_v3 }
 0x181   :  { %v1481_v6 = vor.u32 %v1480_v11, %v1479_v34  ;;  %v8185_v43 = vpop.eup %8184  ;;  %vm411_vm1 = vcmp.eq.s32.totalorder %v9498_v52, 0  ;;  %v1484_v23 = vor.u32 %v1483_v28, %v1482_v5  ;;  %vm1702_vm2 = vcmp.lt.s32.totalorder %v9306_v59, 4 }
 0x182   :  { %v806_v53 = vor.u32 %v805_v58, %v804_v14  ;;  %v809_v38 = vshll.u32 %v808_v15, 23  ;;  %vm414_vm6 = vcmp.eq.s32.totalorder %v9498_v52, 2  ;;  %v820_v51 = vsel %vm9527_vm0, 0, %v818_v9 }
 0x183   :  { %v9536_v1 = vshrl.u32 %v1104_v21, 30  ;;  %v1475_v35 = vshrl.u32 %v14995_v49, %v8740_v4  ;;  %v8187_v2 = vpop.eup %8186  ;;  %v1467_v32 = vor.u32 8388608, %v1466_v12  ;;  %vm1491_vm4 = vcmp.lt.s32.totalorder %v8723_v27, 1 }
 0x184   :  { %v810_v55 = vor.u32 4788187, %v809_v38  ;;  %vm1492_vm10 = vcmp.lt.s32.totalorder %v8723_v27, 2  ;;  %v415_v10 = vxor.u32 2147483648, %v8185_v43  ;;  %vm1493_vm15 = vcmp.lt.s32.totalorder %v8723_v27, 3 }
 0x185   :  { %v1106_v45 = vshll.u32 %v9536_v1, 30  ;;  %v1499_v56 = vsel %vm1491_vm4, %v1478_v0, %v1481_v6  ;;  %v813_v42 = vcvt.s32.f32 %v806_v53  ;;  %v1501_v4 = vsel %vm1493_vm15, %v1484_v23, %v9291_v25 }
 0x186   :  { %v811_v9 = vand.u32 2147483647, %v810_v55  ;;  %v1503_v36 = vsel %vm1491_vm4, %v1481_v6, %v1484_v23  ;;  %v412_v46 = vxor.u32 2147483648, %v8187_v2  ;;  %v1496_v50 = vsel %vm1494_vm5, %v1484_v23, 2102212464 }
 0x187   :  { %v9551_v11 = vsub.s32 %v1103_v44, %v1106_v45  ;;  %v1505_v26 = vsel %vm1493_vm15, %v9164_v19, %v9300_v48  ;;  %v1502_v17 = vsel %vm1492_vm10, %v1499_v56, %v1501_v4  ;;  %v1507_v3 = vshll.u32 %v1467_v32, 8 }
 0x188   :  { %v814_v40 = vmul.f32 %v813_v42, %v811_v9  ;;  %v1506_v25 = vsel %vm1492_vm10, %v1503_v36, %v1505_v26  ;;  %v416_v44 = vsel %vm414_vm6, %v415_v10, %v8187_v2  ;;  %v824_v12 = vadd.s32 3, %v820_v51  ;;  %v15033_v36 = vld [vmem:[#allocation26_spill] sm:$0xff] }
 0x189   :  { %v1109_v34 = vsub.s32 0, %v9551_v11  ;;  %v1495_v28 = vsel %vm1491_vm4, %v1475_v35, %v1478_v0  ;;  %v1497_v19 = vsel %vm1493_vm15, %v1481_v6, %v1496_v50  ;;  %v413_v15 = vsel %vm411_vm1, %v8185_v43, %v412_v46  ;;  %v15032_v35 = vld [vmem:[#allocation13_spill] sm:$0xff] }
 0x18a   :  { %v815_v14 = vxor.u32 2147483648, %v814_v40  ;;  %v9570_v48 = vmul.u32.u64.low %v1507_v3, %v1506_v25  ;;  %v9571_v58 = vmul.u32.u64.high %v1507_v3, %v1506_v25, %v9570_v48  ;;  %v1698_v38 = vor.u32 %v9496_v61, %v9485_v7 }
 0x18b   :  { %v7598_v5 = vmin.u32 %v1109_v34, %v9551_v11  ;;  %v9576_v21 = vmul.u32.u64.low %v1507_v3, %v1502_v17  ;;  %v9577_v53 = vmul.u32.u64.high %v1507_v3, %v1502_v17, %v9576_v21  ;;  %v9585_v0 = vsel %vm1702_vm2, %v9492_v18, 920167782 }
 0x18c   :  { %vm410_vm5 = vcmp.lt.s32.totalorder %v9498_v52, 2  ;;  %v816_v6 = vsel %vm733_vm13, %v815_v14, %v814_v40  ;;  %v1498_v51 = vsel %vm1492_vm10, %v1495_v28, %v1497_v19  ;;  %v1251_v2 = vand.u32 2147483647, %v15032_v35 }
 0x18d   :  { %v819_v43 = vsel %vm9527_vm0, %v15021_v33, %v816_v6  ;;  %v1111_v23 = vclz %v7598_v5  ;;  %v417_v55 = vsel %vm410_vm5, %v413_v15, %v416_v44  ;;  %v9596_v32 = vand.u32 3, %v824_v12 }
 0x18e   :  { %8188 = vcosq.f32 %v819_v43  ;;  %vm1516_vm8 = vc.u32 %v9571_v58, %v9576_v21  ;;  %vm407_vm11 = vweird.f32 %v8551_v37  ;;  %v1517_v24 = vadd.s32 1, %v9577_v53 }
 0x18f   :  { %8190 = vsinq.f32 %v819_v43  ;;  %v7599_v52 = vadd.s32 4294967294, %v1111_v23  ;;  %vm1045_vm3 = vcmp.lt.s32.totalorder %v15022_v39, 0  ;;  %v1099_v27 = vadd.s32 %v9477_v13, %v9490_v60  ;;  %v15034_v13 = vld [vmem:[#allocation30_spill] sm:$0xff] }
 0x190   :  { %v1129_v10 = vsub.s32 4, %v9536_v1  ;;  %v1514_v45 = vmul.u32 %v1507_v3, %v1498_v51  ;;  %v9606_v56 = vsel %vm407_vm11, nan, %v417_v55  ;;  %v1518_v9 = vsel %vm1516_vm8, %v1517_v24, %v9577_v53 }
 0x191   :  { %vm7600_vm7 = vcmp.lt.s32.totalorder %v7599_v52, 0  ;;  %v9611_v37 = vand.u32 8388607, %v1251_v2  ;;  %vm830_vm12 = vcmp.eq.s32.totalorder %v9596_v32, 2  ;;  %v1274_v46 = vshll.u32 %v14997_v62, %v15033_v36 }
 0x192   :  { %v1114_v42 = vsel %vm7600_vm7, 0, %v7599_v52  ;;  %v1519_v4 = vadd.s32 %v1518_v9, %v1514_v45  ;;  %v1275_v60 = vshrl.u32 %v14998_v20, %v15034_v13  ;;  %vm827_vm13 = vcmp.eq.s32.totalorder %v9596_v32, 0 }
 0x193   :  { %v1115_v50 = vsub.s32 32, %v1114_v42  ;;  %v1119_v26 = vsub.s32 4294967266, %v1114_v42  ;;  %v1268_v40 = vshll.u32 %v14995_v49, %v15033_v36  ;;  %v1269_v17 = vshrl.u32 %v14996_v16, %v15034_v13 }
 0x194   :  { %vm826_vm14 = vcmp.lt.s32.totalorder %v9596_v32, 2  ;;  %v1116_v25 = vshll.u32 %v9551_v11, %v1114_v42  ;;  %v1520_v3 = vadd.s32 536870912, %v1519_v4  ;;  %v1271_v44 = vshll.u32 %v14996_v16, %v15033_v36 }
 0x195   :  { %v1272_v12 = vshrl.u32 %v14997_v62, %v15034_v13  ;;  %vm823_vm9 = vweird.f32 %v15021_v33  ;;  %v1117_v34 = vshrl.u32 %v1099_v27, %v1115_v50  ;;  %v1120_v28 = vadd.s32 127, %v1119_v26 }
 0x196   :  { %v1277_v14 = vshll.u32 %v14998_v20, %v15033_v36  ;;  %v1278_v19 = vshrl.u32 %v14999_v29, %v15034_v13  ;;  %v9637_v11 = vsel %vm1045_vm3, %v1129_v10, %v9536_v1  ;;  %v9639_v48 = vshrl.u32 %v1520_v3, 30 }
 0x197   :  { %v1259_v15 = vor.u32 8388608, %v9611_v37  ;;  %v1276_v5 = vor.u32 %v1275_v60, %v1274_v46  ;;  %vm9644_vm0 = vcmp.le.f32.partialorder %v1043_v30, 0.7853982  ;;  %v1118_v6 = vor.u32 %v1117_v34, %v1116_v25  ;;  %v15037_v37 = vld [vmem:[#allocation24_spill] sm:$0xff] }
 0x198   :  { %v1121_v43 = vshll.u32 %v1120_v28, 23  ;;  %v1280_v23 = vshll.u32 %v14999_v29, %v15033_v36  ;;  %v1281_v1 = vshrl.u32 %v15000_v47, %v15034_v13  ;;  %v8189_v51 = vpop.eup %8188  ;;  %v1522_v55 = vshll.u32 %v9639_v48, 30 }
 0x199   :  { %v1267_v52 = vshrl.u32 %v14995_v49, %v15034_v13  ;;  %v1270_v24 = vor.u32 %v1269_v17, %v1268_v40  ;;  %v1273_v27 = vor.u32 %v1272_v12, %v1271_v44  ;;  %v8191_v30 = vpop.eup %8190  ;;  %v831_v10 = vxor.u32 2147483648, %v8189_v51 }
 0x19a   :  { %v1122_v45 = vor.u32 4788187, %v1121_v43  ;;  %v1279_v9 = vor.u32 %v1278_v19, %v1277_v14  ;;  %vm1286_vm1 = vcmp.lt.s32.totalorder %v15037_v37, 4  ;;  %v828_v42 = vxor.u32 2147483648, %v8191_v30 }
 0x19b   :  { %v9656_v46 = vsub.s32 %v1519_v4, %v1522_v55  ;;  %vm1283_vm6 = vcmp.lt.s32.totalorder %v15037_v37, 1  ;;  %v1288_v36 = vsel %vm1286_vm1, %v1276_v5, 2102212464  ;;  %v832_v60 = vsel %vm830_vm12, %v831_v10, %v8191_v30 }
 0x19c   :  { %v1123_v13 = vand.u32 2147483647, %v1122_v45  ;;  %v1125_v50 = vcvt.s32.f32 %v1118_v6  ;;  %v1282_v26 = vor.u32 %v1281_v1, %v1280_v23  ;;  %v829_v40 = vsel %vm827_vm13, %v8189_v51, %v828_v42  ;;  %v15038_v42 = vld [vmem:[#allocation18_spill] sm:$0xff] }
 0x19d   :  { %v1525_v17 = vsub.s32 0, %v9656_v46  ;;  %vm1285_vm4 = vcmp.lt.s32.totalorder %v15037_v37, 3  ;;  %v1287_v4 = vsel %vm1283_vm6, %v1267_v52, %v1270_v24  ;;  %vm1461_vm10 = vcmp.lt.s32.totalorder %v15028_v22, 0 }
 0x19e   :  { %v833_v25 = vsel %vm826_vm14, %v829_v40, %v832_v60  ;;  %v1126_v3 = vmul.f32 %v1125_v50, %v1123_v13  ;;  %v1289_v44 = vsel %vm1285_vm4, %v1273_v27, %v1288_v36  ;;  %v1292_v12 = vsel %vm1286_vm1, %v1279_v9, 920167782 }
 0x19f   :  { %v834_v34 = vsel %vm823_vm9, nan, %v833_v25  ;;  %v7614_v28 = vmin.u32 %v1525_v17, %v9656_v46  ;;  %v1291_v14 = vsel %vm1283_vm6, %v1270_v24, %v1273_v27  ;;  %v1293_v19 = vsel %vm1285_vm4, %v1276_v5, %v1292_v12 }
 0x1a0   :  { %v7851_v32 = vpack.c.bf16 %v834_v34, %v9606_v56  ;;  %v1127_v6 = vxor.u32 2147483648, %v1126_v3  ;;  %v1295_v43 = vsel %vm1283_vm6, %v1273_v27, %v1276_v5  ;;  %v1296_v23 = vsel %vm1286_vm1, %v1282_v26, 1326507024 }
 0x1a1   :  { %v1132_v33 = vsel %vm9644_vm0, 0, %v9637_v11  ;;  %v1527_v1 = vclz %v7614_v28  ;;  %v1545_v51 = vsub.s32 4, %v9639_v48  ;;  %vm1284_vm15 = vcmp.lt.s32.totalorder %v15037_v37, 2 }
 0x1a2   :  { %7852 = vmatpush1.bf16.msra.mxu1 %v7851_v32  ;;  %v1128_v56 = vsel %vm1045_vm3, %v1127_v6, %v1126_v3  ;;  %v1294_v55 = vsel %vm1284_vm15, %v1291_v14, %v1293_v19  ;;  %v1297_v5 = vsel %vm1285_vm4, %v1279_v9, %v1296_v23  ;;  %v1299_v52 = vshll.u32 %v1259_v15, 8 }
 0x1a3   :  { %v1131_v24 = vsel %vm9644_vm0, %v15022_v39, %v1128_v56  ;;  %v7615_v27 = vadd.s32 4294967294, %v1527_v1  ;;  %v1290_v11 = vsel %vm1284_vm15, %v1287_v4, %v1289_v44  ;;  %v1298_v30 = vsel %vm1284_vm15, %v1295_v43, %v1297_v5 }
 0x1a4   :  { %8192 = vcosq.f32 %v1131_v24  ;;  %v9700_v10 = vmul.u32.u64.low %v1299_v52, %v1298_v30  ;;  %v9701_v45 = vmul.u32.u64.high %v1299_v52, %v1298_v30, %v9700_v10  ;;  %v1667_v36 = vand.u32 2147483647, %v15038_v42 }
 0x1a5   :  { %8194 = vsinq.f32 %v1131_v24  ;;  %vm7616_vm5 = vcmp.lt.s32.totalorder %v7615_v27, 0  ;;  %v9704_v60 = vmul.u32.u64.low %v1299_v52, %v1294_v55  ;;  %v9705_v13 = vmul.u32.u64.high %v1299_v52, %v1294_v55, %v9704_v60  ;;  %v15041_v10 = vld [vmem:[#allocation33_spill] sm:$0xff] }
 0x1a6   :  { %v1712_v15 = vsel %vm1702_vm2, %v1698_v38, 1326507024  ;;  %v1136_v53 = vadd.s32 3, %v1132_v33  ;;  %v1515_v9 = vadd.s32 %v9576_v21, %v9571_v58  ;;  %v1530_v37 = vsel %vm7616_vm5, 0, %v7615_v27 }
 0x1a7   :  { %v1531_v50 = vsub.s32 32, %v1530_v37  ;;  %v1535_v26 = vsub.s32 4294967266, %v1530_v37  ;;  %v1546_v40 = vsel %vm1461_vm10, %v1545_v51, %v9639_v48  ;;  %v1306_v17 = vmul.u32 %v1299_v52, %v1290_v11 }
 0x1a8   :  { %v1532_v4 = vshll.u32 %v9656_v46, %v1530_v37  ;;  %vm1308_vm8 = vc.u32 %v9701_v45, %v9704_v60  ;;  %v1674_v7 = vand.u32 8388607, %v1667_v36  ;;  %v1685_v61 = vshrl.u32 %v14996_v16, %v9376_v41 }
 0x1a9   :  { %v1533_v58 = vshrl.u32 %v1515_v9, %v1531_v50  ;;  %v1536_v21 = vadd.s32 127, %v1535_v26  ;;  %v1309_v38 = vadd.s32 1, %v9705_v13  ;;  %v1684_v25 = vshll.u32 %v14995_v49, %v9308_v31 }
 0x1aa   :  { %v1687_v48 = vshll.u32 %v14996_v16, %v9308_v31  ;;  %v1688_v46 = vshrl.u32 %v14997_v62, %v9376_v41  ;;  %v1690_v3 = vshll.u32 %v14997_v62, %v9308_v31  ;;  %v1691_v44 = vshrl.u32 %v14998_v20, %v9376_v41 }
 0x1ab   :  { %v1534_v12 = vor.u32 %v1533_v58, %v1532_v4  ;;  %v1537_v34 = vshll.u32 %v1536_v21, 23  ;;  %v1310_v28 = vsel %vm1308_vm8, %v1309_v38, %v9705_v13  ;;  %v1686_v14 = vor.u32 %v1685_v61, %v1684_v25 }
 0x1ac   :  { %vm9739_vm11 = vcmp.le.f32.partialorder %v1459_v54, 0.7853982  ;;  %v1311_v32 = vadd.s32 %v1310_v28, %v1306_v17  ;;  %v1689_v6 = vor.u32 %v1688_v46, %v1687_v48  ;;  %v1692_v43 = vor.u32 %v1691_v44, %v1690_v3 }
 0x1ad   :  { %v1137_v23 = vand.u32 3, %v1136_v53  ;;  %v1538_v33 = vor.u32 4788187, %v1537_v34  ;;  %v1548_v31 = vsel %vm9739_vm11, 0, %v1546_v40  ;;  %v1675_v1 = vor.u32 8388608, %v1674_v7 }
 0x1ae   :  { %v8193_v51 = vpop.eup %8192  ;;  %v1312_v56 = vadd.s32 536870912, %v1311_v32  ;;  %v1683_v55 = vshrl.u32 %v14995_v49, %v9376_v41  ;;  %vm1699_vm3 = vcmp.lt.s32.totalorder %v9306_v59, 1  ;;  %vm1701_vm7 = vcmp.lt.s32.totalorder %v9306_v59, 3 }
 0x1af   :  { %v8195_v54 = vpop.eup %8194  ;;  %v1539_v5 = vand.u32 2147483647, %v1538_v33  ;;  %v1541_v52 = vcvt.s32.f32 %v1534_v12  ;;  %v1707_v24 = vsel %vm1699_vm3, %v1686_v14, %v1689_v6  ;;  %v1709_v27 = vsel %vm1701_vm7, %v1692_v43, %v9585_v0 }
 0x1b0   :  { %v9754_v11 = vshrl.u32 %v1312_v56, 30  ;;  %vm1700_vm12 = vcmp.lt.s32.totalorder %v9306_v59, 2  ;;  %v1704_v41 = vsel %vm1702_vm2, %v1692_v43, 2102212464  ;;  %v1711_v30 = vsel %vm1699_vm3, %v1689_v6, %v1692_v43 }
 0x1b1   :  { %vm1390_vm13 = vcmp.lt.s32.totalorder %v15041_v10, 4  ;;  %v1143_v13 = vxor.u32 2147483648, %v8193_v51  ;;  %v1542_v53 = vmul.f32 %v1541_v52, %v1539_v5  ;;  %v1713_v9 = vsel %vm1701_vm7, %v9492_v18, %v1712_v15 }
 0x1b2   :  { %v1715_v37 = vshll.u32 %v1675_v1, 8  ;;  %v1140_v0 = vxor.u32 2147483648, %v8195_v54  ;;  %v1314_v50 = vshll.u32 %v9754_v11, 30  ;;  %v1710_v26 = vsel %vm1700_vm12, %v1707_v24, %v1709_v27 }
 0x1b3   :  { %v1714_v40 = vsel %vm1700_vm12, %v1711_v30, %v1713_v9  ;;  %v1543_v17 = vxor.u32 2147483648, %v1542_v53  ;;  %v1552_v4 = vadd.s32 3, %v1548_v31  ;;  %vm1139_vm2 = vcmp.eq.s32.totalorder %v1137_v23, 0  ;;  %v15044_v31 = vld [vmem:[#allocation36_spill] sm:$0xff]  ;;  %v15046_v30 = vld [vmem:[#allocation19_spill] sm:$0xff] }
 0x1b4   :  { %v9770_v7 = vmul.u32.u64.low %v1715_v37, %v1714_v40  ;;  %v9771_v61 = vmul.u32.u64.high %v1715_v37, %v1714_v40, %v9770_v7  ;;  %v9773_v58 = vsub.s32 %v1311_v32, %v1314_v50  ;;  %v1703_v18 = vsel %vm1699_vm3, %v1683_v55, %v1686_v14  ;;  %v15042_v14 = vld [vmem:[#allocation10_spill] sm:$0xff] }
 0x1b5   :  { %v1705_v15 = vsel %vm1701_vm7, %v1689_v6, %v1704_v41  ;;  %vm1142_vm14 = vcmp.eq.s32.totalorder %v1137_v23, 2  ;;  %v1544_v21 = vsel %vm1461_vm10, %v1543_v17, %v1542_v53  ;;  %v1141_v48 = vsel %vm1139_vm2, %v8193_v51, %v1140_v0  ;;  %v15043_v6 = vld [vmem:[#allocation34_spill] sm:$0xff]  ;;  %v15045_v41 = vld [vmem:[#allocation25_spill] sm:$0xff] }
 0x1b6   :  { %v9781_v38 = vmul.u32.u64.low %v1715_v37, %v1710_v26  ;;  %v9782_v25 = vmul.u32.u64.high %v1715_v37, %v1710_v26, %v9781_v38  ;;  %v1144_v46 = vsel %vm1142_vm14, %v1143_v13, %v8195_v54  ;;  %v1547_v3 = vsel %vm9739_vm11, %v15028_v22, %v1544_v21 }
 0x1b7   :  { %v1317_v44 = vsub.s32 0, %v9773_v58  ;;  %vm1138_vm9 = vcmp.lt.s32.totalorder %v1137_v23, 2  ;;  %8196 = vcosq.f32 %v1547_v3  ;;  %v9789_v12 = vand.u32 3, %v1552_v4 }
 0x1b8   :  { %v1706_v34 = vsel %vm1700_vm12, %v1703_v18, %v1705_v15  ;;  %8198 = vsinq.f32 %v1547_v3  ;;  %vm1724_vm0 = vc.u32 %v9771_v61, %v9781_v38  ;;  %v939_v32 = vand.u32 2147483647, %v15042_v14 }
 0x1b9   :  { %v7606_v28 = vmin.u32 %v1317_v44, %v9773_v58  ;;  %v9798_v19 = vshrl.u32 %v15043_v6, 5  ;;  %v9801_v43 = vand.u32 31, %v15043_v6  ;;  %v1145_v23 = vsel %vm1138_vm9, %v1141_v48, %v1144_v46 }
 0x1ba   :  { %v1725_v33 = vadd.s32 1, %v9782_v25  ;;  %v1386_v59 = vor.u32 %v9062_v57, %v15044_v31  ;;  %v9809_v1 = vsel %vm1390_vm13, %v9286_v63, 920167782  ;;  %v1722_v56 = vmul.u32 %v1715_v37, %v1706_v34 }
 0x1bb   :  { %v1319_v51 = vclz %v7606_v28  ;;  %vm1135_vm1 = vweird.f32 %v15022_v39  ;;  %vm1558_vm6 = vcmp.eq.s32.totalorder %v9789_v12, 2  ;;  %v1307_v55 = vadd.s32 %v9704_v60, %v9701_v45 }
 0x1bc   :  { %v1726_v54 = vsel %vm1724_vm0, %v1725_v33, %v9782_v25  ;;  %v1146_v5 = vsel %vm1135_vm1, nan, %v1145_v23  ;;  %vm1555_vm4 = vcmp.eq.s32.totalorder %v9789_v12, 0  ;;  %v9819_v27 = vand.u32 8388607, %v939_v32 }
 0x1bd   :  { %v7607_v52 = vadd.s32 4294967294, %v1319_v51  ;;  %v1727_v24 = vadd.s32 %v1726_v54, %v1722_v56  ;;  %vm1554_vm10 = vcmp.lt.s32.totalorder %v9789_v12, 2  ;;  %v955_v39 = vshrl.u32 %v14995_v49, %v15045_v41 }
 0x1be   :  { %v956_v13 = vshll.u32 %v14995_v49, %v15046_v30  ;;  %v962_v45 = vshll.u32 %v14997_v62, %v15046_v30  ;;  %v963_v60 = vshrl.u32 %v14998_v20, %v15045_v41  ;;  %vm1551_vm15 = vweird.f32 %v15028_v22 }
 0x1bf   :  { %vm7608_vm5 = vcmp.lt.s32.totalorder %v7607_v52, 0  ;;  %v1728_v53 = vadd.s32 536870912, %v1727_v24  ;;  %v957_v9 = vshrl.u32 %v14996_v16, %v15045_v41  ;;  %v959_v37 = vshll.u32 %v14996_v16, %v15046_v30 }
 0x1c0   :  { %v1322_v0 = vsel %vm7608_vm5, 0, %v7607_v52  ;;  %v960_v50 = vshrl.u32 %v14997_v62, %v15045_v41  ;;  %v965_v26 = vshll.u32 %v14998_v20, %v15046_v30  ;;  %v966_v40 = vshrl.u32 %v14999_v29, %v15045_v41 }
 0x1c1   :  { %v1323_v17 = vsub.s32 32, %v1322_v0  ;;  %v1327_v4 = vsub.s32 4294967266, %v1322_v0  ;;  %v9841_v7 = vshrl.u32 %v1728_v53, 30  ;;  %v947_v18 = vor.u32 8388608, %v9819_v27  ;;  %v8197_v15 = vpop.eup %8196 }
 0x1c2   :  { %v1324_v21 = vshll.u32 %v9773_v58, %v1322_v0  ;;  %v964_v25 = vor.u32 %v963_v60, %v962_v45  ;;  %v968_v48 = vshll.u32 %v14999_v29, %v15046_v30  ;;  %v969_v46 = vshrl.u32 %v15000_v47, %v15045_v41  ;;  %v8199_v3 = vpop.eup %8198  ;;  %v15047_v45 = vld [vmem:[#allocation17_spill] sm:$0xff] }
 0x1c3   :  { %v1559_v44 = vxor.u32 2147483648, %v8197_v15  ;;  %v1325_v34 = vshrl.u32 %v1307_v55, %v1323_v17  ;;  %v1328_v28 = vadd.s32 127, %v1327_v4  ;;  %v1730_v6 = vshll.u32 %v9841_v7, 30 }
 0x1c4   :  { %v1556_v23 = vxor.u32 2147483648, %v8199_v3  ;;  %v958_v33 = vor.u32 %v957_v9, %v956_v13  ;;  %v961_v51 = vor.u32 %v960_v50, %v959_v37  ;;  %v967_v56 = vor.u32 %v966_v40, %v965_v26 }
 0x1c5   :  { %v1560_v58 = vsel %vm1558_vm6, %v1559_v44, %v8199_v3  ;;  %v1326_v54 = vor.u32 %v1325_v34, %v1324_v21  ;;  %v1329_v52 = vshll.u32 %v1328_v28, 23  ;;  %v9852_v27 = vsub.s32 %v1727_v24, %v1730_v6 }
 0x1c6   :  { %v1557_v41 = vsel %vm1555_vm4, %v8197_v15, %v1556_v23  ;;  %v970_v30 = vor.u32 %v969_v46, %v968_v48  ;;  %vm971_vm8 = vcmp.lt.s32.totalorder %v15047_v45, 1  ;;  %vm974_vm11 = vcmp.lt.s32.totalorder %v15047_v45, 4 }
 0x1c7   :  { %v1561_v55 = vsel %vm1554_vm10, %v1557_v41, %v1560_v58  ;;  %v1330_v13 = vor.u32 4788187, %v1329_v52  ;;  %v1733_v60 = vsub.s32 0, %v9852_v27  ;;  %v976_v53 = vsel %vm974_vm11, %v964_v25, 2102212464  ;;  %v15050_v52 = vld [vmem:[#allocation14_spill] sm:$0xff] }
 0x1c8   :  { %v1562_v24 = vsel %vm1551_vm15, nan, %v1561_v55  ;;  %v1333_v9 = vcvt.s32.f32 %v1326_v54  ;;  %vm972_vm3 = vcmp.lt.s32.totalorder %v15047_v45, 2  ;;  %vm973_vm7 = vcmp.lt.s32.totalorder %v15047_v45, 3 }
 0x1c9   :  { %v7845_v37 = vpack.c.bf16 %v1562_v24, %v1146_v5  ;;  %v1331_v0 = vand.u32 2147483647, %v1330_v13  ;;  %v7622_v50 = vmin.u32 %v1733_v60, %v9852_v27  ;;  %v979_v12 = vsel %vm971_vm8, %v958_v33, %v961_v51 }
 0x1ca   :  { %v975_v26 = vsel %vm971_vm8, %v955_v39, %v958_v33  ;;  %v977_v40 = vsel %vm973_vm7, %v961_v51, %v976_v53  ;;  %v980_v22 = vsel %vm974_vm11, %v967_v56, 920167782  ;;  %v984_v17 = vsel %vm974_vm11, %v970_v30, 1326507024 }
 0x1cb   :  { %7846 = vmatprep.subr.bf16.mxu0 %v7845_v37  ;;  %v1334_v5 = vmul.f32 %v1333_v9, %v1331_v0  ;;  %v1735_v4 = vclz %v7622_v50  ;;  %v981_v15 = vsel %vm973_vm7, %v964_v25, %v980_v22  ;;  %v983_v21 = vsel %vm971_vm8, %v961_v51, %v964_v25  ;;  %v15051_v0 = vld [vmem:[#allocation31_spill] sm:$0xff] }
 0x1cc   :  { %v1337_v39 = vsub.s32 4, %v9754_v11  ;;  %v982_v48 = vsel %vm972_vm3, %v979_v12, %v981_v15  ;;  %v985_v46 = vsel %vm973_vm7, %v967_v56, %v984_v17  ;;  %v987_v3 = vshll.u32 %v947_v18, 8 }
 0x1cd   :  { %vm9889_vm12 = vcmp.le.f32.partialorder %v1251_v2, 0.7853982  ;;  %vm1253_vm2 = vcmp.lt.s32.totalorder %v15032_v35, 0  ;;  %v1335_v34 = vxor.u32 2147483648, %v1334_v5  ;;  %v7623_v28 = vadd.s32 4294967294, %v1735_v4 }
 0x1ce   :  { %vm1669_vm14 = vcmp.lt.s32.totalorder %v15038_v42, 0  ;;  %v978_v25 = vsel %vm972_vm3, %v975_v26, %v977_v40  ;;  %v986_v6 = vsel %vm972_vm3, %v983_v21, %v985_v46  ;;  %v1338_v56 = vsel %vm1253_vm2, %v1337_v39, %v9754_v11 }
 0x1cf   :  { %v9899_v23 = vmul.u32.u64.low %v987_v3, %v982_v48  ;;  %v9900_v18 = vmul.u32.u64.high %v987_v3, %v982_v48, %v9899_v23  ;;  %v1336_v2 = vsel %vm1253_vm2, %v1335_v34, %v1334_v5  ;;  %vm7624_vm9 = vcmp.lt.s32.totalorder %v7623_v28, 0 }
 0x1d0   :  { %v9903_v33 = vmul.u32.u64.low %v987_v3, %v986_v6  ;;  %v9904_v51 = vmul.u32.u64.high %v987_v3, %v986_v6, %v9903_v33  ;;  %v1339_v58 = vsel %vm9889_vm12, %v15032_v35, %v1336_v2  ;;  %v1738_v54 = vsel %vm7624_vm9, 0, %v7623_v28 }
 0x1d1   :  { %v1355_v41 = vand.u32 2147483647, %v15050_v52  ;;  %v1723_v30 = vadd.s32 %v9781_v38, %v9771_v61  ;;  %v1739_v45 = vsub.s32 32, %v1738_v54  ;;  %v1743_v55 = vsub.s32 4294967266, %v1738_v54 }
 0x1d2   :  { %v1753_v13 = vsub.s32 4, %v9841_v7  ;;  %8200 = vcosq.f32 %v1339_v58  ;;  %v1740_v60 = vshll.u32 %v9852_v27, %v1738_v54  ;;  %v994_v53 = vmul.u32 %v987_v3, %v978_v25 }
 0x1d3   :  { %v997_v11 = vadd.s32 1, %v9900_v18  ;;  %8202 = vsinq.f32 %v1339_v58  ;;  %v1741_v24 = vshrl.u32 %v1723_v30, %v1739_v45  ;;  %v1744_v9 = vadd.s32 127, %v1743_v55 }
 0x1d4   :  { %vm996_vm0 = vc.u32 %v9904_v51, %v9899_v23  ;;  %v1340_v37 = vsel %vm9889_vm12, 0, %v1338_v56  ;;  %v1362_v38 = vand.u32 8388607, %v1355_v41  ;;  %v1372_v27 = vshll.u32 %v14995_v49, %v15051_v0 }
 0x1d5   :  { %v998_v61 = vsel %vm996_vm0, %v997_v11, %v9900_v18  ;;  %v1742_v50 = vor.u32 %v1741_v24, %v1740_v60  ;;  %v1745_v12 = vshll.u32 %v1744_v9, 23  ;;  %v1373_v40 = vshrl.u32 %v14996_v16, %v8720_v8 }
 0x1d6   :  { %v999_v26 = vadd.s32 %v998_v61, %v994_v53  ;;  %v1375_v22 = vshll.u32 %v14996_v16, %v15051_v0  ;;  %v1376_v17 = vshrl.u32 %v14997_v62, %v8720_v8  ;;  %v1378_v5 = vshll.u32 %v14997_v62, %v15051_v0 }
 0x1d7   :  { %v1379_v4 = vshrl.u32 %v14998_v20, %v8720_v8  ;;  %v1400_v15 = vsel %vm1390_vm13, %v1386_v59, 1326507024  ;;  %v1746_v21 = vor.u32 4788187, %v1745_v12  ;;  %v1754_v39 = vsel %vm1669_vm14, %v1753_v13, %v9841_v7 }
 0x1d8   :  { %v1000_v48 = vadd.s32 536870912, %v999_v26  ;;  %v1344_v46 = vadd.s32 3, %v1340_v37  ;;  %v1374_v3 = vor.u32 %v1373_v40, %v1372_v27  ;;  %v1377_v44 = vor.u32 %v1376_v17, %v1375_v22 }
 0x1d9   :  { %v1380_v34 = vor.u32 %v1379_v4, %v1378_v5  ;;  %vm9945_vm1 = vcmp.le.f32.partialorder %v1667_v36, 0.7853982  ;;  %v1747_v57 = vand.u32 2147483647, %v1746_v21  ;;  %v1749_v31 = vcvt.s32.f32 %v1742_v50 }
 0x1da   :  { %v9949_v25 = vshrl.u32 %v1000_v48, 30  ;;  %v9952_v59 = vsub.s32 32, %v9801_v43  ;;  %v1756_v7 = vsel %vm9945_vm1, 0, %v1754_v39  ;;  %v1363_v6 = vor.u32 8388608, %v1362_v38 }
 0x1db   :  { %vm1387_vm6 = vcmp.lt.s32.totalorder %v15041_v10, 1  ;;  %v1750_v18 = vmul.f32 %v1749_v31, %v1747_v57  ;;  %vm1389_vm4 = vcmp.lt.s32.totalorder %v15041_v10, 3  ;;  %v1345_v56 = vand.u32 3, %v1344_v46 }
 0x1dc   :  { %v1002_v2 = vshll.u32 %v9949_v25, 30  ;;  %v1399_v36 = vsel %vm1387_vm6, %v1377_v44, %v1380_v34  ;;  %v8201_v33 = vpop.eup %8200  ;;  %v1395_v58 = vsel %vm1387_vm6, %v1374_v3, %v1377_v44  ;;  %v1397_v54 = vsel %vm1389_vm4, %v1380_v34, %v9809_v1 }
 0x1dd   :  { %v1401_v30 = vsel %vm1389_vm4, %v9286_v63, %v1400_v15  ;;  %v8203_v45 = vpop.eup %8202  ;;  %v1751_v55 = vxor.u32 2147483648, %v1750_v18  ;;  %v1760_v13 = vadd.s32 3, %v1756_v7  ;;  %vm1388_vm10 = vcmp.lt.s32.totalorder %v15041_v10, 2  ;;  %v15054_v10 = vld [vmem:[#allocation12_spill] sm:$0xff] }
 0x1de   :  { %v9969_v60 = vsub.s32 %v999_v26, %v1002_v2  ;;  %v1371_v53 = vshrl.u32 %v14995_v49, %v8720_v8  ;;  %v1392_v11 = vsel %vm1390_vm13, %v1380_v34, 2102212464  ;;  %v1402_v1 = vsel %vm1388_vm10, %v1399_v36, %v1401_v30  ;;  %v15056_v2 = vld [vmem:[#allocation29_spill] sm:$0xff] }
 0x1df   :  { %v1403_v24 = vshll.u32 %v1363_v6, 8  ;;  %v1351_v9 = vxor.u32 2147483648, %v8201_v33  ;;  %v1752_v63 = vsel %vm1669_vm14, %v1751_v55, %v1750_v18  ;;  %v1398_v61 = vsel %vm1388_vm10, %v1395_v58, %v1397_v54  ;;  %v15055_v6 = vld [vmem:[#allocation23_spill] sm:$0xff] }
 0x1e0   :  { %v1005_v37 = vsub.s32 0, %v9969_v60  ;;  %v1348_v38 = vxor.u32 2147483648, %v8203_v45  ;;  %v1755_v8 = vsel %vm9945_vm1, %v15038_v42, %v1752_v63  ;;  %v1391_v12 = vsel %vm1387_vm6, %v1371_v53, %v1374_v3 }
 0x1e1   :  { %v9986_v0 = vmul.u32.u64.low %v1403_v24, %v1402_v1  ;;  %v9987_v27 = vmul.u32.u64.high %v1403_v24, %v1402_v1, %v9986_v0  ;;  %8204 = vcosq.f32 %v1755_v8  ;;  %v1393_v26 = vsel %vm1389_vm4, %v1377_v44, %v1392_v11 }
 0x1e2   :  { %v7594_v50 = vmin.u32 %v1005_v37, %v9969_v60  ;;  %8206 = vsinq.f32 %v1755_v8  ;;  %v1761_v40 = vand.u32 3, %v1760_v13  ;;  %v10000_v5 = vshrl.u32 %v14999_v29, %v9952_v59 }
 0x1e3   :  { %v9994_v22 = vmul.u32.u64.low %v1403_v24, %v1398_v61  ;;  %v9995_v17 = vmul.u32.u64.high %v1403_v24, %v1398_v61, %v9994_v22  ;;  %vm1347_vm13 = vcmp.eq.s32.totalorder %v1345_v56, 0  ;;  %vm1350_vm15 = vcmp.eq.s32.totalorder %v1345_v56, 2 }
 0x1e4   :  { %v1007_v4 = vclz %v7594_v50  ;;  %v10004_v15 = vshrl.u32 %v15000_v47, %v9952_v59  ;;  %v1349_v21 = vsel %vm1347_vm13, %v8201_v33, %v1348_v38  ;;  %v1352_v39 = vsel %vm1350_vm15, %v1351_v9, %v8203_v45 }
 0x1e5   :  { %v1394_v48 = vsel %vm1388_vm10, %v1391_v12, %v1393_v26  ;;  %vm1343_vm5 = vweird.f32 %v15032_v35  ;;  %vm1346_vm8 = vcmp.lt.s32.totalorder %v1345_v56, 2  ;;  %vm1412_vm11 = vc.u32 %v9987_v27, %v9994_v22 }
 0x1e6   :  { %v7595_v46 = vadd.s32 4294967294, %v1007_v4  ;;  %vm1763_vm3 = vcmp.eq.s32.totalorder %v1761_v40, 0  ;;  %vm1766_vm7 = vcmp.eq.s32.totalorder %v1761_v40, 2  ;;  %v995_v3 = vadd.s32 %v9899_v23, %v9904_v51 }
 0x1e7   :  { %v1413_v44 = vadd.s32 1, %v9995_v17  ;;  %v1353_v34 = vsel %vm1346_vm8, %v1349_v21, %v1352_v39  ;;  %vm1762_vm12 = vcmp.lt.s32.totalorder %v1761_v40, 2  ;;  %v1410_v28 = vmul.u32 %v1403_v24, %v1394_v48 }
 0x1e8   :  { %vm7596_vm2 = vcmp.lt.s32.totalorder %v7595_v46, 0  ;;  %v1147_v57 = vand.u32 2147483647, %v15054_v10  ;;  %vm1759_vm14 = vweird.f32 %v15038_v42  ;;  %v1164_v18 = vshll.u32 %v14995_v49, %v15055_v6 }
 0x1e9   :  { %v1010_v31 = vsel %vm7596_vm2, 0, %v7595_v46  ;;  %v1414_v7 = vsel %vm1412_vm11, %v1413_v44, %v9995_v17  ;;  %v1165_v36 = vshrl.u32 %v14996_v16, %v15056_v2  ;;  %v1167_v56 = vshll.u32 %v14996_v16, %v15055_v6 }
 0x1ea   :  { %v1011_v23 = vsub.s32 32, %v1010_v31  ;;  %v1015_v51 = vsub.s32 4294967266, %v1010_v31  ;;  %v1415_v33 = vadd.s32 %v1414_v7, %v1410_v28  ;;  %v1012_v58 = vshll.u32 %v9969_v60, %v1010_v31 }
 0x1eb   :  { %v1168_v54 = vshrl.u32 %v14997_v62, %v15056_v2  ;;  %v1170_v30 = vshll.u32 %v14997_v62, %v15055_v6  ;;  %v1171_v45 = vshrl.u32 %v14998_v20, %v15056_v2  ;;  %v8205_v55 = vpop.eup %8204  ;;  %v1173_v1 = vshll.u32 %v14998_v20, %v15055_v6 }
 0x1ec   :  { %v1013_v13 = vshrl.u32 %v995_v3, %v1011_v23  ;;  %v1016_v53 = vadd.s32 127, %v1015_v51  ;;  %v1416_v11 = vadd.s32 536870912, %v1415_v33  ;;  %v8207_v24 = vpop.eup %8206  ;;  %v1767_v9 = vxor.u32 2147483648, %v8205_v55  ;;  %v15057_v23 = vld [vmem:[#allocation22_spill] sm:$0xff] }
 0x1ed   :  { %v1174_v60 = vshrl.u32 %v14999_v29, %v15056_v2  ;;  %v1176_v63 = vshll.u32 %v14999_v29, %v15055_v6  ;;  %v1177_v37 = vshrl.u32 %v15000_v47, %v15056_v2  ;;  %v1764_v61 = vxor.u32 2147483648, %v8207_v24 }
 0x1ee   :  { %v1014_v38 = vor.u32 %v1013_v13, %v1012_v58  ;;  %v1017_v8 = vshll.u32 %v1016_v53, 23  ;;  %v10038_v0 = vshrl.u32 %v1416_v11, 30  ;;  %v1354_v50 = vsel %vm1343_vm5, nan, %v1353_v34 }
 0x1ef   :  { %v1768_v12 = vsel %vm1766_vm7, %v1767_v9, %v8207_v24  ;;  %v1154_v26 = vand.u32 8388607, %v1147_v57  ;;  %v1166_v17 = vor.u32 %v1165_v36, %v1164_v18  ;;  %v1765_v4 = vsel %vm1763_vm3, %v8205_v55, %v1764_v61 }
 0x1f0   :  { %v1018_v21 = vor.u32 4788187, %v1017_v8  ;;  %v1418_v39 = vshll.u32 %v10038_v0, 30  ;;  %v1172_v48 = vor.u32 %v1171_v45, %v1170_v30  ;;  %v1769_v46 = vsel %vm1762_vm12, %v1765_v4, %v1768_v12 }
 0x1f1   :  { %v1169_v3 = vor.u32 %v1168_v54, %v1167_v56  ;;  %v1175_v44 = vor.u32 %v1174_v60, %v1173_v1  ;;  %v1178_v28 = vor.u32 %v1177_v37, %v1176_v63  ;;  %v1770_v35 = vsel %vm1759_vm14, nan, %v1769_v46 }
 0x1f2   :  { %v1019_v34 = vand.u32 2147483647, %v1018_v21  ;;  %v1021_v31 = vcvt.s32.f32 %v1014_v38  ;;  %v10050_v7 = vsub.s32 %v1415_v33, %v1418_v39  ;;  %v7853_v6 = vpack.c.bf16 %v1770_v35, %v1354_v50 }
 0x1f3   :  { %v1155_v18 = vor.u32 8388608, %v1154_v26  ;;  %v1163_v36 = vshrl.u32 %v14995_v49, %v15056_v2  ;;  %vm1182_vm9 = vcmp.lt.s32.totalorder %v15057_v23, 4  ;;  %vm1179_vm0 = vcmp.lt.s32.totalorder %v15057_v23, 1 }
 0x1f4   :  { %v1022_v51 = vmul.f32 %v1021_v31, %v1019_v34  ;;  %v1421_v40 = vsub.s32 0, %v10050_v7  ;;  %v1184_v56 = vsel %vm1182_vm9, %v1172_v48, 2102212464  ;;  %7854 = vmatprep.subr.bf16.mxu1 %v7853_v6  ;;  %vm1181_vm1 = vcmp.lt.s32.totalorder %v15057_v23, 3 }
 0x1f5   :  { %v1187_v42 = vsel %vm1179_vm0, %v1166_v17, %v1169_v3  ;;  %v1188_v58 = vsel %vm1182_vm9, %v1175_v44, 920167782  ;;  %v1191_v33 = vsel %vm1179_vm0, %v1169_v3, %v1172_v48  ;;  %v1192_v55 = vsel %vm1182_vm9, %v1178_v28, 1326507024 }
 0x1f6   :  { %v1023_v54 = vxor.u32 2147483648, %v1022_v51  ;;  %v7610_v30 = vmin.u32 %v1421_v40, %v10050_v7  ;;  %v1189_v45 = vsel %vm1181_vm1, %v1172_v48, %v1188_v58  ;;  %vm1180_vm6 = vcmp.lt.s32.totalorder %v15057_v23, 2 }
 0x1f7   :  { %v1183_v2 = vsel %vm1179_vm0, %v1163_v36, %v1166_v17  ;;  %v1185_v13 = vsel %vm1181_vm1, %v1169_v3, %v1184_v56  ;;  %v1193_v53 = vsel %vm1181_vm1, %v1175_v44, %v1192_v55  ;;  %v1190_v1 = vsel %vm1180_vm6, %v1187_v42, %v1189_v45  ;;  %v15060_v3 = vld [vmem:[#allocation16_spill] sm:$0xff] }
 0x1f8   :  { %v1423_v11 = vclz %v7610_v30  ;;  %v1194_v24 = vsel %vm1180_vm6, %v1191_v33, %v1193_v53  ;;  %v1195_v9 = vshll.u32 %v1155_v18, 8  ;;  %v1589_v60 = vshll.u32 %v14998_v20, %v9801_v43 }
 0x1f9   :  { %v1592_v63 = vshll.u32 %v14999_v29, %v9801_v43  ;;  %vm941_vm4 = vcmp.lt.s32.totalorder %v15042_v14, 0  ;;  %vm1598_vm10 = vcmp.lt.s32.totalorder %v9798_v19, 4  ;;  %v1186_v12 = vsel %vm1180_vm6, %v1183_v2, %v1185_v13 }
 0x1fa   :  { %v1024_v37 = vsel %vm941_vm4, %v1023_v54, %v1022_v51  ;;  %v7611_v61 = vadd.s32 4294967294, %v1423_v11  ;;  %v10072_v38 = vmul.u32.u64.low %v1195_v9, %v1194_v24  ;;  %v10073_v8 = vmul.u32.u64.high %v1195_v9, %v1194_v24, %v10072_v38 }
 0x1fb   :  { %v1591_v50 = vor.u32 %v10000_v5, %v1589_v60  ;;  %v10078_v26 = vmul.u32.u64.low %v1195_v9, %v1190_v1  ;;  %v10079_v17 = vmul.u32.u64.high %v1195_v9, %v1190_v1, %v10078_v26  ;;  %v1594_v4 = vor.u32 %v10004_v15, %v1592_v63 }
 0x1fc   :  { %vm10085_vm13 = vcmp.le.f32.partialorder %v939_v32, 0.7853982  ;;  %v1025_v39 = vsub.s32 4, %v9949_v25  ;;  %vm7612_vm15 = vcmp.lt.s32.totalorder %v7611_v61, 0  ;;  %v1411_v48 = vadd.s32 %v9994_v22, %v9987_v27 }
 0x1fd   :  { %v1027_v5 = vsel %vm10085_vm13, %v15042_v14, %v1024_v37  ;;  %v1426_v46 = vsel %vm7612_vm15, 0, %v7611_v61  ;;  %v1563_v44 = vand.u32 2147483647, %v15060_v3  ;;  %v1202_v35 = vmul.u32 %v1195_v9, %v1186_v12 }
 0x1fe   :  { %v1427_v15 = vsub.s32 32, %v1426_v46  ;;  %v1431_v28 = vsub.s32 4294967266, %v1426_v46  ;;  %v1584_v32 = vshrl.u32 %v14997_v62, %v9952_v59  ;;  %vm1204_vm5 = vc.u32 %v10073_v8, %v10078_v26 }
 0x1ff   :  { %v1205_v34 = vadd.s32 1, %v10079_v17  ;;  %v1580_v31 = vshll.u32 %v14995_v49, %v9801_v43  ;;  %v1581_v27 = vshrl.u32 %v14996_v16, %v9952_v59  ;;  %v1428_v22 = vshll.u32 %v10050_v7, %v1426_v46 }
 0x200   :  { %v1429_v6 = vshrl.u32 %v1411_v48, %v1427_v15  ;;  %v1432_v18 = vadd.s32 127, %v1431_v28  ;;  %v1583_v36 = vshll.u32 %v14996_v16, %v9801_v43  ;;  %v1570_v51 = vand.u32 8388607, %v1563_v44 }
 0x201   :  { %v1206_v23 = vsel %vm1204_vm5, %v1205_v34, %v10079_v17  ;;  %v1586_v40 = vshll.u32 %v14997_v62, %v9801_v43  ;;  %v1587_v56 = vshrl.u32 %v14998_v20, %v9952_v59  ;;  %vm1357_vm8 = vcmp.lt.s32.totalorder %v15050_v52, 0 }
 0x202   :  { %v1430_v42 = vor.u32 %v1429_v6, %v1428_v22  ;;  %v1433_v7 = vshll.u32 %v1432_v18, 23  ;;  %v1207_v58 = vadd.s32 %v1206_v23, %v1202_v35  ;;  %v1585_v33 = vor.u32 %v1584_v32, %v1583_v36 }
 0x203   :  { %v1604_v54 = vsel %vm1598_vm10, %v1591_v50, 920167782  ;;  %v1608_v30 = vsel %vm1598_vm10, %v1594_v4, 1326507024  ;;  %v1582_v45 = vor.u32 %v1581_v27, %v1580_v31  ;;  %v1588_v55 = vor.u32 %v1587_v56, %v1586_v40 }
 0x204   :  { %v1026_v43 = vsel %vm941_vm4, %v1025_v39, %v9949_v25  ;;  %v1434_v2 = vor.u32 4788187, %v1433_v7  ;;  %v1441_v13 = vsub.s32 4, %v10038_v0  ;;  %v1208_v53 = vadd.s32 536870912, %v1207_v58 }
 0x205   :  { %8208 = vcosq.f32 %v1027_v5  ;;  %v1571_v11 = vor.u32 8388608, %v1570_v51  ;;  %vm1595_vm11 = vcmp.lt.s32.totalorder %v9798_v19, 1  ;;  %vm1597_vm3 = vcmp.lt.s32.totalorder %v9798_v19, 3 }
 0x206   :  { %v1435_v1 = vand.u32 2147483647, %v1434_v2  ;;  %v1437_v24 = vcvt.s32.f32 %v1430_v42  ;;  %v10126_v9 = vshrl.u32 %v1208_v53, 30  ;;  %v1607_v60 = vsel %vm1595_vm11, %v1585_v33, %v1588_v55 }
 0x207   :  { %8210 = vsinq.f32 %v1027_v5  ;;  %v1603_v25 = vsel %vm1595_vm11, %v1582_v45, %v1585_v33  ;;  %v1605_v63 = vsel %vm1597_vm3, %v1588_v55, %v1604_v54  ;;  %v1609_v37 = vsel %vm1597_vm3, %v1591_v50, %v1608_v30 }
 0x208   :  { %vm10138_vm7 = vcmp.le.f32.partialorder %v1355_v41, 0.7853982  ;;  %v1438_v38 = vmul.f32 %v1437_v24, %v1435_v1  ;;  %v1210_v12 = vshll.u32 %v10126_v9, 30  ;;  %vm1596_vm12 = vcmp.lt.s32.totalorder %v9798_v19, 2 }
 0x209   :  { %v1579_v17 = vshrl.u32 %v14995_v49, %v9952_v59  ;;  %v1600_v4 = vsel %vm1598_vm10, %v1588_v55, 2102212464  ;;  %v1610_v50 = vsel %vm1596_vm12, %v1607_v60, %v1609_v37  ;;  %v1611_v39 = vshll.u32 %v1571_v11, 8 }
 0x20a   :  { %v1028_v41 = vsel %vm10085_vm13, 0, %v1026_v43  ;;  %v1439_v5 = vxor.u32 2147483648, %v1438_v38  ;;  %v10152_v48 = vsub.s32 %v1207_v58, %v1210_v12  ;;  %v1606_v46 = vsel %vm1596_vm12, %v1603_v25, %v1605_v63 }
 0x20b   :  { %v1442_v59 = vsel %vm1357_vm8, %v1441_v13, %v10038_v0  ;;  %v1599_v15 = vsel %vm1595_vm11, %v1579_v17, %v1582_v45  ;;  %v10161_v28 = vmul.u32.u64.low %v1611_v39, %v1610_v50  ;;  %v10162_v35 = vmul.u32.u64.high %v1611_v39, %v1610_v50, %v10161_v28 }
 0x20c   :  { %v1440_v21 = vsel %vm1357_vm8, %v1439_v5, %v1438_v38  ;;  %v1213_v32 = vsub.s32 0, %v10152_v48  ;;  %v1601_v34 = vsel %vm1597_vm3, %v1585_v33, %v1600_v4  ;;  %v1032_v31 = vadd.s32 3, %v1028_v41 }
 0x20d   :  { %v1443_v27 = vsel %vm10138_vm7, %v15050_v52, %v1440_v21  ;;  %v10172_v0 = vmul.u32.u64.low %v1611_v39, %v1606_v46  ;;  %v10173_v22 = vmul.u32.u64.high %v1611_v39, %v1606_v46, %v10172_v0  ;;  %v14868_v6 = vmov 0.0  }
 0x20e   :  { %1884 = vmatprep.mubr.f32.mxu0 %v14868_v6  ;;  %1973 = vmatprep.mubr.f32.mxu1 %v14868_v6  ;;  %v1444_v18 = vsel %vm10138_vm7, 0, %v1442_v59  ;;  %8212 = vcosq.f32 %v1443_v27  ;;  %v7602_v36 = vmin.u32 %v1213_v32, %v10152_v48  ;;  %v1602_v51 = vsel %vm1596_vm12, %v1599_v15, %v1601_v34 }
 0x20f   :  { %v8209_v23 = vpop.eup %8208  ;;  %8214 = vsinq.f32 %v1443_v27  ;;  %vm1620_vm2 = vc.u32 %v10162_v35, %v10172_v0  ;;  %v1033_v42 = vand.u32 3, %v1032_v31  ;;  %v1448_v7 = vadd.s32 3, %v1444_v18 }
 0x210   :  { %v1215_v40 = vclz %v7602_v36  ;;  %v1621_v58 = vadd.s32 1, %v10173_v22  ;;  %v1618_v54 = vmul.u32 %v1611_v39, %v1602_v51  ;;  %v1039_v30 = vxor.u32 2147483648, %v8209_v23 }
 0x211   :  { %v8211_v56 = vpop.eup %8210  ;;  %vm1038_vm9 = vcmp.eq.s32.totalorder %v1033_v42, 2  ;;  %v1449_v19 = vand.u32 3, %v1448_v7  ;;  %v1203_v13 = vadd.s32 %v10078_v26, %v10073_v8  ;;  %vm1035_vm0 = vcmp.eq.s32.totalorder %v1033_v42, 0  ;;  %v10208_v7 = vld [vmem:[#allocation3 + $0x10] sm:$0xff] }
 0x212   :  { %v7603_v33 = vadd.s32 4294967294, %v1215_v40  ;;  %v1622_v45 = vsel %vm1620_vm2, %v1621_v58, %v10173_v22  ;;  %v1036_v55 = vxor.u32 2147483648, %v8211_v56  ;;  %v1040_v24 = vsel %vm1038_vm9, %v1039_v30, %v8211_v56  ;;  %v10195_v22 = vld [vmem:[#allocation3] sm:$0xff] }
 0x213   :  { %v1623_v43 = vadd.s32 %v1622_v45, %v1618_v54  ;;  %vm1034_vm1 = vcmp.lt.s32.totalorder %v1033_v42, 2  ;;  %vm1454_vm6 = vcmp.eq.s32.totalorder %v1449_v19, 2  ;;  %vm1450_vm4 = vcmp.lt.s32.totalorder %v1449_v19, 2 }
 0x214   :  { %vm7604_vm14 = vcmp.lt.s32.totalorder %v7603_v33, 0  ;;  %v1037_v25 = vsel %vm1035_vm0, %v8209_v23, %v1036_v55  ;;  %vm1451_vm10 = vcmp.eq.s32.totalorder %v1449_v19, 0  ;;  %vm1031_vm13 = vweird.f32 %v15042_v14  ;;  %v10200_v14 = vld [vmem:[#allocation3 + $0x8] sm:$0xff] }
 0x215   :  { %v1218_v2 = vsel %vm7604_vm14, 0, %v7603_v33  ;;  %v1624_v1 = vadd.s32 536870912, %v1623_v43  ;;  %v1041_v26 = vsel %vm1034_vm1, %v1037_v25, %v1040_v24  ;;  %vm1447_vm15 = vweird.f32 %v15050_v52 }
 0x216   :  { %v1219_v53 = vsub.s32 32, %v1218_v2  ;;  %v1223_v11 = vsub.s32 4294967266, %v1218_v2  ;;  %v1220_v4 = vshll.u32 %v10152_v48, %v1218_v2  ;;  %v1042_v28 = vsel %vm1031_vm13, nan, %v1041_v26 }
 0x217   :  { %v10189_v61 = vshrl.u32 %v1624_v1, 30  ;;  %vm1807_vm5 = vcmask 261120   ;;  %v1619_v40 = vadd.s32 %v10172_v0, %v10162_v35  ;;  %vm1149_vm11 = vcmp.lt.s32.totalorder %v15054_v10, 0 }
 0x218   :  { %v8213_v60 = vpop.eup %8212  ;;  %v1221_v63 = vshrl.u32 %v1203_v13, %v1219_v53  ;;  %v1224_v37 = vadd.s32 127, %v1223_v11  ;;  %vm10214_vm3 = vcmp.le.f32.partialorder %v1147_v57, 0.7853982  ;;  %v1233_v2 = vsub.s32 4, %v10126_v9 }
 0x219   :  { %v8215_v38 = vpop.eup %8214  ;;  %v1455_v12 = vxor.u32 2147483648, %v8213_v60  ;;  %v1626_v8 = vshll.u32 %v10189_v61, 30  ;;  %v1649_v11 = vsub.s32 4, %v10189_v61  ;;  %vm1565_vm7 = vcmp.lt.s32.totalorder %v15060_v3, 0 }
 0x21a   :  { %v1452_v17 = vxor.u32 2147483648, %v8215_v38  ;;  %v1225_v50 = vshll.u32 %v1224_v37, 23  ;;  %v1222_v5 = vor.u32 %v1221_v63, %v1220_v4  ;;  %v1234_v1 = vsel %vm1149_vm11, %v1233_v2, %v10126_v9 }
 0x21b   :  { %v1456_v39 = vsel %vm1454_vm6, %v1455_v12, %v8215_v38  ;;  %v1627_v59 = vsub.s32 %v1623_v43, %v1626_v8  ;;  %v1790_v43 = vld [vmem:[#allocation3 + $0x18] sm:$0xff]  ;;  %vm1564_vm12 = vcmp.le.f32.partialorder %v1563_v44, 0.7853982  ;;  %v1650_v63 = vsel %vm1565_vm7, %v1649_v11, %v10189_v61 }
 0x21c   :  { %v1453_v41 = vsel %vm1451_vm10, %v8213_v60, %v1452_v17  ;;  %v1226_v46 = vor.u32 4788187, %v1225_v50  ;;  %v1229_v31 = vcvt.s32.f32 %v1222_v5  ;;  %v1236_v60 = vsel %vm10214_vm3, 0, %v1234_v1 }
 0x21d   :  { %v1457_v15 = vsel %vm1450_vm4, %v1453_v41, %v1456_v39  ;;  %v1629_v48 = vsub.s32 0, %v1627_v59  ;;  %v1240_v38 = vadd.s32 3, %v1236_v60  ;;  %v1652_v12 = vsel %vm1564_vm12, 0, %v1650_v63 }
 0x21e   :  { %v1458_v21 = vsel %vm1447_vm15, nan, %v1457_v15  ;;  %v1227_v32 = vand.u32 2147483647, %v1226_v46  ;;  %v1656_v4 = vadd.s32 3, %v1652_v12  ;;  %vm1239_vm4 = vweird.f32 %v15054_v10 }
 0x21f   :  { %v7847_v34 = vpack.c.bf16 %v1458_v21, %v1042_v28  ;;  %v7618_v27 = vmin.u32 %v1629_v48, %v1627_v59  ;;  %v1241_v50 = vand.u32 3, %v1240_v38  ;;  %vm1655_vm10 = vweird.f32 %v15060_v3 }
 0x220   :  { %v1230_v18 = vmul.f32 %v1229_v31, %v1227_v32  ;;  %v1657_v39 = vand.u32 3, %v1656_v4 }
 0x221   :  { %7848 = vmatpush1.bf16.msra.mxu0 %v7847_v34  ;;  %v1631_v36 = vclz %v7618_v27  ;;  %vm1243_vm2 = vcmp.eq.s32.totalorder %v1241_v50, 0  ;;  %vm1246_vm14 = vcmp.eq.s32.totalorder %v1241_v50, 2  ;;  %vm1242_vm9 = vcmp.lt.s32.totalorder %v1241_v50, 2 }
 0x222   :  { %v1231_v52 = vxor.u32 2147483648, %v1230_v18  ;;  %vm1662_vm0 = vcmp.eq.s32.totalorder %v1657_v39, 2  ;;  %vm1659_vm1 = vcmp.eq.s32.totalorder %v1657_v39, 0  ;;  %vm1658_vm6 = vcmp.lt.s32.totalorder %v1657_v39, 2 }
 0x223   :  { %v7619_v23 = vadd.s32 4294967294, %v1631_v36 }
 0x224   :  { %7625 = vmatmul.mubr.msk.f32.vlgmr.msra.gmra.mrb[0].mxu0 %vm1807_vm5, %v10195_v22  ;;  %v1232_v58 = vsel %vm1149_vm11, %v1231_v52, %v1230_v18 }
 0x225   :  { %1890 = vmatprep.mubr.f32.mxu0 %v14868_v6  ;;  %vm7620_vm8 = vcmp.lt.s32.totalorder %v7619_v23, 0  ;;  %v1235_v55 = vsel %vm10214_vm3, %v15054_v10, %v1232_v58 }
 0x226   :  { %v1634_v51 = vsel %vm7620_vm8, 0, %v7619_v23  ;;  %8216 = vcosq.f32 %v1235_v55 }
 0x227   :  { %v1635_v56 = vsub.s32 32, %v1634_v51  ;;  %v1639_v42 = vsub.s32 4294967266, %v1634_v51  ;;  %v1636_v33 = vshll.u32 %v1627_v59, %v1634_v51  ;;  %8218 = vsinq.f32 %v1235_v55 }
 0x228   :  { %7626 = vmatmul.mubr.msk.f32.gmra.mrb[2].mxu0 %vm1807_vm5, %v10200_v14 }
 0x229   :  { %1896 = vmatprep.mubr.f32.mxu0 %v14868_v6  ;;  %v1637_v54 = vshrl.u32 %v1619_v40, %v1635_v56  ;;  %v1640_v30 = vadd.s32 127, %v1639_v42 }
 0x22b   :  { %v1638_v0 = vor.u32 %v1637_v54, %v1636_v33  ;;  %v1641_v45 = vshll.u32 %v1640_v30, 23 }
 0x22c   :  { %7627 = vmatmul.mubr.msk.f32.gmra.mrb[4].mxu0 %vm1807_vm5, %v10208_v7 }
 0x22d   :  { %1902 = vmatprep.mubr.f32.mxu0 %v14868_v6  ;;  %v1642_v19 = vor.u32 4788187, %v1641_v45  ;;  %v1645_v13 = vcvt.s32.f32 %v1638_v0 }
 0x22f   :  { %v1643_v57 = vand.u32 2147483647, %v1642_v19 }
 0x230   :  { %7628 = vmatmul.mubr.msk.f32.gmra.mrb[6].mxu0 %vm1807_vm5, %v1790_v43  ;;  %v8217_v17 = vpop.eup %8216 }
 0x231   :  { %3775 = vmatprep.mubr.f32.mxu0 %v14868_v6  ;;  %v1646_v53 = vmul.f32 %v1645_v13, %v1643_v57  ;;  %v8219_v9 = vpop.eup %8218  ;;  %v1247_v26 = vxor.u32 2147483648, %v8217_v17 }
 0x232   :  { %v1244_v8 = vxor.u32 2147483648, %v8219_v9 }
 0x233   :  { %v1647_v24 = vxor.u32 2147483648, %v1646_v53  ;;  %v1248_v5 = vsel %vm1246_vm14, %v1247_v26, %v8219_v9 }
 0x234   :  { %v1245_v44 = vsel %vm1243_vm2, %v8217_v17, %v1244_v8 }
 0x235   :  { %v1648_v25 = vsel %vm1565_vm7, %v1647_v24, %v1646_v53  ;;  %v1249_v15 = vsel %vm1242_vm9, %v1245_v44, %v1248_v5 }
 0x236   :  { %v1651_v37 = vsel %vm1564_vm12, %v15060_v3, %v1648_v25  ;;  %v1250_v48 = vsel %vm1239_vm4, nan, %v1249_v15 }
 0x237   :  { %8220 = vcosq.f32 %v1651_v37 }
 0x238   :  { %8222 = vsinq.f32 %v1651_v37 }
 0x241   :  { %v8221_v41 = vpop.eup %8220 }
 0x242   :  { %v8223_v46 = vpop.eup %8222  ;;  %v1663_v61 = vxor.u32 2147483648, %v8221_v41 }
 0x243   :  { %v1660_v59 = vxor.u32 2147483648, %v8223_v46 }
 0x244   :  { %v1664_v28 = vsel %vm1662_vm0, %v1663_v61, %v8223_v46 }
 0x245   :  { %v1661_v21 = vsel %vm1659_vm1, %v8221_v41, %v1660_v59 }
 0x246   :  { %v1665_v32 = vsel %vm1658_vm6, %v1661_v21, %v1664_v28 }
 0x247   :  { %v1666_v34 = vsel %vm1655_vm10, nan, %v1665_v32 }
 0x248   :  { %v7855_v31 = vpack.c.bf16 %v1666_v34, %v1250_v48 }
 0x24a   :  { %7856 = vmatpush1.bf16.msra.mxu1 %v7855_v31 }
 0x24d   :  { %7629 = vmatmul.mubr.msk.f32.vlgmr.msra.gmra.mrb[0].mxu1 %vm1807_vm5, %v10195_v22 }
 0x24e   :  { %1979 = vmatprep.mubr.f32.mxu1 %v14868_v6 }
 0x251   :  { %7630 = vmatmul.mubr.msk.f32.gmra.mrb[2].mxu1 %vm1807_vm5, %v10200_v14 }
 0x252   :  { %1985 = vmatprep.mubr.f32.mxu1 %v14868_v6 }
 0x255   :  { %7631 = vmatmul.mubr.msk.f32.gmra.mrb[4].mxu1 %vm1807_vm5, %v10208_v7 }
 0x256   :  { %1991 = vmatprep.mubr.f32.mxu1 %v14868_v6 }
 0x259   :  { %7632 = vmatmul.mubr.msk.f32.gmra.mrb[6].mxu1 %vm1807_vm5, %v1790_v43 }
 0x25a   :  { %3864 = vmatprep.mubr.f32.mxu1 %v14868_v6 }
 0x2f7   :  { %v10251_v10 = vpop.f32.mrb[0].mxu0 }
 0x2f8   :  { %15065 = vst [vmem:[#allocation35_spill] sm:$0xff] %v10251_v10  ;;  %v1998_v3 = vand.u32 2147483647, %v10251_v10  ;;  %v2001_v27 = vand.u32 2139095040, %v10251_v10  ;;  %v10255_v22 = vpop.f32.mrb[1].mxu0  ;;  %vm2000_vm4 = vcmp.lt.s32.totalorder %v10251_v10, 0 }
 0x2f9   :  { %v14873_v18 = vand.u32 2147483647, %v10255_v22  ;;  %v2105_v36 = vand.u32 2139095040, %v10255_v22 }
 0x2fa   :  { %v2002_v23 = vshrl.u32 %v2001_v27, 23  ;;  %v2005_v14 = vand.u32 8388607, %v1998_v3 }
 0x2fb   :  { %v2106_v52 = vshrl.u32 %v2105_v36, 23  ;;  %v2109_v51 = vand.u32 8388607, %v14873_v18  ;;  %v10263_v40 = vpop.f32.mrb[2].mxu0 }
 0x2fc   :  { %15066 = vst [vmem:[#allocation28_spill] sm:$0xff] %v10263_v40  ;;  %v7633_v56 = vadd.s32 4294967169, %v2002_v23  ;;  %v10265_v42 = vpop.f32.mrb[3].mxu0  ;;  %v2006_v33 = vor.u32 8388608, %v2005_v14  ;;  %v2417_v35 = vand.u32 2139095040, %v10263_v40 }
 0x2fd   :  { %v7637_v7 = vadd.s32 4294967169, %v2106_v52  ;;  %v2110_v54 = vor.u32 8388608, %v2109_v51 }
 0x2fe   :  { %v2008_v58 = vadd.s32 1, %v7633_v56  ;;  %v10268_v19 = vshll.u32 %v2006_v33, 8  ;;  %v2418_v57 = vshrl.u32 %v2417_v35, 23 }
 0x2ff   :  { %v2112_v30 = vadd.s32 1, %v7637_v7  ;;  %v10270_v2 = vshll.u32 %v2110_v54, 8 }
 0x300   :  { %vm2009_vm13 = vcmp.gt.s32.totalorder %v2008_v58, 0 }
 0x301   :  { %v2010_v0 = vsel %vm2009_vm13, %v2008_v58, 0  ;;  %vm2113_vm15 = vcmp.gt.s32.totalorder %v2112_v30, 0 }
 0x302   :  { %v2011_v45 = vshrl.u32 %v2010_v0, 5  ;;  %v2012_v55 = vand.u32 31, %v2010_v0  ;;  %v2114_v43 = vsel %vm2113_vm15, %v2112_v30, 0 }
 0x303   :  { %v10273_v11 = vshrl.u32 %v2114_v43, 5  ;;  %v2116_v1 = vand.u32 31, %v2114_v43  ;;  %v7649_v43 = vadd.s32 4294967169, %v2418_v57 }
 0x304   :  { %v2013_v13 = vsub.s32 32, %v2012_v55  ;;  %v2015_v53 = vshll.u32 %v14995_v49, %v2012_v55  ;;  %v2018_v24 = vshll.u32 %v14996_v16, %v2012_v55  ;;  %v2021_v60 = vshll.u32 %v14997_v62, %v2012_v55 }
 0x305   :  { %v2024_v25 = vshll.u32 %v14998_v20, %v2012_v55  ;;  %v2027_v63 = vshll.u32 %v14999_v29, %v2012_v55  ;;  %vm2030_vm8 = vcmp.lt.s32.totalorder %v2011_v45, 1  ;;  %vm2031_vm11 = vcmp.lt.s32.totalorder %v2011_v45, 2 }
 0x306   :  { %v2016_v37 = vshrl.u32 %v14996_v16, %v2013_v13  ;;  %v2019_v38 = vshrl.u32 %v14997_v62, %v2013_v13  ;;  %v2022_v12 = vshrl.u32 %v14998_v20, %v2013_v13  ;;  %v2014_v17 = vshrl.u32 %v14995_v49, %v2013_v13 }
 0x307   :  { %v2025_v9 = vshrl.u32 %v14999_v29, %v2013_v13  ;;  %v2028_v4 = vshrl.u32 %v15000_v47, %v2013_v13  ;;  %v2117_v39 = vsub.s32 32, %v2116_v1  ;;  %vm2032_vm3 = vcmp.lt.s32.totalorder %v2011_v45, 3  ;;  %v10309_v13 = vpop.f32.mrb[4].mxu0 }
 0x308   :  { %v2017_v50 = vor.u32 %v2016_v37, %v2015_v53  ;;  %v2020_v8 = vor.u32 %v2019_v38, %v2018_v24  ;;  %v2023_v26 = vor.u32 %v2022_v12, %v2021_v60  ;;  %vm2033_vm7 = vcmp.lt.s32.totalorder %v2011_v45, 4  ;;  %15067 = vst [vmem:[#allocation11_spill] sm:$0xff] %v10309_v13 }
 0x309   :  { %v2026_v41 = vor.u32 %v2025_v9, %v2024_v25  ;;  %v2029_v44 = vor.u32 %v2028_v4, %v2027_v63  ;;  %v2119_v32 = vshll.u32 %v14995_v49, %v2116_v1  ;;  %v2120_v31 = vshrl.u32 %v14996_v16, %v2117_v39 }
 0x30a   :  { %v2034_v5 = vsel %vm2030_vm8, %v2014_v17, %v2017_v50  ;;  %v2035_v46 = vsel %vm2033_vm7, %v2023_v26, 2102212464  ;;  %v2038_v61 = vsel %vm2030_vm8, %v2017_v50, %v2020_v8  ;;  %v2042_v59 = vsel %vm2030_vm8, %v2020_v8, %v2023_v26 }
 0x30b   :  { %v2036_v15 = vsel %vm2032_vm3, %v2020_v8, %v2035_v46  ;;  %v2039_v28 = vsel %vm2033_vm7, %v2026_v41, 920167782  ;;  %v2043_v21 = vsel %vm2033_vm7, %v2029_v44, 1326507024  ;;  %v2122_v27 = vshll.u32 %v14996_v16, %v2116_v1 }
 0x30c   :  { %v2040_v48 = vsel %vm2032_vm3, %v2023_v26, %v2039_v28  ;;  %v2044_v34 = vsel %vm2032_vm3, %v2026_v41, %v2043_v21  ;;  %v2037_v36 = vsel %vm2031_vm11, %v2034_v5, %v2036_v15  ;;  %v2123_v52 = vshrl.u32 %v14997_v62, %v2117_v39 }
 0x30d   :  { %v2041_v23 = vsel %vm2031_vm11, %v2038_v61, %v2040_v48  ;;  %v2045_v14 = vsel %vm2031_vm11, %v2042_v59, %v2044_v34  ;;  %v2121_v33 = vor.u32 %v2120_v31, %v2119_v32  ;;  %v2125_v30 = vshll.u32 %v14997_v62, %v2116_v1 }
 0x30e   :  { %v10296_v51 = vmul.u32.u64.low %v10268_v19, %v2045_v14  ;;  %v10297_v56 = vmul.u32.u64.high %v10268_v19, %v2045_v14, %v10296_v51  ;;  %v10300_v7 = vmul.u32.u64.low %v10268_v19, %v2041_v23  ;;  %v10301_v58 = vmul.u32.u64.high %v10268_v19, %v2041_v23, %v10300_v7 }
 0x30f   :  { %v2124_v54 = vor.u32 %v2123_v52, %v2122_v27  ;;  %v2126_v35 = vshrl.u32 %v14998_v20, %v2117_v39  ;;  %v2128_v0 = vshll.u32 %v14998_v20, %v2116_v1  ;;  %v2129_v45 = vshrl.u32 %v14999_v29, %v2117_v39 }
 0x310   :  { %v2132_v55 = vshrl.u32 %v15000_v47, %v2117_v39  ;;  %v2053_v53 = vmul.u32 %v10268_v19, %v2037_v36  ;;  %v2118_v24 = vshrl.u32 %v14995_v49, %v2117_v39  ;;  %v2131_v25 = vshll.u32 %v14999_v29, %v2116_v1 }
 0x311   :  { %v2127_v60 = vor.u32 %v2126_v35, %v2125_v30  ;;  %vm2055_vm12 = vc.u32 %v10297_v56, %v10300_v7  ;;  %v2056_v63 = vadd.s32 1, %v10301_v58  ;;  %v2130_v37 = vor.u32 %v2129_v45, %v2128_v0 }
 0x312   :  { %vm2134_vm2 = vcmp.lt.s32.totalorder %v10273_v11, 1  ;;  %v2133_v38 = vor.u32 %v2132_v55, %v2131_v25  ;;  %vm2136_vm14 = vcmp.lt.s32.totalorder %v10273_v11, 3  ;;  %vm2137_vm9 = vcmp.lt.s32.totalorder %v10273_v11, 4 }
 0x313   :  { %v2142_v57 = vsel %vm2134_vm2, %v2121_v33, %v2124_v54  ;;  %v2057_v19 = vsel %vm2055_vm12, %v2056_v63, %v10301_v58  ;;  %v2139_v12 = vsel %vm2137_vm9, %v2127_v60, 2102212464  ;;  %v2143_v17 = vsel %vm2137_vm9, %v2130_v37, 920167782 }
 0x314   :  { %v2146_v9 = vsel %vm2134_vm2, %v2124_v54, %v2127_v60  ;;  %v2058_v1 = vadd.s32 %v2057_v19, %v2053_v53  ;;  %vm2135_vm0 = vcmp.lt.s32.totalorder %v10273_v11, 2  ;;  %v2144_v4 = vsel %vm2136_vm14, %v2127_v60, %v2143_v17 }
 0x315   :  { %v2147_v50 = vsel %vm2137_vm9, %v2133_v38, 1326507024  ;;  %v2138_v8 = vsel %vm2134_vm2, %v2118_v24, %v2121_v33  ;;  %v2140_v26 = vsel %vm2136_vm14, %v2124_v54, %v2139_v12  ;;  %v2145_v39 = vsel %vm2135_vm0, %v2142_v57, %v2144_v4 }
 0x316   :  { %v2148_v41 = vsel %vm2136_vm14, %v2130_v37, %v2147_v50  ;;  %v2059_v44 = vadd.s32 536870912, %v2058_v1  ;;  %v10323_v46 = vmul.u32.u64.low %v10270_v2, %v2145_v39  ;;  %v10324_v61 = vmul.u32.u64.high %v10270_v2, %v2145_v39, %v10323_v46 }
 0x317   :  { %v2149_v5 = vsel %vm2135_vm0, %v2146_v9, %v2148_v41  ;;  %v2141_v21 = vsel %vm2135_vm0, %v2138_v8, %v2140_v26  ;;  %v2424_v48 = vadd.s32 1, %v7649_v43  ;;  %v14870_v36 = vand.u32 2147483647, %v10263_v40 }
 0x318   :  { %v10327_v59 = vmul.u32.u64.low %v10270_v2, %v2149_v5  ;;  %v10328_v15 = vmul.u32.u64.high %v10270_v2, %v2149_v5, %v10327_v59  ;;  %v2060_v28 = vshrl.u32 %v2059_v44, 30  ;;  %v2160_v11 = vadd.s32 1, %v10324_v61 }
 0x319   :  { %v2157_v34 = vmul.u32 %v10270_v2, %v2141_v21  ;;  %vm2425_vm6 = vcmp.gt.s32.totalorder %v2424_v48, 0  ;;  %v2421_v2 = vand.u32 8388607, %v14870_v36  ;;  %v2521_v45 = vand.u32 2139095040, %v10265_v42 }
 0x31a   :  { %v2061_v32 = vshll.u32 %v2060_v28, 30  ;;  %vm2159_vm1 = vc.u32 %v10328_v15, %v10323_v46  ;;  %v2426_v30 = vsel %vm2425_vm6, %v2424_v48, 0  ;;  %v10362_v9 = vadd.s32 %v10300_v7, %v10297_v56 }
 0x31b   :  { %v2161_v27 = vsel %vm2159_vm1, %v2160_v11, %v10324_v61  ;;  %v2422_v43 = vor.u32 8388608, %v2421_v2  ;;  %v10349_v53 = vand.u32 31, %v2426_v30  ;;  %v2522_v19 = vshrl.u32 %v2521_v45, 23 }
 0x31c   :  { %v10333_v31 = vsub.s32 %v2058_v1, %v2061_v32  ;;  %v2162_v23 = vadd.s32 %v2161_v27, %v2157_v34  ;;  %v2084_v1 = vsub.s32 4, %v2060_v28  ;;  %v10375_v41 = vshrl.u32 %v2426_v30, 5 }
 0x31d   :  { %v10365_v4 = vsub.s32 32, %v10349_v53  ;;  %v10367_v50 = vshll.u32 %v2422_v43, 8  ;;  %v10377_v7 = vadd.s32 4294967169, %v2522_v19  ;;  %v10380_v61 = vadd.s32 %v10323_v46, %v10328_v15 }
 0x31e   :  { %v2064_v14 = vsub.s32 0, %v10333_v31  ;;  %v2163_v52 = vadd.s32 536870912, %v2162_v23  ;;  %v2431_v59 = vshll.u32 %v14995_v49, %v10349_v53  ;;  %v10386_v21 = vshll.u32 %v14996_v16, %v10349_v53 }
 0x31f   :  { %v10390_v32 = vsel %vm2000_vm4, %v2084_v1, %v2060_v28  ;;  %v2432_v48 = vshrl.u32 %v14996_v16, %v10365_v4  ;;  %v2435_v46 = vshrl.u32 %v14997_v62, %v10365_v4  ;;  %vm10476_vm14 = vcmp.le.f32.partialorder %v1998_v3, 0.7853982 }
 0x320   :  { %v7634_v51 = vmin.u32 %v2064_v14, %v10333_v31  ;;  %v10339_v58 = vpop.f32.mrb[0].mxu1  ;;  %v10346_v0 = vshrl.u32 %v2163_v52, 30 }
 0x321   :  { %15068 = vst [vmem:[#allocation21_spill] sm:$0xff] %v10339_v58  ;;  %v2209_v33 = vand.u32 2139095040, %v10339_v58  ;;  %v10344_v54 = vpop.f32.mrb[1].mxu1  ;;  %v14871_v60 = vand.u32 2147483647, %v10339_v58 }
 0x322   :  { %15069 = vst [vmem:[#allocation27_spill] sm:$0xff] %v10344_v54  ;;  %v2066_v35 = vclz %v7634_v51  ;;  %v2165_v63 = vshll.u32 %v10346_v0, 30  ;;  %v2313_v57 = vand.u32 2139095040, %v10344_v54  ;;  %v14872_v11 = vand.u32 2147483647, %v10344_v54 }
 0x323   :  { %v2210_v55 = vshrl.u32 %v2209_v33, 23  ;;  %v2213_v26 = vand.u32 8388607, %v14871_v60 }
 0x324   :  { %v10351_v24 = vpop.f32.mrb[2].mxu1  ;;  %v7635_v38 = vadd.s32 4294967294, %v2066_v35  ;;  %v10373_v39 = vsub.s32 %v2162_v23, %v2165_v63  ;;  %v2314_v56 = vshrl.u32 %v2313_v57, 23 }
 0x325   :  { %15070 = vst [vmem:[#allocation20_spill] sm:$0xff] %v10351_v24  ;;  %v7641_v25 = vadd.s32 4294967169, %v2210_v55  ;;  %v10355_v37 = vpop.f32.mrb[3].mxu1  ;;  %v2214_v34 = vor.u32 8388608, %v2213_v26 }
 0x326   :  { %vm7636_vm13 = vcmp.lt.s32.totalorder %v7635_v38, 0  ;;  %v2168_v23 = vsub.s32 0, %v10373_v39  ;;  %v7645_v51 = vadd.s32 4294967169, %v2314_v56 }
 0x327   :  { %v2216_v12 = vadd.s32 1, %v7641_v25  ;;  %v10397_v15 = vsel %vm7636_vm13, 0, %v7635_v38  ;;  %v2254_v19 = vshll.u32 %v2214_v34, 8  ;;  %vm2104_vm13 = vcmp.lt.s32.totalorder %v10255_v22, 0 }
 0x328   :  { %v10369_v8 = vpop.f32.mrb[4].mxu1  ;;  %v2320_v26 = vadd.s32 1, %v7645_v51  ;;  %v7638_v6 = vmin.u32 %v2168_v23, %v10373_v39  ;;  %v2074_v51 = vsub.s32 4294967266, %v10397_v15 }
 0x329   :  { %15071 = vst [vmem:[#allocation15_spill] sm:$0xff] %v10369_v8  ;;  %vm2217_vm10 = vcmp.gt.s32.totalorder %v2216_v12, 0 }
 0x32a   :  { %v2218_v44 = vsel %vm2217_vm10, %v2216_v12, 0  ;;  %vm2321_vm7 = vcmp.gt.s32.totalorder %v2320_v26, 0  ;;  %vm2449_vm10 = vcmp.lt.s32.totalorder %v10375_v41, 4 }
 0x32b   :  { %v2220_v5 = vand.u32 31, %v2218_v44  ;;  %v2219_v14 = vshrl.u32 %v2218_v44, 5 }
 0x32d   :  { %v2221_v27 = vsub.s32 32, %v2220_v5  ;;  %v2223_v52 = vshll.u32 %v14995_v49, %v2220_v5  ;;  %v2226_v28 = vshll.u32 %v14996_v16, %v2220_v5  ;;  %v2229_v30 = vshll.u32 %v14997_v62, %v2220_v5 }
 0x32e   :  { %v2232_v45 = vshll.u32 %v14998_v20, %v2220_v5  ;;  %v2235_v43 = vshll.u32 %v14999_v29, %v2220_v5  ;;  %vm2238_vm15 = vcmp.lt.s32.totalorder %v2219_v14, 1  ;;  %vm2241_vm8 = vcmp.lt.s32.totalorder %v2219_v14, 4 }
 0x32f   :  { %v2224_v2 = vshrl.u32 %v14996_v16, %v2221_v27  ;;  %v2227_v33 = vshrl.u32 %v14997_v62, %v2221_v27  ;;  %v2230_v35 = vshrl.u32 %v14998_v20, %v2221_v27  ;;  %v2233_v55 = vshrl.u32 %v14999_v29, %v2221_v27 }
 0x330   :  { %v2236_v25 = vshrl.u32 %v15000_v47, %v2221_v27  ;;  %v2222_v44 = vshrl.u32 %v14995_v49, %v2221_v27  ;;  %vm2240_vm11 = vcmp.lt.s32.totalorder %v2219_v14, 3  ;;  %vm2239_vm3 = vcmp.lt.s32.totalorder %v2219_v14, 2 }
 0x331   :  { %v2225_v63 = vor.u32 %v2224_v2, %v2223_v52  ;;  %v2228_v38 = vor.u32 %v2227_v33, %v2226_v28  ;;  %v2231_v57 = vor.u32 %v2230_v35, %v2229_v30  ;;  %v2234_v12 = vor.u32 %v2233_v55, %v2232_v45 }
 0x332   :  { %v2237_v1 = vor.u32 %v2236_v25, %v2235_v43  ;;  %v2170_v55 = vclz %v7638_v6  ;;  %v2070_v43 = vsub.s32 32, %v10397_v15  ;;  %v10436_v6 = vshll.u32 %v14997_v62, %v10349_v53 }
 0x333   :  { %v2246_v56 = vsel %vm2238_vm15, %v2225_v63, %v2228_v38  ;;  %v2243_v36 = vsel %vm2241_vm8, %v2231_v57, 2102212464  ;;  %v2247_v60 = vsel %vm2241_vm8, %v2234_v12, 920167782  ;;  %v2250_v5 = vsel %vm2238_vm15, %v2228_v38, %v2231_v57 }
 0x334   :  { %v2242_v17 = vsel %vm2238_vm15, %v2222_v44, %v2225_v63  ;;  %v2248_v52 = vsel %vm2240_vm11, %v2231_v57, %v2247_v60  ;;  %v2251_v28 = vsel %vm2241_vm8, %v2237_v1, 1326507024  ;;  %v2244_v2 = vsel %vm2240_vm11, %v2228_v38, %v2243_v36  ;;  %v10426_v36 = vpop.f32.mrb[5].mxu0 }
 0x335   :  { %v2249_v34 = vsel %vm2239_vm3, %v2246_v56, %v2248_v52  ;;  %v2252_v33 = vsel %vm2240_vm11, %v2234_v12, %v2251_v28  ;;  %v10424_v60 = vshrl.u32 %v14995_v49, %v10365_v4  ;;  %15072 = vst [vmem:[#allocation32_spill] sm:$0xff] %v10426_v36  ;;  %v2245_v25 = vsel %vm2239_vm3, %v2242_v17, %v2244_v2 }
 0x336   :  { %v2253_v27 = vsel %vm2239_vm3, %v2250_v5, %v2252_v33  ;;  %v10415_v30 = vmul.u32.u64.low %v2254_v19, %v2249_v34  ;;  %v10416_v35 = vmul.u32.u64.high %v2254_v19, %v2249_v34, %v10415_v30  ;;  %v2317_v63 = vand.u32 8388607, %v14872_v11 }
 0x337   :  { %v10419_v23 = vmul.u32.u64.low %v2254_v19, %v2253_v27  ;;  %v10420_v45 = vmul.u32.u64.high %v2254_v19, %v2253_v27, %v10419_v23  ;;  %v2322_v38 = vsel %vm2321_vm7, %v2320_v26, 0  ;;  %v10432_v12 = vor.u32 %v2432_v48, %v2431_v59 }
 0x338   :  { %v2324_v57 = vand.u32 31, %v2322_v38  ;;  %v10440_v1 = vshrl.u32 %v14998_v20, %v10365_v4  ;;  %v2075_v44 = vadd.s32 127, %v2074_v51  ;;  %v2264_v56 = vadd.s32 1, %v10416_v35 }
 0x339   :  { %v10444_v17 = vor.u32 %v2435_v46, %v10386_v21  ;;  %v10448_v14 = vshll.u32 %v14998_v20, %v10349_v53  ;;  %v2261_v59 = vmul.u32 %v2254_v19, %v2245_v25  ;;  %vm2263_vm12 = vc.u32 %v10420_v45, %v10415_v30 }
 0x33a   :  { %v7639_v48 = vadd.s32 4294967294, %v2170_v55  ;;  %v2325_v26 = vsub.s32 32, %v2324_v57  ;;  %v2071_v5 = vshll.u32 %v10333_v31, %v10397_v15  ;;  %v2072_v52 = vshrl.u32 %v10362_v9, %v2070_v43 }
 0x33b   :  { %v2265_v28 = vsel %vm2263_vm12, %v2264_v56, %v10416_v35  ;;  %v2318_v2 = vor.u32 8388608, %v2317_v63  ;;  %v2327_v46 = vshll.u32 %v14995_v49, %v2324_v57  ;;  %v2076_v33 = vshll.u32 %v2075_v44, 23 }
 0x33c   :  { %v2266_v21 = vadd.s32 %v2265_v28, %v2261_v59  ;;  %v2328_v34 = vshrl.u32 %v14996_v16, %v2325_v26  ;;  %v2331_v19 = vshrl.u32 %v14997_v62, %v2325_v26  ;;  %v2330_v51 = vshll.u32 %v14996_v16, %v2324_v57 }
 0x33d   :  { %v2333_v27 = vshll.u32 %v14997_v62, %v2324_v57  ;;  %v2334_v23 = vshrl.u32 %v14998_v20, %v2325_v26  ;;  %vm7640_vm2 = vcmp.lt.s32.totalorder %v7639_v48, 0  ;;  %v2323_v9 = vshrl.u32 %v2322_v38, 5 }
 0x33e   :  { %v2267_v31 = vadd.s32 536870912, %v2266_v21  ;;  %v2329_v15 = vor.u32 %v2328_v34, %v2327_v46  ;;  %v2332_v35 = vor.u32 %v2331_v19, %v2330_v51  ;;  %v2336_v43 = vshll.u32 %v14998_v20, %v2324_v57 }
 0x33f   :  { %v2335_v55 = vor.u32 %v2334_v23, %v2333_v27  ;;  %v2337_v25 = vshrl.u32 %v14999_v29, %v2325_v26  ;;  %v2073_v63 = vor.u32 %v2072_v52, %v2071_v5  ;;  %v2340_v44 = vshrl.u32 %v15000_v47, %v2325_v26 }
 0x340   :  { %v10464_v56 = vshrl.u32 %v2267_v31, 30  ;;  %v2441_v59 = vshrl.u32 %v14999_v29, %v10365_v4  ;;  %v10469_v28 = vsel %vm7640_vm2, 0, %v7639_v48  ;;  %v2339_v38 = vshll.u32 %v14999_v29, %v2324_v57 }
 0x341   :  { %v2338_v11 = vor.u32 %v2337_v25, %v2336_v43  ;;  %v10472_v46 = vshll.u32 %v2318_v2, 8  ;;  %v2077_v5 = vor.u32 4788187, %v2076_v33  ;;  %vm2342_vm9 = vcmp.lt.s32.totalorder %v2323_v9, 1 }
 0x342   :  { %v2269_v52 = vshll.u32 %v10464_v56, 30  ;;  %vm2345_vm0 = vcmp.lt.s32.totalorder %v2323_v9, 4  ;;  %v2326_v19 = vshrl.u32 %v14995_v49, %v2325_v26  ;;  %v2341_v48 = vor.u32 %v2340_v44, %v2339_v38 }
 0x343   :  { %v2347_v51 = vsel %vm2345_vm0, %v2335_v55, 2102212464  ;;  %v2350_v57 = vsel %vm2342_vm9, %v2329_v15, %v2332_v35  ;;  %v2178_v27 = vsub.s32 4294967266, %v10469_v28  ;;  %vm2344_vm1 = vcmp.lt.s32.totalorder %v2323_v9, 3 }
 0x344   :  { %v10484_v2 = vsub.s32 %v2266_v21, %v2269_v52  ;;  %v2351_v3 = vsel %vm2345_vm0, %v2338_v11, 920167782  ;;  %vm2343_vm6 = vcmp.lt.s32.totalorder %v2323_v9, 2  ;;  %v2346_v33 = vsel %vm2342_vm9, %v2326_v19, %v2329_v15  ;;  %v10502_v15 = vpop.f32.mrb[5].mxu1 }
 0x345   :  { %v2352_v23 = vsel %vm2344_vm1, %v2335_v55, %v2351_v3  ;;  %v2444_v26 = vshrl.u32 %v15000_v47, %v10365_v4  ;;  %v2348_v43 = vsel %vm2344_vm1, %v2332_v35, %v2347_v51  ;;  %v2354_v25 = vsel %vm2342_vm9, %v2332_v35, %v2335_v55  ;;  %15075 = vst [vmem:[#allocation13_spill] sm:$0xff] %v10502_v15 }
 0x346   :  { %v2272_v31 = vsub.s32 0, %v10484_v2  ;;  %v2353_v21 = vsel %vm2343_vm6, %v2350_v57, %v2352_v23  ;;  %v2078_v44 = vand.u32 2147483647, %v2077_v5  ;;  %v2355_v38 = vsel %vm2345_vm0, %v2341_v48, 1326507024 }
 0x347   :  { %v10498_v52 = vmul.u32.u64.low %v10472_v46, %v2353_v21  ;;  %v10499_v18 = vmul.u32.u64.high %v10472_v46, %v2353_v21, %v10498_v52  ;;  %v2179_v19 = vadd.s32 127, %v2178_v27  ;;  %v2356_v3 = vsel %vm2344_vm1, %v2338_v11, %v2355_v38 }
 0x348   :  { %v7642_v4 = vmin.u32 %v2272_v31, %v10484_v2  ;;  %v2443_v51 = vshll.u32 %v14999_v29, %v10349_v53  ;;  %v2080_v57 = vcvt.s32.f32 %v2073_v63  ;;  %v2349_v35 = vsel %vm2343_vm6, %v2346_v33, %v2348_v43 }
 0x349   :  { %v2357_v55 = vsel %vm2343_vm6, %v2354_v25, %v2356_v3  ;;  %v2442_v5 = vor.u32 %v2441_v59, %v10448_v14  ;;  %v2087_v11 = vsel %vm10476_vm14, 0, %v10390_v32  ;;  %v2188_v27 = vsub.s32 4, %v10346_v0 }
 0x34a   :  { %v2274_v48 = vclz %v7642_v4  ;;  %v10512_v23 = vmul.u32.u64.low %v10472_v46, %v2357_v55  ;;  %v10513_v21 = vmul.u32.u64.high %v10472_v46, %v2357_v55, %v10512_v23  ;;  %v2445_v15 = vor.u32 %v2444_v26, %v2443_v51 }
 0x34b   :  { %v2368_v53 = vadd.s32 1, %v10499_v18  ;;  %v2439_v9 = vor.u32 %v10440_v1, %v10436_v6  ;;  %v10522_v63 = vmul.f32 %v2080_v57, %v2078_v44  ;;  %v2174_v14 = vsub.s32 32, %v10469_v28 }
 0x34c   :  { %v2180_v59 = vshll.u32 %v2179_v19, 23  ;;  %v2365_v33 = vmul.u32 %v10472_v46, %v2349_v35  ;;  %vm2446_vm15 = vcmp.lt.s32.totalorder %v10375_v41, 1  ;;  %vm2448_vm8 = vcmp.lt.s32.totalorder %v10375_v41, 3 }
 0x34d   :  { %v2455_v32 = vsel %vm2449_vm10, %v2442_v5, 920167782  ;;  %v7643_v26 = vadd.s32 4294967294, %v2274_v48  ;;  %vm2367_vm11 = vc.u32 %v10513_v21, %v10498_v52  ;;  %v2454_v6 = vsel %vm2446_vm15, %v10432_v12, %v10444_v17 }
 0x34e   :  { %v2459_v1 = vsel %vm2449_vm10, %v2445_v15, 1326507024  ;;  %v2369_v31 = vsel %vm2367_vm11, %v2368_v53, %v10499_v18  ;;  %v2451_v43 = vsel %vm2449_vm10, %v2439_v9, 2102212464  ;;  %v2456_v46 = vsel %vm2448_vm8, %v2439_v9, %v2455_v32 }
 0x34f   :  { %v2458_v25 = vsel %vm2446_vm15, %v10444_v17, %v2439_v9  ;;  %v2175_v44 = vshll.u32 %v10373_v39, %v10469_v28  ;;  %v2176_v38 = vshrl.u32 %v10380_v61, %v2174_v14  ;;  %v2370_v4 = vadd.s32 %v2369_v31, %v2365_v33 }
 0x350   :  { %vm2447_vm3 = vcmp.lt.s32.totalorder %v10375_v41, 2  ;;  %v2181_v19 = vor.u32 4788187, %v2180_v59  ;;  %v2450_v18 = vsel %vm2446_vm15, %v10424_v60, %v10432_v12  ;;  %v2460_v3 = vsel %vm2448_vm8, %v2442_v5, %v2459_v1 }
 0x351   :  { %v2457_v15 = vsel %vm2447_vm3, %v2454_v6, %v2456_v46  ;;  %vm7644_vm7 = vcmp.lt.s32.totalorder %v7643_v26, 0  ;;  %v15076_v39 = vand.u32 2147483647, %v10255_v22  ;;  %v2371_v28 = vadd.s32 536870912, %v2370_v4 }
 0x352   :  { %v2452_v51 = vsel %vm2448_vm8, %v10444_v17, %v2451_v43  ;;  %v2461_v60 = vsel %vm2447_vm3, %v2458_v25, %v2460_v3  ;;  %v10570_v35 = vmul.u32.u64.low %v10367_v50, %v2457_v15  ;;  %v10571_v55 = vmul.u32.u64.high %v10367_v50, %v2457_v15, %v10570_v35 }
 0x353   :  { %vm10556_vm12 = vcmp.le.f32.partialorder %v15076_v39, 0.7853982  ;;  %v10566_v12 = vmul.u32.u64.low %v10367_v50, %v2461_v60  ;;  %v10567_v57 = vmul.u32.u64.high %v10367_v50, %v2461_v60, %v10566_v12  ;;  %v2177_v5 = vor.u32 %v2176_v38, %v2175_v44 }
 0x354   :  { %v10574_v48 = vshrl.u32 %v2371_v28, 30  ;;  %v15079_v23 = vand.u32 2147483647, %v10265_v42  ;;  %v2277_v9 = vsel %vm7644_vm7, 0, %v7643_v26  ;;  %v2453_v14 = vsel %vm2447_vm3, %v2450_v18, %v2452_v51 }
 0x355   :  { %v2625_v59 = vand.u32 2139095040, %v10351_v24  ;;  %v2082_v32 = vxor.u32 2147483648, %v10522_v63  ;;  %v2091_v6 = vadd.s32 3, %v2087_v11  ;;  %v2189_v1 = vsel %vm2104_vm13, %v2188_v27, %v10346_v0 }
 0x356   :  { %v10578_v53 = vand.u32 8388607, %v15079_v23  ;;  %v2373_v31 = vshll.u32 %v10574_v48, 30  ;;  %v2182_v43 = vand.u32 2147483647, %v2181_v19  ;;  %vm2471_vm2 = vc.u32 %v10567_v57, %v10570_v35 }
 0x357   :  { %v2472_v41 = vadd.s32 1, %v10571_v55  ;;  %v2626_v26 = vshrl.u32 %v2625_v59, 23  ;;  %v2282_v46 = vsub.s32 4294967266, %v2277_v9  ;;  %v2184_v25 = vcvt.s32.f32 %v2177_v5 }
 0x358   :  { %v10593_v44 = vsub.s32 %v2370_v4, %v2373_v31  ;;  %v2469_v38 = vmul.u32 %v10367_v50, %v2453_v14  ;;  %v2278_v11 = vsub.s32 32, %v2277_v9  ;;  %v2292_v18 = vsub.s32 4, %v10464_v56 }
 0x359   :  { %v2473_v0 = vsel %vm2471_vm2, %v2472_v41, %v10571_v55  ;;  %v7657_v27 = vadd.s32 4294967169, %v2626_v26  ;;  %v15080_v19 = vand.u32 2147483647, %v10339_v58  ;;  %vm2208_vm0 = vcmp.lt.s32.totalorder %v10339_v58, 0 }
 0x35a   :  { %v2376_v3 = vsub.s32 0, %v10593_v44  ;;  %v2474_v4 = vadd.s32 %v2473_v0, %v2469_v38  ;;  %v2262_v50 = vadd.s32 %v10415_v30, %v10420_v45  ;;  %v2185_v39 = vmul.f32 %v2184_v25, %v2182_v43 }
 0x35b   :  { %vm10600_vm9 = vcmp.le.f32.partialorder %v15080_v19, 0.7853982  ;;  %v2191_v28 = vsel %vm10556_vm12, 0, %v2189_v1  ;;  %v2632_v51 = vadd.s32 1, %v7657_v27  ;;  %v2083_v60 = vsel %vm2000_vm4, %v2082_v32, %v10522_v63 }
 0x35c   :  { %v2283_v12 = vadd.s32 127, %v2282_v46  ;;  %v7646_v55 = vmin.u32 %v2376_v3, %v10593_v44  ;;  %v2475_v5 = vadd.s32 536870912, %v2474_v4  ;;  %v2280_v23 = vshrl.u32 %v2262_v50, %v2278_v11 }
 0x35d   :  { %v2293_v14 = vsel %vm2208_vm0, %v2292_v18, %v10464_v56  ;;  %v14875_v30 = vand.u32 2147483647, %v10351_v24  ;;  %vm2633_vm1 = vcmp.gt.s32.totalorder %v2632_v51, 0  ;;  %v2195_v45 = vadd.s32 3, %v2191_v28  ;;  %v10648_v28 = vpop.f32.mrb[6].mxu0 }
 0x35e   :  { %v2378_v59 = vclz %v7646_v55  ;;  %v10618_v1 = vshrl.u32 %v2475_v5, 30  ;;  %v2634_v31 = vsel %vm2633_vm1, %v2632_v51, 0  ;;  %v2086_v63 = vsel %vm10476_vm14, %v10251_v10, %v2083_v60 }
 0x35f   :  { %v2279_v32 = vshll.u32 %v10484_v2, %v2277_v9  ;;  %v2186_v43 = vxor.u32 2147483648, %v2185_v39  ;;  %v2636_v41 = vand.u32 31, %v2634_v31  ;;  %v2284_v26 = vshll.u32 %v2283_v12, 23 }
 0x360   :  { %v2295_v56 = vsel %vm10600_vm9, 0, %v2293_v14  ;;  %v7647_v46 = vadd.s32 4294967294, %v2378_v59  ;;  %v2477_v25 = vshll.u32 %v10618_v1, 30  ;;  %v10627_v38 = vand.u32 3, %v2091_v6 }
 0x361   :  { %v10629_v11 = vor.u32 %v2280_v23, %v2279_v32  ;;  %v2629_v18 = vand.u32 8388607, %v14875_v30  ;;  %v2637_v34 = vsub.s32 32, %v2636_v41  ;;  %8224 = vcosq.f32 %v2086_v63 }
 0x362   :  { %15083 = vst [vmem:[#allocation26_spill] sm:$0xff] %v10627_v38  ;;  %vm7648_vm4 = vcmp.lt.s32.totalorder %v7647_v46, 0  ;;  %v10633_v2 = vsub.s32 %v2474_v4, %v2477_v25  ;;  %v2528_v9 = vadd.s32 1, %v10377_v7  ;;  %8226 = vsinq.f32 %v2086_v63 }
 0x363   :  { %v10636_v0 = vadd.s32 3, %v2295_v56  ;;  %v2187_v27 = vsel %vm2104_vm13, %v2186_v43, %v2185_v39  ;;  %v10640_v6 = vand.u32 3, %v2195_v45  ;;  %v10642_v19 = vor.u32 4788187, %v2284_v26 }
 0x364   :  { %v2366_v3 = vadd.s32 %v10498_v52, %v10513_v21  ;;  %v2480_v50 = vsub.s32 0, %v10633_v2  ;;  %v2640_v4 = vshrl.u32 %v14996_v16, %v2637_v34  ;;  %v2288_v7 = vcvt.s32.f32 %v10629_v11 }
 0x365   :  { %v10651_v51 = vsel %vm7648_vm4, 0, %v7647_v46  ;;  %v2630_v60 = vor.u32 8388608, %v2629_v18  ;;  %v2643_v39 = vshrl.u32 %v14997_v62, %v2637_v34  ;;  %v2639_v55 = vshll.u32 %v14995_v49, %v2636_v41 }
 0x366   :  { %v7650_v12 = vmin.u32 %v2480_v50, %v10633_v2  ;;  %v2646_v5 = vshrl.u32 %v14998_v20, %v2637_v34  ;;  %vm2529_vm14 = vcmp.gt.s32.totalorder %v2528_v9, 0  ;;  %v2635_v52 = vshrl.u32 %v2634_v31, 5 }
 0x367   :  { %v2642_v21 = vshll.u32 %v14996_v16, %v2636_v41  ;;  %v2648_v23 = vshll.u32 %v14998_v20, %v2636_v41  ;;  %v2649_v14 = vshrl.u32 %v14999_v29, %v2637_v34  ;;  %v2386_v45 = vsub.s32 4294967266, %v10651_v51 }
 0x368   :  { %v2482_v59 = vclz %v7650_v12  ;;  %v2641_v63 = vor.u32 %v2640_v4, %v2639_v55  ;;  %v2645_v32 = vshll.u32 %v14997_v62, %v2636_v41  ;;  %vm2312_vm6 = vcmp.lt.s32.totalorder %v10344_v54, 0 }
 0x369   :  { %v2644_v43 = vor.u32 %v2643_v39, %v2642_v21  ;;  %v2650_v26 = vor.u32 %v2649_v14, %v2648_v23  ;;  %v2651_v56 = vshll.u32 %v14999_v29, %v2636_v41  ;;  %v2652_v31 = vshrl.u32 %v15000_v47, %v2637_v34 }
 0x36a   :  { %v2286_v46 = vand.u32 2147483647, %v10642_v19  ;;  %v2396_v25 = vsub.s32 4, %v10574_v48  ;;  %v7651_v11 = vadd.s32 4294967294, %v2482_v59  ;;  %v2647_v18 = vor.u32 %v2646_v5, %v2645_v32 }
 0x36b   :  { %v2382_v50 = vsub.s32 32, %v10651_v51  ;;  %v2653_v12 = vor.u32 %v2652_v31, %v2651_v56  ;;  %v2670_v4 = vshll.u32 %v2630_v60, 8  ;;  %v2526_v55 = vor.u32 8388608, %v10578_v53  ;;  %v10669_v30 = vpop.eup %8224 }
 0x36c   :  { %15084 = vst [vmem:[#allocation30_spill] sm:$0xff] %v10669_v30  ;;  %v2387_v39 = vadd.s32 127, %v2386_v45  ;;  %vm2654_vm10 = vcmp.lt.s32.totalorder %v2635_v52, 1  ;;  %vm2657_vm13 = vcmp.lt.s32.totalorder %v2635_v52, 4  ;;  %v2530_v41 = vsel %vm2529_vm14, %v2528_v9, 0  ;;  %v10672_v21 = vpop.eup %8226 }
 0x36d   :  { %15085 = vst [vmem:[#allocation24_spill] sm:$0xff] %v10672_v21  ;;  %vm7652_vm15 = vcmp.lt.s32.totalorder %v7651_v11, 0  ;;  %v2662_v19 = vsel %vm2654_vm10, %v2641_v63, %v2644_v43  ;;  %v2663_v23 = vsel %vm2657_vm13, %v2650_v26, 920167782  ;;  %v2667_v5 = vsel %vm2657_vm13, %v2653_v12, 1326507024 }
 0x36e   :  { %v2638_v14 = vshrl.u32 %v14995_v49, %v2637_v34  ;;  %vm2656_vm8 = vcmp.lt.s32.totalorder %v2635_v52, 3  ;;  %v2659_v60 = vsel %vm2657_vm13, %v2647_v18, 2102212464  ;;  %v2666_v53 = vsel %vm2654_vm10, %v2644_v43, %v2647_v18 }
 0x36f   :  { %v2384_v59 = vshrl.u32 %v2366_v3, %v2382_v50  ;;  %vm2655_vm11 = vcmp.lt.s32.totalorder %v2635_v52, 2  ;;  %v2664_v45 = vsel %vm2656_vm8, %v2647_v18, %v2663_v23  ;;  %v2668_v32 = vsel %vm2656_vm8, %v2650_v26, %v2667_v5 }
 0x370   :  { %v2388_v56 = vshll.u32 %v2387_v39, 23  ;;  %v10677_v31 = vsel %vm7652_vm15, 0, %v7651_v11  ;;  %v2658_v9 = vsel %vm2654_vm10, %v2638_v14, %v2641_v63  ;;  %v2665_v17 = vsel %vm2655_vm11, %v2662_v19, %v2664_v45 }
 0x371   :  { %v2660_v33 = vsel %vm2656_vm8, %v2644_v43, %v2659_v60  ;;  %v2669_v12 = vsel %vm2655_vm11, %v2666_v53, %v2668_v32  ;;  %v10682_v30 = vmul.u32.u64.low %v2670_v4, %v2665_v17  ;;  %v10683_v34 = vmul.u32.u64.high %v2670_v4, %v2665_v17, %v10682_v30 }
 0x372   :  { %v10689_v3 = vsel %vm10556_vm12, %v10255_v22, %v2187_v27  ;;  %v10694_v26 = vsel %vm2312_vm6, %v2396_v25, %v10574_v48  ;;  %v2470_v63 = vadd.s32 %v10570_v35, %v10567_v57  ;;  %v2532_v43 = vand.u32 31, %v2530_v41  ;;  %v10709_v48 = vpop.f32.mrb[6].mxu1 }
 0x373   :  { %v10698_v11 = vmul.f32 %v2288_v7, %v2286_v46  ;;  %v2383_v17 = vshll.u32 %v10593_v44, %v10651_v51  ;;  %v10702_v18 = vmul.u32.u64.low %v2670_v4, %v2669_v12  ;;  %v10703_v50 = vmul.u32.u64.high %v2670_v4, %v2669_v12, %v10702_v18 }
 0x374   :  { %v2490_v61 = vsub.s32 4294967266, %v10677_v31  ;;  %v2661_v27 = vsel %vm2655_vm11, %v2658_v9, %v2660_v33  ;;  %v2533_v39 = vsub.s32 32, %v2532_v43  ;;  %v10707_v19 = vshll.u32 %v2526_v55, 8 }
 0x375   :  { %v2385_v25 = vor.u32 %v2384_v59, %v2383_v17  ;;  %v2389_v57 = vor.u32 4788187, %v2388_v56  ;;  %v2486_v35 = vsub.s32 32, %v10677_v31  ;;  %v2680_v7 = vadd.s32 1, %v10683_v34 }
 0x376   :  { %v2531_v46 = vshrl.u32 %v2530_v41, 5  ;;  %v2535_v44 = vshll.u32 %v14995_v49, %v2532_v43  ;;  %v2536_v51 = vshrl.u32 %v14996_v16, %v2533_v39  ;;  %v2539_v23 = vshrl.u32 %v14997_v62, %v2533_v39 }
 0x377   :  { %v2677_v52 = vmul.u32 %v2670_v4, %v2661_v27  ;;  %vm2679_vm3 = vc.u32 %v10703_v50, %v10682_v30  ;;  %v2538_v33 = vshll.u32 %v14996_v16, %v2532_v43  ;;  %v2542_v55 = vshrl.u32 %v14998_v20, %v2533_v39 }
 0x378   :  { %v2491_v5 = vadd.s32 127, %v2490_v61  ;;  %v2681_v14 = vsel %vm2679_vm3, %v2680_v7, %v10683_v34  ;;  %v2537_v60 = vor.u32 %v2536_v51, %v2535_v44  ;;  %v2541_v41 = vshll.u32 %v14997_v62, %v2532_v43 }
 0x379   :  { %v2682_v53 = vadd.s32 %v2681_v14, %v2677_v52  ;;  %v2540_v59 = vor.u32 %v2539_v23, %v2538_v33  ;;  %v2544_v45 = vshll.u32 %v14998_v20, %v2532_v43  ;;  %v2545_v32 = vshrl.u32 %v14999_v29, %v2533_v39 }
 0x37a   :  { %v2290_v4 = vxor.u32 2147483648, %v10698_v11  ;;  %v2543_v56 = vor.u32 %v2542_v55, %v2541_v41  ;;  %v2547_v9 = vshll.u32 %v14999_v29, %v2532_v43  ;;  %v2548_v12 = vshrl.u32 %v15000_v47, %v2533_v39 }
 0x37b   :  { %v15086_v17 = vand.u32 2147483647, %v10344_v54  ;;  %v2390_v18 = vand.u32 2147483647, %v2389_v57  ;;  %v2392_v61 = vcvt.s32.f32 %v2385_v25  ;;  %v2683_v27 = vadd.s32 536870912, %v2682_v53 }
 0x37c   :  { %v2546_v7 = vor.u32 %v2545_v32, %v2544_v45  ;;  %v2487_v44 = vshll.u32 %v10633_v2, %v10677_v31  ;;  %v2492_v51 = vshll.u32 %v2491_v5, 23  ;;  %v2549_v23 = vor.u32 %v2548_v12, %v2547_v9 }
 0x37d   :  { %vm10729_vm7 = vcmp.le.f32.partialorder %v15086_v17, 0.7853982  ;;  %vm2550_vm12 = vcmp.lt.s32.totalorder %v2531_v46, 1  ;;  %v2488_v52 = vshrl.u32 %v2470_v63, %v2486_v35  ;;  %v10735_v43 = vshrl.u32 %v2683_v27, 30 }
 0x37e   :  { %vm2553_vm2 = vcmp.lt.s32.totalorder %v2531_v46, 4  ;;  %v2558_v33 = vsel %vm2550_vm12, %v2537_v60, %v2540_v59  ;;  %v2534_v55 = vshrl.u32 %v14995_v49, %v2533_v39  ;;  %vm2552_vm1 = vcmp.lt.s32.totalorder %v2531_v46, 3 }
 0x37f   :  { %v2555_v14 = vsel %vm2553_vm2, %v2543_v56, 2102212464  ;;  %v2559_v41 = vsel %vm2553_vm2, %v2546_v7, 920167782  ;;  %v2685_v25 = vshll.u32 %v10735_v43, 30  ;;  %vm2551_vm4 = vcmp.lt.s32.totalorder %v2531_v46, 2 }
 0x380   :  { %v2560_v57 = vsel %vm2552_vm1, %v2543_v56, %v2559_v41  ;;  %v2562_v45 = vsel %vm2550_vm12, %v2540_v59, %v2543_v56  ;;  %v2493_v32 = vor.u32 4788187, %v2492_v51  ;;  %v2554_v2 = vsel %vm2550_vm12, %v2534_v55, %v2537_v60 }
 0x381   :  { %v2561_v31 = vsel %vm2551_vm4, %v2558_v33, %v2560_v57  ;;  %v2563_v5 = vsel %vm2553_vm2, %v2549_v23, 1326507024  ;;  %v10740_v63 = vsub.s32 %v2682_v53, %v2685_v25  ;;  %v2556_v35 = vsel %vm2552_vm1, %v2540_v59, %v2555_v14 }
 0x382   :  { %v2564_v9 = vsel %vm2552_vm1, %v2546_v7, %v2563_v5  ;;  %v2729_v12 = vand.u32 2139095040, %v10355_v37  ;;  %vm2416_vm14 = vcmp.lt.s32.totalorder %v10263_v40, 0  ;;  %v2489_v39 = vor.u32 %v2488_v52, %v2487_v44 }
 0x383   :  { %v2565_v17 = vsel %vm2551_vm4, %v2562_v45, %v2564_v9  ;;  %v10746_v27 = vmul.u32.u64.low %v10707_v19, %v2561_v31  ;;  %v10747_v41 = vmul.u32.u64.high %v10707_v19, %v2561_v31, %v10746_v27  ;;  %v2393_v60 = vmul.f32 %v2392_v61, %v2390_v18 }
 0x384   :  { %v2688_v56 = vsub.s32 0, %v10740_v63  ;;  %v10752_v53 = vmul.u32.u64.low %v10707_v19, %v2565_v17  ;;  %v10753_v51 = vmul.u32.u64.high %v10707_v19, %v2565_v17, %v10752_v53  ;;  %v2399_v59 = vsel %vm10729_vm7, 0, %v10694_v26 }
 0x385   :  { %v2494_v7 = vand.u32 2147483647, %v2493_v32  ;;  %v2557_v44 = vsel %vm2551_vm4, %v2554_v2, %v2556_v35  ;;  %v2730_v23 = vshrl.u32 %v2729_v12, 23  ;;  %v2291_v52 = vsel %vm2208_vm0, %v2290_v4, %v10698_v11 }
 0x386   :  { %v2500_v18 = vsub.s32 4, %v10618_v1  ;;  %v7658_v61 = vmin.u32 %v2688_v56, %v10740_v63  ;;  %v14877_v33 = vand.u32 2147483647, %v10355_v37  ;;  %v15089_v55 = vand.u32 2147483647, %v10263_v40 }
 0x387   :  { %v2496_v26 = vcvt.s32.f32 %v2489_v39  ;;  %v2576_v46 = vadd.s32 1, %v10747_v41  ;;  %v7661_v25 = vadd.s32 4294967169, %v2730_v23  ;;  %v15092_v57 = vand.u32 2139095040, %v10309_v13 }
 0x388   :  { %vm10767_vm10 = vcmp.le.f32.partialorder %v15089_v55, 0.7853982  ;;  %v2394_v11 = vxor.u32 2147483648, %v2393_v60  ;;  %v2690_v4 = vclz %v7658_v61  ;;  %v2573_v32 = vmul.u32 %v10707_v19, %v2557_v44 }
 0x389   :  { %v2834_v45 = vshrl.u32 %v15092_v57, 23  ;;  %vm2575_vm0 = vc.u32 %v10753_v51, %v10746_v27  ;;  %8228 = vcosq.f32 %v10689_v3  ;;  %v2497_v2 = vmul.f32 %v2496_v26, %v2494_v7 }
 0x38a   :  { %v2577_v31 = vsel %vm2575_vm0, %v2576_v46, %v10747_v41  ;;  %v2736_v5 = vadd.s32 1, %v7661_v25  ;;  %8230 = vsinq.f32 %v10689_v3  ;;  %v2403_v35 = vadd.s32 3, %v2399_v59  ;;  %v10814_v25 = vpop.f32.mrb[7].mxu0 }
 0x38b   :  { %v7659_v9 = vadd.s32 4294967294, %v2690_v4  ;;  %v2578_v12 = vadd.s32 %v2577_v31, %v2573_v32  ;;  %v2294_v39 = vsel %vm10600_vm9, %v10339_v58, %v2291_v52  ;;  %v2733_v19 = vand.u32 8388607, %v14877_v33 }
 0x38c   :  { %vm2737_vm13 = vcmp.gt.s32.totalorder %v2736_v5, 0  ;;  %v7665_v17 = vadd.s32 4294967169, %v2834_v45  ;;  %v2395_v56 = vsel %vm2312_vm6, %v2394_v11, %v2393_v60  ;;  %v10790_v41 = vsel %vm2416_vm14, %v2500_v18, %v10618_v1 }
 0x38d   :  { %v2579_v3 = vadd.s32 536870912, %v2578_v12  ;;  %v2738_v53 = vsel %vm2737_vm13, %v2736_v5, 0  ;;  %v2498_v59 = vxor.u32 2147483648, %v2497_v2  ;;  %vm7660_vm15 = vcmp.lt.s32.totalorder %v7659_v9, 0 }
 0x38e   :  { %v2740_v7 = vand.u32 31, %v2738_v53  ;;  %v15093_v15 = vand.u32 2147483647, %v10309_v13  ;;  %8232 = vcosq.f32 %v2294_v39  ;;  %v10797_v23 = vand.u32 3, %v10636_v0 }
 0x38f   :  { %v10799_v52 = vand.u32 3, %v2403_v35  ;;  %v10801_v60 = vshrl.u32 %v2579_v3, 30  ;;  %8234 = vsinq.f32 %v2294_v39  ;;  %v2734_v1 = vor.u32 8388608, %v2733_v19 }
 0x390   :  { %v10794_v44 = vand.u32 8388607, %v15093_v15  ;;  %15094 = vst [vmem:[#allocation18_spill] sm:$0xff] %v10797_v23  ;;  %v2741_v18 = vsub.s32 32, %v2740_v7  ;;  %v2840_v61 = vadd.s32 1, %v7665_v17  ;;  %v10806_v55 = vsel %vm10729_vm7, %v10344_v54, %v2395_v56 }
 0x391   :  { %15095 = vst [vmem:[#allocation33_spill] sm:$0xff] %v10799_v52  ;;  %v10811_v46 = vsel %vm7660_vm15, 0, %v7659_v9  ;;  %v2581_v0 = vshll.u32 %v10801_v60, 30  ;;  %v10818_v57 = vsel %vm2416_vm14, %v2498_v59, %v2497_v2  ;;  %v2678_v45 = vadd.s32 %v10682_v30, %v10703_v50 }
 0x392   :  { %v2750_v34 = vshrl.u32 %v14998_v20, %v2741_v18  ;;  %v2838_v11 = vor.u32 8388608, %v10794_v44  ;;  %v2744_v32 = vshrl.u32 %v14996_v16, %v2741_v18  ;;  %v2747_v31 = vshrl.u32 %v14997_v62, %v2741_v18 }
 0x393   :  { %v10824_v4 = vsub.s32 %v2578_v12, %v2581_v0  ;;  %v2749_v5 = vshll.u32 %v14997_v62, %v2740_v7  ;;  %v10829_v35 = vpop.eup %8228  ;;  %v2698_v2 = vsub.s32 4294967266, %v10811_v46  ;;  %v2739_v9 = vshrl.u32 %v2738_v53, 5 }
 0x394   :  { %v10832_v39 = vshll.u32 %v2734_v1, 8  ;;  %vm2841_vm9 = vcmp.gt.s32.totalorder %v2840_v61, 0  ;;  %v10834_v30 = vpop.eup %8230  ;;  %v2743_v12 = vshll.u32 %v14995_v49, %v2740_v7  ;;  %v2746_v19 = vshll.u32 %v14996_v16, %v2740_v7 }
 0x395   :  { %v2584_v50 = vsub.s32 0, %v10824_v4  ;;  %v2751_v17 = vor.u32 %v2750_v34, %v2749_v5  ;;  %v2752_v56 = vshll.u32 %v14998_v20, %v2740_v7  ;;  %v2753_v3 = vshrl.u32 %v14999_v29, %v2741_v18 }
 0x396   :  { %v2755_v59 = vshll.u32 %v14999_v29, %v2740_v7  ;;  %v2756_v53 = vshrl.u32 %v15000_v47, %v2741_v18  ;;  %v2745_v44 = vor.u32 %v2744_v32, %v2743_v12  ;;  %v2748_v1 = vor.u32 %v2747_v31, %v2746_v19 }
 0x397   :  { %v7654_v15 = vmin.u32 %v2584_v50, %v10824_v4  ;;  %v2842_v0 = vsel %vm2841_vm9, %v2840_v61, 0  ;;  %v2694_v33 = vsub.s32 32, %v10811_v46  ;;  %v2699_v26 = vadd.s32 127, %v2698_v2 }
 0x398   :  { %v2754_v23 = vor.u32 %v2753_v3, %v2752_v56  ;;  %v2757_v58 = vor.u32 %v2756_v53, %v2755_v59  ;;  %v10845_v38 = vpop.eup %8232  ;;  %v2695_v34 = vshll.u32 %v10740_v63, %v10811_v46  ;;  %v2742_v7 = vshrl.u32 %v14995_v49, %v2741_v18 }
 0x399   :  { %15096 = vst [vmem:[#allocation10_spill] sm:$0xff] %v10845_v38  ;;  %v2586_v5 = vclz %v7654_v15  ;;  %vm2761_vm6 = vcmp.lt.s32.totalorder %v2739_v9, 4  ;;  %v10850_v54 = vpop.eup %8234  ;;  %vm2758_vm8 = vcmp.lt.s32.totalorder %v2739_v9, 1  ;;  %vm2760_vm11 = vcmp.lt.s32.totalorder %v2739_v9, 3 }
 0x39a   :  { %15097 = vst [vmem:[#allocation34_spill] sm:$0xff] %v10850_v54  ;;  %v2763_v32 = vsel %vm2761_vm6, %v2751_v17, 2102212464  ;;  %v2767_v61 = vsel %vm2761_vm6, %v2754_v23, 920167782  ;;  %v2766_v50 = vsel %vm2758_vm8, %v2745_v44, %v2748_v1  ;;  %v2770_v12 = vsel %vm2758_vm8, %v2748_v1, %v2751_v17 }
 0x39b   :  { %v7655_v31 = vadd.s32 4294967294, %v2586_v5  ;;  %v2768_v2 = vsel %vm2760_vm11, %v2751_v17, %v2767_v61  ;;  %v2696_v19 = vshrl.u32 %v2678_v45, %v2694_v33  ;;  %v2700_v56 = vshll.u32 %v2699_v26, 23 }
 0x39c   :  { %v2771_v3 = vsel %vm2761_vm6, %v2757_v58, 1326507024  ;;  %v2844_v59 = vand.u32 31, %v2842_v0  ;;  %vm2759_vm7 = vcmp.lt.s32.totalorder %v2739_v9, 2  ;;  %v2762_v63 = vsel %vm2758_vm8, %v2742_v7, %v2745_v44 }
 0x39d   :  { %vm7656_vm3 = vcmp.lt.s32.totalorder %v7655_v31, 0  ;;  %v2772_v46 = vsel %vm2760_vm11, %v2754_v23, %v2771_v3  ;;  %v2764_v18 = vsel %vm2760_vm11, %v2748_v1, %v2763_v32  ;;  %v2769_v53 = vsel %vm2759_vm7, %v2766_v50, %v2768_v2 }
 0x39e   :  { %v2773_v15 = vsel %vm2759_vm7, %v2770_v12, %v2772_v46  ;;  %v2845_v38 = vsub.s32 32, %v2844_v59  ;;  %v10855_v5 = vadd.s32 %v10746_v27, %v10753_v51  ;;  %v10857_v61 = vsel %vm7656_vm3, 0, %v7655_v31  ;;  %v10875_v51 = vpop.f32.mrb[7].mxu1 }
 0x39f   :  { %v10859_v33 = vshll.u32 %v2838_v11, 8  ;;  %v10861_v58 = vor.u32 %v2696_v19, %v2695_v34  ;;  %v10864_v26 = vmul.u32.u64.low %v10832_v39, %v2773_v15  ;;  %v10865_v45 = vmul.u32.u64.high %v10832_v39, %v2773_v15, %v10864_v26 }
 0x3a0   :  { %v2765_v9 = vsel %vm2759_vm7, %v2762_v63, %v2764_v18  ;;  %v10869_v17 = vmul.u32.u64.low %v10832_v39, %v2769_v53  ;;  %v10870_v44 = vmul.u32.u64.high %v10832_v39, %v2769_v53, %v10869_v17  ;;  %v10873_v27 = vshrl.u32 %v2842_v0, 5 }
 0x3a1   :  { %v2701_v11 = vor.u32 4788187, %v2700_v56  ;;  %v2594_v1 = vsub.s32 4294967266, %v10857_v61  ;;  %v2848_v34 = vshrl.u32 %v14996_v16, %v2845_v38  ;;  %v2851_v7 = vshrl.u32 %v14997_v62, %v2845_v38 }
 0x3a2   :  { %v2847_v32 = vshll.u32 %v14995_v49, %v2844_v59  ;;  %v2850_v31 = vshll.u32 %v14996_v16, %v2844_v59  ;;  %v2853_v50 = vshll.u32 %v14997_v62, %v2844_v59  ;;  %v2854_v2 = vshrl.u32 %v14998_v20, %v2845_v38 }
 0x3a3   :  { %v2704_v0 = vcvt.s32.f32 %v10861_v58  ;;  %v2604_v12 = vsub.s32 4, %v10801_v60  ;;  %v2781_v19 = vmul.u32 %v10832_v39, %v2765_v9  ;;  %vm2783_vm12 = vc.u32 %v10865_v45, %v10869_v17 }
 0x3a4   :  { %vm2624_vm2 = vcmp.lt.s32.totalorder %v10351_v24, 0  ;;  %vm2520_vm1 = vcmp.lt.s32.totalorder %v10265_v42, 0  ;;  %v2784_v56 = vadd.s32 1, %v10870_v44  ;;  %v2849_v3 = vor.u32 %v2848_v34, %v2847_v32 }
 0x3a5   :  { %v2852_v63 = vor.u32 %v2851_v7, %v2850_v31  ;;  %v2855_v46 = vor.u32 %v2854_v2, %v2853_v50  ;;  %v2856_v18 = vshll.u32 %v14998_v20, %v2844_v59  ;;  %v2857_v53 = vshrl.u32 %v14999_v29, %v2845_v38 }
 0x3a6   :  { %v2859_v15 = vshll.u32 %v14999_v29, %v2844_v59  ;;  %v2860_v39 = vshrl.u32 %v15000_v47, %v2845_v38  ;;  %v2702_v58 = vand.u32 2147483647, %v2701_v11  ;;  %v2590_v26 = vsub.s32 32, %v10857_v61 }
 0x3a7   :  { %v2595_v9 = vadd.s32 127, %v2594_v1  ;;  %v2785_v23 = vsel %vm2783_vm12, %v2784_v56, %v10870_v44  ;;  %v15098_v54 = vand.u32 2147483647, %v10351_v24  ;;  %v2858_v32 = vor.u32 %v2857_v53, %v2856_v18 }
 0x3a8   :  { %v2786_v7 = vadd.s32 %v2785_v23, %v2781_v19  ;;  %v2861_v31 = vor.u32 %v2860_v39, %v2859_v15  ;;  %vm2862_vm14 = vcmp.lt.s32.totalorder %v10873_v27, 1  ;;  %v2846_v59 = vshrl.u32 %v14995_v49, %v2845_v38 }
 0x3a9   :  { %vm10900_vm4 = vcmp.le.f32.partialorder %v15098_v54, 0.7853982  ;;  %vm2864_vm0 = vcmp.lt.s32.totalorder %v10873_v27, 3  ;;  %vm2865_vm13 = vcmp.lt.s32.totalorder %v10873_v27, 4  ;;  %v2870_v11 = vsel %vm2862_vm14, %v2849_v3, %v2852_v63 }
 0x3aa   :  { %v15101_v44 = vand.u32 2147483647, %v10265_v42  ;;  %v2787_v54 = vadd.s32 536870912, %v2786_v7  ;;  %v2867_v50 = vsel %vm2865_vm13, %v2855_v46, 2102212464  ;;  %v2874_v2 = vsel %vm2862_vm14, %v2852_v63, %v2855_v46 }
 0x3ab   :  { %v2871_v23 = vsel %vm2865_vm13, %v2858_v32, 920167782  ;;  %v2596_v19 = vshll.u32 %v2595_v9, 23  ;;  %vm2863_vm9 = vcmp.lt.s32.totalorder %v10873_v27, 2  ;;  %v2875_v56 = vsel %vm2865_vm13, %v2861_v31, 1326507024 }
 0x3ac   :  { %vm10910_vm15 = vcmp.le.f32.partialorder %v15101_v44, 0.7853982  ;;  %v2872_v38 = vsel %vm2864_vm0, %v2855_v46, %v2871_v23  ;;  %v10917_v18 = vshrl.u32 %v2787_v54, 30  ;;  %v2866_v53 = vsel %vm2862_vm14, %v2846_v59, %v2849_v3 }
 0x3ad   :  { %v2873_v15 = vsel %vm2863_vm9, %v2870_v11, %v2872_v38  ;;  %v2876_v39 = vsel %vm2864_vm0, %v2858_v32, %v2875_v56  ;;  %v2868_v44 = vsel %vm2864_vm0, %v2852_v63, %v2867_v50  ;;  %v15104_v3 = vsub.s32 4, %v10735_v43 }
 0x3ae   :  { %v2877_v9 = vsel %vm2863_vm9, %v2874_v2, %v2876_v39  ;;  %v10928_v10 = vmul.u32.u64.low %v10859_v33, %v2873_v15  ;;  %v10929_v21 = vmul.u32.u64.high %v10859_v33, %v2873_v15, %v10928_v10  ;;  %v2592_v31 = vshrl.u32 %v10855_v5, %v2590_v26 }
 0x3af   :  { %v2709_v46 = vsel %vm2624_vm2, %v15104_v3, %v10735_v43  ;;  %v2605_v63 = vsel %vm2520_vm1, %v2604_v12, %v10801_v60  ;;  %v2789_v32 = vshll.u32 %v10917_v18, 30  ;;  %v2705_v59 = vmul.f32 %v2704_v0, %v2702_v58 }
 0x3b0   :  { %v2591_v11 = vshll.u32 %v10824_v4, %v10857_v61  ;;  %v10945_v54 = vmul.u32.u64.low %v10859_v33, %v2877_v9  ;;  %v10946_v50 = vmul.u32.u64.high %v10859_v33, %v2877_v9, %v10945_v54  ;;  %v2597_v23 = vor.u32 4788187, %v2596_v19 }
 0x3b1   :  { %v10948_v2 = vsub.s32 %v2786_v7, %v2789_v32  ;;  %v2869_v43 = vsel %vm2863_vm9, %v2866_v53, %v2868_v44  ;;  %v15105_v5 = vand.u32 2139095040, %v10369_v8  ;;  %8236 = vcosq.f32 %v10806_v55 }
 0x3b2   :  { %v2502_v60 = vsel %vm10767_vm10, %v10263_v40, %v10818_v57  ;;  %v2711_v4 = vsel %vm10900_vm4, 0, %v2709_v46  ;;  %v2888_v61 = vadd.s32 1, %v10929_v21  ;;  %v2593_v0 = vor.u32 %v2592_v31, %v2591_v11 }
 0x3b3   :  { %v3042_v26 = vshrl.u32 %v15105_v5, 23  ;;  %v2792_v12 = vsub.s32 0, %v10948_v2  ;;  %v14888_v27 = vand.u32 2147483647, %v10369_v8  ;;  %v2706_v7 = vxor.u32 2147483648, %v2705_v59 }
 0x3b4   :  { %v2607_v19 = vsel %vm10910_vm15, 0, %v2605_v63  ;;  %v2885_v38 = vmul.u32 %v10859_v33, %v2869_v43  ;;  %vm2887_vm6 = vc.u32 %v10946_v50, %v10928_v10  ;;  %v2598_v57 = vand.u32 2147483647, %v2597_v23 }
 0x3b5   :  { %v7673_v58 = vadd.s32 4294967169, %v3042_v26  ;;  %v7662_v56 = vmin.u32 %v2792_v12, %v10948_v2  ;;  %v2889_v53 = vsel %vm2887_vm6, %v2888_v61, %v10929_v21  ;;  %8238 = vsinq.f32 %v10806_v55 }
 0x3b6   :  { %v15106_v39 = vsel %vm10767_vm10, 0, %v10790_v41  ;;  %v2715_v9 = vadd.s32 3, %v2711_v4  ;;  %v2890_v3 = vadd.s32 %v2889_v53, %v2885_v38  ;;  %v2600_v46 = vcvt.s32.f32 %v2593_v0 }
 0x3b7   :  { %v3048_v15 = vadd.s32 1, %v7673_v58  ;;  %v2507_v44 = vadd.s32 3, %v15106_v39  ;;  %v2611_v33 = vadd.s32 3, %v2607_v19  ;;  %v2794_v31 = vclz %v7662_v56 }
 0x3b8   :  { %8240 = vcosq.f32 %v2502_v60  ;;  %v2707_v63 = vsel %vm2624_vm2, %v2706_v7, %v2705_v59  ;;  %v2891_v32 = vadd.s32 536870912, %v2890_v3  ;;  %v10978_v11 = vmul.f32 %v2600_v46, %v2598_v57 }
 0x3b9   :  { %vm3049_vm8 = vcmp.gt.s32.totalorder %v3048_v15, 0  ;;  %v7663_v55 = vadd.s32 4294967294, %v2794_v31  ;;  %v3045_v14 = vand.u32 8388607, %v14888_v27  ;;  %8242 = vsinq.f32 %v2502_v60 }
 0x3ba   :  { %v3050_v21 = vsel %vm3049_vm8, %v3048_v15, 0  ;;  %v10982_v54 = vand.u32 3, %v2507_v44  ;;  %v10984_v23 = vand.u32 3, %v2715_v9  ;;  %v10986_v43 = vshrl.u32 %v2891_v32, 30 }
 0x3bb   :  { %v3052_v41 = vand.u32 31, %v3050_v21  ;;  %v10991_v59 = vsel %vm10900_vm4, %v10351_v24, %v2707_v63  ;;  %v10993_v5 = vand.u32 3, %v2611_v33  ;;  %vm7664_vm10 = vcmp.lt.s32.totalorder %v7663_v55, 0  ;;  %v10995_v4 = vpop.eup %8236 }
 0x3bc   :  { %15107 = vst [vmem:[#allocation36_spill] sm:$0xff] %v10982_v54  ;;  %15108 = vst [vmem:[#allocation25_spill] sm:$0xff] %v10984_v23  ;;  %v2782_v60 = vadd.s32 %v10869_v17, %v10865_v45  ;;  %v2797_v61 = vsel %vm7664_vm10, 0, %v7663_v55  ;;  %v2893_v0 = vshll.u32 %v10986_v43, 30  ;;  %v2937_v12 = vand.u32 2139095040, %v10426_v36 }
 0x3bd   :  { %v3053_v26 = vsub.s32 32, %v3052_v41  ;;  %15109 = vst [vmem:[#allocation19_spill] sm:$0xff] %v10995_v4  ;;  %v2802_v7 = vsub.s32 4294967266, %v2797_v61  ;;  %v3046_v19 = vor.u32 8388608, %v3045_v14  ;;  %v2886_v17 = vadd.s32 %v10928_v10, %v10946_v50 }
 0x3be   :  { %v11003_v38 = vsub.s32 %v2890_v3, %v2893_v0  ;;  %v3055_v15 = vshll.u32 %v14995_v49, %v3052_v41  ;;  %v2798_v9 = vsub.s32 32, %v2797_v61  ;;  %v3058_v46 = vshll.u32 %v14996_v16, %v3052_v41 }
 0x3bf   :  { %v3056_v57 = vshrl.u32 %v14996_v16, %v3053_v26  ;;  %v3059_v56 = vshrl.u32 %v14997_v62, %v3053_v26  ;;  %v2803_v45 = vadd.s32 127, %v2802_v7  ;;  %v3062_v39 = vshrl.u32 %v14998_v20, %v3053_v26  ;;  %v11012_v44 = vpop.eup %8238 }
 0x3c0   :  { %v2896_v3 = vsub.s32 0, %v11003_v38  ;;  %v2938_v33 = vshrl.u32 %v2937_v12, 23  ;;  %v3051_v31 = vshrl.u32 %v3050_v21, 5  ;;  %v3061_v32 = vshll.u32 %v14997_v62, %v3052_v41 }
 0x3c1   :  { %v3057_v63 = vor.u32 %v3056_v57, %v3055_v15  ;;  %v11017_v55 = vshll.u32 %v3046_v19, 8  ;;  %v3060_v50 = vor.u32 %v3059_v56, %v3058_v46  ;;  %v3064_v0 = vshll.u32 %v14998_v20, %v3052_v41 }
 0x3c2   :  { %v11019_v14 = vpop.eup %8240  ;;  %v7666_v10 = vmin.u32 %v2896_v3, %v11003_v38  ;;  %v3065_v7 = vshrl.u32 %v14999_v29, %v3053_v26  ;;  %vm2728_vm11 = vcmp.lt.s32.totalorder %v10355_v37, 0  ;;  %v2804_v27 = vshll.u32 %v2803_v45, 23 }
 0x3c3   :  { %15110 = vst [vmem:[#allocation17_spill] sm:$0xff] %v11019_v14  ;;  %v3063_v58 = vor.u32 %v3062_v39, %v3061_v32  ;;  %v3067_v21 = vshll.u32 %v14999_v29, %v3052_v41  ;;  %v3068_v12 = vshrl.u32 %v15000_v47, %v3053_v26  ;;  %v11027_v57 = vpop.eup %8242  ;;  %v2800_v19 = vshrl.u32 %v2782_v60, %v2798_v9 }
 0x3c4   :  { %15111 = vst [vmem:[#allocation14_spill] sm:$0xff] %v11027_v57  ;;  %v2898_v15 = vclz %v7666_v10  ;;  %v3066_v53 = vor.u32 %v3065_v7, %v3064_v0  ;;  %v7669_v34 = vadd.s32 4294967169, %v2938_v33  ;;  %v2799_v56 = vshll.u32 %v10948_v2, %v2797_v61 }
 0x3c5   :  { %v3054_v3 = vshrl.u32 %v14995_v49, %v3053_v26  ;;  %v3069_v46 = vor.u32 %v3068_v12, %v3067_v21  ;;  %vm3073_vm3 = vcmp.lt.s32.totalorder %v3051_v31, 4  ;;  %v15112_v23 = vand.u32 2147483647, %v10355_v37 }
 0x3c6   :  { %v7667_v41 = vadd.s32 4294967294, %v2898_v15  ;;  %vm3070_vm12 = vcmp.lt.s32.totalorder %v3051_v31, 1  ;;  %vm3072_vm2 = vcmp.lt.s32.totalorder %v3051_v31, 3  ;;  %v3079_v39 = vsel %vm3073_vm3, %v3066_v53, 920167782 }
 0x3c7   :  { %vm11033_vm7 = vcmp.le.f32.partialorder %v15112_v23, 0.7853982  ;;  %v2805_v60 = vor.u32 4788187, %v2804_v27  ;;  %v3078_v9 = vsel %vm3070_vm12, %v3057_v63, %v3060_v50  ;;  %v3080_v33 = vsel %vm3072_vm2, %v3063_v58, %v3079_v39 }
 0x3c8   :  { %v3082_v32 = vsel %vm3070_vm12, %v3060_v50, %v3063_v58  ;;  %v2801_v2 = vor.u32 %v2800_v19, %v2799_v56  ;;  %vm7668_vm4 = vcmp.lt.s32.totalorder %v7667_v41, 0  ;;  %v3075_v26 = vsel %vm3073_vm3, %v3063_v58, 2102212464 }
 0x3c9   :  { %v3083_v61 = vsel %vm3073_vm3, %v3069_v46, 1326507024  ;;  %v2901_v10 = vsel %vm7668_vm4, 0, %v7667_v41  ;;  %vm3071_vm14 = vcmp.lt.s32.totalorder %v3051_v31, 2  ;;  %v3074_v0 = vsel %vm3070_vm12, %v3054_v3, %v3057_v63 }
 0x3ca   :  { %v3084_v23 = vsel %vm3072_vm2, %v3066_v53, %v3083_v61  ;;  %v2902_v7 = vsub.s32 32, %v2901_v10  ;;  %v2906_v21 = vsub.s32 4294967266, %v2901_v10  ;;  %v3081_v12 = vsel %vm3071_vm14, %v3078_v9, %v3080_v33 }
 0x3cb   :  { %v3085_v15 = vsel %vm3071_vm14, %v3082_v32, %v3084_v23  ;;  %v3076_v27 = vsel %vm3072_vm2, %v3060_v50, %v3075_v26  ;;  %v2944_v19 = vadd.s32 1, %v7669_v34  ;;  %v2806_v58 = vand.u32 2147483647, %v2805_v60 }
 0x3cc   :  { %v11043_v39 = vmul.u32.u64.low %v11017_v55, %v3085_v15  ;;  %v11044_v24 = vmul.u32.u64.high %v11017_v55, %v3085_v15, %v11043_v39  ;;  %v15115_v56 = vsub.s32 4, %v10917_v18  ;;  %v2907_v63 = vadd.s32 127, %v2906_v21 }
 0x3cd   :  { %v15116_v3 = vand.u32 2147483647, %v10426_v36  ;;  %v2904_v41 = vshrl.u32 %v2886_v17, %v2902_v7  ;;  %v11056_v50 = vmul.u32.u64.low %v11017_v55, %v3081_v12  ;;  %v11057_v9 = vmul.u32.u64.high %v11017_v55, %v3081_v12, %v11056_v50 }
 0x3ce   :  { %v11051_v53 = vsel %vm2728_vm11, %v15115_v56, %v10917_v18  ;;  %vm2945_vm0 = vcmp.gt.s32.totalorder %v2944_v19, 0  ;;  %v2808_v34 = vcvt.s32.f32 %v2801_v2  ;;  %v2908_v60 = vshll.u32 %v2907_v63, 23  ;;  %v15118_v2 = vld [vmem:[#allocation13_spill] sm:$0xff] }
 0x3cf   :  { %v2941_v46 = vand.u32 8388607, %v15116_v3  ;;  %v3077_v33 = vsel %vm3071_vm14, %v3074_v0, %v3076_v27  ;;  %v2946_v32 = vsel %vm2945_vm0, %v2944_v19, 0  ;;  %v15117_v18 = vxor.u32 2147483648, %v10978_v11 }
 0x3d0   :  { %v2903_v61 = vshll.u32 %v11003_v38, %v2901_v10  ;;  %v2948_v23 = vand.u32 31, %v2946_v32  ;;  %v11072_v7 = vmul.f32 %v2808_v34, %v2806_v58  ;;  %vm3095_vm13 = vc.u32 %v11044_v24, %v11056_v50 }
 0x3d1   :  { %v11066_v26 = vsel %vm2520_vm1, %v15117_v18, %v10978_v11  ;;  %v2942_v31 = vor.u32 8388608, %v2941_v46  ;;  %v3145_v0 = vand.u32 2139095040, %v15118_v2  ;;  %v3093_v12 = vmul.u32 %v11017_v55, %v3077_v33 }
 0x3d2   :  { %v2905_v21 = vor.u32 %v2904_v41, %v2903_v61  ;;  %v3096_v11 = vadd.s32 1, %v11057_v9  ;;  %v2949_v15 = vsub.s32 32, %v2948_v23  ;;  %v2909_v27 = vor.u32 4788187, %v2908_v60 }
 0x3d3   :  { %v2947_v39 = vshrl.u32 %v2946_v32, 5  ;;  %v2951_v19 = vshll.u32 %v14995_v49, %v2948_v23  ;;  %v2954_v38 = vshll.u32 %v14996_v16, %v2948_v23  ;;  %v2957_v63 = vshll.u32 %v14997_v62, %v2948_v23 }
 0x3d4   :  { %v3097_v10 = vsel %vm3095_vm13, %v3096_v11, %v11057_v9  ;;  %v2952_v58 = vshrl.u32 %v14996_v16, %v2949_v15  ;;  %v2955_v56 = vshrl.u32 %v14997_v62, %v2949_v15  ;;  %v2958_v55 = vshrl.u32 %v14998_v20, %v2949_v15 }
 0x3d5   :  { %v3098_v3 = vadd.s32 %v3097_v10, %v3093_v12  ;;  %v2960_v46 = vshll.u32 %v14998_v20, %v2948_v23  ;;  %v2961_v41 = vshrl.u32 %v14999_v29, %v2949_v15  ;;  %v2963_v33 = vshll.u32 %v14999_v29, %v2948_v23 }
 0x3d6   :  { %v2953_v34 = vor.u32 %v2952_v58, %v2951_v19  ;;  %v2956_v60 = vor.u32 %v2955_v56, %v2954_v38  ;;  %v2964_v32 = vshrl.u32 %v15000_v47, %v2949_v15  ;;  %v2916_v9 = vsub.s32 4, %v10986_v43 }
 0x3d7   :  { %v3099_v18 = vadd.s32 536870912, %v3098_v3  ;;  %v2959_v61 = vor.u32 %v2958_v55, %v2957_v63  ;;  %v2962_v11 = vor.u32 %v2961_v41, %v2960_v46  ;;  %v2810_v17 = vxor.u32 2147483648, %v11072_v7 }
 0x3d8   :  { %vm2832_vm1 = vcmp.lt.s32.totalorder %v10309_v13, 0  ;;  %v2912_v12 = vcvt.s32.f32 %v2905_v21  ;;  %v2965_v10 = vor.u32 %v2964_v32, %v2963_v33  ;;  %v2982_v14 = vshll.u32 %v2942_v31, 8 }
 0x3d9   :  { %v2910_v57 = vand.u32 2147483647, %v2909_v27  ;;  %v11093_v54 = vshrl.u32 %v3099_v18, 30  ;;  %vm2966_vm9 = vcmp.lt.s32.totalorder %v2947_v39, 1  ;;  %vm2969_vm6 = vcmp.lt.s32.totalorder %v2947_v39, 4 }
 0x3da   :  { %v2950_v23 = vshrl.u32 %v14995_v49, %v2949_v15  ;;  %v2971_v19 = vsel %vm2969_vm6, %v2959_v61, 2102212464  ;;  %v2974_v38 = vsel %vm2966_vm9, %v2953_v34, %v2956_v60  ;;  %v2975_v58 = vsel %vm2969_vm6, %v2962_v11, 920167782 }
 0x3db   :  { %v15119_v56 = vand.u32 2147483647, %v10309_v13  ;;  %v3101_v21 = vshll.u32 %v11093_v54, 30  ;;  %vm2967_vm10 = vcmp.lt.s32.totalorder %v2947_v39, 2  ;;  %vm2968_vm3 = vcmp.lt.s32.totalorder %v2947_v39, 3 }
 0x3dc   :  { %v3146_v31 = vshrl.u32 %v3145_v0, 23  ;;  %v2970_v27 = vsel %vm2966_vm9, %v2950_v23, %v2953_v34  ;;  %v2976_v55 = vsel %vm2968_vm3, %v2959_v61, %v2975_v58  ;;  %v2978_v46 = vsel %vm2966_vm9, %v2956_v60, %v2959_v61 }
 0x3dd   :  { %vm11098_vm8 = vcmp.le.f32.partialorder %v15119_v56, 0.7853982  ;;  %v2979_v41 = vsel %vm2969_vm6, %v2965_v10, 1326507024  ;;  %v11103_v33 = vsub.s32 %v3098_v3, %v3101_v21  ;;  %v2972_v15 = vsel %vm2968_vm3, %v2956_v60, %v2971_v19 }
 0x3de   :  { %v2977_v32 = vsel %vm2967_vm10, %v2974_v38, %v2976_v55  ;;  %v2980_v18 = vsel %vm2968_vm3, %v2962_v11, %v2979_v41  ;;  %v2913_v40 = vmul.f32 %v2912_v12, %v2910_v57  ;;  %8244 = vcosq.f32 %v10991_v59 }
 0x3df   :  { %v2981_v56 = vsel %vm2967_vm10, %v2978_v46, %v2980_v18  ;;  %v11107_v52 = vmul.u32.u64.low %v2982_v14, %v2977_v32  ;;  %v11108_v4 = vmul.u32.u64.high %v2982_v14, %v2977_v32, %v11107_v52  ;;  %v3104_v0 = vsub.s32 0, %v11103_v33 }
 0x3e0   :  { %v11113_v34 = vmul.u32.u64.low %v2982_v14, %v2981_v56  ;;  %v11114_v61 = vmul.u32.u64.high %v2982_v14, %v2981_v56, %v11113_v34  ;;  %8246 = vsinq.f32 %v10991_v59  ;;  %v2606_v57 = vsel %vm10910_vm15, %v10265_v42, %v11066_v26 }
 0x3e1   :  { %v2973_v3 = vsel %vm2967_vm10, %v2970_v27, %v2972_v15  ;;  %v7677_v60 = vadd.s32 4294967169, %v3146_v31  ;;  %v15122_v11 = vsel %vm11033_vm7, 0, %v11051_v53  ;;  %v2917_v10 = vsel %vm2832_vm1, %v2916_v9, %v10986_v43 }
 0x3e2   :  { %v2819_v12 = vadd.s32 3, %v15122_v11  ;;  %v7674_v23 = vmin.u32 %v3104_v0, %v11103_v33  ;;  %v14900_v59 = vand.u32 2147483647, %v15118_v2  ;;  %v2811_v1 = vsel %vm2728_vm11, %v2810_v17, %v11072_v7 }
 0x3e3   :  { %v2914_v26 = vxor.u32 2147483648, %v2913_v40  ;;  %v2992_v39 = vadd.s32 1, %v11108_v4  ;;  %v3152_v19 = vadd.s32 1, %v7677_v60  ;;  %v2989_v58 = vmul.u32 %v2982_v14, %v2973_v3 }
 0x3e4   :  { %v3106_v38 = vclz %v7674_v23  ;;  %vm2991_vm15 = vc.u32 %v11114_v61, %v11107_v52  ;;  %v3249_v53 = vand.u32 2139095040, %v10648_v28  ;;  %8248 = vcosq.f32 %v2606_v57 }
 0x3e5   :  { %v2919_v43 = vsel %vm11098_vm8, 0, %v2917_v10  ;;  %v2993_v9 = vsel %vm2991_vm15, %v2992_v39, %v11108_v4  ;;  %vm3153_vm12 = vcmp.gt.s32.totalorder %v3152_v19, 0  ;;  %v11144_v17 = vsel %vm11033_vm7, %v10355_v37, %v2811_v1 }
 0x3e6   :  { %v7675_v7 = vadd.s32 4294967294, %v3106_v38  ;;  %v2994_v21 = vadd.s32 %v2993_v9, %v2989_v58  ;;  %v3154_v14 = vsel %vm3153_vm12, %v3152_v19, 0  ;;  %8250 = vsinq.f32 %v2606_v57 }
 0x3e7   :  { %v11146_v31 = vand.u32 3, %v2819_v12  ;;  %v3149_v27 = vand.u32 8388607, %v14900_v59  ;;  %v3156_v55 = vand.u32 31, %v3154_v14  ;;  %v2915_v46 = vsel %vm2832_vm1, %v2914_v26, %v2913_v40 }
 0x3e8   :  { %vm7676_vm11 = vcmp.lt.s32.totalorder %v7675_v7, 0  ;;  %v2995_v4 = vadd.s32 536870912, %v2994_v21  ;;  %v3250_v41 = vshrl.u32 %v3249_v53, 23  ;;  %8252 = vcosq.f32 %v11144_v17  ;;  %v11155_v18 = vpop.eup %8244 }
 0x3e9   :  { %v11153_v45 = vadd.s32 3, %v2919_v43  ;;  %v3109_v15 = vsel %vm7676_vm11, 0, %v7675_v7  ;;  %v3157_v32 = vsub.s32 32, %v3156_v55  ;;  %15123 = vst [vmem:[#allocation31_spill] sm:$0xff] %v11155_v18  ;;  %v3094_v56 = vadd.s32 %v11056_v50, %v11044_v24 }
 0x3ea   :  { %v3110_v0 = vsub.s32 32, %v3109_v15  ;;  %v3114_v34 = vsub.s32 4294967266, %v3109_v15  ;;  %v11159_v57 = vshrl.u32 %v2995_v4, 30  ;;  %v11161_v3 = vpop.eup %8246  ;;  %v11166_v40 = vsel %vm11098_vm8, %v10309_v13, %v2915_v46 }
 0x3eb   :  { %v3124_v60 = vsub.s32 4, %v11093_v54  ;;  %v3160_v11 = vshrl.u32 %v14996_v16, %v3157_v32  ;;  %v3163_v12 = vshrl.u32 %v14997_v62, %v3157_v32  ;;  %v3150_v50 = vor.u32 8388608, %v3149_v27 }
 0x3ec   :  { %v3115_v10 = vadd.s32 127, %v3114_v34  ;;  %v2997_v24 = vshll.u32 %v11159_v57, 30  ;;  %v7681_v23 = vadd.s32 4294967169, %v3250_v41  ;;  %v3155_v1 = vshrl.u32 %v3154_v14, 5 }
 0x3ed   :  { %v3159_v26 = vshll.u32 %v14995_v49, %v3156_v55  ;;  %v3162_v39 = vshll.u32 %v14996_v16, %v3156_v55  ;;  %v3166_v63 = vshrl.u32 %v14998_v20, %v3157_v32  ;;  %v3112_v19 = vshrl.u32 %v3094_v56, %v3110_v0 }
 0x3ee   :  { %v3116_v38 = vshll.u32 %v3115_v10, 23  ;;  %v11175_v58 = vsub.s32 %v2994_v21, %v2997_v24  ;;  %v3165_v53 = vshll.u32 %v14997_v62, %v3156_v55  ;;  %v11178_v43 = vpop.eup %8248  ;;  %v3168_v27 = vshll.u32 %v14998_v20, %v3156_v55 }
 0x3ef   :  { %v3161_v9 = vor.u32 %v3160_v11, %v3159_v26  ;;  %v3164_v7 = vor.u32 %v3163_v12, %v3162_v39  ;;  %v3169_v14 = vshrl.u32 %v14999_v29, %v3157_v32  ;;  %v11183_v41 = vshll.u32 %v3150_v50, 8 }
 0x3f0   :  { %v3000_v46 = vsub.s32 0, %v11175_v58  ;;  %v3167_v4 = vor.u32 %v3166_v63, %v3165_v53  ;;  %v3256_v34 = vadd.s32 1, %v7681_v23  ;;  %v11185_v56 = vpop.eup %8250  ;;  %v3111_v21 = vshll.u32 %v11103_v33, %v3109_v15 }
 0x3f1   :  { %v3170_v0 = vor.u32 %v3169_v14, %v3168_v27  ;;  %v3171_v10 = vshll.u32 %v14999_v29, %v3156_v55  ;;  %v3172_v11 = vshrl.u32 %v15000_v47, %v3157_v32  ;;  %v3117_v12 = vor.u32 4788187, %v3116_v38 }
 0x3f2   :  { %v7670_v24 = vmin.u32 %v3000_v46, %v11175_v58  ;;  %v3158_v26 = vshrl.u32 %v14995_v49, %v3157_v32  ;;  %vm3174_vm7 = vcmp.lt.s32.totalorder %v3155_v1, 1  ;;  %v11192_v39 = vpop.eup %8252  ;;  %v3113_v50 = vor.u32 %v3112_v19, %v3111_v21 }
 0x3f3   :  { %v3173_v63 = vor.u32 %v3172_v11, %v3171_v10  ;;  %vm3177_vm2 = vcmp.lt.s32.totalorder %v3155_v1, 4  ;;  %v3182_v23 = vsel %vm3174_vm7, %v3161_v9, %v3164_v7  ;;  %vm3040_vm4 = vcmp.lt.s32.totalorder %v10369_v8, 0 }
 0x3f4   :  { %v3002_v33 = vclz %v7670_v24  ;;  %vm3176_vm14 = vcmp.lt.s32.totalorder %v3155_v1, 3  ;;  %v3179_v55 = vsel %vm3177_vm2, %v3167_v4, 2102212464  ;;  %v3183_v15 = vsel %vm3177_vm2, %v3170_v0, 920167782 }
 0x3f5   :  { %vm3175_vm0 = vcmp.lt.s32.totalorder %v3155_v1, 2  ;;  %v3184_v38 = vsel %vm3176_vm14, %v3167_v4, %v3183_v15  ;;  %v3186_v53 = vsel %vm3174_vm7, %v3164_v7, %v3167_v4  ;;  %v3187_v27 = vsel %vm3177_vm2, %v3173_v63, 1326507024 }
 0x3f6   :  { %v3118_v32 = vand.u32 2147483647, %v3117_v12  ;;  %vm2936_vm13 = vcmp.lt.s32.totalorder %v10426_v36, 0  ;;  %v7671_v14 = vadd.s32 4294967294, %v3002_v33  ;;  %v3178_v19 = vsel %vm3174_vm7, %v3158_v26, %v3161_v9 }
 0x3f7   :  { %v3185_v46 = vsel %vm3175_vm0, %v3182_v23, %v3184_v38  ;;  %v3180_v21 = vsel %vm3176_vm14, %v3164_v7, %v3179_v55  ;;  %v3188_v10 = vsel %vm3176_vm14, %v3170_v0, %v3187_v27  ;;  %v14899_v4 = vand.u32 2147483647, %v10648_v28 }
 0x3f8   :  { %v11201_v11 = vmul.u32.u64.low %v11183_v41, %v3185_v46  ;;  %v11202_v24 = vmul.u32.u64.high %v11183_v41, %v3185_v46, %v11201_v11  ;;  %vm7672_vm1 = vcmp.lt.s32.totalorder %v7671_v14, 0  ;;  %v3189_v15 = vsel %vm3175_vm0, %v3186_v53, %v3188_v10 }
 0x3f9   :  { %vm3257_vm9 = vcmp.gt.s32.totalorder %v3256_v34, 0  ;;  %v3120_v12 = vcvt.s32.f32 %v3113_v50  ;;  %v3005_v63 = vsel %vm7672_vm1, 0, %v7671_v14  ;;  %8254 = vsinq.f32 %v11144_v17 }
 0x3fa   :  { %v11208_v33 = vmul.u32.u64.low %v11183_v41, %v3189_v15  ;;  %v11209_v9 = vmul.u32.u64.high %v11183_v41, %v3189_v15, %v11208_v33  ;;  %v3006_v7 = vsub.s32 32, %v3005_v63  ;;  %v3010_v0 = vsub.s32 4294967266, %v3005_v63 }
 0x3fb   :  { %v3181_v26 = vsel %vm3175_vm0, %v3178_v19, %v3180_v21  ;;  %v3121_v23 = vmul.f32 %v3120_v12, %v3118_v32  ;;  %v3020_v55 = vsub.s32 4, %v11159_v57  ;;  %v3200_v38 = vadd.s32 1, %v11202_v24 }
 0x3fc   :  { %v3258_v53 = vsel %vm3257_vm9, %v3256_v34, 0  ;;  %8256 = vcosq.f32 %v11166_v40  ;;  %v15124_v50 = vand.u32 2147483647, %v10369_v8  ;;  %v15127_v17 = vand.u32 2147483647, %v10426_v36 }
 0x3fd   :  { %v2990_v1 = vadd.s32 %v11107_v52, %v11114_v61  ;;  %v3011_v32 = vadd.s32 127, %v3010_v0  ;;  %v3260_v19 = vand.u32 31, %v3258_v53  ;;  %v11235_v34 = vsel %vm3040_vm4, %v3124_v60, %v11093_v54 }
 0x3fe   :  { %vm11218_vm6 = vcmp.le.f32.partialorder %v15124_v50, 0.7853982  ;;  %vm11224_vm8 = vcmp.le.f32.partialorder %v15127_v17, 0.7853982  ;;  %v3197_v46 = vmul.u32 %v11183_v41, %v3181_v26  ;;  %vm3199_vm10 = vc.u32 %v11209_v9, %v11201_v11 }
 0x3ff   :  { %v3253_v21 = vand.u32 8388607, %v14899_v4  ;;  %v3008_v10 = vshrl.u32 %v2990_v1, %v3006_v7  ;;  %v3012_v15 = vshll.u32 %v3011_v32, 23  ;;  %v3201_v52 = vsel %vm3199_vm10, %v3200_v38, %v11202_v24 }
 0x400   :  { %v3261_v61 = vsub.s32 32, %v3260_v19  ;;  %v3122_v12 = vxor.u32 2147483648, %v3121_v23  ;;  %v3007_v33 = vshll.u32 %v11175_v58, %v3005_v63  ;;  %v3021_v54 = vsel %vm2936_vm13, %v3020_v55, %v11159_v57 }
 0x401   :  { %v3202_v60 = vadd.s32 %v3201_v52, %v3197_v46  ;;  %v3013_v41 = vor.u32 4788187, %v3012_v15  ;;  %v3259_v0 = vshrl.u32 %v3258_v53, 5  ;;  %v3263_v26 = vshll.u32 %v14995_v49, %v3260_v19 }
 0x402   :  { %v3264_v50 = vshrl.u32 %v14996_v16, %v3261_v61  ;;  %v3266_v7 = vshll.u32 %v14996_v16, %v3260_v19  ;;  %v3267_v24 = vshrl.u32 %v14997_v62, %v3261_v61  ;;  %v3270_v38 = vshrl.u32 %v14998_v20, %v3261_v61 }
 0x403   :  { %v3203_v17 = vadd.s32 536870912, %v3202_v60  ;;  %v3009_v1 = vor.u32 %v3008_v10, %v3007_v33  ;;  %v3269_v58 = vshll.u32 %v14997_v62, %v3260_v19  ;;  %v3272_v63 = vshll.u32 %v14998_v20, %v3260_v19  ;;  %v11258_v15 = vpop.eup %8254 }
 0x404   :  { %v3273_v57 = vshrl.u32 %v14999_v29, %v3261_v61  ;;  %v3265_v53 = vor.u32 %v3264_v50, %v3263_v26  ;;  %v3268_v32 = vor.u32 %v3267_v24, %v3266_v7  ;;  %v3276_v46 = vshrl.u32 %v15000_v47, %v3261_v61 }
 0x405   :  { %v11255_v55 = vshrl.u32 %v3203_v17, 30  ;;  %v3014_v52 = vand.u32 2147483647, %v3013_v41  ;;  %v3271_v4 = vor.u32 %v3270_v38, %v3269_v58  ;;  %v3275_v13 = vshll.u32 %v14999_v29, %v3260_v19 }
 0x406   :  { %v3274_v59 = vor.u32 %v3273_v57, %v3272_v63  ;;  %v3127_v10 = vsel %vm11218_vm6, 0, %v11235_v34  ;;  %v3023_v33 = vsel %vm11224_vm8, 0, %v3021_v54  ;;  %v3254_v26 = vor.u32 8388608, %v3253_v21  ;;  %v11267_v50 = vpop.eup %8256 }
 0x407   :  { %v3205_v17 = vshll.u32 %v11255_v55, 30  ;;  %15130 = vst [vmem:[#allocation12_spill] sm:$0xff] %v11267_v50  ;;  %v3016_v7 = vcvt.s32.f32 %v3009_v1  ;;  %v3277_v24 = vor.u32 %v3276_v46, %v3275_v13  ;;  %vm3278_vm3 = vcmp.lt.s32.totalorder %v3259_v0, 1 }
 0x408   :  { %vm3281_vm15 = vcmp.lt.s32.totalorder %v3259_v0, 4  ;;  %vm3280_vm12 = vcmp.lt.s32.totalorder %v3259_v0, 3  ;;  %v3286_v19 = vsel %vm3278_vm3, %v3265_v53, %v3268_v32  ;;  %v3123_v34 = vsel %vm3040_vm4, %v3122_v12, %v3121_v23 }
 0x409   :  { %v11269_v41 = vsub.s32 %v3202_v60, %v3205_v17  ;;  %v3287_v38 = vsel %vm3281_vm15, %v3274_v59, 920167782  ;;  %v3017_v54 = vmul.f32 %v3016_v7, %v3014_v52  ;;  %v3283_v58 = vsel %vm3281_vm15, %v3271_v4, 2102212464 }
 0x40a   :  { %v3288_v21 = vsel %vm3280_vm12, %v3271_v4, %v3287_v38  ;;  %v3262_v13 = vshrl.u32 %v14995_v49, %v3261_v61  ;;  %vm3279_vm11 = vcmp.lt.s32.totalorder %v3259_v0, 2  ;;  %v3457_v60 = vand.u32 2139095040, %v10709_v48 }
 0x40b   :  { %v3208_v1 = vsub.s32 0, %v11269_v41  ;;  %vm3144_vm7 = vcmp.lt.s32.totalorder %v15118_v2, 0  ;;  %v3289_v63 = vsel %vm3279_vm11, %v3286_v19, %v3288_v21  ;;  %v3290_v57 = vsel %vm3278_vm3, %v3268_v32, %v3271_v4 }
 0x40c   :  { %v3291_v23 = vsel %vm3281_vm15, %v3277_v24, 1326507024  ;;  %v3294_v12 = vshll.u32 %v3254_v26, 8  ;;  %v3282_v52 = vsel %vm3278_vm3, %v3262_v13, %v3265_v53  ;;  %v3284_v17 = vsel %vm3280_vm12, %v3268_v32, %v3283_v58 }
 0x40d   :  { %v7678_v46 = vmin.u32 %v3208_v1, %v11269_v41  ;;  %v3292_v61 = vsel %vm3280_vm12, %v3274_v59, %v3291_v23  ;;  %v3018_v7 = vxor.u32 2147483648, %v3017_v54  ;;  %v15131_v4 = vand.u32 2147483647, %v15118_v2 }
 0x40e   :  { %v3293_v38 = vsel %vm3279_vm11, %v3290_v57, %v3292_v61  ;;  %v11289_v50 = vmul.u32.u64.low %v3294_v12, %v3289_v63  ;;  %v11290_v18 = vmul.u32.u64.high %v3294_v12, %v3289_v63, %v11289_v50  ;;  %v3458_v32 = vshrl.u32 %v3457_v60, 23 }
 0x40f   :  { %vm11295_vm2 = vcmp.le.f32.partialorder %v15131_v4, 0.7853982  ;;  %v3210_v26 = vclz %v7678_v46  ;;  %v11299_v19 = vmul.u32.u64.low %v3294_v12, %v3293_v38  ;;  %v11300_v53 = vmul.u32.u64.high %v3294_v12, %v3293_v38, %v11299_v19 }
 0x410   :  { %8258 = vsinq.f32 %v11166_v40  ;;  %v11304_v59 = vand.u32 3, %v11153_v45  ;;  %v3027_v58 = vadd.s32 3, %v3023_v33  ;;  %v3285_v21 = vsel %vm3279_vm11, %v3282_v52, %v3284_v17 }
 0x411   :  { %v3126_v1 = vsel %vm11218_vm6, %v10369_v8, %v3123_v34  ;;  %v7679_v13 = vadd.s32 4294967294, %v3210_v26  ;;  %v3228_v63 = vsub.s32 4, %v11255_v55  ;;  %v7689_v57 = vadd.s32 4294967169, %v3458_v32 }
 0x412   :  { %15134 = vst [vmem:[#allocation23_spill] sm:$0xff] %v11304_v59  ;;  %v11311_v23 = vadd.s32 3, %v3127_v10  ;;  %v3019_v60 = vsel %vm2936_vm13, %v3018_v7, %v3017_v54  ;;  %v3304_v40 = vadd.s32 1, %v11290_v18  ;;  %v14906_v45 = vand.u32 2147483647, %v10709_v48 }
 0x413   :  { %vm7680_vm4 = vcmp.lt.s32.totalorder %v7679_v13, 0  ;;  %v3301_v0 = vmul.u32 %v3294_v12, %v3285_v21  ;;  %vm3303_vm14 = vc.u32 %v11300_v53, %v11289_v50  ;;  %v3464_v27 = vadd.s32 1, %v7689_v57 }
 0x414   :  { %15135 = vst [vmem:[#allocation29_spill] sm:$0xff] %v11311_v23  ;;  %8260 = vcosq.f32 %v3126_v1  ;;  %v11319_v33 = vand.u32 3, %v3027_v58  ;;  %v3213_v34 = vsel %vm7680_vm4, 0, %v7679_v13  ;;  %v3305_v10 = vsel %vm3303_vm14, %v3304_v40, %v11290_v18 }
 0x415   :  { %v3218_v46 = vsub.s32 4294967266, %v3213_v34  ;;  %v11325_v54 = vsel %vm3144_vm7, %v3228_v63, %v11255_v55  ;;  %v3306_v52 = vadd.s32 %v3305_v10, %v3301_v0  ;;  %v3353_v17 = vand.u32 2139095040, %v10814_v25 }
 0x416   :  { %15136 = vst [vmem:[#allocation22_spill] sm:$0xff] %v11319_v33  ;;  %v11331_v12 = vsel %vm11224_vm8, %v10426_v36, %v3019_v60  ;;  %v3214_v61 = vsub.s32 32, %v3213_v34  ;;  %v3461_v7 = vand.u32 8388607, %v14906_v45  ;;  %vm3465_vm0 = vcmp.gt.s32.totalorder %v3464_v27, 0 }
 0x417   :  { %v3219_v18 = vadd.s32 127, %v3218_v46  ;;  %v3307_v38 = vadd.s32 536870912, %v3306_v52  ;;  %v3466_v4 = vsel %vm3465_vm0, %v3464_v27, 0  ;;  %v14905_v26 = vand.u32 2147483647, %v10814_v25 }
 0x418   :  { %8262 = vsinq.f32 %v3126_v1  ;;  %v3198_v55 = vadd.s32 %v11201_v11, %v11209_v9  ;;  %v3468_v19 = vand.u32 31, %v3466_v4  ;;  %v3354_v21 = vshrl.u32 %v3353_v17, 23 }
 0x419   :  { %8264 = vcosq.f32 %v11331_v12  ;;  %v3220_v32 = vshll.u32 %v3219_v18, 23  ;;  %v11342_v58 = vshrl.u32 %v3307_v38, 30  ;;  %v3462_v57 = vor.u32 8388608, %v3461_v7 }
 0x41a   :  { %v11344_v13 = vpop.eup %8258  ;;  %v3216_v63 = vshrl.u32 %v3198_v55, %v3214_v61  ;;  %v3469_v60 = vsub.s32 32, %v3468_v19  ;;  %v3215_v11 = vshll.u32 %v11269_v41, %v3213_v34  ;;  %v3471_v40 = vshll.u32 %v14995_v49, %v3468_v19 }
 0x41b   :  { %15137 = vst [vmem:[#allocation16_spill] sm:$0xff] %v11344_v13  ;;  %v3309_v9 = vshll.u32 %v11342_v58, 30  ;;  %v11352_v0 = vand.u32 8388607, %v14905_v26  ;;  %v3221_v27 = vor.u32 4788187, %v3220_v32  ;;  %v3474_v7 = vshll.u32 %v14996_v16, %v3468_v19 }
 0x41c   :  { %v3472_v10 = vshrl.u32 %v14996_v16, %v3469_v60  ;;  %v3475_v46 = vshrl.u32 %v14997_v62, %v3469_v60  ;;  %v3478_v17 = vshrl.u32 %v14998_v20, %v3469_v60  ;;  %v3477_v41 = vshll.u32 %v14997_v62, %v3468_v19 }
 0x41d   :  { %v11357_v61 = vsub.s32 %v3306_v52, %v3309_v9  ;;  %v7685_v34 = vadd.s32 4294967169, %v3354_v21  ;;  %v3217_v38 = vor.u32 %v3216_v63, %v3215_v11  ;;  %v3467_v55 = vshrl.u32 %v3466_v4, 5 }
 0x41e   :  { %v11361_v18 = vpop.eup %8260  ;;  %v3473_v26 = vor.u32 %v3472_v10, %v3471_v40  ;;  %v3480_v32 = vshll.u32 %v14998_v20, %v3468_v19  ;;  %v3476_v1 = vor.u32 %v3475_v46, %v3474_v7  ;;  %v3479_v45 = vor.u32 %v3478_v17, %v3477_v41 }
 0x41f   :  { %15138 = vst [vmem:[#allocation13_spill] sm:$0xff] %v11361_v18  ;;  %v3312_v14 = vsub.s32 0, %v11357_v61  ;;  %v3481_v8 = vshrl.u32 %v14999_v29, %v3469_v60  ;;  %v3222_v52 = vand.u32 2147483647, %v3221_v27  ;;  %v3302_v9 = vadd.s32 %v11289_v50, %v11300_v53 }
 0x420   :  { %v3483_v59 = vshll.u32 %v14999_v29, %v3468_v19  ;;  %v3484_v21 = vshrl.u32 %v15000_v47, %v3469_v60  ;;  %v11371_v11 = vshll.u32 %v3462_v57, 8  ;;  %v3224_v46 = vcvt.s32.f32 %v3217_v38 }
 0x421   :  { %v7682_v63 = vmin.u32 %v3312_v14, %v11357_v61  ;;  %v3482_v4 = vor.u32 %v3481_v8, %v3480_v32  ;;  %vm3486_vm13 = vcmp.lt.s32.totalorder %v3467_v55, 1  ;;  %vm3489_vm1 = vcmp.lt.s32.totalorder %v3467_v55, 4 }
 0x422   :  { %v11374_v10 = vpop.eup %8262  ;;  %v3485_v17 = vor.u32 %v3484_v21, %v3483_v59  ;;  %v3491_v53 = vsel %vm3489_vm1, %v3479_v45, 2102212464  ;;  %v3494_v19 = vsel %vm3486_vm13, %v3473_v26, %v3476_v1  ;;  %v3360_v7 = vadd.s32 1, %v7685_v34 }
 0x423   :  { %15139 = vst [vmem:[#allocation37_spill] sm:$0xff] %v11374_v10  ;;  %v11376_v27 = vpop.eup %8264  ;;  %v3314_v50 = vclz %v7682_v63  ;;  %v11379_v41 = vmul.f32 %v3224_v46, %v3222_v52  ;;  %v3470_v8 = vshrl.u32 %v14995_v49, %v3469_v60  ;;  %vm3488_vm9 = vcmp.lt.s32.totalorder %v3467_v55, 3 }
 0x424   :  { %15140 = vst [vmem:[#allocation38_spill] sm:$0xff] %v11376_v27  ;;  %v3495_v14 = vsel %vm3489_vm1, %v3482_v4, 920167782  ;;  %vm3487_vm6 = vcmp.lt.s32.totalorder %v3467_v55, 2  ;;  %v3498_v59 = vsel %vm3486_vm13, %v3476_v1, %v3479_v45  ;;  %v3492_v21 = vsel %vm3488_vm9, %v3476_v1, %v3491_v53 }
 0x425   :  { %v7683_v57 = vadd.s32 4294967294, %v3314_v50  ;;  %v3496_v38 = vsel %vm3488_vm9, %v3479_v45, %v3495_v14  ;;  %v3490_v32 = vsel %vm3486_vm13, %v3470_v8, %v3473_v26  ;;  %v3499_v63 = vsel %vm3489_vm1, %v3485_v17, 1326507024 }
 0x426   :  { %v3497_v40 = vsel %vm3487_vm6, %v3494_v19, %v3496_v38  ;;  %v3500_v18 = vsel %vm3488_vm9, %v3482_v4, %v3499_v63  ;;  %v3332_v46 = vsub.s32 4, %v11342_v58  ;;  %vm3361_vm10 = vcmp.gt.s32.totalorder %v3360_v7, 0 }
 0x427   :  { %vm7684_vm8 = vcmp.lt.s32.totalorder %v7683_v57, 0  ;;  %v11386_v34 = vmul.u32.u64.low %v11371_v11, %v3497_v40  ;;  %v11387_v52 = vmul.u32.u64.high %v11371_v11, %v3497_v40, %v11386_v34  ;;  %v3501_v50 = vsel %vm3487_vm6, %v3498_v59, %v3500_v18 }
 0x428   :  { %v3317_v60 = vsel %vm7684_vm8, 0, %v7683_v57  ;;  %v3493_v1 = vsel %vm3487_vm6, %v3490_v32, %v3492_v21  ;;  %v3362_v53 = vsel %vm3361_vm10, %v3360_v7, 0  ;;  %v3226_v17 = vxor.u32 2147483648, %v11379_v41 }
 0x429   :  { %v3318_v45 = vsub.s32 32, %v3317_v60  ;;  %v3322_v26 = vsub.s32 4294967266, %v3317_v60  ;;  %vm3248_vm3 = vcmp.lt.s32.totalorder %v10648_v28, 0  ;;  %v3364_v19 = vand.u32 31, %v3362_v53 }
 0x42a   :  { %v11396_v4 = vmul.u32.u64.low %v11371_v11, %v3501_v50  ;;  %v11397_v40 = vmul.u32.u64.high %v11371_v11, %v3501_v50, %v11396_v4  ;;  %v3319_v8 = vshll.u32 %v11357_v61, %v3317_v60  ;;  %v3512_v18 = vadd.s32 1, %v11387_v52 }
 0x42b   :  { %v3320_v14 = vshrl.u32 %v3302_v9, %v3318_v45  ;;  %v3323_v57 = vadd.s32 127, %v3322_v26  ;;  %v3509_v38 = vmul.u32 %v11371_v11, %v3493_v1  ;;  %v11402_v55 = vshrl.u32 %v3362_v53, 5 }
 0x42c   :  { %v3365_v7 = vsub.s32 32, %v3364_v19  ;;  %v3561_v59 = vand.u32 2139095040, %v10875_v51  ;;  %v3367_v63 = vshll.u32 %v14995_v49, %v3364_v19  ;;  %v3370_v50 = vshll.u32 %v14996_v16, %v3364_v19 }
 0x42d   :  { %v3321_v32 = vor.u32 %v3320_v14, %v3319_v8  ;;  %v3324_v21 = vshll.u32 %v3323_v57, 23  ;;  %v15141_v4 = vand.u32 2147483647, %v10648_v28  ;;  %vm3511_vm12 = vc.u32 %v11397_v40, %v11386_v34 }
 0x42e   :  { %v3368_v9 = vshrl.u32 %v14996_v16, %v3365_v7  ;;  %v3373_v11 = vshll.u32 %v14997_v62, %v3364_v19  ;;  %v3376_v60 = vshll.u32 %v14998_v20, %v3364_v19  ;;  %v3513_v26 = vsel %vm3511_vm12, %v3512_v18, %v11387_v52 }
 0x42f   :  { %vm11409_vm15 = vcmp.le.f32.partialorder %v15141_v4, 0.7853982  ;;  %v3325_v45 = vor.u32 4788187, %v3324_v21  ;;  %v3371_v1 = vshrl.u32 %v14997_v62, %v3365_v7  ;;  %v3379_v53 = vshll.u32 %v14999_v29, %v3364_v19 }
 0x430   :  { %v3328_v8 = vcvt.s32.f32 %v3321_v32  ;;  %v3514_v14 = vadd.s32 %v3513_v26, %v3509_v38  ;;  %v3374_v57 = vshrl.u32 %v14998_v20, %v3365_v7  ;;  %v3377_v4 = vshrl.u32 %v14999_v29, %v3365_v7 }
 0x431   :  { %v3326_v10 = vand.u32 2147483647, %v3325_v45  ;;  %v3369_v13 = vor.u32 %v3368_v9, %v3367_v63  ;;  %v3372_v23 = vor.u32 %v3371_v1, %v3370_v50  ;;  %v3380_v36 = vshrl.u32 %v15000_v47, %v3365_v7 }
 0x432   :  { %v3515_v27 = vadd.s32 536870912, %v3514_v14  ;;  %v3375_v33 = vor.u32 %v3374_v57, %v3373_v11  ;;  %v3378_v21 = vor.u32 %v3377_v4, %v3376_v60  ;;  %v15144_v52 = vor.u32 8388608, %v11352_v0 }
 0x433   :  { %v3227_v19 = vsel %vm3144_vm7, %v3226_v17, %v11379_v41  ;;  %v3329_v38 = vmul.f32 %v3328_v8, %v3326_v10  ;;  %v3333_v32 = vsel %vm3248_vm3, %v3332_v46, %v11342_v58  ;;  %v3381_v63 = vor.u32 %v3380_v36, %v3379_v53 }
 0x434   :  { %v11426_v18 = vshll.u32 %v15144_v52, 8  ;;  %v3516_v50 = vshrl.u32 %v3515_v27, 30  ;;  %vm3382_vm11 = vcmp.lt.s32.totalorder %v11402_v55, 1  ;;  %vm3385_vm4 = vcmp.lt.s32.totalorder %v11402_v55, 4 }
 0x435   :  { %v3562_v9 = vshrl.u32 %v3561_v59, 23  ;;  %vm3456_vm14 = vcmp.lt.s32.totalorder %v10709_v48, 0  ;;  %vm3384_vm0 = vcmp.lt.s32.totalorder %v11402_v55, 3  ;;  %v3387_v0 = vsel %vm3385_vm4, %v3375_v33, 2102212464 }
 0x436   :  { %v3390_v41 = vsel %vm3382_vm11, %v3369_v13, %v3372_v23  ;;  %v3391_v10 = vsel %vm3385_vm4, %v3378_v21, 920167782  ;;  %v3330_v17 = vxor.u32 2147483648, %v3329_v38  ;;  %v3517_v11 = vshll.u32 %v3516_v50, 30 }
 0x437   :  { %v3392_v36 = vsel %vm3384_vm0, %v3375_v33, %v3391_v10  ;;  %v3394_v58 = vsel %vm3382_vm11, %v3372_v23, %v3375_v33  ;;  %v3335_v27 = vsel %vm11409_vm15, 0, %v3333_v32  ;;  %v3366_v46 = vshrl.u32 %v14995_v49, %v3365_v7 }
 0x438   :  { %vm3383_vm7 = vcmp.lt.s32.totalorder %v11402_v55, 2  ;;  %v3395_v59 = vsel %vm3385_vm4, %v3381_v63, 1326507024  ;;  %v3230_v60 = vsel %vm11295_vm2, %v15118_v2, %v3227_v19  ;;  %v15145_v45 = vand.u32 2147483647, %v10709_v48 }
 0x439   :  { %v11457_v1 = vsub.s32 %v3514_v14, %v3517_v11  ;;  %v3393_v33 = vsel %vm3383_vm7, %v3390_v41, %v3392_v36  ;;  %v3396_v7 = vsel %vm3384_vm0, %v3378_v21, %v3395_v59  ;;  %v3386_v53 = vsel %vm3382_vm11, %v3366_v46, %v3369_v13 }
 0x43a   :  { %vm11453_vm13 = vcmp.le.f32.partialorder %v15145_v45, 0.7853982  ;;  %v3388_v8 = vsel %vm3384_vm0, %v3372_v23, %v3387_v0  ;;  %v3397_v57 = vsel %vm3383_vm7, %v3394_v58, %v3396_v7  ;;  %v7693_v4 = vadd.s32 4294967169, %v3562_v9 }
 0x43b   :  { %v3331_v14 = vsel %vm3248_vm3, %v3330_v17, %v3329_v38  ;;  %v3520_v52 = vsub.s32 0, %v11457_v1  ;;  %v3540_v19 = vsub.s32 4, %v3516_v50  ;;  %v15148_v32 = vand.u32 2147483647, %v10875_v51 }
 0x43c   :  { %v11475_v21 = vmul.u32.u64.low %v11426_v18, %v3397_v57  ;;  %v11476_v41 = vmul.u32.u64.high %v11426_v18, %v3397_v57, %v11475_v21  ;;  %v11479_v13 = vmul.u32.u64.low %v11426_v18, %v3393_v33  ;;  %v11480_v23 = vmul.u32.u64.high %v11426_v18, %v3393_v33, %v11479_v13 }
 0x43d   :  { %v3565_v63 = vand.u32 8388607, %v15148_v32  ;;  %8266 = vsinq.f32 %v11331_v12  ;;  %v15149_v38 = vsel %vm11295_vm2, 0, %v11325_v54  ;;  %v7690_v0 = vmin.u32 %v3520_v52, %v11457_v1 }
 0x43e   :  { %v11488_v9 = vadd.s32 3, %v15149_v38  ;;  %v3568_v10 = vadd.s32 1, %v7693_v4  ;;  %8268 = vcosq.f32 %v3230_v60  ;;  %v3334_v17 = vsel %vm11409_vm15, %v10648_v28, %v3331_v14 }
 0x43f   :  { %v11494_v11 = vadd.s32 3, %v3335_v27  ;;  %v3389_v36 = vsel %vm3383_vm7, %v3386_v53, %v3388_v8  ;;  %8270 = vsinq.f32 %v3230_v60  ;;  %v3522_v12 = vclz %v7690_v0 }
 0x440   :  { %v11500_v24 = vsel %vm3456_vm14, %v3540_v19, %v3516_v50  ;;  %vm3569_vm2 = vcmp.gt.s32.totalorder %v3568_v10, 0  ;;  %vm3407_vm1 = vc.u32 %v11476_v41, %v11479_v13  ;;  %v3408_v54 = vadd.s32 1, %v11480_v23 }
 0x441   :  { %v3566_v58 = vor.u32 8388608, %v3565_v63  ;;  %v3570_v61 = vsel %vm3569_vm2, %v3568_v10, 0  ;;  %8272 = vcosq.f32 %v3334_v17  ;;  %v7691_v27 = vadd.s32 4294967294, %v3522_v12 }
 0x442   :  { %v3405_v46 = vmul.u32 %v11426_v18, %v3389_v36  ;;  %v3572_v55 = vand.u32 31, %v3570_v61  ;;  %8274 = vsinq.f32 %v3334_v17  ;;  %v3510_v59 = vadd.s32 %v11386_v34, %v11397_v40 }
 0x443   :  { %v3409_v60 = vsel %vm3407_vm1, %v3408_v54, %v11480_v23  ;;  %vm7692_vm9 = vcmp.lt.s32.totalorder %v7691_v27, 0  ;;  %v11515_v57 = vshll.u32 %v3566_v58, 8  ;;  %vm3352_vm6 = vcmp.lt.s32.totalorder %v10814_v25, 0 }
 0x444   :  { %v3410_v45 = vadd.s32 %v3409_v60, %v3405_v46  ;;  %v3573_v33 = vsub.s32 32, %v3572_v55  ;;  %v3525_v53 = vsel %vm7692_vm9, 0, %v7691_v27  ;;  %v3575_v8 = vshll.u32 %v14995_v49, %v3572_v55 }
 0x445   :  { %v3578_v18 = vshll.u32 %v14996_v16, %v3572_v55  ;;  %v3526_v4 = vsub.s32 32, %v3525_v53  ;;  %v3530_v34 = vsub.s32 4294967266, %v3525_v53  ;;  %v3581_v14 = vshll.u32 %v14997_v62, %v3572_v55 }
 0x446   :  { %v3411_v40 = vadd.s32 536870912, %v3410_v45  ;;  %v3527_v52 = vshll.u32 %v11457_v1, %v3525_v53  ;;  %v3576_v19 = vshrl.u32 %v14996_v16, %v3573_v33  ;;  %v3579_v32 = vshrl.u32 %v14997_v62, %v3573_v33 }
 0x447   :  { %v3582_v63 = vshrl.u32 %v14998_v20, %v3573_v33  ;;  %v11523_v21 = vpop.eup %8266  ;;  %v3528_v23 = vshrl.u32 %v3510_v59, %v3526_v4  ;;  %v3531_v38 = vadd.s32 127, %v3530_v34  ;;  %v3585_v10 = vshrl.u32 %v14999_v29, %v3573_v33 }
 0x448   :  { %v3412_v0 = vshrl.u32 %v3411_v40, 30  ;;  %v11526_v17 = vpop.eup %8268  ;;  %v15150_v36 = vand.u32 2147483647, %v10814_v25  ;;  %v3571_v1 = vshrl.u32 %v3570_v61, 5  ;;  %v3577_v54 = vor.u32 %v3576_v19, %v3575_v8 }
 0x449   :  { %v3580_v58 = vor.u32 %v3579_v32, %v3578_v18  ;;  %v3584_v27 = vshll.u32 %v14998_v20, %v3572_v55  ;;  %v11535_v46 = vpop.eup %8270  ;;  %v3529_v59 = vor.u32 %v3528_v23, %v3527_v52  ;;  %v3532_v60 = vshll.u32 %v3531_v38, 23 }
 0x44a   :  { %vm11530_vm8 = vcmp.le.f32.partialorder %v15150_v36, 0.7853982  ;;  %v3413_v53 = vshll.u32 %v3412_v0, 30  ;;  %v3583_v4 = vor.u32 %v3582_v63, %v3581_v14  ;;  %v3436_v34 = vsub.s32 4, %v3412_v0 }
 0x44b   :  { %v3586_v40 = vor.u32 %v3585_v10, %v3584_v27  ;;  %v3587_v50 = vshll.u32 %v14999_v29, %v3572_v55  ;;  %v3588_v36 = vshrl.u32 %v15000_v47, %v3573_v33  ;;  %v11539_v7 = vpop.eup %8272  ;;  %v3533_v62 = vor.u32 4788187, %v3532_v60 }
 0x44c   :  { %v11541_v61 = vsub.s32 %v3410_v45, %v3413_v53  ;;  %vm2198_vm10 = vcmp.eq.s32.totalorder %v10640_v6, 0  ;;  %vm2201_vm3 = vcmp.eq.s32.totalorder %v10640_v6, 2  ;;  %v2202_v8 = vxor.u32 2147483648, %v10829_v35  ;;  %v11546_v18 = vpop.eup %8274 }
 0x44d   :  { %v3574_v14 = vshrl.u32 %v14995_v49, %v3573_v33  ;;  %v3589_v52 = vor.u32 %v3588_v36, %v3587_v50  ;;  %vm3590_vm15 = vcmp.lt.s32.totalorder %v3571_v1, 1  ;;  %vm3591_vm12 = vcmp.lt.s32.totalorder %v3571_v1, 2 }
 0x44e   :  { %v3534_v55 = vand.u32 2147483647, %v3533_v62  ;;  %v3536_v19 = vcvt.s32.f32 %v3529_v59  ;;  %v3416_v32 = vsub.s32 0, %v11541_v61  ;;  %vm3593_vm11 = vcmp.lt.s32.totalorder %v3571_v1, 4 }
 0x44f   :  { %v3437_v45 = vsel %vm3352_vm6, %v3436_v34, %v3412_v0  ;;  %v3595_v63 = vsel %vm3593_vm11, %v3583_v4, 2102212464  ;;  %v3598_v23 = vsel %vm3590_vm15, %v3577_v54, %v3580_v58  ;;  %v3599_v38 = vsel %vm3593_vm11, %v3586_v40, 920167782 }
 0x450   :  { %vm2197_vm4 = vcmp.lt.s32.totalorder %v10640_v6, 2  ;;  %v3537_v10 = vmul.f32 %v3536_v19, %v3534_v55  ;;  %v7686_v27 = vmin.u32 %v3416_v32, %v11541_v61  ;;  %vm3592_vm0 = vcmp.lt.s32.totalorder %v3571_v1, 3 }
 0x451   :  { %v3602_v50 = vsel %vm3590_vm15, %v3580_v58, %v3583_v4  ;;  %v3594_v33 = vsel %vm3590_vm15, %v3574_v14, %v3577_v54  ;;  %v3596_v60 = vsel %vm3592_vm0, %v3580_v58, %v3595_v63  ;;  %v3600_v62 = vsel %vm3592_vm0, %v3583_v4, %v3599_v38 }
 0x452   :  { %v3603_v59 = vsel %vm3593_vm11, %v3589_v52, 1326507024  ;;  %v3418_v53 = vclz %v7686_v27  ;;  %v3439_v36 = vsel %vm11530_vm8, 0, %v3437_v45  ;;  %v3601_v0 = vsel %vm3591_vm12, %v3598_v23, %v3600_v62 }
 0x453   :  { %v3604_v34 = vsel %vm3592_vm0, %v3586_v40, %v3603_v59  ;;  %vm2194_vm7 = vweird.f32 %v10255_v22  ;;  %v3538_v47 = vxor.u32 2147483648, %v3537_v10  ;;  %v3597_v58 = vsel %vm3591_vm12, %v3594_v33, %v3596_v60 }
 0x454   :  { %v3605_v55 = vsel %vm3591_vm12, %v3602_v50, %v3604_v34  ;;  %v11560_v19 = vmul.u32.u64.low %v11515_v57, %v3601_v0  ;;  %v11561_v32 = vmul.u32.u64.high %v11515_v57, %v3601_v0, %v11560_v19  ;;  %v7687_v54 = vadd.s32 4294967294, %v3418_v53 }
 0x455   :  { %v11566_v4 = vmul.u32.u64.low %v11515_v57, %v3605_v55  ;;  %v11567_v14 = vmul.u32.u64.high %v11515_v57, %v3605_v55, %v11566_v4  ;;  %v3406_v40 = vadd.s32 %v11479_v13, %v11476_v41  ;;  %v15153_v52 = vxor.u32 2147483648, %v10834_v30 }
 0x456   :  { %v2203_v63 = vsel %vm2201_vm3, %v2202_v8, %v10834_v30  ;;  %v2615_v1 = vxor.u32 2147483648, %v11185_v56  ;;  %vm7688_vm2 = vcmp.lt.s32.totalorder %v7687_v54, 0  ;;  %v3443_v23 = vadd.s32 3, %v3439_v36 }
 0x457   :  { %v2200_v45 = vsel %vm2198_vm10, %v10829_v35, %v15153_v52  ;;  %vm2610_vm1 = vweird.f32 %v10265_v42  ;;  %vm2613_vm9 = vcmp.lt.s32.totalorder %v10993_v5, 2  ;;  %v3539_v41 = vsel %vm3456_vm14, %v3538_v47, %v3537_v10 }
 0x458   :  { %v3421_v13 = vsel %vm7688_vm2, 0, %v7687_v54  ;;  %v3613_v38 = vmul.u32 %v11515_v57, %v3597_v58  ;;  %v3616_v35 = vadd.s32 1, %v11561_v32  ;;  %v2204_v30 = vsel %vm2197_vm4, %v2200_v45, %v2203_v63 }
 0x459   :  { %v3422_v27 = vsub.s32 32, %v3421_v13  ;;  %v3426_v50 = vsub.s32 4294967266, %v3421_v13  ;;  %vm2614_vm10 = vcmp.eq.s32.totalorder %v10993_v5, 0  ;;  %vm3615_vm3 = vc.u32 %v11567_v14, %v11560_v19 }
 0x45a   :  { %v2616_v8 = vsel %vm2614_vm10, %v11178_v43, %v2615_v1  ;;  %vm2617_vm15 = vcmp.eq.s32.totalorder %v10993_v5, 2  ;;  %v2618_v47 = vxor.u32 2147483648, %v11178_v43  ;;  %v3423_v57 = vshll.u32 %v11541_v61, %v3421_v13  ;;  %v15154_v43 = vld [vmem:[#allocation19_spill] sm:$0xff] }
 0x45b   :  { %v3424_v10 = vshrl.u32 %v3406_v40, %v3422_v27  ;;  %v3427_v33 = vadd.s32 127, %v3426_v50  ;;  %v3617_v60 = vsel %vm3615_vm3, %v3616_v35, %v11561_v32  ;;  %v2205_v6 = vsel %vm2194_vm7, nan, %v2204_v30  ;;  %v15155_v32 = vld [vmem:[#allocation33_spill] sm:$0xff]  ;;  %v15158_v27 = vld [vmem:[#allocation35_spill] sm:$0xff] }
 0x45c   :  { %v3618_v62 = vadd.s32 %v3617_v60, %v3613_v38  ;;  %v2619_v59 = vsel %vm2617_vm15, %v2618_v47, %v11185_v56  ;;  %v2407_v53 = vxor.u32 2147483648, %v11012_v44  ;;  %v2410_v55 = vxor.u32 2147483648, %v15154_v43  ;;  %v15157_v38 = vld [vmem:[#allocation24_spill] sm:$0xff]  ;;  %v15159_v30 = vld [vmem:[#allocation27_spill] sm:$0xff] }
 0x45d   :  { %v3425_v36 = vor.u32 %v3424_v10, %v3423_v57  ;;  %v3428_v0 = vshll.u32 %v3427_v33, 23  ;;  %v2620_v34 = vsel %vm2613_vm9, %v2616_v8, %v2619_v59  ;;  %vm2406_vm14 = vcmp.eq.s32.totalorder %v15155_v32, 0  ;;  %v15160_v47 = vld [vmem:[#allocation28_spill] sm:$0xff] }
 0x45e   :  { %v3619_v61 = vadd.s32 536870912, %v3618_v62  ;;  %v2621_v54 = vsel %vm2610_vm1, nan, %v2620_v34  ;;  %vm2409_vm12 = vcmp.eq.s32.totalorder %v15155_v32, 2  ;;  %v2408_v56 = vsel %vm2406_vm14, %v15154_v43, %v2407_v53  ;;  %v15163_v34 = vld [vmem:[#allocation36_spill] sm:$0xff]  ;;  %v15164_v43 = vld [vmem:[#allocation14_spill] sm:$0xff] }
 0x45f   :  { %v3429_v22 = vor.u32 4788187, %v3428_v0  ;;  %v7857_v58 = vpack.c.bf16 %v2621_v54, %v2205_v6  ;;  %v2411_v4 = vsel %vm2409_vm12, %v2410_v55, %v11012_v44  ;;  %v11612_v5 = vsel %vm11453_vm13, %v10709_v48, %v3539_v41  ;;  %v15161_v6 = vld [vmem:[#allocation26_spill] sm:$0xff] }
 0x460   :  { %v15156_v42 = vsel %vm11453_vm13, 0, %v11500_v24  ;;  %v11620_v52 = vand.u32 3, %v3443_v23  ;;  %v11622_v45 = vshrl.u32 %v3619_v61, 30  ;;  %v3432_v1 = vcvt.s32.f32 %v3425_v36 }
 0x461   :  { %v11618_v40 = vadd.s32 3, %v15156_v42  ;;  %v3430_v63 = vand.u32 2147483647, %v3429_v22  ;;  %7858 = vmatprep.subr.bf16.mxu0 %v7857_v58  ;;  %vm2405_vm11 = vcmp.lt.s32.totalorder %v15155_v32, 2  ;;  %v2823_v44 = vxor.u32 2147483648, %v11258_v15  ;;  %v15165_v32 = vld [vmem:[#allocation17_spill] sm:$0xff] }
 0x462   :  { %v3621_v41 = vshll.u32 %v11622_v45, 30  ;;  %v2412_v13 = vsel %vm2405_vm11, %v2408_v56, %v2411_v4  ;;  %vm2822_vm4 = vcmp.eq.s32.totalorder %v11146_v31, 0  ;;  %v2826_v26 = vxor.u32 2147483648, %v11192_v39  ;;  %v15166_v58 = vld [vmem:[#allocation34_spill] sm:$0xff]  ;;  %v15167_v4 = vld [vmem:[#allocation21_spill] sm:$0xff]  ;;  %v15168_v42 = vld [vmem:[#allocation20_spill] sm:$0xff] }
 0x463   :  { %v3433_v24 = vmul.f32 %v3432_v1, %v3430_v63  ;;  %v2824_v23 = vsel %vm2822_vm4, %v11192_v39, %v2823_v44  ;;  %vm2825_vm13 = vcmp.eq.s32.totalorder %v11146_v31, 2  ;;  %v2095_v35 = vxor.u32 2147483648, %v15157_v38  ;;  %v15169_v44 = vld [vmem:[#allocation18_spill] sm:$0xff] }
 0x464   :  { %vm2090_vm0 = vweird.f32 %v15158_v27  ;;  %v11633_v50 = vsub.s32 %v3618_v62, %v3621_v41  ;;  %vm2402_vm7 = vweird.f32 %v15159_v30  ;;  %vm2821_vm2 = vcmp.lt.s32.totalorder %v11146_v31, 2  ;;  %v15162_v62 = vld [vmem:[#allocation30_spill] sm:$0xff] }
 0x465   :  { %v2827_v8 = vsel %vm2825_vm13, %v2826_v26, %v11258_v15  ;;  %vm2506_vm1 = vweird.f32 %v15160_v47  ;;  %v3434_v57 = vxor.u32 2147483648, %v3433_v24  ;;  %v2413_v10 = vsel %vm2402_vm7, nan, %v2412_v13  ;;  %v15170_v41 = vld [vmem:[#allocation10_spill] sm:$0xff] }
 0x466   :  { %vm2818_vm9 = vweird.f32 %v10355_v37  ;;  %v2828_v39 = vsel %vm2821_vm2, %v2824_v23, %v2827_v8  ;;  %v3624_v33 = vsub.s32 0, %v11633_v50  ;;  %vm2094_vm10 = vcmp.eq.s32.totalorder %v15161_v6, 0 }
 0x467   :  { %v2829_v60 = vsel %vm2818_vm9, nan, %v2828_v39  ;;  %v2098_v59 = vxor.u32 2147483648, %v15162_v62  ;;  %v3435_v53 = vsel %vm3352_vm6, %v3434_v57, %v3433_v24  ;;  %v2096_v15 = vsel %vm2094_vm10, %v15162_v62, %v2095_v35 }
 0x468   :  { %v7865_v31 = vpack.c.bf16 %v2829_v60, %v2413_v10  ;;  %vm2097_vm3 = vcmp.eq.s32.totalorder %v15161_v6, 2  ;;  %8276 = vcosq.f32 %v11612_v5  ;;  %v3438_v37 = vsel %vm11530_vm8, %v10814_v25, %v3435_v53 }
 0x469   :  { %v7694_v36 = vmin.u32 %v3624_v33, %v11633_v50  ;;  %v2099_v0 = vsel %vm2097_vm3, %v2098_v59, %v15157_v38  ;;  %8278 = vcosq.f32 %v3438_v37  ;;  %vm2093_vm15 = vcmp.lt.s32.totalorder %v15161_v6, 2  ;;  %v15174_v6 = vld [vmem:[#allocation25_spill] sm:$0xff]  ;;  %v15175_v59 = vld [vmem:[#allocation31_spill] sm:$0xff] }
 0x46a   :  { %7866 = vmatprep.subr.bf16.mxu1 %v7865_v31  ;;  %vm2510_vm6 = vcmp.eq.s32.totalorder %v15163_v34, 0  ;;  %v2511_v55 = vxor.u32 2147483648, %v15164_v43  ;;  %8280 = vsinq.f32 %v3438_v37  ;;  %v2100_v54 = vsel %vm2093_vm15, %v2096_v15, %v2099_v0 }
 0x46b   :  { %v3626_v61 = vclz %v7694_v36  ;;  %v2514_v22 = vxor.u32 2147483648, %v15165_v32  ;;  %vm2509_vm14 = vcmp.lt.s32.totalorder %v15163_v34, 2  ;;  %vm2513_vm8 = vcmp.eq.s32.totalorder %v15163_v34, 2 }
 0x46c   :  { %v2512_v12 = vsel %vm2510_vm6, %v15165_v32, %v2511_v55  ;;  %v2303_v56 = vxor.u32 2147483648, %v15166_v58  ;;  %vm2298_vm12 = vweird.f32 %v15167_v4  ;;  %vm2714_vm11 = vweird.f32 %v15168_v42  ;;  %v15177_v55 = vld [vmem:[#allocation38_spill] sm:$0xff] }
 0x46d   :  { %v7695_v63 = vadd.s32 4294967294, %v3626_v61  ;;  %v2515_v1 = vsel %vm2513_vm8, %v2514_v22, %v15164_v43  ;;  %vm2302_vm4 = vcmp.eq.s32.totalorder %v15169_v44, 0  ;;  %v2306_v13 = vxor.u32 2147483648, %v15170_v41  ;;  %v15176_v43 = vld [vmem:[#allocation22_spill] sm:$0xff] }
 0x46e   :  { %vm3560_vm13 = vcmp.lt.s32.totalorder %v10875_v51, 0  ;;  %v2101_v26 = vsel %vm2090_vm0, nan, %v2100_v54  ;;  %v2516_v24 = vsel %vm2509_vm14, %v2512_v12, %v2515_v1  ;;  %v2304_v23 = vsel %vm2302_vm4, %v15170_v41, %v2303_v56 }
 0x46f   :  { %vm2305_vm7 = vcmp.eq.s32.totalorder %v15169_v44, 2  ;;  %vm7696_vm2 = vcmp.lt.s32.totalorder %v7695_v63, 0  ;;  %v2517_v38 = vsel %vm2506_vm1, nan, %v2516_v24  ;;  %v2719_v30 = vxor.u32 2147483648, %v11161_v3 }
 0x470   :  { %v2307_v35 = vsel %vm2305_vm7, %v2306_v13, %v15166_v58  ;;  %v3614_v8 = vadd.s32 %v11560_v19, %v11567_v14  ;;  %v3629_v57 = vsel %vm7696_vm2, 0, %v7695_v63  ;;  %v3644_v27 = vsub.s32 4, %v11622_v45 }
 0x471   :  { %v7859_v10 = vpack.c.bf16 %v2517_v38, %v2101_v26  ;;  %v15171_v39 = vand.u32 2147483647, %v10875_v51  ;;  %v3630_v60 = vsub.s32 32, %v3629_v57  ;;  %v3634_v47 = vsub.s32 4294967266, %v3629_v57 }
 0x472   :  { %vm2301_vm1 = vcmp.lt.s32.totalorder %v15169_v44, 2  ;;  %vm2718_vm9 = vcmp.eq.s32.totalorder %v15174_v6, 0  ;;  %vm2721_vm10 = vcmp.eq.s32.totalorder %v15174_v6, 2  ;;  %v2722_v14 = vxor.u32 2147483648, %v15175_v59  ;;  %v11689_v53 = vpop.eup %8276 }
 0x473   :  { %vm11680_vm0 = vcmp.le.f32.partialorder %v15171_v39, 0.7853982  ;;  %7860 = vmatpush1.bf16.msra.mxu0 %v7859_v10  ;;  %v2308_v62 = vsel %vm2301_vm1, %v2304_v23, %v2307_v35  ;;  %v2720_v19 = vsel %vm2718_vm9, %v15175_v59, %v2719_v30  ;;  %v3631_v31 = vshll.u32 %v11633_v50, %v3629_v57  ;;  %v8279_v0 = vpop.eup %8278  ;;  %v15178_v23 = vld [vmem:[#allocation32_spill] sm:$0xff]  ;;  %v15179_v35 = vld [vmem:[#allocation11_spill] sm:$0xff]  ;;  %v15180_v30 = vld [vmem:[#allocation29_spill] sm:$0xff] }
 0x474   :  { %v3632_v15 = vshrl.u32 %v3614_v8, %v3630_v60  ;;  %v3635_v37 = vadd.s32 127, %v3634_v47  ;;  %v3031_v36 = vxor.u32 2147483648, %v11523_v21  ;;  %vm2717_vm3 = vcmp.lt.s32.totalorder %v15174_v6, 2  ;;  %v8281_v54 = vpop.eup %8280 }
 0x475   :  { %v2723_v34 = vsel %vm2721_vm10, %v2722_v14, %v11161_v3  ;;  %vm3030_vm15 = vcmp.eq.s32.totalorder %v15176_v43, 0  ;;  %v3034_v61 = vxor.u32 2147483648, %v15177_v55  ;;  %vm3033_vm6 = vcmp.eq.s32.totalorder %v15176_v43, 2  ;;  %v15182_v14 = vld [vmem:[#allocation23_spill] sm:$0xff] }
 0x476   :  { %v3633_v32 = vor.u32 %v3632_v15, %v3631_v31  ;;  %v3636_v22 = vshll.u32 %v3635_v37, 23  ;;  %v2724_v12 = vsel %vm2717_vm3, %v2720_v19, %v2723_v34  ;;  %v2309_v50 = vsel %vm2298_vm12, nan, %v2308_v62  ;;  %v15181_v62 = vld [vmem:[#allocation16_spill] sm:$0xff] }
 0x477   :  { %v2725_v58 = vsel %vm2714_vm11, nan, %v2724_v12  ;;  %v3032_v56 = vsel %vm3030_vm15, %v15177_v55, %v3031_v36  ;;  %v3035_v3 = vsel %vm3033_vm6, %v3034_v61, %v11523_v21  ;;  %8282 = vsinq.f32 %v11612_v5  ;;  %v15183_v31 = vld [vmem:[#allocation12_spill] sm:$0xff]  ;;  %v15184_v55 = vld [vmem:[#allocation37_spill] sm:$0xff] }
 0x478   :  { %v3637_v63 = vor.u32 4788187, %v3636_v22  ;;  %v3645_v1 = vsel %vm3560_vm13, %v3644_v27, %v11622_v45  ;;  %v7867_v44 = vpack.c.bf16 %v2725_v58, %v2309_v50  ;;  %vm3029_vm14 = vcmp.lt.s32.totalorder %v15176_v43, 2  ;;  %v15185_v22 = vld [vmem:[#allocation13_spill] sm:$0xff] }
 0x479   :  { %vm3446_vm8 = vcmp.eq.s32.totalorder %v11620_v52, 0  ;;  %v3447_v4 = vxor.u32 2147483648, %v8281_v54  ;;  %v3450_v41 = vxor.u32 2147483648, %v8279_v0  ;;  %v3640_v13 = vcvt.s32.f32 %v3633_v32 }
 0x47a   :  { %v3638_v42 = vand.u32 2147483647, %v3637_v63  ;;  %7868 = vmatpush1.bf16.msra.mxu1 %v7867_v44  ;;  %v3036_v26 = vsel %vm3029_vm14, %v3032_v56, %v3035_v3  ;;  %vm3449_vm12 = vcmp.eq.s32.totalorder %v11620_v52, 2  ;;  %v3647_v21 = vsel %vm11680_vm0, 0, %v3645_v1 }
 0x47b   :  { %vm3445_vm11 = vcmp.lt.s32.totalorder %v11620_v52, 2  ;;  %v3448_v5 = vsel %vm3446_vm8, %v8279_v0, %v3447_v4  ;;  %v3451_v45 = vsel %vm3449_vm12, %v3450_v41, %v8281_v54  ;;  %vm3026_vm4 = vweird.f32 %v15178_v23  ;;  %v15186_v41 = vld [vmem:[#allocation15_spill] sm:$0xff] }
 0x47c   :  { %v3641_v24 = vmul.f32 %v3640_v13, %v3638_v42  ;;  %vm3442_vm7 = vweird.f32 %v10814_v25  ;;  %v3452_v38 = vsel %vm3445_vm11, %v3448_v5, %v3451_v45  ;;  %vm2922_vm2 = vweird.f32 %v15179_v35  ;;  %v3679_v13 = vld [vmem:[#allocation3 + $0x20] sm:$0xff] }
 0x47d   :  { %v3132_v8 = vand.u32 3, %v15180_v30  ;;  %v3037_v57 = vsel %vm3026_vm4, nan, %v3036_v26  ;;  %v3453_v27 = vsel %vm3442_vm7, nan, %v3452_v38  ;;  %v11719_v10 = vand.u32 3, %v11488_v9  ;;  %v3680_v30 = vld [vmem:[#allocation3 + $0x28] sm:$0xff] }
 0x47e   :  { %vm3338_vm1 = vweird.f32 %v10648_v28  ;;  %v3340_v52 = vand.u32 3, %v11494_v11  ;;  %v3642_v39 = vxor.u32 2147483648, %v3641_v24  ;;  %v7861_v60 = vpack.c.bf16 %v3453_v27, %v3037_v57 }
 0x47f   :  { %v3548_v47 = vand.u32 3, %v11618_v40  ;;  %v3651_v6 = vadd.s32 3, %v3647_v21  ;;  %v3239_v25 = vxor.u32 2147483648, %v11535_v46  ;;  %v2927_v59 = vxor.u32 2147483648, %v15181_v62 }
 0x480   :  { %v3643_v19 = vsel %vm3560_vm13, %v3642_v39, %v3641_v24  ;;  %7862 = vmatprep.subr.bf16.mxu0 %v7861_v60  ;;  %v3242_v9 = vxor.u32 2147483648, %v11526_v17  ;;  %vm2926_vm9 = vcmp.eq.s32.totalorder %v15182_v14, 0  ;;  %v2930_v15 = vxor.u32 2147483648, %v15183_v31  ;;  %v3682_v60 = vld [vmem:[#allocation3 + $0x38] sm:$0xff] }
 0x481   :  { %v3646_v11 = vsel %vm11680_vm0, %v10875_v51, %v3643_v19  ;;  %vm2925_vm10 = vcmp.lt.s32.totalorder %v15182_v14, 2  ;;  %v2928_v40 = vsel %vm2926_vm9, %v15183_v31, %v2927_v59  ;;  %vm2929_vm3 = vcmp.eq.s32.totalorder %v15182_v14, 2  ;;  %v8283_v37 = vpop.eup %8282 }
 0x482   :  { %8284 = vcosq.f32 %v3646_v11  ;;  %v2931_v36 = vsel %vm2929_vm3, %v2930_v15, %v15181_v62  ;;  %vm3341_vm13 = vcmp.lt.s32.totalorder %v3340_v52, 2  ;;  %v3343_v0 = vxor.u32 2147483648, %v11546_v18 }
 0x483   :  { %8286 = vsinq.f32 %v3646_v11  ;;  %v2932_v34 = vsel %vm2925_vm10, %v2928_v40, %v2931_v36  ;;  %vm3342_vm15 = vcmp.eq.s32.totalorder %v3340_v52, 0  ;;  %v3346_v43 = vxor.u32 2147483648, %v11539_v7 }
 0x484   :  { %v3344_v33 = vsel %vm3342_vm15, %v11539_v7, %v3343_v0  ;;  %vm3345_vm0 = vcmp.eq.s32.totalorder %v3340_v52, 2  ;;  %vm3133_vm6 = vcmp.lt.s32.totalorder %v3132_v8, 2  ;;  %v3135_v61 = vxor.u32 2147483648, %v15184_v55 }
 0x485   :  { %v2933_v54 = vsel %vm2922_vm2, nan, %v2932_v34  ;;  %v3347_v32 = vsel %vm3345_vm0, %v3346_v43, %v11546_v18  ;;  %vm3134_vm14 = vcmp.eq.s32.totalorder %v3132_v8, 0  ;;  %v3138_v12 = vxor.u32 2147483648, %v15185_v22 }
 0x486   :  { %v3348_v50 = vsel %vm3341_vm13, %v3344_v33, %v3347_v32  ;;  %v3136_v58 = vsel %vm3134_vm14, %v15185_v22, %v3135_v61  ;;  %vm3137_vm8 = vcmp.eq.s32.totalorder %v3132_v8, 2  ;;  %v3551_v56 = vxor.u32 2147483648, %v8283_v37 }
 0x487   :  { %v3349_v7 = vsel %vm3338_vm1, nan, %v3348_v50  ;;  %v3139_v3 = vsel %vm3137_vm8, %v3138_v12, %v15184_v55  ;;  %vm3550_vm12 = vcmp.eq.s32.totalorder %v3548_v47, 0  ;;  %v3554_v63 = vxor.u32 2147483648, %v11689_v53 }
 0x488   :  { %v7863_v1 = vpack.c.bf16 %v3349_v7, %v2933_v54  ;;  %v3140_v44 = vsel %vm3133_vm6, %v3136_v58, %v3139_v3  ;;  %v3552_v18 = vsel %vm3550_vm12, %v11689_v53, %v3551_v56  ;;  %vm3553_vm11 = vcmp.eq.s32.totalorder %v3548_v47, 2 }
 0x489   :  { %vm3549_vm4 = vcmp.lt.s32.totalorder %v3548_v47, 2  ;;  %v3555_v4 = vsel %vm3553_vm11, %v3554_v63, %v8283_v37  ;;  %vm3130_vm7 = vweird.f32 %v15186_v41  ;;  %vm3546_vm2 = vweird.f32 %v10709_v48 }
 0x48a   :  { %v3652_v42 = vand.u32 3, %v3651_v6  ;;  %7864 = vmatpush1.bf16.msra.mxu0 %v7863_v1  ;;  %v3556_v28 = vsel %vm3549_vm4, %v3552_v18, %v3555_v4  ;;  %vm3238_vm1 = vcmp.eq.s32.totalorder %v11719_v10, 0  ;;  %vm3241_vm9 = vcmp.eq.s32.totalorder %v11719_v10, 2 }
 0x48b   :  { %v3141_v26 = vsel %vm3130_vm7, nan, %v3140_v44  ;;  %v3557_v21 = vsel %vm3546_vm2, nan, %v3556_v28  ;;  %v3240_v53 = vsel %vm3238_vm1, %v11526_v17, %v3239_v25  ;;  %v3243_v45 = vsel %vm3241_vm9, %v3242_v9, %v11535_v46 }
 0x48c   :  { %v8285_v5 = vpop.eup %8284  ;;  %v7871_v24 = vpack.c.bf16 %v3557_v21, %v3141_v26  ;;  %vm3237_vm10 = vcmp.lt.s32.totalorder %v11719_v10, 2  ;;  %vm3657_vm3 = vcmp.eq.s32.totalorder %v3652_v42, 2  ;;  %v15187_v35 = vmov 0.0   ;;  %v3681_v10 = vld [vmem:[#allocation3 + $0x30] sm:$0xff] }
 0x48d   :  { %v8287_v23 = vpop.eup %8286  ;;  %v3658_v38 = vxor.u32 2147483648, %v8285_v5  ;;  %7697 = vmatmul.mubr.msk.f32.vlgmr.msra.gmra.mrb[8].mxu0 %vm1807_vm5, %v3679_v13  ;;  %v3244_v8 = vsel %vm3237_vm10, %v3240_v53, %v3243_v45  ;;  %vm3654_vm13 = vcmp.eq.s32.totalorder %v3652_v42, 0  ;;  %vm3653_vm15 = vcmp.lt.s32.totalorder %v3652_v42, 2 }
 0x48e   :  { %v3655_v48 = vxor.u32 2147483648, %v8287_v23  ;;  %3781 = vmatprep.mubr.f32.mxu0 %v15187_v35  ;;  %vm3234_vm0 = vweird.f32 %v15118_v2  ;;  %vm3650_vm6 = vweird.f32 %v10875_v51  ;;  %v15192_v12 = vmov 2131351028  }
 0x48f   :  { %v3659_v57 = vsel %vm3657_vm3, %v3658_v38, %v8287_v23  ;;  %v3245_v46 = vsel %vm3234_vm0, nan, %v3244_v8  ;;  %v15193_v18 = vmov 1326507024  }
 0x490   :  { %v3656_v27 = vsel %vm3654_vm13, %v8285_v5, %v3655_v48 }
 0x491   :  { %v3660_v17 = vsel %vm3653_vm15, %v3656_v27, %v3659_v57  ;;  %7698 = vmatmul.mubr.msk.f32.gmra.mrb[10].mxu0 %vm1807_vm5, %v3680_v30 }
 0x492   :  { %v3661_v52 = vsel %vm3650_vm6, nan, %v3660_v17  ;;  %3787 = vmatprep.mubr.f32.mxu0 %v15187_v35 }
 0x493   :  { %v7869_v39 = vpack.c.bf16 %v3661_v52, %v3245_v46 }
 0x495   :  { %7870 = vmatprep.subr.bf16.mxu1 %v7869_v39  ;;  %7699 = vmatmul.mubr.msk.f32.gmra.mrb[12].mxu0 %vm1807_vm5, %v3681_v10 }
 0x496   :  { %7872 = vmatpush1.bf16.msra.mxu1 %v7871_v24  ;;  %3793 = vmatprep.mubr.f32.mxu0 %v15187_v35 }
 0x499   :  { %7701 = vmatmul.mubr.msk.f32.vlgmr.msra.gmra.mrb[8].mxu1 %vm1807_vm5, %v3679_v13  ;;  %7700 = vmatmul.mubr.msk.f32.gmra.mrb[14].mxu0 %vm1807_vm5, %v3682_v60 }
 0x49a   :  { %3870 = vmatprep.mubr.f32.mxu1 %v15187_v35  ;;  %5666 = vmatprep.mubr.f32.mxu0 %v15187_v35 }
 0x49d   :  { %7702 = vmatmul.mubr.msk.f32.gmra.mrb[10].mxu1 %vm1807_vm5, %v3680_v30 }
 0x49e   :  { %3876 = vmatprep.mubr.f32.mxu1 %v15187_v35 }
 0x4a1   :  { %7703 = vmatmul.mubr.msk.f32.gmra.mrb[12].mxu1 %vm1807_vm5, %v3681_v10 }
 0x4a2   :  { %3882 = vmatprep.mubr.f32.mxu1 %v15187_v35 }
 0x4a5   :  { %7704 = vmatmul.mubr.msk.f32.gmra.mrb[14].mxu1 %vm1807_vm5, %v3682_v60 }
 0x4a6   :  { %5755 = vmatprep.mubr.f32.mxu1 %v15187_v35 }
 0x560   :  { %v11777_v51 = vpop.f32.mrb[8].mxu0 }
 0x561   :  { %15188 = vst [vmem:[#allocation19_spill] sm:$0xff] %v11777_v51  ;;  %v3889_v2 = vand.u32 2147483647, %v11777_v51  ;;  %v3892_v47 = vand.u32 2139095040, %v11777_v51  ;;  %v11781_v6 = vpop.f32.mrb[9].mxu0 }
 0x562   :  { %15189 = vst [vmem:[#allocation33_spill] sm:$0xff] %v11781_v6  ;;  %v3996_v25 = vand.u32 2139095040, %v11781_v6 }
 0x563   :  { %v3893_v62 = vshrl.u32 %v3892_v47, 23  ;;  %v3896_v14 = vand.u32 8388607, %v3889_v2 }
 0x564   :  { %v3997_v59 = vshrl.u32 %v3996_v25, 23  ;;  %v11784_v19 = vpop.f32.mrb[10].mxu0 }
 0x565   :  { %v7705_v9 = vadd.s32 4294967169, %v3893_v62  ;;  %v11788_v31 = vpop.f32.mrb[11].mxu0  ;;  %v3897_v37 = vor.u32 8388608, %v3896_v14 }
 0x566   :  { %v7709_v15 = vadd.s32 4294967169, %v3997_v59 }
 0x567   :  { %v3899_v11 = vadd.s32 1, %v7705_v9  ;;  %v11794_v61 = vshll.u32 %v3897_v37, 8 }
 0x568   :  { %v4003_v40 = vadd.s32 1, %v7709_v15  ;;  %v11817_v24 = vpop.f32.mrb[12].mxu0  ;;  %v14920_v15 = vand.u32 2147483647, %v11781_v6 }
 0x569   :  { %vm3900_vm14 = vcmp.gt.s32.totalorder %v3899_v11, 0 }
 0x56a   :  { %v3901_v36 = vsel %vm3900_vm14, %v3899_v11, 0  ;;  %vm4004_vm8 = vcmp.gt.s32.totalorder %v4003_v40, 0 }
 0x56b   :  { %v3903_v0 = vand.u32 31, %v3901_v36  ;;  %v11790_v34 = vsel %vm4004_vm8, %v4003_v40, 0  ;;  %v3902_v43 = vshrl.u32 %v3901_v36, 5 }
 0x56c   :  { %v11792_v33 = vpop.f32.mrb[8].mxu1  ;;  %v11802_v58 = vand.u32 31, %v11790_v34 }
 0x56d   :  { %15190 = vst [vmem:[#allocation24_spill] sm:$0xff] %v11792_v33  ;;  %v3904_v55 = vsub.s32 32, %v3903_v0  ;;  %v11796_v54 = vpop.f32.mrb[9].mxu1  ;;  %v3906_v32 = vshll.u32 %v14995_v49, %v3903_v0  ;;  %v3909_v22 = vshll.u32 %v14996_v16, %v3903_v0  ;;  %v3912_v50 = vshll.u32 %v15192_v12, %v3903_v0 }
 0x56e   :  { %15191 = vst [vmem:[#allocation35_spill] sm:$0xff] %v11796_v54  ;;  %v3915_v63 = vshll.u32 %v14998_v20, %v3903_v0  ;;  %v3918_v44 = vshll.u32 %v14999_v29, %v3903_v0  ;;  %vm3921_vm12 = vcmp.lt.s32.totalorder %v3902_v43, 1  ;;  %vm3924_vm11 = vcmp.lt.s32.totalorder %v3902_v43, 4 }
 0x56f   :  { %v3907_v56 = vshrl.u32 %v14996_v16, %v3904_v55  ;;  %v3910_v7 = vshrl.u32 %v15192_v12, %v3904_v55  ;;  %v3913_v3 = vshrl.u32 %v14998_v20, %v3904_v55  ;;  %v3916_v1 = vshrl.u32 %v14999_v29, %v3904_v55 }
 0x570   :  { %v3919_v4 = vshrl.u32 %v15193_v18, %v3904_v55  ;;  %v11811_v41 = vpop.f32.mrb[10].mxu1  ;;  %v14919_v53 = vand.u32 2147483647, %v11792_v33  ;;  %v4100_v45 = vand.u32 2139095040, %v11792_v33  ;;  %v3905_v23 = vshrl.u32 %v14995_v49, %v3904_v55 }
 0x571   :  { %15194 = vst [vmem:[#allocation27_spill] sm:$0xff] %v11811_v41  ;;  %v3908_v42 = vor.u32 %v3907_v56, %v3906_v32  ;;  %v3911_v28 = vor.u32 %v3910_v7, %v3909_v22  ;;  %v3914_v13 = vor.u32 %v3913_v3, %v3912_v50  ;;  %v11813_v26 = vpop.f32.mrb[11].mxu1  ;;  %v3917_v21 = vor.u32 %v3916_v1, %v3915_v63 }
 0x572   :  { %v3920_v5 = vor.u32 %v3919_v4, %v3918_v44  ;;  %vm3922_vm4 = vcmp.lt.s32.totalorder %v3902_v43, 2  ;;  %vm3923_vm7 = vcmp.lt.s32.totalorder %v3902_v43, 3  ;;  %v4101_v52 = vshrl.u32 %v4100_v45, 23 }
 0x573   :  { %v3926_v38 = vsel %vm3924_vm11, %v3914_v13, 2102212464  ;;  %v3929_v48 = vsel %vm3921_vm12, %v3908_v42, %v3911_v28  ;;  %v3933_v30 = vsel %vm3921_vm12, %v3911_v28, %v3914_v13  ;;  %v3930_v8 = vsel %vm3924_vm11, %v3917_v21, 920167782 }
 0x574   :  { %v3934_v57 = vsel %vm3924_vm11, %v3920_v5, 1326507024  ;;  %v3925_v27 = vsel %vm3921_vm12, %v3905_v23, %v3908_v42  ;;  %v3931_v17 = vsel %vm3923_vm7, %v3914_v13, %v3930_v8  ;;  %v3927_v10 = vsel %vm3923_vm7, %v3911_v28, %v3926_v38 }
 0x575   :  { %v3935_v46 = vsel %vm3923_vm7, %v3917_v21, %v3934_v57  ;;  %v3932_v39 = vsel %vm3922_vm4, %v3929_v48, %v3931_v17  ;;  %v4104_v47 = vand.u32 8388607, %v14919_v53  ;;  %v7713_v14 = vadd.s32 4294967169, %v4101_v52 }
 0x576   :  { %v3936_v60 = vsel %vm3922_vm4, %v3933_v30, %v3935_v46  ;;  %v11832_v59 = vmul.u32.u64.low %v11794_v61, %v3932_v39  ;;  %v11833_v9 = vmul.u32.u64.high %v11794_v61, %v3932_v39, %v11832_v59  ;;  %v11838_v11 = vsub.s32 32, %v11802_v58 }
 0x577   :  { %v11828_v25 = vmul.u32.u64.low %v11794_v61, %v3936_v60  ;;  %v11829_v62 = vmul.u32.u64.high %v11794_v61, %v3936_v60, %v11828_v25  ;;  %v3928_v40 = vsel %vm3922_vm4, %v3925_v27, %v3927_v10  ;;  %v4107_v37 = vadd.s32 1, %v7713_v14 }
 0x578   :  { %v3947_v36 = vadd.s32 1, %v11833_v9  ;;  %v4105_v0 = vor.u32 8388608, %v4104_v47  ;;  %v4011_v55 = vshrl.u32 %v14996_v16, %v11838_v11  ;;  %v3944_v32 = vmul.u32 %v11794_v61, %v3928_v40 }
 0x579   :  { %vm3946_vm2 = vc.u32 %v11829_v62, %v11832_v59  ;;  %vm4108_vm1 = vcmp.gt.s32.totalorder %v4107_v37, 0  ;;  %v11849_v22 = vand.u32 8388607, %v14920_v15  ;;  %v4014_v43 = vshrl.u32 %v15192_v12, %v11838_v11 }
 0x57a   :  { %v3948_v50 = vsel %vm3946_vm2, %v3947_v36, %v11833_v9  ;;  %v4109_v56 = vsel %vm4108_vm1, %v4107_v37, 0  ;;  %v11855_v7 = vshrl.u32 %v11790_v34, 5  ;;  %v4010_v3 = vshll.u32 %v14995_v49, %v11802_v58 }
 0x57b   :  { %v3949_v63 = vadd.s32 %v3948_v50, %v3944_v32  ;;  %v4111_v1 = vand.u32 31, %v4109_v56  ;;  %v4013_v61 = vshll.u32 %v14996_v16, %v11802_v58  ;;  %v4016_v44 = vshll.u32 %v15192_v12, %v11802_v58 }
 0x57c   :  { %v11863_v4 = vshll.u32 %v4105_v0, 8  ;;  %v11865_v42 = vor.u32 %v4011_v55, %v4010_v3  ;;  %v4017_v28 = vshrl.u32 %v14998_v20, %v11838_v11  ;;  %v4019_v34 = vshll.u32 %v14998_v20, %v11802_v58 }
 0x57d   :  { %v3950_v13 = vadd.s32 536870912, %v3949_v63  ;;  %v4112_v21 = vsub.s32 32, %v4111_v1  ;;  %v11871_v5 = vor.u32 %v4014_v43, %v4013_v61  ;;  %v4020_v45 = vshrl.u32 %v14999_v29, %v11838_v11 }
 0x57e   :  { %v4110_v23 = vshrl.u32 %v4109_v56, 5  ;;  %v4114_v38 = vshll.u32 %v14995_v49, %v4111_v1  ;;  %v4117_v48 = vshll.u32 %v14996_v16, %v4111_v1  ;;  %v4120_v30 = vshll.u32 %v15192_v12, %v4111_v1 }
 0x57f   :  { %v11878_v8 = vshrl.u32 %v3950_v13, 30  ;;  %v4115_v57 = vshrl.u32 %v14996_v16, %v4112_v21  ;;  %v4118_v27 = vshrl.u32 %v15192_v12, %v4112_v21  ;;  %v4123_v17 = vshll.u32 %v14998_v20, %v4111_v1 }
 0x580   :  { %v4121_v46 = vshrl.u32 %v14998_v20, %v4112_v21  ;;  %v4124_v52 = vshrl.u32 %v14999_v29, %v4112_v21  ;;  %v4126_v10 = vshll.u32 %v14999_v29, %v4111_v1  ;;  %v4127_v39 = vshrl.u32 %v15193_v18, %v4112_v21 }
 0x581   :  { %v3952_v60 = vshll.u32 %v11878_v8, 30  ;;  %v4116_v47 = vor.u32 %v4115_v57, %v4114_v38  ;;  %v4119_v25 = vor.u32 %v4118_v27, %v4117_v48  ;;  %v4022_v9 = vshll.u32 %v14999_v29, %v11802_v58 }
 0x582   :  { %v4122_v14 = vor.u32 %v4121_v46, %v4120_v30  ;;  %v4125_v40 = vor.u32 %v4124_v52, %v4123_v17  ;;  %v4128_v37 = vor.u32 %v4127_v39, %v4126_v10  ;;  %v4018_v36 = vor.u32 %v4017_v28, %v4016_v44  ;;  %v11900_v28 = vpop.f32.mrb[12].mxu1 }
 0x583   :  { %v11890_v0 = vsub.s32 %v3949_v63, %v3952_v60  ;;  %vm4129_vm9 = vcmp.lt.s32.totalorder %v4110_v23, 1  ;;  %vm4132_vm10 = vcmp.lt.s32.totalorder %v4110_v23, 4  ;;  %v4023_v55 = vshrl.u32 %v15193_v18, %v11838_v11  ;;  %15195 = vst [vmem:[#allocation28_spill] sm:$0xff] %v11900_v28 }
 0x584   :  { %vm4131_vm3 = vcmp.lt.s32.totalorder %v4110_v23, 3  ;;  %v4134_v32 = vsel %vm4132_vm10, %v4122_v14, 2102212464  ;;  %v4137_v43 = vsel %vm4129_vm9, %v4116_v47, %v4119_v25  ;;  %v4138_v50 = vsel %vm4132_vm10, %v4125_v40, 920167782 }
 0x585   :  { %v3955_v56 = vsub.s32 0, %v11890_v0  ;;  %v4113_v58 = vshrl.u32 %v14995_v49, %v4112_v21  ;;  %vm4130_vm13 = vcmp.lt.s32.totalorder %v4110_v23, 2  ;;  %v4139_v3 = vsel %vm4131_vm3, %v4122_v14, %v4138_v50 }
 0x586   :  { %v4140_v63 = vsel %vm4130_vm13, %v4137_v43, %v4139_v3  ;;  %v4141_v1 = vsel %vm4129_vm9, %v4119_v25, %v4122_v14  ;;  %v4142_v61 = vsel %vm4132_vm10, %v4128_v37, 1326507024  ;;  %v4021_v44 = vor.u32 %v4020_v45, %v4019_v34 }
 0x587   :  { %v7706_v13 = vmin.u32 %v3955_v56, %v11890_v0  ;;  %v4133_v38 = vsel %vm4129_vm9, %v4113_v58, %v4116_v47  ;;  %v4135_v48 = vsel %vm4131_vm3, %v4119_v25, %v4134_v32  ;;  %v4143_v30 = vsel %vm4131_vm3, %v4125_v40, %v4142_v61 }
 0x588   :  { %v4144_v21 = vsel %vm4130_vm13, %v4141_v1, %v4143_v30  ;;  %v11908_v57 = vmul.u32.u64.low %v11863_v4, %v4140_v63  ;;  %v11909_v27 = vmul.u32.u64.high %v11863_v4, %v4140_v63, %v11908_v57  ;;  %v4024_v17 = vor.u32 %v4023_v55, %v4022_v9 }
 0x589   :  { %v11913_v34 = vmul.u32.u64.low %v11863_v4, %v4144_v21  ;;  %v11914_v45 = vmul.u32.u64.high %v11863_v4, %v4144_v21, %v11913_v34  ;;  %v4001_v46 = vor.u32 8388608, %v11849_v22  ;;  %v4136_v52 = vsel %vm4130_vm13, %v4133_v38, %v4135_v48 }
 0x58a   :  { %v4009_v10 = vshrl.u32 %v14995_v49, %v11838_v11  ;;  %vm4025_vm15 = vcmp.lt.s32.totalorder %v11855_v7, 1  ;;  %vm4028_vm0 = vcmp.lt.s32.totalorder %v11855_v7, 4  ;;  %v3957_v39 = vclz %v7706_v13 }
 0x58b   :  { %vm4027_vm6 = vcmp.lt.s32.totalorder %v11855_v7, 3  ;;  %v4033_v60 = vsel %vm4025_vm15, %v11865_v42, %v11871_v5  ;;  %v4034_v47 = vsel %vm4028_vm0, %v4021_v44, 920167782  ;;  %v4155_v22 = vadd.s32 1, %v11909_v27 }
 0x58c   :  { %vm4026_vm14 = vcmp.lt.s32.totalorder %v11855_v7, 2  ;;  %v4035_v11 = vsel %vm4027_vm6, %v4018_v36, %v4034_v47  ;;  %v4038_v23 = vsel %vm4028_vm0, %v4024_v17, 1326507024  ;;  %v4152_v25 = vmul.u32 %v11863_v4, %v4136_v52 }
 0x58d   :  { %vm4154_vm8 = vc.u32 %v11914_v45, %v11908_v57  ;;  %v4030_v9 = vsel %vm4028_vm0, %v4018_v36, 2102212464  ;;  %v4037_v14 = vsel %vm4025_vm15, %v11871_v5, %v4018_v36  ;;  %v4036_v37 = vsel %vm4026_vm14, %v4033_v60, %v4035_v11 }
 0x58e   :  { %v4156_v40 = vsel %vm4154_vm8, %v4155_v22, %v11909_v27  ;;  %v4039_v55 = vsel %vm4027_vm6, %v4021_v44, %v4038_v23  ;;  %v4041_v32 = vshll.u32 %v4001_v46, 8  ;;  %v7707_v43 = vadd.s32 4294967294, %v3957_v39 }
 0x58f   :  { %v4157_v50 = vadd.s32 %v4156_v40, %v4152_v25  ;;  %v4029_v4 = vsel %vm4025_vm15, %v4009_v10, %v11865_v42  ;;  %v4308_v56 = vand.u32 2139095040, %v11784_v19  ;;  %v4031_v36 = vsel %vm4027_vm6, %v11871_v5, %v4030_v9 }
 0x590   :  { %v4040_v58 = vsel %vm4026_vm14, %v4037_v14, %v4039_v55  ;;  %v11951_v3 = vmul.u32.u64.low %v4041_v32, %v4036_v37  ;;  %v11952_v63 = vmul.u32.u64.high %v4041_v32, %v4036_v37, %v11951_v3  ;;  %v4204_v13 = vand.u32 2139095040, %v11796_v54 }
 0x591   :  { %v4158_v1 = vadd.s32 536870912, %v4157_v50  ;;  %v11955_v61 = vmul.u32.u64.low %v4041_v32, %v4040_v58  ;;  %v11956_v44 = vmul.u32.u64.high %v4041_v32, %v4040_v58, %v11955_v61  ;;  %vm7708_vm12 = vcmp.lt.s32.totalorder %v7707_v43, 0  ;;  %v11980_v58 = vpop.f32.mrb[13].mxu0 }
 0x592   :  { %v4032_v38 = vsel %vm4026_vm14, %v4029_v4, %v4031_v36  ;;  %v4051_v5 = vadd.s32 1, %v11952_v63  ;;  %v4205_v48 = vshrl.u32 %v4204_v13, 23  ;;  %v14917_v30 = vand.u32 2147483647, %v11784_v19 }
 0x593   :  { %v11959_v42 = vshrl.u32 %v4158_v1, 30  ;;  %v4309_v21 = vshrl.u32 %v4308_v56, 23  ;;  %v3960_v17 = vsel %vm7708_vm12, 0, %v7707_v43  ;;  %v4048_v34 = vmul.u32 %v4041_v32, %v4032_v38 }
 0x594   :  { %vm4050_vm11 = vc.u32 %v11956_v44, %v11951_v3  ;;  %v7717_v46 = vadd.s32 4294967169, %v4205_v48  ;;  %v4312_v47 = vand.u32 8388607, %v14917_v30  ;;  %v3961_v22 = vsub.s32 32, %v3960_v17 }
 0x595   :  { %v4160_v27 = vshll.u32 %v11959_v42, 30  ;;  %v4052_v10 = vsel %vm4050_vm11, %v4051_v5, %v11952_v63  ;;  %v7721_v60 = vadd.s32 4294967169, %v4309_v21  ;;  %v3945_v25 = vadd.s32 %v11832_v59, %v11829_v62 }
 0x596   :  { %v4053_v7 = vadd.s32 %v4052_v10, %v4048_v34  ;;  %v4211_v39 = vadd.s32 1, %v7717_v46  ;;  %v3965_v9 = vsub.s32 4294967266, %v3960_v17  ;;  %v4313_v32 = vor.u32 8388608, %v4312_v47 }
 0x597   :  { %v11968_v52 = vsub.s32 %v4157_v50, %v4160_v27  ;;  %v4315_v43 = vadd.s32 1, %v7721_v60  ;;  %v3963_v50 = vshrl.u32 %v3945_v25, %v3961_v22  ;;  %v3962_v63 = vshll.u32 %v11890_v0, %v3960_v17 }
 0x598   :  { %v4054_v23 = vadd.s32 536870912, %v4053_v7  ;;  %vm4212_vm4 = vcmp.gt.s32.totalorder %v4211_v39, 0  ;;  %v3966_v1 = vadd.s32 127, %v3965_v9  ;;  %v14918_v59 = vand.u32 2147483647, %v11796_v54 }
 0x599   :  { %v4163_v11 = vsub.s32 0, %v11968_v52  ;;  %v4213_v40 = vsel %vm4212_vm4, %v4211_v39, 0  ;;  %vm4316_vm7 = vcmp.gt.s32.totalorder %v4315_v43, 0  ;;  %v11986_v13 = vshll.u32 %v4313_v32, 8 }
 0x59a   :  { %v11977_v37 = vshrl.u32 %v4054_v23, 30  ;;  %v4215_v55 = vand.u32 31, %v4213_v40  ;;  %v4412_v38 = vand.u32 2139095040, %v11788_v31  ;;  %v11989_v5 = vor.u32 %v3963_v50, %v3962_v63 }
 0x59b   :  { %v7714_v14 = vmin.u32 %v4163_v11, %v11968_v52  ;;  %v3975_v48 = vsub.s32 4, %v11878_v8  ;;  %v4153_v21 = vadd.s32 %v11908_v57, %v11914_v45  ;;  %v3967_v46 = vshll.u32 %v3966_v1, 23 }
 0x59c   :  { %v4056_v56 = vshll.u32 %v11977_v37, 30  ;;  %v4216_v36 = vsub.s32 32, %v4215_v55  ;;  %v4208_v10 = vand.u32 8388607, %v14918_v59  ;;  %v4317_v39 = vsel %vm4316_vm7, %v4315_v43, 0 }
 0x59d   :  { %v4165_v4 = vclz %v7714_v14  ;;  %v4218_v47 = vshll.u32 %v14995_v49, %v4215_v55  ;;  %v4221_v57 = vshll.u32 %v14996_v16, %v4215_v55  ;;  %v4224_v11 = vshll.u32 %v15192_v12, %v4215_v55 }
 0x59e   :  { %v11984_v61 = vsub.s32 %v4053_v7, %v4056_v56  ;;  %v4219_v17 = vshrl.u32 %v14996_v16, %v4216_v36  ;;  %v4222_v34 = vshrl.u32 %v15192_v12, %v4216_v36  ;;  %v4214_v7 = vshrl.u32 %v4213_v40, 5 }
 0x59f   :  { %v7715_v62 = vadd.s32 4294967294, %v4165_v4  ;;  %v4225_v45 = vshrl.u32 %v14998_v20, %v4216_v36  ;;  %v4227_v23 = vshll.u32 %v14998_v20, %v4215_v55  ;;  %v4228_v25 = vshrl.u32 %v14999_v29, %v4216_v36 }
 0x5a0   :  { %v4059_v27 = vsub.s32 0, %v11984_v61  ;;  %v4220_v14 = vor.u32 %v4219_v17, %v4218_v47  ;;  %v4223_v40 = vor.u32 %v4222_v34, %v4221_v57  ;;  %v4231_v32 = vshrl.u32 %v15193_v18, %v4216_v36 }
 0x5a1   :  { %vm7716_vm2 = vcmp.lt.s32.totalorder %v7715_v62, 0  ;;  %v4209_v43 = vor.u32 8388608, %v4208_v10  ;;  %v4226_v50 = vor.u32 %v4225_v45, %v4224_v11  ;;  %v4229_v4 = vor.u32 %v4228_v25, %v4227_v23 }
 0x5a2   :  { %v11994_v0 = vsel %vm7716_vm2, 0, %v7715_v62  ;;  %v7710_v60 = vmin.u32 %v4059_v27, %v11984_v61  ;;  %v4230_v56 = vshll.u32 %v14999_v29, %v4215_v55  ;;  %v3968_v63 = vor.u32 4788187, %v3967_v46 }
 0x5a3   :  { %v4173_v22 = vsub.s32 4294967266, %v11994_v0  ;;  %v4169_v1 = vsub.s32 32, %v11994_v0  ;;  %v4319_v27 = vand.u32 31, %v4317_v39  ;;  %vm4233_vm1 = vcmp.lt.s32.totalorder %v4214_v7, 1 }
 0x5a4   :  { %v4061_v9 = vclz %v7710_v60  ;;  %v4232_v59 = vor.u32 %v4231_v32, %v4230_v56  ;;  %vm4236_vm9 = vcmp.lt.s32.totalorder %v4214_v7, 4  ;;  %vm4235_vm3 = vcmp.lt.s32.totalorder %v4214_v7, 3 }
 0x5a5   :  { %v4174_v30 = vadd.s32 127, %v4173_v22  ;;  %v4241_v17 = vsel %vm4233_vm1, %v4220_v14, %v4223_v40  ;;  %v4242_v34 = vsel %vm4236_vm9, %v4229_v4, 920167782  ;;  %v3971_v10 = vcvt.s32.f32 %v11989_v5 }
 0x5a6   :  { %v7711_v62 = vadd.s32 4294967294, %v4061_v9  ;;  %v4238_v60 = vsel %vm4236_vm9, %v4226_v50, 2102212464  ;;  %v4243_v55 = vsel %vm4235_vm3, %v4226_v50, %v4242_v34  ;;  %v4249_v46 = vshll.u32 %v4209_v43, 8 }
 0x5a7   :  { %v4217_v57 = vshrl.u32 %v14995_v49, %v4216_v36  ;;  %vm4234_vm13 = vcmp.lt.s32.totalorder %v4214_v7, 2  ;;  %v12020_v45 = vsub.s32 32, %v4319_v27  ;;  %v4171_v22 = vshrl.u32 %v4153_v21, %v4169_v1 }
 0x5a8   :  { %vm7712_vm10 = vcmp.lt.s32.totalorder %v7711_v62, 0  ;;  %v4244_v11 = vsel %vm4234_vm13, %v4241_v17, %v4243_v55  ;;  %v4245_v23 = vsel %vm4233_vm1, %v4223_v40, %v4226_v50  ;;  %v4246_v25 = vsel %vm4236_vm9, %v4232_v59, 1326507024 }
 0x5a9   :  { %v12017_v47 = vsel %vm7712_vm10, 0, %v7711_v62  ;;  %v4175_v5 = vshll.u32 %v4174_v30, 23  ;;  %v4237_v9 = vsel %vm4233_vm1, %v4217_v57, %v4220_v14  ;;  %v4239_v32 = vsel %vm4235_vm3, %v4223_v40, %v4238_v60  ;;  %v12040_v14 = vpop.f32.mrb[13].mxu1 }
 0x5aa   :  { %v4247_v43 = vsel %vm4235_vm3, %v4229_v4, %v4246_v25  ;;  %v4069_v56 = vsub.s32 4294967266, %v12017_v47  ;;  %v12030_v62 = vmul.u32.u64.low %v4249_v46, %v4244_v11  ;;  %v12031_v34 = vmul.u32.u64.high %v4249_v46, %v4244_v11, %v12030_v62  ;;  %15196 = vst [vmem:[#allocation26_spill] sm:$0xff] %v12040_v14 }
 0x5ab   :  { %v4248_v36 = vsel %vm4234_vm13, %v4245_v23, %v4247_v43  ;;  %v4170_v21 = vshll.u32 %v11968_v52, %v11994_v0  ;;  %v4183_v59 = vsub.s32 4, %v11959_v42  ;;  %v3969_v40 = vand.u32 2147483647, %v3968_v63 }
 0x5ac   :  { %v12037_v30 = vmul.u32.u64.low %v4249_v46, %v4248_v36  ;;  %v12038_v50 = vmul.u32.u64.high %v4249_v46, %v4248_v36, %v12037_v30  ;;  %v4240_v4 = vsel %vm4234_vm13, %v4237_v9, %v4239_v32  ;;  %v12043_v1 = vshrl.u32 %v4317_v39, 5 }
 0x5ad   :  { %v4323_v17 = vshrl.u32 %v14996_v16, %v12020_v45  ;;  %v4172_v60 = vor.u32 %v4171_v22, %v4170_v21  ;;  %v4322_v55 = vshll.u32 %v14995_v49, %v4319_v27  ;;  %v4325_v52 = vshll.u32 %v14996_v16, %v4319_v27 }
 0x5ae   :  { %v4326_v0 = vshrl.u32 %v15192_v12, %v12020_v45  ;;  %v4176_v57 = vor.u32 4788187, %v4175_v5  ;;  %v4065_v11 = vsub.s32 32, %v12017_v47  ;;  %v4070_v23 = vadd.s32 127, %v4069_v56 }
 0x5af   :  { %v4259_v7 = vadd.s32 1, %v12031_v34  ;;  %v4256_v63 = vmul.u32 %v4249_v46, %v4240_v4  ;;  %vm4258_vm15 = vc.u32 %v12038_v50, %v12030_v62  ;;  %v4324_v39 = vor.u32 %v4323_v17, %v4322_v55 }
 0x5b0   :  { %v4328_v22 = vshll.u32 %v15192_v12, %v4319_v27  ;;  %v4329_v9 = vshrl.u32 %v14998_v20, %v12020_v45  ;;  %v4331_v32 = vshll.u32 %v14998_v20, %v4319_v27  ;;  %v4332_v5 = vshrl.u32 %v14999_v29, %v12020_v45 }
 0x5b1   :  { %v4260_v25 = vsel %vm4258_vm15, %v4259_v7, %v12031_v34  ;;  %v4327_v56 = vor.u32 %v4326_v0, %v4325_v52  ;;  %v4334_v46 = vshll.u32 %v14999_v29, %v4319_v27  ;;  %v4335_v36 = vshrl.u32 %v15193_v18, %v12020_v45 }
 0x5b2   :  { %v4261_v43 = vadd.s32 %v4260_v25, %v4256_v63  ;;  %v3972_v21 = vmul.f32 %v3971_v10, %v3969_v40  ;;  %v4049_v30 = vadd.s32 %v11951_v3, %v11956_v44  ;;  %v4330_v34 = vor.u32 %v4329_v9, %v4328_v22 }
 0x5b3   :  { %v4333_v4 = vor.u32 %v4332_v5, %v4331_v32  ;;  %v4179_v17 = vcvt.s32.f32 %v4172_v60  ;;  %v4071_v55 = vshll.u32 %v4070_v23, 23  ;;  %v4336_v53 = vor.u32 %v4335_v36, %v4334_v46 }
 0x5b4   :  { %v4262_v7 = vadd.s32 536870912, %v4261_v43  ;;  %vm3891_vm0 = vcmp.lt.s32.totalorder %v11777_v51, 0  ;;  %v4177_v15 = vand.u32 2147483647, %v4176_v57  ;;  %v4067_v63 = vshrl.u32 %v4049_v30, %v4065_v11 }
 0x5b5   :  { %vm4337_vm6 = vcmp.lt.s32.totalorder %v12043_v1, 1  ;;  %vm4340_vm14 = vcmp.lt.s32.totalorder %v12043_v1, 4  ;;  %vm3995_vm8 = vcmp.lt.s32.totalorder %v11781_v6, 0  ;;  %vm4339_vm12 = vcmp.lt.s32.totalorder %v12043_v1, 3 }
 0x5b6   :  { %v12071_v27 = vshrl.u32 %v4262_v7, 30  ;;  %v4345_v3 = vsel %vm4337_vm6, %v4324_v39, %v4327_v56  ;;  %v4346_v44 = vsel %vm4340_vm14, %v4333_v4, 920167782  ;;  %v4066_v10 = vshll.u32 %v11984_v61, %v12017_v47 }
 0x5b7   :  { %v4347_v40 = vsel %vm4339_vm12, %v4330_v34, %v4346_v44  ;;  %v4349_v60 = vsel %vm4337_vm6, %v4327_v56, %v4330_v34  ;;  %v4350_v52 = vsel %vm4340_vm14, %v4336_v53, 1326507024  ;;  %v4072_v0 = vor.u32 4788187, %v4071_v55 }
 0x5b8   :  { %v4264_v57 = vshll.u32 %v12071_v27, 30  ;;  %vm4338_vm11 = vcmp.lt.s32.totalorder %v12043_v1, 2  ;;  %v4342_v11 = vsel %vm4340_vm14, %v4330_v34, 2102212464  ;;  %vm12086_vm4 = vcmp.le.f32.partialorder %v3889_v2, 0.7853982 }
 0x5b9   :  { %v4079_v61 = vsub.s32 4, %v11977_v37  ;;  %v4321_v47 = vshrl.u32 %v14995_v49, %v12020_v45  ;;  %v4348_v53 = vsel %vm4338_vm11, %v4345_v3, %v4347_v40  ;;  %v4351_v22 = vsel %vm4339_vm12, %v4333_v4, %v4350_v52 }
 0x5ba   :  { %v4180_v25 = vmul.f32 %v4179_v17, %v4177_v15  ;;  %v4068_v9 = vor.u32 %v4067_v63, %v4066_v10  ;;  %v12097_v32 = vsub.s32 %v4261_v43, %v4264_v57  ;;  %v4352_v2 = vsel %vm4338_vm11, %v4349_v60, %v4351_v22 }
 0x5bb   :  { %v4341_v5 = vsel %vm4337_vm6, %v4321_v47, %v4324_v39  ;;  %v4343_v46 = vsel %vm4339_vm12, %v4327_v56, %v4342_v11  ;;  %v12106_v45 = vmul.u32.u64.low %v11986_v13, %v4352_v2  ;;  %v12107_v36 = vmul.u32.u64.high %v11986_v13, %v4352_v2, %v12106_v45 }
 0x5bc   :  { %v4073_v30 = vand.u32 2147483647, %v4072_v0  ;;  %v4267_v34 = vsub.s32 0, %v12097_v32  ;;  %v12111_v15 = vmul.u32.u64.low %v11986_v13, %v4348_v53  ;;  %v12112_v43 = vmul.u32.u64.high %v11986_v13, %v4348_v53, %v12111_v15 }
 0x5bd   :  { %v3973_v4 = vxor.u32 2147483648, %v3972_v21  ;;  %vm4099_vm7 = vcmp.lt.s32.totalorder %v11792_v33, 0  ;;  %v4516_v39 = vand.u32 2139095040, %v11811_v41  ;;  %v4413_v56 = vshrl.u32 %v4412_v38, 23 }
 0x5be   :  { %v3976_v17 = vsel %vm3891_vm0, %v3975_v48, %v11878_v8  ;;  %v4184_v55 = vsel %vm4099_vm7, %v4183_v59, %v11959_v42  ;;  %v4075_v7 = vcvt.s32.f32 %v4068_v9  ;;  %v4344_v63 = vsel %vm4338_vm11, %v4341_v5, %v4343_v46 }
 0x5bf   :  { %v4181_v3 = vxor.u32 2147483648, %v4180_v25  ;;  %v4080_v38 = vsel %vm3995_vm8, %v4079_v61, %v11977_v37  ;;  %vm4362_vm2 = vc.u32 %v12107_v36, %v12111_v15  ;;  %v4517_v44 = vshrl.u32 %v4516_v39, 23 }
 0x5c0   :  { %v15199_v8 = vand.u32 2147483647, %v11781_v6  ;;  %v4076_v42 = vmul.f32 %v4075_v7, %v4073_v30  ;;  %v7718_v59 = vmin.u32 %v4267_v34, %v12097_v32  ;;  %v4363_v1 = vadd.s32 1, %v12112_v43 }
 0x5c1   :  { %v3974_v10 = vsel %vm3891_vm0, %v3973_v4, %v3972_v21  ;;  %v15202_v37 = vand.u32 2147483647, %v11792_v33  ;;  %v4360_v60 = vmul.u32 %v11986_v13, %v4344_v63  ;;  %v7729_v52 = vadd.s32 4294967169, %v4517_v44 }
 0x5c2   :  { %vm12138_vm1 = vcmp.le.f32.partialorder %v15199_v8, 0.7853982  ;;  %v3978_v0 = vsel %vm12086_vm4, 0, %v3976_v17  ;;  %v4364_v21 = vsel %vm4362_vm2, %v4363_v1, %v12112_v43  ;;  %v4182_v61 = vsel %vm4099_vm7, %v4181_v3, %v4180_v25 }
 0x5c3   :  { %vm12148_vm9 = vcmp.le.f32.partialorder %v15202_v37, 0.7853982  ;;  %v4082_v11 = vsel %vm12138_vm1, 0, %v4080_v38  ;;  %v4365_v47 = vadd.s32 %v4364_v21, %v4360_v60  ;;  %v4523_v53 = vadd.s32 1, %v7729_v52 }
 0x5c4   :  { %v4186_v57 = vsel %vm12148_vm9, 0, %v4184_v55  ;;  %v7725_v22 = vadd.s32 4294967169, %v4413_v56  ;;  %v3977_v13 = vsel %vm12086_vm4, %v11777_v51, %v3974_v10  ;;  %v4077_v9 = vxor.u32 2147483648, %v4076_v42 }
 0x5c5   :  { %v4269_v2 = vclz %v7718_v59  ;;  %v14922_v5 = vand.u32 2147483647, %v11811_v41  ;;  %v3982_v46 = vadd.s32 3, %v3978_v0  ;;  %v4366_v45 = vadd.s32 536870912, %v4365_v47 }
 0x5c6   :  { %vm4524_vm10 = vcmp.gt.s32.totalorder %v4523_v53, 0  ;;  %v14921_v30 = vand.u32 2147483647, %v11788_v31  ;;  %v4185_v25 = vsel %vm12148_vm9, %v11792_v33, %v4182_v61  ;;  %v4190_v34 = vadd.s32 3, %v4186_v57 }
 0x5c7   :  { %v4086_v43 = vadd.s32 3, %v4082_v11  ;;  %v4525_v4 = vsel %vm4524_vm10, %v4523_v53, 0  ;;  %8288 = vcosq.f32 %v3977_v13  ;;  %v12170_v39 = vshrl.u32 %v4366_v45, 30 }
 0x5c8   :  { %v4527_v23 = vand.u32 31, %v4525_v4  ;;  %v4419_v56 = vadd.s32 1, %v7725_v22  ;;  %8290 = vsinq.f32 %v3977_v13  ;;  %v4078_v17 = vsel %vm3995_vm8, %v4077_v9, %v4076_v42  ;;  %v12187_v42 = vpop.f32.mrb[14].mxu0 }
 0x5c9   :  { %v7719_v55 = vadd.s32 4294967294, %v4269_v2  ;;  %v4520_v7 = vand.u32 8388607, %v14922_v5  ;;  %v12176_v63 = vand.u32 3, %v3982_v46  ;;  %8292 = vcosq.f32 %v4185_v25  ;;  %15207 = vst [vmem:[#allocation14_spill] sm:$0xff] %v12187_v42 }
 0x5ca   :  { %v4368_v3 = vshll.u32 %v12170_v39, 30  ;;  %v4528_v38 = vsub.s32 32, %v4527_v23  ;;  %8294 = vsinq.f32 %v4185_v25  ;;  %v12179_v44 = vand.u32 3, %v4190_v34 }
 0x5cb   :  { %15205 = vst [vmem:[#allocation30_spill] sm:$0xff] %v12176_v63  ;;  %v12181_v8 = vand.u32 3, %v4086_v43  ;;  %v12185_v59 = vadd.s32 %v12030_v62, %v12038_v50  ;;  %v12192_v1 = vsel %vm12138_vm1, %v11781_v6, %v4078_v17  ;;  %v12197_v37 = vand.u32 8388607, %v14921_v30 }
 0x5cc   :  { %15206 = vst [vmem:[#allocation36_spill] sm:$0xff] %v12179_v44  ;;  %v4531_v10 = vshrl.u32 %v14996_v16, %v4528_v38  ;;  %vm4420_vm3 = vcmp.gt.s32.totalorder %v4419_v56, 0  ;;  %vm7720_vm13 = vcmp.lt.s32.totalorder %v7719_v55, 0  ;;  %v12199_v40 = vsub.s32 %v4365_v47, %v4368_v3 }
 0x5cd   :  { %v4521_v60 = vor.u32 8388608, %v4520_v7  ;;  %v4534_v62 = vshrl.u32 %v15192_v12, %v4528_v38  ;;  %v4530_v50 = vshll.u32 %v14995_v49, %v4527_v23  ;;  %v4533_v52 = vshll.u32 %v14996_v16, %v4527_v23 }
 0x5ce   :  { %v4536_v48 = vshll.u32 %v15192_v12, %v4527_v23  ;;  %v4537_v0 = vshrl.u32 %v14998_v20, %v4528_v38  ;;  %v4526_v57 = vshrl.u32 %v4525_v4, 5  ;;  %v4539_v11 = vshll.u32 %v14998_v20, %v4527_v23 }
 0x5cf   :  { %v4540_v21 = vshrl.u32 %v14999_v29, %v4528_v38  ;;  %v4421_v61 = vsel %vm4420_vm3, %v4419_v56, 0  ;;  %v12208_v53 = vsel %vm7720_vm13, 0, %v7719_v55  ;;  %v4532_v47 = vor.u32 %v4531_v10, %v4530_v50 }
 0x5d0   :  { %v4535_v22 = vor.u32 %v4534_v62, %v4533_v52  ;;  %v4538_v13 = vor.u32 %v4537_v0, %v4536_v48  ;;  %v4371_v9 = vsub.s32 0, %v12199_v40  ;;  %v4542_v46 = vshll.u32 %v14999_v29, %v4527_v23 }
 0x5d1   :  { %v4541_v2 = vor.u32 %v4540_v21, %v4539_v11  ;;  %v4543_v45 = vshrl.u32 %v15193_v18, %v4528_v38  ;;  %v12213_v25 = vpop.eup %8288  ;;  %v12216_v43 = vshll.u32 %v4521_v60, 8  ;;  %v4417_v4 = vor.u32 8388608, %v12197_v37 }
 0x5d2   :  { %15208 = vst [vmem:[#allocation17_spill] sm:$0xff] %v12213_v25  ;;  %v4423_v56 = vand.u32 31, %v4421_v61  ;;  %v12219_v17 = vpop.eup %8290  ;;  %v4277_v55 = vsub.s32 4294967266, %v12208_v53  ;;  %vm4545_vm15 = vcmp.lt.s32.totalorder %v4526_v57, 1  ;;  %vm4548_vm0 = vcmp.lt.s32.totalorder %v4526_v57, 4 }
 0x5d3   :  { %15209 = vst [vmem:[#allocation34_spill] sm:$0xff] %v12219_v17  ;;  %v4544_v7 = vor.u32 %v4543_v45, %v4542_v46  ;;  %v12222_v3 = vpop.eup %8292  ;;  %vm4547_vm6 = vcmp.lt.s32.totalorder %v4526_v57, 3  ;;  %v4550_v23 = vsel %vm4548_vm0, %v4538_v13, 2102212464  ;;  %v4553_v10 = vsel %vm4545_vm15, %v4532_v47, %v4535_v22 }
 0x5d4   :  { %15210 = vst [vmem:[#allocation21_spill] sm:$0xff] %v12222_v3  ;;  %v4554_v62 = vsel %vm4548_vm0, %v4541_v2, 920167782  ;;  %v12225_v50 = vpop.eup %8294  ;;  %v7722_v60 = vmin.u32 %v4371_v9, %v12199_v40  ;;  %v4529_v37 = vshrl.u32 %v14995_v49, %v4528_v38  ;;  %vm4546_vm14 = vcmp.lt.s32.totalorder %v4526_v57, 2 }
 0x5d5   :  { %15211 = vst [vmem:[#allocation20_spill] sm:$0xff] %v12225_v50  ;;  %v4555_v52 = vsel %vm4547_vm6, %v4538_v13, %v4554_v62  ;;  %v4273_v48 = vsub.s32 32, %v12208_v53  ;;  %v4557_v11 = vsel %vm4545_vm15, %v4535_v22, %v4538_v13  ;;  %v4558_v21 = vsel %vm4548_vm0, %v4544_v7, 1326507024 }
 0x5d6   :  { %v4556_v0 = vsel %vm4546_vm14, %v4553_v10, %v4555_v52  ;;  %vm4203_vm8 = vcmp.lt.s32.totalorder %v11796_v54, 0  ;;  %v4549_v46 = vsel %vm4545_vm15, %v4529_v37, %v4532_v47  ;;  %v4551_v45 = vsel %vm4547_vm6, %v4535_v22, %v4550_v23  ;;  %v12242_v52 = vpop.f32.mrb[14].mxu1 }
 0x5d7   :  { %v4559_v9 = vsel %vm4547_vm6, %v4541_v2, %v4558_v21  ;;  %v4424_v30 = vsub.s32 32, %v4423_v56  ;;  %v4274_v38 = vshll.u32 %v12097_v32, %v12208_v53  ;;  %v4278_v62 = vadd.s32 127, %v4277_v55 }
 0x5d8   :  { %v12239_v5 = vshrl.u32 %v4421_v61, 5  ;;  %v4620_v10 = vand.u32 2139095040, %v11813_v26  ;;  %v4373_v13 = vclz %v7722_v60  ;;  %v4560_v7 = vsel %vm4546_vm14, %v4557_v11, %v4559_v9 }
 0x5d9   :  { %v12246_v47 = vmul.u32.u64.low %v12216_v43, %v4556_v0  ;;  %v12247_v37 = vmul.u32.u64.high %v12216_v43, %v4556_v0, %v12246_v47  ;;  %v4275_v22 = vshrl.u32 %v12185_v59, %v4273_v48  ;;  %v4552_v2 = vsel %vm4546_vm14, %v4549_v46, %v4551_v45 }
 0x5da   :  { %v12253_v32 = vmul.u32.u64.low %v12216_v43, %v4560_v7  ;;  %v12254_v61 = vmul.u32.u64.high %v12216_v43, %v4560_v7, %v12253_v32  ;;  %v4426_v53 = vshll.u32 %v14995_v49, %v4423_v56  ;;  %v4427_v55 = vshrl.u32 %v14996_v16, %v4424_v30 }
 0x5db   :  { %v4430_v23 = vshrl.u32 %v15192_v12, %v4424_v30  ;;  %v4433_v60 = vshrl.u32 %v14998_v20, %v4424_v30  ;;  %v4279_v11 = vshll.u32 %v4278_v62, 23  ;;  %v4429_v0 = vshll.u32 %v14996_v16, %v4423_v56 }
 0x5dc   :  { %v4432_v21 = vshll.u32 %v15192_v12, %v4423_v56  ;;  %v4436_v59 = vshrl.u32 %v14999_v29, %v4424_v30  ;;  %v7723_v57 = vadd.s32 4294967294, %v4373_v13  ;;  %v4568_v48 = vmul.u32 %v12216_v43, %v4552_v2 }
 0x5dd   :  { %v4571_v46 = vadd.s32 1, %v12247_v37  ;;  %v4435_v45 = vshll.u32 %v14998_v20, %v4423_v56  ;;  %vm4570_vm12 = vc.u32 %v12254_v61, %v12246_v47  ;;  %v4428_v9 = vor.u32 %v4427_v55, %v4426_v53 }
 0x5de   :  { %v4431_v7 = vor.u32 %v4430_v23, %v4429_v0  ;;  %v4434_v32 = vor.u32 %v4433_v60, %v4432_v21  ;;  %v4438_v35 = vshll.u32 %v14999_v29, %v4423_v56  ;;  %v4439_v3 = vshrl.u32 %v15193_v18, %v4424_v30 }
 0x5df   :  { %v4572_v62 = vsel %vm4570_vm12, %v4571_v46, %v12247_v37  ;;  %v4437_v34 = vor.u32 %v4436_v59, %v4435_v45  ;;  %v4280_v13 = vor.u32 4788187, %v4279_v11  ;;  %v15212_v43 = vsub.s32 4, %v12071_v27 }
 0x5e0   :  { %v4573_v44 = vadd.s32 %v4572_v62, %v4568_v48  ;;  %v12278_v50 = vshll.u32 %v4417_v4, 8  ;;  %v4276_v53 = vor.u32 %v4275_v22, %v4274_v38  ;;  %vm7724_vm11 = vcmp.lt.s32.totalorder %v7723_v57, 0 }
 0x5e1   :  { %v12276_v2 = vsel %vm4203_vm8, %v15212_v43, %v12071_v27  ;;  %v4440_v55 = vor.u32 %v4439_v3, %v4438_v35  ;;  %v4621_v37 = vshrl.u32 %v4620_v10, 23  ;;  %vm4441_vm4 = vcmp.lt.s32.totalorder %v12239_v5, 1 }
 0x5e2   :  { %v4574_v23 = vadd.s32 536870912, %v4573_v44  ;;  %vm4443_vm7 = vcmp.lt.s32.totalorder %v12239_v5, 3  ;;  %vm4444_vm2 = vcmp.lt.s32.totalorder %v12239_v5, 4  ;;  %v15213_v56 = vand.u32 2147483647, %v11796_v54 }
 0x5e3   :  { %v4449_v27 = vsel %vm4441_vm4, %v4428_v9, %v4431_v7  ;;  %v4450_v4 = vsel %vm4444_vm2, %v4437_v34, 920167782  ;;  %v4453_v35 = vsel %vm4441_vm4, %v4431_v7, %v4434_v32  ;;  %v4454_v3 = vsel %vm4444_vm2, %v4440_v55, 1326507024 }
 0x5e4   :  { %vm12285_vm1 = vcmp.le.f32.partialorder %v15213_v56, 0.7853982  ;;  %v4281_v38 = vand.u32 2147483647, %v4280_v13  ;;  %vm4307_vm9 = vcmp.lt.s32.totalorder %v11784_v19, 0  ;;  %v12294_v10 = vsel %vm7724_vm11, 0, %v7723_v57 }
 0x5e5   :  { %v12296_v22 = vshrl.u32 %v4574_v23, 30  ;;  %v4451_v11 = vsel %vm4443_vm7, %v4434_v32, %v4450_v4  ;;  %vm4442_vm10 = vcmp.lt.s32.totalorder %v12239_v5, 2  ;;  %v4446_v0 = vsel %vm4444_vm2, %v4434_v32, 2102212464 }
 0x5e6   :  { %v4455_v21 = vsel %vm4443_vm7, %v4437_v34, %v4454_v3  ;;  %v7733_v59 = vadd.s32 4294967169, %v4621_v37  ;;  %v4425_v46 = vshrl.u32 %v14995_v49, %v4424_v30  ;;  %v4452_v57 = vsel %vm4442_vm10, %v4449_v27, %v4451_v11 }
 0x5e7   :  { %v4576_v48 = vshll.u32 %v12296_v22, 30  ;;  %v4456_v45 = vsel %vm4442_vm10, %v4453_v35, %v4455_v21  ;;  %v4283_v62 = vcvt.s32.f32 %v4276_v53  ;;  %v4381_v13 = vsub.s32 4294967266, %v12294_v10 }
 0x5e8   :  { %v12311_v43 = vmul.u32.u64.low %v12278_v50, %v4456_v45  ;;  %v12312_v32 = vmul.u32.u64.high %v12278_v50, %v4456_v45, %v12311_v43  ;;  %v4445_v34 = vsel %vm4441_vm4, %v4425_v46, %v4428_v9  ;;  %v4447_v30 = vsel %vm4443_vm7, %v4431_v7, %v4446_v0 }
 0x5e9   :  { %v12314_v55 = vsub.s32 %v4573_v44, %v4576_v48  ;;  %v4627_v37 = vadd.s32 1, %v7733_v59  ;;  %v4391_v23 = vsub.s32 4, %v12170_v39  ;;  %v14927_v27 = vand.u32 2147483647, %v11813_v26 }
 0x5ea   :  { %v12322_v56 = vmul.u32.u64.low %v12278_v50, %v4452_v57  ;;  %v12323_v53 = vmul.u32.u64.high %v12278_v50, %v4452_v57, %v12322_v56  ;;  %8296 = vcosq.f32 %v12192_v1  ;;  %v12328_v44 = vmul.f32 %v4283_v62, %v4281_v38 }
 0x5eb   :  { %v4579_v4 = vsub.s32 0, %v12314_v55  ;;  %vm4628_vm3 = vcmp.gt.s32.totalorder %v4627_v37, 0  ;;  %v4377_v9 = vsub.s32 32, %v12294_v10  ;;  %v4382_v7 = vadd.s32 127, %v4381_v13 }
 0x5ec   :  { %v4448_v35 = vsel %vm4442_vm10, %v4445_v34, %v4447_v30  ;;  %v4629_v3 = vsel %vm4628_vm3, %v4627_v37, 0  ;;  %vm4466_vm13 = vc.u32 %v12312_v32, %v12322_v56  ;;  %v4361_v21 = vadd.s32 %v12111_v15, %v12107_v36 }
 0x5ed   :  { %v7730_v0 = vmin.u32 %v4579_v4, %v12314_v55  ;;  %v4631_v38 = vand.u32 31, %v4629_v3  ;;  %v12345_v59 = vsel %vm4307_vm9, %v4391_v23, %v12170_v39  ;;  %v4467_v5 = vadd.s32 1, %v12323_v53 }
 0x5ee   :  { %v4624_v48 = vand.u32 8388607, %v14927_v27  ;;  %v4464_v45 = vmul.u32 %v12278_v50, %v4448_v35  ;;  %v4378_v13 = vshll.u32 %v12199_v40, %v12294_v10  ;;  %v4379_v36 = vshrl.u32 %v4361_v21, %v4377_v9 }
 0x5ef   :  { %v4581_v57 = vclz %v7730_v0  ;;  %v4632_v62 = vsub.s32 32, %v4631_v38  ;;  %v4383_v15 = vshll.u32 %v4382_v7, 23  ;;  %v4468_v43 = vsel %vm4466_vm13, %v4467_v5, %v12323_v53 }
 0x5f0   :  { %v4469_v34 = vadd.s32 %v4468_v43, %v4464_v45  ;;  %v12355_v30 = vshrl.u32 %v4629_v3, 5  ;;  %v4643_v50 = vshll.u32 %v14998_v20, %v4631_v38  ;;  %v4634_v10 = vshll.u32 %v14995_v49, %v4631_v38 }
 0x5f1   :  { %v7731_v39 = vadd.s32 4294967294, %v4581_v57  ;;  %v4635_v37 = vshrl.u32 %v14996_v16, %v4632_v62  ;;  %v4638_v23 = vshrl.u32 %v15192_v12, %v4632_v62  ;;  %v4641_v4 = vshrl.u32 %v14998_v20, %v4632_v62 }
 0x5f2   :  { %v4644_v35 = vshrl.u32 %v14999_v29, %v4632_v62  ;;  %v4470_v40 = vadd.s32 536870912, %v4469_v34  ;;  %v4637_v53 = vshll.u32 %v14996_v16, %v4631_v38  ;;  %v4640_v7 = vshll.u32 %v15192_v12, %v4631_v38 }
 0x5f3   :  { %vm7732_vm15 = vcmp.lt.s32.totalorder %v7731_v39, 0  ;;  %v4647_v0 = vshrl.u32 %v15193_v18, %v4632_v62  ;;  %v4636_v45 = vor.u32 %v4635_v37, %v4634_v10  ;;  %v4380_v27 = vor.u32 %v4379_v36, %v4378_v13 }
 0x5f4   :  { %v12364_v9 = vsel %vm7732_vm15, 0, %v7731_v39  ;;  %v4645_v3 = vor.u32 %v4644_v35, %v4643_v50  ;;  %v12368_v21 = vpop.eup %8296  ;;  %v12371_v57 = vshrl.u32 %v4470_v40, 30  ;;  %v4639_v43 = vor.u32 %v4638_v23, %v4637_v53  ;;  %v12374_v39 = vpop.f32.mrb[15].mxu0 }
 0x5f5   :  { %15216 = vst [vmem:[#allocation18_spill] sm:$0xff] %v12368_v21  ;;  %v4589_v5 = vsub.s32 4294967266, %v12364_v9  ;;  %v4384_v46 = vor.u32 4788187, %v4383_v15  ;;  %v4642_v11 = vor.u32 %v4641_v4, %v4640_v7  ;;  %v4646_v33 = vshll.u32 %v14999_v29, %v4631_v38 }
 0x5f6   :  { %v4569_v50 = vadd.s32 %v12246_v47, %v12254_v61  ;;  %v4472_v35 = vshll.u32 %v12371_v57, 30  ;;  %v4625_v25 = vor.u32 8388608, %v4624_v48  ;;  %vm4652_vm0 = vcmp.lt.s32.totalorder %v12355_v30, 4 }
 0x5f7   :  { %v15217_v40 = vand.u32 2147483647, %v11784_v19  ;;  %v4648_v13 = vor.u32 %v4647_v0, %v4646_v33  ;;  %vm4649_vm14 = vcmp.lt.s32.totalorder %v12355_v30, 1  ;;  %v4658_v38 = vsel %vm4652_vm0, %v4645_v3, 920167782 }
 0x5f8   :  { %v4724_v36 = vand.u32 2139095040, %v11817_v24  ;;  %v4590_v47 = vadd.s32 127, %v4589_v5  ;;  %v12390_v61 = vsub.s32 %v4469_v34, %v4472_v35  ;;  %vm4651_vm12 = vcmp.lt.s32.totalorder %v12355_v30, 3 }
 0x5f9   :  { %vm12382_vm6 = vcmp.le.f32.partialorder %v15217_v40, 0.7853982  ;;  %v4657_v48 = vsel %vm4649_vm14, %v4636_v45, %v4639_v43  ;;  %v4385_v15 = vand.u32 2147483647, %v4384_v46  ;;  %v4585_v23 = vsub.s32 32, %v12364_v9 }
 0x5fa   :  { %v4633_v33 = vshrl.u32 %v14995_v49, %v4632_v62  ;;  %v4659_v4 = vsel %vm4651_vm12, %v4642_v11, %v4658_v38  ;;  %v4475_v10 = vsub.s32 0, %v12390_v61  ;;  %vm4650_vm11 = vcmp.lt.s32.totalorder %v12355_v30, 2 }
 0x5fb   :  { %v4654_v34 = vsel %vm4652_vm0, %v4642_v11, 2102212464  ;;  %v4661_v53 = vsel %vm4649_vm14, %v4639_v43, %v4642_v11  ;;  %v4660_v46 = vsel %vm4650_vm11, %v4657_v48, %v4659_v4  ;;  %v4662_v7 = vsel %vm4652_vm0, %v4648_v13, 1326507024 }
 0x5fc   :  { %v4665_v62 = vshll.u32 %v4625_v25, 8  ;;  %v4725_v0 = vshrl.u32 %v4724_v36, 23  ;;  %v4591_v5 = vshll.u32 %v4590_v47, 23  ;;  %v7726_v35 = vmin.u32 %v4475_v10, %v12390_v61 }
 0x5fd   :  { %v4653_v40 = vsel %vm4649_vm14, %v4633_v33, %v4636_v45  ;;  %v4663_v38 = vsel %vm4651_vm12, %v4645_v3, %v4662_v7  ;;  %v4655_v11 = vsel %vm4651_vm12, %v4639_v43, %v4654_v34  ;;  %v4387_v25 = vcvt.s32.f32 %v4380_v27 }
 0x5fe   :  { %v4664_v48 = vsel %vm4650_vm11, %v4661_v53, %v4663_v38  ;;  %v12418_v4 = vmul.u32.u64.low %v4665_v62, %v4660_v46  ;;  %v12419_v63 = vmul.u32.u64.high %v4665_v62, %v4660_v46, %v12418_v4  ;;  %v4587_v13 = vshrl.u32 %v4569_v50, %v4585_v23 }
 0x5ff   :  { %v12422_v36 = vmul.u32.u64.low %v4665_v62, %v4664_v48  ;;  %v12423_v47 = vmul.u32.u64.high %v4665_v62, %v4664_v48, %v12422_v36  ;;  %8298 = vsinq.f32 %v12192_v1  ;;  %v15220_v3 = vsel %vm12285_vm1, 0, %v12276_v2 }
 0x600   :  { %v4294_v45 = vadd.s32 3, %v15220_v3  ;;  %v4477_v43 = vclz %v7726_v35  ;;  %v7737_v33 = vadd.s32 4294967169, %v4725_v0  ;;  %v4388_v10 = vmul.f32 %v4387_v25, %v4385_v15  ;;  %v12475_v3 = vpop.f32.mrb[15].mxu1 }
 0x601   :  { %v4394_v34 = vsel %vm12382_vm6, 0, %v12345_v59  ;;  %v4586_v27 = vshll.u32 %v12314_v55, %v12364_v9  ;;  %vm4411_vm4 = vcmp.lt.s32.totalorder %v11788_v31, 0  ;;  %v4656_v1 = vsel %vm4650_vm11, %v4653_v40, %v4655_v11 }
 0x602   :  { %v15221_v50 = vxor.u32 2147483648, %v12328_v44  ;;  %v4592_v23 = vor.u32 4788187, %v4591_v5  ;;  %v4675_v15 = vadd.s32 1, %v12419_v63  ;;  %v4731_v53 = vadd.s32 1, %v7737_v33 }
 0x603   :  { %v4588_v46 = vor.u32 %v4587_v13, %v4586_v27  ;;  %v4599_v59 = vsub.s32 4, %v12296_v22  ;;  %vm4674_vm7 = vc.u32 %v12423_v47, %v12418_v4  ;;  %v14932_v55 = vand.u32 2147483647, %v11817_v24 }
 0x604   :  { %v4286_v2 = vsel %vm4203_vm8, %v15221_v50, %v12328_v44  ;;  %v7727_v30 = vadd.s32 4294967294, %v4477_v43  ;;  %v4672_v9 = vmul.u32 %v4665_v62, %v4656_v1  ;;  %v4676_v7 = vsel %vm4674_vm7, %v4675_v15, %v12419_v63 }
 0x605   :  { %vm4732_vm2 = vcmp.gt.s32.totalorder %v4731_v53, 0  ;;  %v12452_v44 = vsel %vm12285_vm1, %v11796_v54, %v4286_v2  ;;  %v4389_v0 = vxor.u32 2147483648, %v4388_v10  ;;  %v4398_v5 = vadd.s32 3, %v4394_v34 }
 0x606   :  { %vm4515_vm8 = vcmp.lt.s32.totalorder %v11811_v41, 0  ;;  %v4593_v35 = vand.u32 2147483647, %v4592_v23  ;;  %v4495_v40 = vsub.s32 4, %v12371_v57  ;;  %v4677_v38 = vadd.s32 %v4676_v7, %v4672_v9 }
 0x607   :  { %v4733_v11 = vsel %vm4732_vm2, %v4731_v53, 0  ;;  %v15222_v48 = vand.u32 2147483647, %v11811_v41  ;;  %v12465_v63 = vsel %vm4515_vm8, %v4599_v59, %v12296_v22  ;;  %v15225_v60 = vand.u32 2147483647, %v11788_v31 }
 0x608   :  { %v4728_v13 = vand.u32 8388607, %v14932_v55  ;;  %v4735_v36 = vand.u32 31, %v4733_v11  ;;  %v12477_v43 = vand.u32 3, %v4294_v45  ;;  %v4595_v33 = vcvt.s32.f32 %v4588_v46 }
 0x609   :  { %vm12458_vm10 = vcmp.le.f32.partialorder %v15222_v48, 0.7853982  ;;  %vm12469_vm1 = vcmp.le.f32.partialorder %v15225_v60, 0.7853982  ;;  %vm7728_vm3 = vcmp.lt.s32.totalorder %v7727_v30, 0  ;;  %v4678_v34 = vadd.s32 536870912, %v4677_v38  ;;  %v12486_v50 = vpop.eup %8298 }
 0x60a   :  { %15228 = vst [vmem:[#allocation10_spill] sm:$0xff] %v12477_v43  ;;  %8300 = vcosq.f32 %v12452_v44  ;;  %v12482_v22 = vsel %vm4307_vm9, %v4389_v0, %v4388_v10  ;;  %v12484_v27 = vand.u32 3, %v4398_v5  ;;  %v4736_v1 = vsub.s32 32, %v4735_v36  ;;  %15230 = vst [vmem:[#allocation31_spill] sm:$0xff] %v12486_v50 }
 0x60b   :  { %v12488_v2 = vmul.f32 %v4595_v33, %v4593_v35  ;;  %v12496_v23 = vsel %vm4411_vm4, %v4495_v40, %v12371_v57  ;;  %v12498_v15 = vshrl.u32 %v4678_v34, 30  ;;  %v12500_v10 = vsel %vm7728_vm3, 0, %v7727_v30 }
 0x60c   :  { %15229 = vst [vmem:[#allocation25_spill] sm:$0xff] %v12484_v27  ;;  %v4729_v53 = vor.u32 8388608, %v4728_v13  ;;  %v4739_v46 = vshrl.u32 %v14996_v16, %v4736_v1  ;;  %v4932_v59 = vand.u32 2139095040, %v11900_v28  ;;  %v4738_v7 = vshll.u32 %v14995_v49, %v4735_v36 }
 0x60d   :  { %v4680_v9 = vshll.u32 %v12498_v15, 30  ;;  %v4742_v0 = vshrl.u32 %v15192_v12, %v4736_v1  ;;  %v4745_v5 = vshrl.u32 %v14998_v20, %v4736_v1  ;;  %v4741_v57 = vshll.u32 %v14996_v16, %v4735_v36 }
 0x60e   :  { %v4744_v35 = vshll.u32 %v15192_v12, %v4735_v36  ;;  %v4747_v30 = vshll.u32 %v14998_v20, %v4735_v36  ;;  %v4748_v40 = vshrl.u32 %v14999_v29, %v4736_v1  ;;  %v4734_v60 = vshrl.u32 %v4733_v11, 5 }
 0x60f   :  { %v12512_v48 = vsub.s32 %v4677_v38, %v4680_v9  ;;  %v4740_v13 = vor.u32 %v4739_v46, %v4738_v7  ;;  %v4750_v33 = vshll.u32 %v14999_v29, %v4735_v36  ;;  %v4743_v34 = vor.u32 %v4742_v0, %v4741_v57 }
 0x610   :  { %v4746_v55 = vor.u32 %v4745_v5, %v4744_v35  ;;  %v4749_v45 = vor.u32 %v4748_v40, %v4747_v30  ;;  %v4751_v27 = vshrl.u32 %v15193_v18, %v4736_v1  ;;  %v4597_v17 = vxor.u32 2147483648, %v12488_v2 }
 0x611   :  { %v4465_v51 = vadd.s32 %v12322_v56, %v12312_v32  ;;  %v4498_v54 = vsel %vm12469_vm1, 0, %v12496_v23  ;;  %v4683_v38 = vsub.s32 0, %v12512_v48  ;;  %v4481_v11 = vsub.s32 32, %v12500_v10 }
 0x612   :  { %v4485_v36 = vsub.s32 4294967266, %v12500_v10  ;;  %v4752_v46 = vor.u32 %v4751_v27, %v4750_v33  ;;  %v4769_v9 = vshll.u32 %v4729_v53, 8  ;;  %vm4753_vm9 = vcmp.lt.s32.totalorder %v4734_v60, 1 }
 0x613   :  { %v7734_v7 = vmin.u32 %v4683_v38, %v12512_v48  ;;  %vm4756_vm13 = vcmp.lt.s32.totalorder %v4734_v60, 4  ;;  %v4933_v0 = vshrl.u32 %v4932_v59, 23  ;;  %vm4755_vm15 = vcmp.lt.s32.totalorder %v4734_v60, 3 }
 0x614   :  { %v12526_v5 = vpop.eup %8300  ;;  %v4758_v32 = vsel %vm4756_vm13, %v4746_v55, 2102212464  ;;  %v4761_v56 = vsel %vm4753_vm9, %v4740_v13, %v4743_v34  ;;  %v4762_v23 = vsel %vm4756_vm13, %v4749_v45, 920167782  ;;  %v4737_v35 = vshrl.u32 %v14995_v49, %v4736_v1 }
 0x615   :  { %15231 = vst [vmem:[#allocation22_spill] sm:$0xff] %v12526_v5  ;;  %v4685_v57 = vclz %v7734_v7  ;;  %vm4754_vm0 = vcmp.lt.s32.totalorder %v4734_v60, 2  ;;  %v4763_v30 = vsel %vm4755_vm15, %v4746_v55, %v4762_v23  ;;  %v4486_v40 = vadd.s32 127, %v4485_v36 }
 0x616   :  { %v4764_v27 = vsel %vm4754_vm0, %v4761_v56, %v4763_v30  ;;  %v4765_v53 = vsel %vm4753_vm9, %v4743_v34, %v4746_v55  ;;  %v4766_v33 = vsel %vm4756_vm13, %v4752_v46, 1326507024  ;;  %v4757_v59 = vsel %vm4753_vm9, %v4737_v35, %v4740_v13 }
 0x617   :  { %v7735_v38 = vadd.s32 4294967294, %v4685_v57  ;;  %v4759_v5 = vsel %vm4755_vm15, %v4743_v34, %v4758_v32  ;;  %v4767_v43 = vsel %vm4755_vm15, %v4749_v45, %v4766_v33  ;;  %v7745_v1 = vadd.s32 4294967169, %v4933_v0 }
 0x618   :  { %v4768_v6 = vsel %vm4754_vm0, %v4765_v53, %v4767_v43  ;;  %v12534_v21 = vmul.u32.u64.low %v4769_v9, %v4764_v27  ;;  %v12535_v50 = vmul.u32.u64.high %v4769_v9, %v4764_v27, %v12534_v21  ;;  %v4483_v7 = vshrl.u32 %v4465_v51, %v4481_v11 }
 0x619   :  { %vm7736_vm14 = vcmp.lt.s32.totalorder %v7735_v38, 0  ;;  %v12538_v36 = vmul.u32.u64.low %v4769_v9, %v4768_v6  ;;  %v12539_v23 = vmul.u32.u64.high %v4769_v9, %v4768_v6, %v12538_v36  ;;  %v4487_v56 = vshll.u32 %v4486_v40, 23 }
 0x61a   :  { %v4760_v55 = vsel %vm4754_vm0, %v4757_v59, %v4759_v5  ;;  %v14945_v46 = vand.u32 2147483647, %v11900_v28  ;;  %v4939_v13 = vadd.s32 1, %v7745_v1  ;;  %8302 = vsinq.f32 %v12452_v44 }
 0x61b   :  { %v4393_v43 = vsel %vm12382_vm6, %v11784_v19, %v12482_v22  ;;  %v15232_v51 = vsel %vm12458_vm10, 0, %v12465_v63  ;;  %v4482_v6 = vshll.u32 %v12390_v61, %v12500_v10  ;;  %v4502_v60 = vadd.s32 3, %v4498_v54 }
 0x61c   :  { %v4606_v45 = vadd.s32 3, %v15232_v51  ;;  %v12554_v34 = vsel %vm7736_vm14, 0, %v7735_v38  ;;  %v4779_v11 = vadd.s32 1, %v12535_v50  ;;  %vm4940_vm12 = vcmp.gt.s32.totalorder %v4939_v13, 0 }
 0x61d   :  { %v4598_v44 = vsel %vm4515_vm8, %v4597_v17, %v12488_v2  ;;  %v4484_v37 = vor.u32 %v4483_v7, %v4482_v6  ;;  %v4776_v22 = vmul.u32 %v4769_v9, %v4760_v55  ;;  %vm4778_vm6 = vc.u32 %v12539_v23, %v12534_v21 }
 0x61e   :  { %v4488_v63 = vor.u32 4788187, %v4487_v56  ;;  %v4780_v0 = vsel %vm4778_vm6, %v4779_v11, %v12535_v50  ;;  %v4936_v54 = vand.u32 8388607, %v14945_v46  ;;  %v4941_v61 = vsel %vm4940_vm12, %v4939_v13, 0 }
 0x61f   :  { %8304 = vcosq.f32 %v4393_v43  ;;  %vm4619_vm11 = vcmp.lt.s32.totalorder %v11813_v26, 0  ;;  %v4693_v10 = vsub.s32 4294967266, %v12554_v34  ;;  %v4781_v5 = vadd.s32 %v4780_v0, %v4776_v22 }
 0x620   :  { %v4828_v17 = vand.u32 2139095040, %v11980_v58  ;;  %8306 = vsinq.f32 %v4393_v43  ;;  %v12568_v2 = vand.u32 3, %v4606_v45  ;;  %v12570_v9 = vand.u32 3, %v4502_v60 }
 0x621   :  { %v4943_v32 = vand.u32 31, %v4941_v61  ;;  %v12575_v50 = vsel %vm12458_vm10, %v11811_v41, %v4598_v44  ;;  %v4491_v57 = vcvt.s32.f32 %v4484_v37  ;;  %v4673_v35 = vadd.s32 %v12418_v4, %v12423_v47 }
 0x622   :  { %15233 = vst [vmem:[#allocation38_spill] sm:$0xff] %v12568_v2  ;;  %v4782_v30 = vadd.s32 536870912, %v4781_v5  ;;  %v4489_v40 = vand.u32 2147483647, %v4488_v63  ;;  %v4703_v27 = vsub.s32 4, %v12498_v15  ;;  %v4937_v53 = vor.u32 8388608, %v4936_v54 }
 0x623   :  { %v4944_v33 = vsub.s32 32, %v4943_v32  ;;  %v4689_v38 = vsub.s32 32, %v12554_v34  ;;  %v12581_v59 = vadd.s32 127, %v4693_v10  ;;  %v4829_v7 = vshrl.u32 %v4828_v17, 23 }
 0x624   :  { %v12583_v1 = vshrl.u32 %v4782_v30, 30  ;;  %v4946_v62 = vshll.u32 %v14995_v49, %v4943_v32  ;;  %v12589_v47 = vpop.eup %8302  ;;  %v4949_v13 = vshll.u32 %v14996_v16, %v4943_v32  ;;  %v4952_v43 = vshll.u32 %v15192_v12, %v4943_v32 }
 0x625   :  { %v4947_v36 = vshrl.u32 %v14996_v16, %v4944_v33  ;;  %v4950_v56 = vshrl.u32 %v15192_v12, %v4944_v33  ;;  %v4953_v4 = vshrl.u32 %v14998_v20, %v4944_v33  ;;  %v4956_v51 = vshrl.u32 %v14999_v29, %v4944_v33 }
 0x626   :  { %v4784_v55 = vshll.u32 %v12583_v1, 30  ;;  %v4942_v45 = vshrl.u32 %v4941_v61, 5  ;;  %v4955_v6 = vshll.u32 %v14998_v20, %v4943_v32  ;;  %v4958_v60 = vshll.u32 %v14999_v29, %v4943_v32 }
 0x627   :  { %v4959_v11 = vshrl.u32 %v15193_v18, %v4944_v33  ;;  %v4948_v37 = vor.u32 %v4947_v36, %v4946_v62  ;;  %v4951_v22 = vor.u32 %v4950_v56, %v4949_v13  ;;  %v4954_v63 = vor.u32 %v4953_v4, %v4952_v43 }
 0x628   :  { %v12598_v44 = vsub.s32 %v4781_v5, %v4784_v55  ;;  %v12600_v0 = vmul.f32 %v4491_v57, %v4489_v40  ;;  %v12605_v54 = vsel %vm4619_vm11, %v4703_v27, %v12498_v15  ;;  %v4957_v10 = vor.u32 %v4956_v51, %v4955_v6 }
 0x629   :  { %v12608_v17 = vpop.eup %8304  ;;  %v4691_v32 = vshrl.u32 %v4673_v35, %v4689_v38  ;;  %v4960_v5 = vor.u32 %v4959_v11, %v4958_v60  ;;  %v4977_v55 = vshll.u32 %v4937_v53, 8  ;;  %v15235_v57 = vand.u32 2147483647, %v11813_v26 }
 0x62a   :  { %15234 = vst [vmem:[#allocation32_spill] sm:$0xff] %v12608_v17  ;;  %v4787_v30 = vsub.s32 0, %v12598_v44  ;;  %v12611_v62 = vpop.eup %8306  ;;  %v4695_v15 = vshll.u32 %v12581_v59, 23  ;;  %vm4961_vm2 = vcmp.lt.s32.totalorder %v4942_v45, 1  ;;  %vm4964_vm8 = vcmp.lt.s32.totalorder %v4942_v45, 4 }
 0x62b   :  { %vm12615_vm7 = vcmp.le.f32.partialorder %v15235_v57, 0.7853982  ;;  %v7741_v27 = vadd.s32 4294967169, %v4829_v7  ;;  %v4945_v35 = vshrl.u32 %v14995_v49, %v4944_v33  ;;  %v4966_v38 = vsel %vm4964_vm8, %v4954_v63, 2102212464 }
 0x62c   :  { %v7738_v36 = vmin.u32 %v4787_v30, %v12598_v44  ;;  %v4969_v56 = vsel %vm4961_vm2, %v4948_v37, %v4951_v22  ;;  %vm4962_vm10 = vcmp.lt.s32.totalorder %v4942_v45, 2  ;;  %vm4963_vm3 = vcmp.lt.s32.totalorder %v4942_v45, 3 }
 0x62d   :  { %v4970_v53 = vsel %vm4964_vm8, %v4957_v10, 920167782  ;;  %v4973_v4 = vsel %vm4961_vm2, %v4951_v22, %v4954_v63  ;;  %v4965_v43 = vsel %vm4961_vm2, %v4945_v35, %v4948_v37  ;;  %v4974_v6 = vsel %vm4964_vm8, %v4960_v5, 1326507024 }
 0x62e   :  { %v4789_v13 = vclz %v7738_v36  ;;  %v4971_v51 = vsel %vm4963_vm3, %v4954_v63, %v4970_v53  ;;  %v4967_v60 = vsel %vm4963_vm3, %v4951_v22, %v4966_v38  ;;  %v4975_v11 = vsel %vm4963_vm3, %v4957_v10, %v4974_v6 }
 0x62f   :  { %v4972_v59 = vsel %vm4962_vm10, %v4969_v56, %v4971_v51  ;;  %v4835_v57 = vadd.s32 1, %v7741_v27  ;;  %v4976_v30 = vsel %vm4962_vm10, %v4973_v4, %v4975_v11  ;;  %v4690_v61 = vshll.u32 %v12512_v48, %v12554_v34 }
 0x630   :  { %v7739_v7 = vadd.s32 4294967294, %v4789_v13  ;;  %v12624_v46 = vmul.u32.u64.low %v4977_v55, %v4972_v59  ;;  %v12625_v33 = vmul.u32.u64.high %v4977_v55, %v4972_v59, %v12624_v46  ;;  %v4968_v37 = vsel %vm4962_vm10, %v4965_v43, %v4967_v60 }
 0x631   :  { %v12630_v2 = vmul.u32.u64.low %v4977_v55, %v4976_v30  ;;  %v12631_v36 = vmul.u32.u64.high %v4977_v55, %v4976_v30, %v12630_v2  ;;  %vm4836_vm9 = vcmp.gt.s32.totalorder %v4835_v57, 0  ;;  %v15238_v22 = vand.u32 2147483647, %v11980_v58 }
 0x632   :  { %vm7740_vm13 = vcmp.lt.s32.totalorder %v7739_v7, 0  ;;  %v4837_v10 = vsel %vm4836_vm9, %v4835_v57, 0  ;;  %8308 = vcosq.f32 %v12575_v50  ;;  %v4696_v5 = vor.u32 4788187, %v4695_v15 }
 0x633   :  { %v4832_v63 = vand.u32 8388607, %v15238_v22  ;;  %v12637_v27 = vsel %vm7740_vm13, 0, %v7739_v7  ;;  %v4839_v35 = vand.u32 31, %v4837_v10  ;;  %8310 = vsinq.f32 %v12575_v50 }
 0x634   :  { %v4692_v48 = vor.u32 %v4691_v32, %v4690_v61  ;;  %v4987_v2 = vadd.s32 1, %v12625_v33  ;;  %v4797_v45 = vsub.s32 4294967266, %v12637_v27  ;;  %v4984_v38 = vmul.u32 %v4977_v55, %v4968_v37 }
 0x635   :  { %vm4986_vm15 = vc.u32 %v12631_v36, %v12624_v46  ;;  %v4840_v56 = vsub.s32 32, %v4839_v35  ;;  %v4777_v53 = vadd.s32 %v12534_v21, %v12539_v23  ;;  %v4833_v61 = vor.u32 8388608, %v4832_v63 }
 0x636   :  { %v4988_v50 = vsel %vm4986_vm15, %v4987_v2, %v12625_v33  ;;  %v4697_v32 = vand.u32 2147483647, %v4696_v5  ;;  %v4699_v51 = vcvt.s32.f32 %v4692_v48  ;;  %v4842_v55 = vshll.u32 %v14995_v49, %v4839_v35 }
 0x637   :  { %v4989_v4 = vadd.s32 %v4988_v50, %v4984_v38  ;;  %v4843_v13 = vshrl.u32 %v14996_v16, %v4840_v56  ;;  %v4846_v43 = vshrl.u32 %v15192_v12, %v4840_v56  ;;  %v4845_v6 = vshll.u32 %v14996_v16, %v4839_v35 }
 0x638   :  { %v4849_v60 = vshrl.u32 %v14998_v20, %v4840_v56  ;;  %v4798_v59 = vadd.s32 127, %v4797_v45  ;;  %v4838_v57 = vshrl.u32 %v4837_v10, 5  ;;  %v4848_v21 = vshll.u32 %v15192_v12, %v4839_v35 }
 0x639   :  { %v4990_v11 = vadd.s32 536870912, %v4989_v4  ;;  %v4844_v23 = vor.u32 %v4843_v13, %v4842_v55  ;;  %v4847_v7 = vor.u32 %v4846_v43, %v4845_v6  ;;  %v4851_v30 = vshll.u32 %v14998_v20, %v4839_v35 }
 0x63a   :  { %v4852_v33 = vshrl.u32 %v14999_v29, %v4840_v56  ;;  %v12659_v37 = vmul.f32 %v4699_v51, %v4697_v32  ;;  %v4807_v22 = vsub.s32 4, %v12583_v1  ;;  %v4855_v5 = vshrl.u32 %v15193_v18, %v4840_v56 }
 0x63b   :  { %v12662_v63 = vshrl.u32 %v4990_v11, 30  ;;  %v4793_v48 = vsub.s32 32, %v12637_v27  ;;  %v4850_v2 = vor.u32 %v4849_v60, %v4848_v21  ;;  %v4854_v45 = vshll.u32 %v14999_v29, %v4839_v35 }
 0x63c   :  { %v4853_v10 = vor.u32 %v4852_v33, %v4851_v30  ;;  %v12667_v38 = vpop.eup %8308  ;;  %vm4857_vm0 = vcmp.lt.s32.totalorder %v4838_v57, 1  ;;  %v4873_v13 = vshll.u32 %v4833_v61, 8  ;;  %v5036_v32 = vand.u32 2139095040, %v12040_v14 }
 0x63d   :  { %15239 = vst [vmem:[#allocation11_spill] sm:$0xff] %v12667_v38  ;;  %v4992_v50 = vshll.u32 %v12662_v63, 30  ;;  %v12671_v43 = vpop.eup %8310  ;;  %vm4723_vm14 = vcmp.lt.s32.totalorder %v11817_v24, 0  ;;  %v4799_v51 = vshll.u32 %v4798_v59, 23  ;;  %v4856_v55 = vor.u32 %v4855_v5, %v4854_v45 }
 0x63e   :  { %15240 = vst [vmem:[#allocation29_spill] sm:$0xff] %v12671_v43  ;;  %vm4860_vm12 = vcmp.lt.s32.totalorder %v4838_v57, 4  ;;  %v4865_v6 = vsel %vm4857_vm0, %v4844_v23, %v4847_v7  ;;  %v4794_v35 = vshll.u32 %v12598_v44, %v12637_v27  ;;  %vm4859_vm6 = vcmp.lt.s32.totalorder %v4838_v57, 3 }
 0x63f   :  { %v12677_v60 = vsub.s32 %v4989_v4, %v4992_v50  ;;  %v4866_v11 = vsel %vm4860_vm12, %v4853_v10, 920167782  ;;  %v4795_v61 = vshrl.u32 %v4777_v53, %v4793_v48  ;;  %vm4858_vm2 = vcmp.lt.s32.totalorder %v4838_v57, 2 }
 0x640   :  { %v4862_v21 = vsel %vm4860_vm12, %v4850_v2, 2102212464  ;;  %v4867_v30 = vsel %vm4859_vm6, %v4850_v2, %v4866_v11  ;;  %v15241_v59 = vand.u32 2147483647, %v11817_v24  ;;  %v4841_v44 = vshrl.u32 %v14995_v49, %v4840_v56 }
 0x641   :  { %v4995_v5 = vsub.s32 0, %v12677_v60  ;;  %v4868_v27 = vsel %vm4858_vm2, %v4865_v6, %v4867_v30  ;;  %v4869_v4 = vsel %vm4857_vm0, %v4847_v7, %v4850_v2  ;;  %v4800_v53 = vor.u32 4788187, %v4799_v51 }
 0x642   :  { %vm12684_vm8 = vcmp.le.f32.partialorder %v15241_v59, 0.7853982  ;;  %v4870_v48 = vsel %vm4860_vm12, %v4856_v55, 1326507024  ;;  %v12693_v45 = vmul.u32.u64.low %v4873_v13, %v4868_v27  ;;  %v12694_v50 = vmul.u32.u64.high %v4873_v13, %v4868_v27, %v12693_v45 }
 0x643   :  { %v7746_v11 = vmin.u32 %v4995_v5, %v12677_v60  ;;  %v4861_v59 = vsel %vm4857_vm0, %v4841_v44, %v4844_v23  ;;  %v4863_v34 = vsel %vm4859_vm6, %v4847_v7, %v4862_v21  ;;  %v4871_v15 = vsel %vm4859_vm6, %v4853_v10, %v4870_v48 }
 0x644   :  { %v4796_v56 = vor.u32 %v4795_v61, %v4794_v35  ;;  %vm4931_vm10 = vcmp.lt.s32.totalorder %v11900_v28, 0  ;;  %v4872_v2 = vsel %vm4858_vm2, %v4869_v4, %v4871_v15  ;;  %v14947_v51 = vand.u32 2147483647, %v12040_v14 }
 0x645   :  { %v5037_v55 = vshrl.u32 %v5036_v32, 23  ;;  %v15244_v6 = vxor.u32 2147483648, %v12600_v0  ;;  %v4997_v5 = vclz %v7746_v11  ;;  %v15245_v7 = vsel %vm12615_vm7, 0, %v12605_v54 }
 0x646   :  { %v12709_v23 = vmul.u32.u64.low %v4873_v13, %v4872_v2  ;;  %v12710_v44 = vmul.u32.u64.high %v4873_v13, %v4872_v2, %v12709_v23  ;;  %v4710_v10 = vadd.s32 3, %v15245_v7  ;;  %v4864_v15 = vsel %vm4858_vm2, %v4861_v59, %v4863_v34 }
 0x647   :  { %v4494_v30 = vsel %vm4411_vm4, %v15244_v6, %v12600_v0  ;;  %v4883_v35 = vadd.s32 1, %v12694_v50  ;;  %v7749_v32 = vadd.s32 4294967169, %v5037_v55  ;;  %v4701_v61 = vxor.u32 2147483648, %v12659_v37 }
 0x648   :  { %v4801_v21 = vand.u32 2147483647, %v4800_v53  ;;  %v4808_v0 = vsel %vm4723_vm14, %v4807_v22, %v12583_v1  ;;  %v15246_v27 = vand.u32 2147483647, %v11900_v28  ;;  %v7747_v54 = vadd.s32 4294967294, %v4997_v5 }
 0x649   :  { %v4497_v34 = vsel %vm12469_vm1, %v11788_v31, %v4494_v30  ;;  %v4803_v57 = vcvt.s32.f32 %v4796_v56  ;;  %v5040_v48 = vand.u32 8388607, %v14947_v51  ;;  %v5043_v53 = vadd.s32 1, %v7749_v32 }
 0x64a   :  { %vm12724_vm4 = vcmp.le.f32.partialorder %v15246_v27, 0.7853982  ;;  %vm7748_vm3 = vcmp.lt.s32.totalorder %v7747_v54, 0  ;;  %v5015_v11 = vsub.s32 4, %v12662_v63  ;;  %v4880_v1 = vmul.u32 %v4873_v13, %v4864_v15 }
 0x64b   :  { %vm4882_vm9 = vc.u32 %v12710_v44, %v12693_v45  ;;  %v4810_v22 = vsel %vm12684_vm8, 0, %v4808_v0  ;;  %v12738_v59 = vsel %vm7748_vm3, 0, %v7747_v54  ;;  %vm5044_vm1 = vcmp.gt.s32.totalorder %v5043_v53, 0 }
 0x64c   :  { %v4884_v25 = vsel %vm4882_vm9, %v4883_v35, %v12694_v50  ;;  %v4702_v56 = vsel %vm4619_vm11, %v4701_v61, %v12659_v37  ;;  %v12744_v2 = vmul.f32 %v4803_v57, %v4801_v21  ;;  %v5140_v13 = vand.u32 2139095040, %v12187_v42 }
 0x64d   :  { %v4885_v55 = vadd.s32 %v4884_v25, %v4880_v1  ;;  %v12747_v6 = vand.u32 3, %v4710_v10  ;;  %v5041_v30 = vor.u32 8388608, %v5040_v48  ;;  %v5045_v5 = vsel %vm5044_vm1, %v5043_v53, 0 }
 0x64e   :  { %v14948_v23 = vand.u32 2147483647, %v12187_v42  ;;  %8312 = vcosq.f32 %v4497_v34  ;;  %v5005_v7 = vsub.s32 4294967266, %v12738_v59  ;;  %v12754_v50 = vsel %vm4931_vm10, %v5015_v11, %v12662_v63 }
 0x64f   :  { %v4886_v37 = vadd.s32 536870912, %v4885_v55  ;;  %8314 = vsinq.f32 %v4497_v34  ;;  %v12759_v15 = vsel %vm12615_vm7, %v11813_v26, %v4702_v56  ;;  %v12761_v10 = vadd.s32 3, %v4810_v22 }
 0x650   :  { %v5047_v35 = vand.u32 31, %v5045_v5  ;;  %v4985_v61 = vadd.s32 %v12624_v46, %v12631_v36  ;;  %v5141_v0 = vshrl.u32 %v5140_v13, 23  ;;  %v12771_v54 = vshll.u32 %v5041_v30, 8 }
 0x651   :  { %v12766_v21 = vshrl.u32 %v4886_v37, 30  ;;  %v12775_v40 = vand.u32 8388607, %v14948_v23  ;;  %v5001_v34 = vsub.s32 32, %v12738_v59  ;;  %v5006_v57 = vadd.s32 127, %v5005_v7 }
 0x652   :  { %v5048_v27 = vsub.s32 32, %v5047_v35  ;;  %v5050_v46 = vshll.u32 %v14995_v49, %v5047_v35  ;;  %v5053_v53 = vshll.u32 %v14996_v16, %v5047_v35  ;;  %v5046_v25 = vshrl.u32 %v5045_v5, 5 }
 0x653   :  { %v4888_v48 = vshll.u32 %v12766_v21, 30  ;;  %v5056_v56 = vshll.u32 %v15192_v12, %v5047_v35  ;;  %v7753_v13 = vadd.s32 4294967169, %v5141_v0  ;;  %v5002_v30 = vshll.u32 %v12677_v60, %v12738_v59 }
 0x654   :  { %v5051_v36 = vshrl.u32 %v14996_v16, %v5048_v27  ;;  %v5054_v11 = vshrl.u32 %v15192_v12, %v5048_v27  ;;  %v5057_v1 = vshrl.u32 %v14998_v20, %v5048_v27  ;;  %v4881_v7 = vadd.s32 %v12693_v45, %v12710_v44 }
 0x655   :  { %v12784_v22 = vsub.s32 %v4885_v55, %v4888_v48  ;;  %v5059_v32 = vshll.u32 %v14998_v20, %v5047_v35  ;;  %v5060_v55 = vshrl.u32 %v14999_v29, %v5048_v27  ;;  %v5003_v48 = vshrl.u32 %v4985_v61, %v5001_v34 }
 0x656   :  { %v5052_v37 = vor.u32 %v5051_v36, %v5050_v46  ;;  %v5055_v51 = vor.u32 %v5054_v11, %v5053_v53  ;;  %v5058_v63 = vor.u32 %v5057_v1, %v5056_v56  ;;  %v5007_v5 = vshll.u32 %v5006_v57, 23 }
 0x657   :  { %v4891_v23 = vsub.s32 0, %v12784_v22  ;;  %v5062_v38 = vshll.u32 %v14999_v29, %v5047_v35  ;;  %v5063_v0 = vshrl.u32 %v15193_v18, %v5048_v27  ;;  %v5061_v45 = vor.u32 %v5060_v55, %v5059_v32 }
 0x658   :  { %v12796_v43 = vpop.eup %8312  ;;  %vm5065_vm11 = vcmp.lt.s32.totalorder %v5046_v25, 1  ;;  %v5147_v44 = vadd.s32 1, %v7753_v13  ;;  %v5049_v46 = vshrl.u32 %v14995_v49, %v5048_v27  ;;  %vm5068_vm7 = vcmp.lt.s32.totalorder %v5046_v25, 4 }
 0x659   :  { %v7742_v60 = vmin.u32 %v4891_v23, %v12784_v22  ;;  %v12799_v59 = vpop.eup %8314  ;;  %v5064_v36 = vor.u32 %v5063_v0, %v5062_v38  ;;  %v5073_v61 = vsel %vm5065_vm11, %v5052_v37, %v5055_v51  ;;  %vm5067_vm13 = vcmp.lt.s32.totalorder %v5046_v25, 3 }
 0x65a   :  { %v5070_v35 = vsel %vm5068_vm7, %v5058_v63, 2102212464  ;;  %v5074_v57 = vsel %vm5068_vm7, %v5061_v45, 920167782  ;;  %v5004_v53 = vor.u32 %v5003_v48, %v5002_v30  ;;  %v5008_v11 = vor.u32 4788187, %v5007_v5 }
 0x65b   :  { %v4893_v34 = vclz %v7742_v60  ;;  %vm5066_vm15 = vcmp.lt.s32.totalorder %v5046_v25, 2  ;;  %v5075_v1 = vsel %vm5067_vm13, %v5058_v63, %v5074_v57  ;;  %v5069_v32 = vsel %vm5065_vm11, %v5049_v46, %v5052_v37 }
 0x65c   :  { %v5076_v56 = vsel %vm5066_vm15, %v5073_v61, %v5075_v1  ;;  %v5077_v13 = vsel %vm5065_vm11, %v5055_v51, %v5058_v63  ;;  %v5071_v27 = vsel %vm5067_vm13, %v5055_v51, %v5070_v35  ;;  %v5078_v38 = vsel %vm5068_vm7, %v5064_v36, 1326507024 }
 0x65d   :  { %v7743_v23 = vadd.s32 4294967294, %v4893_v34  ;;  %v12807_v55 = vmul.u32.u64.low %v12771_v54, %v5076_v56  ;;  %v12808_v0 = vmul.u32.u64.high %v12771_v54, %v5076_v56, %v12807_v55  ;;  %v5079_v60 = vsel %vm5067_vm13, %v5061_v45, %v5078_v38 }
 0x65e   :  { %v5145_v30 = vor.u32 8388608, %v12775_v40  ;;  %vm5148_vm12 = vcmp.gt.s32.totalorder %v5147_v44, 0  ;;  %v5009_v48 = vand.u32 2147483647, %v5008_v11  ;;  %v5080_v37 = vsel %vm5066_vm15, %v5077_v13, %v5079_v60 }
 0x65f   :  { %vm7744_vm0 = vcmp.lt.s32.totalorder %v7743_v23, 0  ;;  %v5149_v46 = vsel %vm5148_vm12, %v5147_v44, 0  ;;  %v5072_v51 = vsel %vm5066_vm15, %v5069_v32, %v5071_v27  ;;  %v5011_v36 = vcvt.s32.f32 %v5004_v53 }
 0x660   :  { %v4896_v5 = vsel %vm7744_vm0, 0, %v7743_v23  ;;  %v12814_v63 = vshrl.u32 %v5149_v46, 5  ;;  %v12817_v35 = vmul.u32.u64.low %v12771_v54, %v5080_v37  ;;  %v12818_v57 = vmul.u32.u64.high %v12771_v54, %v5080_v37, %v12817_v35 }
 0x661   :  { %v4897_v61 = vsub.s32 32, %v4896_v5  ;;  %v4901_v34 = vsub.s32 4294967266, %v4896_v5  ;;  %v5151_v45 = vand.u32 31, %v5149_v46  ;;  %v5091_v11 = vadd.s32 1, %v12808_v0 }
 0x662   :  { %v12822_v23 = vshll.u32 %v5145_v30, 8  ;;  %v12824_v44 = vmul.f32 %v5011_v36, %v5009_v48  ;;  %v5088_v25 = vmul.u32 %v12771_v54, %v5072_v51  ;;  %v5348_v56 = vand.u32 2139095040, %v12242_v52 }
 0x663   :  { %v4902_v1 = vadd.s32 127, %v4901_v34  ;;  %v5152_v32 = vsub.s32 32, %v5151_v45  ;;  %v4898_v53 = vshll.u32 %v12784_v22, %v4896_v5  ;;  %v4899_v13 = vshrl.u32 %v4881_v7, %v4897_v61 }
 0x664   :  { %v5154_v27 = vshll.u32 %v14995_v49, %v5151_v45  ;;  %vm5169_vm6 = vcmp.lt.s32.totalorder %v12814_v63, 1  ;;  %vm5090_vm2 = vc.u32 %v12818_v57, %v12807_v55  ;;  %v5157_v30 = vshll.u32 %v14996_v16, %v5151_v45 }
 0x665   :  { %v4903_v38 = vshll.u32 %v4902_v1, 23  ;;  %v5155_v60 = vshrl.u32 %v14996_v16, %v5152_v32  ;;  %v5092_v54 = vsel %vm5090_vm2, %v5091_v11, %v12808_v0  ;;  %v5158_v48 = vshrl.u32 %v15192_v12, %v5152_v32 }
 0x666   :  { %v5160_v37 = vshll.u32 %v15192_v12, %v5151_v45  ;;  %v5163_v22 = vshll.u32 %v14998_v20, %v5151_v45  ;;  %v5093_v7 = vadd.s32 %v5092_v54, %v5088_v25  ;;  %v5161_v46 = vshrl.u32 %v14998_v20, %v5152_v32 }
 0x667   :  { %v5156_v5 = vor.u32 %v5155_v60, %v5154_v27  ;;  %v5164_v61 = vshrl.u32 %v14999_v29, %v5152_v32  ;;  %vm4827_vm3 = vcmp.lt.s32.totalorder %v11980_v58, 0  ;;  %v5159_v34 = vor.u32 %v5158_v48, %v5157_v30 }
 0x668   :  { %v5166_v51 = vshll.u32 %v14999_v29, %v5151_v45  ;;  %v5167_v36 = vshrl.u32 %v15193_v18, %v5152_v32  ;;  %vm5170_vm9 = vcmp.lt.s32.totalorder %v12814_v63, 2  ;;  %v4904_v0 = vor.u32 4788187, %v4903_v38 }
 0x669   :  { %v5094_v35 = vadd.s32 536870912, %v5093_v7  ;;  %v5162_v1 = vor.u32 %v5161_v46, %v5160_v37  ;;  %v5165_v11 = vor.u32 %v5164_v61, %v5163_v22  ;;  %v5153_v25 = vshrl.u32 %v14995_v49, %v5152_v32 }
 0x66a   :  { %v5168_v27 = vor.u32 %v5167_v36, %v5166_v51  ;;  %vm5172_vm1 = vcmp.lt.s32.totalorder %v12814_v63, 4  ;;  %v5177_v60 = vsel %vm5169_vm6, %v5156_v5, %v5159_v34  ;;  %v15249_v30 = vand.u32 2147483647, %v11980_v58 }
 0x66b   :  { %v12855_v54 = vshrl.u32 %v5094_v35, 30  ;;  %vm5171_vm7 = vcmp.lt.s32.totalorder %v12814_v63, 3  ;;  %v5174_v38 = vsel %vm5172_vm1, %v5162_v1, 2102212464  ;;  %v5178_v48 = vsel %vm5172_vm1, %v5165_v11, 920167782 }
 0x66c   :  { %vm12851_vm11 = vcmp.le.f32.partialorder %v15249_v30, 0.7853982  ;;  %v4900_v37 = vor.u32 %v4899_v13, %v4898_v53  ;;  %v5179_v32 = vsel %vm5171_vm7, %v5162_v1, %v5178_v48  ;;  %v5181_v22 = vsel %vm5169_vm6, %v5159_v34, %v5162_v1 }
 0x66d   :  { %v5182_v46 = vsel %vm5172_vm1, %v5168_v27, 1326507024  ;;  %v4905_v61 = vand.u32 2147483647, %v4904_v0  ;;  %v5096_v51 = vshll.u32 %v12855_v54, 30  ;;  %v5173_v36 = vsel %vm5169_vm6, %v5153_v25, %v5156_v5 }
 0x66e   :  { %v5180_v35 = vsel %vm5170_vm9, %v5177_v60, %v5179_v32  ;;  %v5175_v30 = vsel %vm5171_vm7, %v5159_v34, %v5174_v38  ;;  %v5183_v40 = vsel %vm5171_vm7, %v5165_v11, %v5182_v46  ;;  %8316 = vcosq.f32 %v12759_v15 }
 0x66f   :  { %v12866_v41 = vmul.u32.u64.low %v12822_v23, %v5180_v35  ;;  %v12867_v17 = vmul.u32.u64.high %v12822_v23, %v5180_v35, %v12866_v41  ;;  %v5013_v53 = vxor.u32 2147483648, %v12824_v44  ;;  %v12872_v13 = vsub.s32 %v5093_v7, %v5096_v51 }
 0x670   :  { %v5184_v0 = vsel %vm5170_vm9, %v5181_v22, %v5183_v40  ;;  %v15252_v5 = vxor.u32 2147483648, %v12744_v2  ;;  %v4907_v1 = vcvt.s32.f32 %v4900_v37  ;;  %v15253_v27 = vsel %vm12724_vm4, 0, %v12754_v50 }
 0x671   :  { %v12882_v11 = vmul.u32.u64.low %v12822_v23, %v5184_v0  ;;  %v12883_v25 = vmul.u32.u64.high %v12822_v23, %v5184_v0, %v12882_v11  ;;  %v5022_v7 = vadd.s32 3, %v15253_v27  ;;  %v15254_v60 = vsub.s32 4, %v12766_v21 }
 0x672   :  { %v4806_v34 = vsel %vm4723_vm14, %v15252_v5, %v12744_v2  ;;  %v5099_v38 = vsub.s32 0, %v12872_v13  ;;  %v5176_v2 = vsel %vm5170_vm9, %v5173_v36, %v5175_v30  ;;  %v12898_v48 = vand.u32 3, %v12761_v10 }
 0x673   :  { %v4912_v40 = vsel %vm4827_vm3, %v15254_v60, %v12766_v21  ;;  %v4908_v37 = vmul.f32 %v4907_v1, %v4905_v61  ;;  %v5195_v32 = vadd.s32 1, %v12867_v17  ;;  %v5349_v22 = vshrl.u32 %v5348_v56, 23 }
 0x674   :  { %15255 = vst [vmem:[#allocation16_spill] sm:$0xff] %v12898_v48  ;;  %8318 = vsinq.f32 %v12759_v15  ;;  %v4809_v50 = vsel %vm12684_vm8, %v11817_v24, %v4806_v34  ;;  %v5014_v21 = vsel %vm4931_vm10, %v5013_v53, %v12824_v44  ;;  %v7750_v63 = vmin.u32 %v5099_v38, %v12872_v13 }
 0x675   :  { %v4914_v10 = vsel %vm12851_vm11, 0, %v4912_v40  ;;  %v5192_v46 = vmul.u32 %v12822_v23, %v5176_v2  ;;  %vm5194_vm14 = vc.u32 %v12883_v25, %v12866_v41  ;;  %v7761_v56 = vadd.s32 4294967169, %v5349_v22 }
 0x676   :  { %v12914_v15 = vand.u32 3, %v5022_v7  ;;  %vm5035_vm13 = vcmp.lt.s32.totalorder %v12040_v14, 0  ;;  %v5101_v33 = vclz %v7750_v63  ;;  %v5196_v61 = vsel %vm5194_vm14, %v5195_v32, %v12867_v17 }
 0x677   :  { %v5017_v44 = vsel %vm12724_vm4, %v11900_v28, %v5014_v21  ;;  %v4909_v51 = vxor.u32 2147483648, %v4908_v37  ;;  %v5197_v36 = vadd.s32 %v5196_v61, %v5192_v46  ;;  %v5355_v35 = vadd.s32 1, %v7761_v56 }
 0x678   :  { %15256 = vst [vmem:[#allocation23_spill] sm:$0xff] %v12914_v15  ;;  %8320 = vcosq.f32 %v4809_v50  ;;  %v4918_v23 = vadd.s32 3, %v4914_v10  ;;  %v7751_v30 = vadd.s32 4294967294, %v5101_v33  ;;  %v5244_v53 = vand.u32 2139095040, %v12374_v39  ;;  %v12923_v34 = vpop.eup %8316 }
 0x679   :  { %8322 = vsinq.f32 %v4809_v50  ;;  %v5198_v0 = vadd.s32 536870912, %v5197_v36  ;;  %v14954_v5 = vand.u32 2147483647, %v12242_v52  ;;  %vm5356_vm8 = vcmp.gt.s32.totalorder %v5355_v35, 0 }
 0x67a   :  { %8324 = vcosq.f32 %v5017_v44  ;;  %vm7752_vm10 = vcmp.lt.s32.totalorder %v7751_v30, 0  ;;  %v5119_v17 = vsub.s32 4, %v12855_v54  ;;  %v5357_v4 = vsel %vm5356_vm8, %v5355_v35, 0 }
 0x67b   :  { %v4910_v1 = vsel %vm4827_vm3, %v4909_v51, %v4908_v37  ;;  %v5104_v11 = vsel %vm7752_vm10, 0, %v7751_v30  ;;  %v12928_v27 = vshrl.u32 %v5198_v0, 30  ;;  %v5359_v7 = vand.u32 31, %v5357_v4 }
 0x67c   :  { %8326 = vsinq.f32 %v5017_v44  ;;  %v12930_v60 = vand.u32 3, %v4918_v23  ;;  %v5109_v40 = vsub.s32 4294967266, %v5104_v11  ;;  %v5245_v38 = vshrl.u32 %v5244_v53, 23 }
 0x67d   :  { %v5089_v2 = vadd.s32 %v12807_v55, %v12818_v57  ;;  %v5105_v32 = vsub.s32 32, %v5104_v11  ;;  %v5200_v22 = vshll.u32 %v12928_v27, 30  ;;  %v5360_v50 = vsub.s32 32, %v5359_v7 }
 0x67e   :  { %v12935_v21 = vpop.eup %8318  ;;  %v12940_v37 = vsel %vm12851_vm11, %v11980_v58, %v4910_v1  ;;  %v5110_v63 = vadd.s32 127, %v5109_v40  ;;  %v12945_v10 = vsel %vm5035_vm13, %v5119_v17, %v12855_v54  ;;  %v5352_v55 = vand.u32 8388607, %v14954_v5 }
 0x67f   :  { %15257 = vst [vmem:[#allocation12_spill] sm:$0xff] %v12945_v10  ;;  %v5193_v57 = vadd.s32 %v12866_v41, %v12883_v25  ;;  %v12951_v46 = vsub.s32 %v5197_v36, %v5200_v22  ;;  %v5363_v56 = vshrl.u32 %v14996_v16, %v5360_v50  ;;  %v12955_v33 = vshrl.u32 %v5357_v4, 5 }
 0x680   :  { %v5362_v61 = vshll.u32 %v14995_v49, %v5359_v7  ;;  %v5366_v44 = vshrl.u32 %v15192_v12, %v5360_v50  ;;  %v7757_v54 = vadd.s32 4294967169, %v5245_v38  ;;  %v5107_v51 = vshrl.u32 %v5089_v2, %v5105_v32 }
 0x681   :  { %v5203_v35 = vsub.s32 0, %v12951_v46  ;;  %v5365_v23 = vshll.u32 %v14996_v16, %v5359_v7  ;;  %v5369_v41 = vshrl.u32 %v14998_v20, %v5360_v50  ;;  %v5106_v36 = vshll.u32 %v12872_v13, %v5104_v11 }
 0x682   :  { %v12962_v25 = vpop.eup %8320  ;;  %v5111_v30 = vshll.u32 %v5110_v63, 23  ;;  %v5364_v53 = vor.u32 %v5363_v56, %v5362_v61  ;;  %v5368_v0 = vshll.u32 %v15192_v12, %v5359_v7  ;;  %v5371_v40 = vshll.u32 %v14998_v20, %v5359_v7 }
 0x683   :  { %15258 = vst [vmem:[#allocation37_spill] sm:$0xff] %v12962_v25  ;;  %v12966_v17 = vpop.eup %8322  ;;  %v7754_v4 = vmin.u32 %v5203_v35, %v12951_v46  ;;  %v5367_v1 = vor.u32 %v5366_v44, %v5365_v23  ;;  %v5372_v38 = vshrl.u32 %v14999_v29, %v5360_v50  ;;  %v5353_v32 = vor.u32 8388608, %v5352_v55 }
 0x684   :  { %15259 = vst [vmem:[#allocation13_spill] sm:$0xff] %v12966_v17  ;;  %v12971_v2 = vpop.eup %8324  ;;  %v5370_v22 = vor.u32 %v5369_v41, %v5368_v0  ;;  %v5374_v5 = vshll.u32 %v14999_v29, %v5359_v7  ;;  %v5375_v13 = vshrl.u32 %v15193_v18, %v5360_v50  ;;  %v5108_v11 = vor.u32 %v5107_v51, %v5106_v36 }
 0x685   :  { %15260 = vst [vmem:[#allocation15_spill] sm:$0xff] %v12971_v2  ;;  %v5205_v63 = vclz %v7754_v4  ;;  %v5373_v56 = vor.u32 %v5372_v38, %v5371_v40  ;;  %v5251_v61 = vadd.s32 1, %v7757_v54  ;;  %v5112_v35 = vor.u32 4788187, %v5111_v30 }
 0x686   :  { %v12975_v45 = vpop.eup %8326  ;;  %v5376_v44 = vor.u32 %v5375_v13, %v5374_v5  ;;  %vm5377_vm4 = vcmp.lt.s32.totalorder %v12955_v33, 1  ;;  %vm5380_vm15 = vcmp.lt.s32.totalorder %v12955_v33, 4  ;;  %vm5379_vm0 = vcmp.lt.s32.totalorder %v12955_v33, 3 }
 0x687   :  { %15261 = vst [vmem:[#allocation39_spill] sm:$0xff] %v12975_v45  ;;  %v7755_v23 = vadd.s32 4294967294, %v5205_v63  ;;  %v5385_v7 = vsel %vm5377_vm4, %v5364_v53, %v5367_v1  ;;  %v5386_v55 = vsel %vm5380_vm15, %v5373_v56, 920167782  ;;  %vm5139_vm12 = vcmp.lt.s32.totalorder %v12187_v42, 0 }
 0x688   :  { %v5361_v51 = vshrl.u32 %v14995_v49, %v5360_v50  ;;  %vm5378_vm6 = vcmp.lt.s32.totalorder %v12955_v33, 2  ;;  %v5382_v54 = vsel %vm5380_vm15, %v5370_v22, 2102212464  ;;  %v5387_v5 = vsel %vm5379_vm0, %v5370_v22, %v5386_v55 }
 0x689   :  { %vm7756_vm2 = vcmp.lt.s32.totalorder %v7755_v23, 0  ;;  %v5388_v41 = vsel %vm5378_vm6, %v5385_v7, %v5387_v5  ;;  %v5389_v36 = vsel %vm5377_vm4, %v5367_v1, %v5370_v22  ;;  %v5390_v30 = vsel %vm5380_vm15, %v5376_v44, 1326507024 }
 0x68a   :  { %v5113_v0 = vand.u32 2147483647, %v5112_v35  ;;  %v5208_v4 = vsel %vm7756_vm2, 0, %v7755_v23  ;;  %v5391_v40 = vsel %vm5379_vm0, %v5373_v56, %v5390_v30  ;;  %v5393_v50 = vshll.u32 %v5353_v32, 8 }
 0x68b   :  { %v5115_v38 = vcvt.s32.f32 %v5108_v11  ;;  %v5209_v13 = vsub.s32 32, %v5208_v4  ;;  %v5213_v63 = vsub.s32 4294967266, %v5208_v4  ;;  %v5381_v55 = vsel %vm5377_vm4, %v5361_v51, %v5364_v53 }
 0x68c   :  { %v5383_v28 = vsel %vm5379_vm0, %v5367_v1, %v5382_v54  ;;  %v5392_v7 = vsel %vm5378_vm6, %v5389_v36, %v5391_v40  ;;  %v12999_v22 = vmul.u32.u64.low %v5393_v50, %v5388_v41  ;;  %v13000_v44 = vmul.u32.u64.high %v5393_v50, %v5388_v41, %v12999_v22 }
 0x68d   :  { %v5211_v35 = vshrl.u32 %v5193_v57, %v5209_v13  ;;  %v5214_v23 = vadd.s32 127, %v5213_v63  ;;  %v5223_v32 = vsub.s32 4, %v12928_v27  ;;  %vm5252_vm3 = vcmp.gt.s32.totalorder %v5251_v61, 0 }
 0x68e   :  { %v5116_v11 = vmul.f32 %v5115_v38, %v5113_v0  ;;  %v13004_v56 = vmul.u32.u64.low %v5393_v50, %v5392_v7  ;;  %v13005_v5 = vmul.u32.u64.high %v5393_v50, %v5392_v7, %v13004_v56  ;;  %v5253_v53 = vsel %vm5252_vm3, %v5251_v61, 0 }
 0x68f   :  { %v15262_v51 = vand.u32 2147483647, %v12187_v42  ;;  %v5210_v54 = vshll.u32 %v12951_v46, %v5208_v4  ;;  %v5215_v41 = vshll.u32 %v5214_v23, 23  ;;  %v5384_v57 = vsel %vm5378_vm6, %v5381_v55, %v5383_v28 }
 0x690   :  { %v5255_v36 = vand.u32 31, %v5253_v53  ;;  %8328 = vcosq.f32 %v12940_v37  ;;  %v5403_v30 = vadd.s32 1, %v13000_v44  ;;  %v15265_v0 = vand.u32 2147483647, %v12374_v39 }
 0x691   :  { %vm13009_vm9 = vcmp.le.f32.partialorder %v15262_v51, 0.7853982  ;;  %v5452_v40 = vand.u32 2139095040, %v12475_v3  ;;  %v5212_v38 = vor.u32 %v5211_v35, %v5210_v54  ;;  %v5216_v13 = vor.u32 4788187, %v5215_v41 }
 0x692   :  { %v5248_v61 = vand.u32 8388607, %v15265_v0  ;;  %v13024_v46 = vsel %vm5139_vm12, %v5223_v32, %v12928_v27  ;;  %v5256_v4 = vsub.s32 32, %v5255_v36  ;;  %v5117_v33 = vxor.u32 2147483648, %v5116_v11 }
 0x693   :  { %v5400_v28 = vmul.u32 %v5393_v50, %v5384_v57  ;;  %vm5402_vm1 = vc.u32 %v13005_v5, %v12999_v22  ;;  %v5254_v63 = vshrl.u32 %v5253_v53, 5  ;;  %v5217_v55 = vand.u32 2147483647, %v5216_v13 }
 0x694   :  { %v5404_v7 = vsel %vm5402_vm1, %v5403_v30, %v13000_v44  ;;  %v5258_v23 = vshll.u32 %v14995_v49, %v5255_v36  ;;  %v5259_v35 = vshrl.u32 %v14996_v16, %v5256_v4  ;;  %v5261_v51 = vshll.u32 %v14996_v16, %v5255_v36 }
 0x695   :  { %v5405_v56 = vadd.s32 %v5404_v7, %v5400_v28  ;;  %v5262_v27 = vshrl.u32 %v15192_v12, %v5256_v4  ;;  %v5265_v32 = vshrl.u32 %v14998_v20, %v5256_v4  ;;  %v5219_v54 = vcvt.s32.f32 %v5212_v38 }
 0x696   :  { %v5264_v50 = vshll.u32 %v15192_v12, %v5255_v36  ;;  %v5267_v41 = vshll.u32 %v14998_v20, %v5255_v36  ;;  %v5268_v53 = vshrl.u32 %v14999_v29, %v5256_v4  ;;  %v5260_v44 = vor.u32 %v5259_v35, %v5258_v23 }
 0x697   :  { %v5406_v57 = vadd.s32 536870912, %v5405_v56  ;;  %v5263_v30 = vor.u32 %v5262_v27, %v5261_v51  ;;  %v5271_v0 = vshrl.u32 %v15193_v18, %v5256_v4  ;;  %v5220_v13 = vmul.f32 %v5219_v54, %v5217_v55 }
 0x698   :  { %v5266_v28 = vor.u32 %v5265_v32, %v5264_v50  ;;  %v5269_v7 = vor.u32 %v5268_v53, %v5267_v41  ;;  %v5270_v2 = vshll.u32 %v14999_v29, %v5255_v36  ;;  %v15266_v15 = vand.u32 2147483647, %v12040_v14 }
 0x699   :  { %v15267_v38 = vmov 0  ;;  %v5226_v45 = vsel %vm13009_vm9, 0, %v13024_v46  ;;  %v5407_v25 = vshrl.u32 %v5406_v57, 30  ;;  %v5249_v23 = vor.u32 8388608, %v5248_v61 }
 0x69a   :  { %vm13041_vm11 = vcmp.le.f32.partialorder %v15266_v15, 0.7853982  ;;  %v5118_v55 = vsel %vm5035_vm13, %v5117_v33, %v5116_v11  ;;  %v5272_v51 = vor.u32 %v5271_v0, %v5270_v2  ;;  %vm5273_vm7 = vcmp.lt.s32.totalorder %v5254_v63, 1  ;;  %v13051_v27 = vpop.eup %8328 }
 0x69b   :  { %v15268_v38 = vsel %vm13041_vm11, 4294967295, %v15267_v38  ;;  %v5453_v36 = vshrl.u32 %v5452_v40, 23  ;;  %v5408_v15 = vshll.u32 %v5407_v25, 30  ;;  %v5257_v32 = vshrl.u32 %v14995_v49, %v5256_v4 }
 0x69c   :  { %15269 = vst [vmem:[#allocation40_spill] sm:$0xff] %v15268_v38  ;;  %vm5276_vm14 = vcmp.lt.s32.totalorder %v5254_v63, 4  ;;  %v5281_v54 = vsel %vm5273_vm7, %v5260_v44, %v5263_v30  ;;  %v5221_v50 = vxor.u32 2147483648, %v5220_v13  ;;  %vm5275_vm8 = vcmp.lt.s32.totalorder %v5254_v63, 3 }
 0x69d   :  { %v5278_v46 = vsel %vm5276_vm14, %v5266_v28, 2102212464  ;;  %v5282_v61 = vsel %vm5276_vm14, %v5269_v7, 920167782  ;;  %v13055_v41 = vsub.s32 %v5405_v56, %v5408_v15  ;;  %vm5274_vm10 = vcmp.lt.s32.totalorder %v5254_v63, 2 }
 0x69e   :  { %v5283_v53 = vsel %vm5275_vm8, %v5266_v28, %v5282_v61  ;;  %v5285_v2 = vsel %vm5273_vm7, %v5263_v30, %v5266_v28  ;;  %vm5347_vm13 = vcmp.lt.s32.totalorder %v12242_v52, 0  ;;  %v5277_v11 = vsel %vm5273_vm7, %v5257_v32, %v5260_v44 }
 0x69f   :  { %v5284_v40 = vsel %vm5274_vm10, %v5281_v54, %v5283_v53  ;;  %v5286_v4 = vsel %vm5276_vm14, %v5272_v51, 1326507024  ;;  %v5289_v33 = vshll.u32 %v5249_v23, 8  ;;  %v5411_v57 = vsub.s32 0, %v13055_v41 }
 0x6a0   :  { %v5279_v0 = vsel %vm5275_vm8, %v5263_v30, %v5278_v46  ;;  %v5287_v35 = vsel %vm5275_vm8, %v5269_v7, %v5286_v4  ;;  %v7765_v48 = vadd.s32 4294967169, %v5453_v36  ;;  %v15270_v28 = vand.u32 2147483647, %v12475_v3 }
 0x6a1   :  { %v5288_v56 = vsel %vm5274_vm10, %v5285_v2, %v5287_v35  ;;  %v13063_v15 = vmul.u32.u64.low %v5289_v33, %v5284_v40  ;;  %v13064_v17 = vmul.u32.u64.high %v5289_v33, %v5284_v40, %v13063_v15  ;;  %v5222_v44 = vsel %vm5139_vm12, %v5221_v50, %v5220_v13 }
 0x6a2   :  { %v5456_v61 = vand.u32 8388607, %v15270_v28  ;;  %v7762_v32 = vmin.u32 %v5411_v57, %v13055_v41  ;;  %v13071_v51 = vmul.u32.u64.low %v5289_v33, %v5288_v56  ;;  %v13072_v23 = vmul.u32.u64.high %v5289_v33, %v5288_v56, %v13071_v51 }
 0x6a3   :  { %8330 = vsinq.f32 %v12940_v37  ;;  %v5280_v7 = vsel %vm5274_vm10, %v5277_v11, %v5279_v0  ;;  %v5459_v35 = vadd.s32 1, %v7765_v48  ;;  %v13082_v36 = vsel %vm13041_vm11, %v12040_v14, %v5118_v55 }
 0x6a4   :  { %15271 = vst [vmem:[#allocation41_spill] sm:$0xff] %v13082_v36  ;;  %v13084_v13 = vadd.s32 3, %v5226_v45  ;;  %v5413_v54 = vclz %v7762_v32  ;;  %v5431_v50 = vsub.s32 4, %v5407_v25  ;;  %v13089_v37 = vsel %vm13009_vm9, %v12187_v42, %v5222_v44  ;;  %v15277_v32 = vld [vmem:[#allocation18_spill] sm:$0xff] }
 0x6a5   :  { %v5299_v46 = vadd.s32 1, %v13064_v17  ;;  %v5457_v53 = vor.u32 8388608, %v5456_v61  ;;  %vm5460_vm4 = vcmp.gt.s32.totalorder %v5459_v35, 0  ;;  %v5296_v48 = vmul.u32 %v5289_v33, %v5280_v7 }
 0x6a6   :  { %15272 = vst [vmem:[#allocation42_spill] sm:$0xff] %v13084_v13  ;;  %v7763_v63 = vadd.s32 4294967294, %v5413_v54  ;;  %vm5298_vm15 = vc.u32 %v13072_v23, %v13063_v15  ;;  %v5461_v2 = vsel %vm5460_vm4, %v5459_v35, 0  ;;  %8332 = vcosq.f32 %v13082_v36 }
 0x6a7   :  { %v5401_v45 = vadd.s32 %v12999_v22, %v13005_v5  ;;  %v5300_v55 = vsel %vm5298_vm15, %v5299_v46, %v13064_v17  ;;  %v5463_v11 = vand.u32 31, %v5461_v2  ;;  %8334 = vcosq.f32 %v13089_v37  ;;  %v15273_v17 = vld [vmem:[#allocation31_spill] sm:$0xff] }
 0x6a8   :  { %vm7764_vm0 = vcmp.lt.s32.totalorder %v7763_v63, 0  ;;  %v13100_v1 = vsel %vm5347_vm13, %v5431_v50, %v5407_v25  ;;  %vm5243_vm12 = vcmp.lt.s32.totalorder %v12374_v39, 0  ;;  %v5301_v40 = vadd.s32 %v5300_v55, %v5296_v48 }
 0x6a9   :  { %v5416_v4 = vsel %vm7764_vm0, 0, %v7763_v63  ;;  %v5464_v33 = vsub.s32 32, %v5463_v11  ;;  %v13103_v57 = vshll.u32 %v5457_v53, 8  ;;  %vm4089_vm6 = vcmp.eq.s32.totalorder %v12181_v8, 0 }
 0x6aa   :  { %v5421_v22 = vsub.s32 4294967266, %v5416_v4  ;;  %v5302_v5 = vadd.s32 536870912, %v5301_v40  ;;  %v4090_v0 = vxor.u32 2147483648, %v15273_v17  ;;  %vm4092_vm2 = vcmp.eq.s32.totalorder %v12181_v8, 2 }
 0x6ab   :  { %v5417_v56 = vsub.s32 32, %v5416_v4  ;;  %v15274_v28 = vand.u32 2147483647, %v12374_v39  ;;  %v13115_v61 = vadd.s32 %v13063_v15, %v13072_v23  ;;  %v5467_v44 = vshrl.u32 %v14996_v16, %v5464_v33 }
 0x6ac   :  { %v4093_v51 = vxor.u32 2147483648, %v15277_v32  ;;  %v5422_v7 = vadd.s32 127, %v5421_v22  ;;  %v5303_v35 = vshrl.u32 %v5302_v5, 30  ;;  %v5470_v54 = vshrl.u32 %v15192_v12, %v5464_v33 }
 0x6ad   :  { %vm13110_vm3 = vcmp.le.f32.partialorder %v15274_v28, 0.7853982  ;;  %v5473_v50 = vshrl.u32 %v14998_v20, %v5464_v33  ;;  %v13121_v46 = vpop.eup %8330  ;;  %v5462_v53 = vshrl.u32 %v5461_v2, 5  ;;  %v5466_v63 = vshll.u32 %v14995_v49, %v5463_v11 }
 0x6ae   :  { %v5469_v48 = vshll.u32 %v14996_v16, %v5463_v11  ;;  %v5476_v15 = vshrl.u32 %v14999_v29, %v5464_v33  ;;  %v5423_v23 = vshll.u32 %v5422_v7, 23  ;;  %v5304_v55 = vshll.u32 %v5303_v35, 30 }
 0x6af   :  { %v5327_v28 = vsub.s32 4, %v5303_v35  ;;  %v5472_v30 = vshll.u32 %v15192_v12, %v5463_v11  ;;  %v5419_v22 = vshrl.u32 %v5401_v45, %v5417_v56  ;;  %v5475_v5 = vshll.u32 %v14998_v20, %v5463_v11 }
 0x6b0   :  { %v5478_v14 = vshll.u32 %v14999_v29, %v5463_v11  ;;  %v5479_v10 = vshrl.u32 %v15193_v18, %v5464_v33  ;;  %v13130_v38 = vsub.s32 %v5301_v40, %v5304_v55  ;;  %v5468_v2 = vor.u32 %v5467_v44, %v5466_v63  ;;  %v13132_v16 = vpop.eup %8332 }
 0x6b1   :  { %v5471_v13 = vor.u32 %v5470_v54, %v5469_v48  ;;  %v5474_v42 = vor.u32 %v5473_v50, %v5472_v30  ;;  %v5418_v7 = vshll.u32 %v13055_v41, %v5416_v4  ;;  %v5328_v36 = vsel %vm5243_vm12, %v5327_v28, %v5303_v35  ;;  %v13137_v56 = vpop.eup %8334  ;;  %v15278_v50 = vld [vmem:[#allocation33_spill] sm:$0xff] }
 0x6b2   :  { %v5477_v12 = vor.u32 %v5476_v15, %v5475_v5  ;;  %v5480_v45 = vor.u32 %v5479_v10, %v5478_v14  ;;  %v5424_v20 = vor.u32 4788187, %v5423_v23  ;;  %v5307_v11 = vsub.s32 0, %v13130_v38 }
 0x6b3   :  { %v4091_v40 = vsel %vm4089_vm6, %v15277_v32, %v4090_v0  ;;  %v4094_v30 = vsel %vm4092_vm2, %v4093_v51, %v15273_v17  ;;  %v5420_v44 = vor.u32 %v5419_v22, %v5418_v7  ;;  %v5465_v41 = vshrl.u32 %v14995_v49, %v5464_v33 }
 0x6b4   :  { %vm5481_vm9 = vcmp.lt.s32.totalorder %v5462_v53, 1  ;;  %vm5484_vm1 = vcmp.lt.s32.totalorder %v5462_v53, 4  ;;  %vm4088_vm7 = vcmp.lt.s32.totalorder %v12181_v8, 2  ;;  %v7758_v14 = vmin.u32 %v5307_v11, %v13130_v38 }
 0x6b5   :  { %v5330_v10 = vsel %vm13110_vm3, 0, %v5328_v36  ;;  %v5486_v4 = vsel %vm5484_vm1, %v5474_v42, 2102212464  ;;  %v5489_v35 = vsel %vm5481_vm9, %v5468_v2, %v5471_v13  ;;  %vm5483_vm14 = vcmp.lt.s32.totalorder %v5462_v53, 3 }
 0x6b6   :  { %v5490_v0 = vsel %vm5484_vm1, %v5477_v12, 920167782  ;;  %v5493_v32 = vsel %vm5481_vm9, %v5471_v13, %v5474_v42  ;;  %v5494_v17 = vsel %vm5484_vm1, %v5480_v45, 1326507024  ;;  %vm4504_vm8 = vcmp.lt.s32.totalorder %v12570_v9, 2 }
 0x6b7   :  { %v5425_v33 = vand.u32 2147483647, %v5424_v20  ;;  %v5309_v51 = vclz %v7758_v14  ;;  %vm5482_vm10 = vcmp.lt.s32.totalorder %v5462_v53, 2  ;;  %v5491_v54 = vsel %vm5483_vm14, %v5474_v42, %v5490_v0 }
 0x6b8   :  { %vm4085_vm4 = vweird.f32 %v15278_v50  ;;  %vm4501_vm15 = vweird.f32 %v11788_v31  ;;  %v5485_v36 = vsel %vm5481_vm9, %v5465_v41, %v5468_v2  ;;  %v5487_v63 = vsel %vm5483_vm14, %v5471_v13, %v5486_v4  ;;  %v15283_v50 = vld [vmem:[#allocation35_spill] sm:$0xff]  ;;  %v15284_v31 = vld [vmem:[#allocation22_spill] sm:$0xff] }
 0x6b9   :  { %v5492_v48 = vsel %vm5482_vm10, %v5489_v35, %v5491_v54  ;;  %v5495_v15 = vsel %vm5483_vm14, %v5477_v12, %v5494_v17  ;;  %v7759_v23 = vadd.s32 4294967294, %v5309_v51  ;;  %vm4505_vm0 = vcmp.eq.s32.totalorder %v12570_v9, 0 }
 0x6ba   :  { %v5496_v55 = vsel %vm5482_vm10, %v5493_v32, %v5495_v15  ;;  %v4506_v20 = vxor.u32 2147483648, %v12799_v59  ;;  %v5427_v28 = vcvt.s32.f32 %v5420_v44  ;;  %v13161_v22 = vadd.s32 3, %v5330_v10 }
 0x6bb   :  { %v13164_v42 = vmul.u32.u64.low %v13103_v57, %v5496_v55  ;;  %v13165_v5 = vmul.u32.u64.high %v13103_v57, %v5496_v55, %v13164_v42  ;;  %vm7760_vm6 = vcmp.lt.s32.totalorder %v7759_v23, 0  ;;  %v5488_v13 = vsel %vm5482_vm10, %v5485_v36, %v5487_v63 }
 0x6bc   :  { %v13169_v2 = vmul.u32.u64.low %v13103_v57, %v5492_v48  ;;  %v13170_v12 = vmul.u32.u64.high %v13103_v57, %v5492_v48, %v13169_v2  ;;  %v13173_v7 = vmul.f32 %v5427_v28, %v5425_v33  ;;  %v5312_v45 = vsel %vm7760_vm6, 0, %v7759_v23 }
 0x6bd   :  { %v4507_v11 = vsel %vm4505_vm0, %v12796_v43, %v4506_v20  ;;  %v4509_v44 = vxor.u32 2147483648, %v12796_v43  ;;  %v5313_v41 = vsub.s32 32, %v5312_v45  ;;  %v5317_v14 = vsub.s32 4294967266, %v5312_v45 }
 0x6be   :  { %v4095_v10 = vsel %vm4088_vm7, %v4091_v40, %v4094_v30  ;;  %vm4508_vm2 = vcmp.eq.s32.totalorder %v12570_v9, 2  ;;  %v5314_v53 = vshll.u32 %v13130_v38, %v5312_v45  ;;  %v5504_v4 = vmul.u32 %v13103_v57, %v5488_v13  ;;  %v15279_v57 = vld [vmem:[#allocation10_spill] sm:$0xff] }
 0x6bf   :  { %vm5506_vm9 = vc.u32 %v13165_v5, %v13169_v2  ;;  %v4510_v35 = vsel %vm4508_vm2, %v4509_v44, %v12799_v59  ;;  %v5315_v0 = vshrl.u32 %v13115_v61, %v5313_v41  ;;  %v5318_v32 = vadd.s32 127, %v5317_v14  ;;  %v15286_v14 = vld [vmem:[#allocation34_spill] sm:$0xff] }
 0x6c0   :  { %v5507_v43 = vadd.s32 1, %v13170_v12  ;;  %v4511_v8 = vsel %vm4504_vm8, %v4507_v11, %v4510_v35  ;;  %v4096_v40 = vsel %vm4085_vm4, nan, %v4095_v10  ;;  %vm4297_vm1 = vcmp.eq.s32.totalorder %v15279_v57, 0  ;;  %v15287_v35 = vld [vmem:[#allocation30_spill] sm:$0xff] }
 0x6c1   :  { %v4512_v38 = vsel %vm4501_vm15, nan, %v4511_v8  ;;  %v4298_v30 = vxor.u32 2147483648, %v12589_v47  ;;  %v5316_v17 = vor.u32 %v5315_v0, %v5314_v53  ;;  %v5319_v59 = vshll.u32 %v5318_v32, 23  ;;  %v15288_v0 = vld [vmem:[#allocation17_spill] sm:$0xff] }
 0x6c2   :  { %v5508_v61 = vsel %vm5506_vm9, %v5507_v43, %v13170_v12  ;;  %v7873_v33 = vpack.c.bf16 %v4512_v38, %v4096_v40  ;;  %v15280_v51 = vand.u32 2147483647, %v12242_v52  ;;  %vm4293_vm14 = vweird.f32 %v15283_v50  ;;  %v15285_v12 = vld [vmem:[#allocation19_spill] sm:$0xff] }
 0x6c3   :  { %v5509_v54 = vadd.s32 %v5508_v61, %v5504_v4  ;;  %v4299_v36 = vsel %vm4297_vm1, %v15284_v31, %v4298_v30  ;;  %v4301_v63 = vxor.u32 2147483648, %v15284_v31  ;;  %v5320_v48 = vor.u32 4788187, %v5319_v59  ;;  %v15289_v61 = vld [vmem:[#allocation24_spill] sm:$0xff]  ;;  %v15292_v50 = vld [vmem:[#allocation27_spill] sm:$0xff] }
 0x6c4   :  { %vm13198_vm7 = vcmp.le.f32.partialorder %v15280_v51, 0.7853982  ;;  %7874 = vmatprep.subr.bf16.mxu0 %v7873_v33  ;;  %vm4296_vm8 = vcmp.lt.s32.totalorder %v15279_v57, 2  ;;  %vm4300_vm10 = vcmp.eq.s32.totalorder %v15279_v57, 2  ;;  %vm4709_vm4 = vweird.f32 %v11813_v26  ;;  %v15290_v33 = vld [vmem:[#allocation25_spill] sm:$0xff]  ;;  %v15291_v51 = vld [vmem:[#allocation32_spill] sm:$0xff] }
 0x6c5   :  { %v5323_v15 = vcvt.s32.f32 %v5316_v17  ;;  %v5510_v23 = vadd.s32 536870912, %v5509_v54  ;;  %v4302_v55 = vsel %vm4300_vm10, %v4301_v63, %v12589_v47  ;;  %v4714_v20 = vxor.u32 2147483648, %v12935_v21 }
 0x6c6   :  { %v5321_v28 = vand.u32 2147483647, %v5320_v48  ;;  %v4303_v42 = vsel %vm4296_vm8, %v4299_v36, %v4302_v55  ;;  %vm4713_vm15 = vcmp.eq.s32.totalorder %v12747_v6, 0  ;;  %v4717_v13 = vxor.u32 2147483648, %v12923_v34  ;;  %v15293_v48 = vld [vmem:[#allocation20_spill] sm:$0xff] }
 0x6c7   :  { %vm3981_vm0 = vweird.f32 %v15285_v12  ;;  %v13213_v45 = vshrl.u32 %v5510_v23, 30  ;;  %vm4712_vm6 = vcmp.lt.s32.totalorder %v12747_v6, 2  ;;  %v4715_v11 = vsel %vm4713_vm15, %v12923_v34, %v4714_v20  ;;  %v15294_v20 = vld [vmem:[#allocation36_spill] sm:$0xff] }
 0x6c8   :  { %vm4716_vm2 = vcmp.eq.s32.totalorder %v12747_v6, 2  ;;  %v5324_v44 = vmul.f32 %v5323_v15, %v5321_v28  ;;  %v4304_v47 = vsel %vm4293_vm14, nan, %v4303_v42  ;;  %v3986_v10 = vxor.u32 2147483648, %v15286_v14  ;;  %v15295_v28 = vld [vmem:[#allocation21_spill] sm:$0xff] }
 0x6c9   :  { %v4718_v41 = vsel %vm4716_vm2, %v4717_v13, %v12935_v21  ;;  %vm4397_vm9 = vweird.f32 %v11784_v19  ;;  %v5512_v53 = vshll.u32 %v13213_v45, 30  ;;  %vm3985_vm1 = vcmp.eq.s32.totalorder %v15287_v35, 0  ;;  %v15298_v19 = vld [vmem:[#allocation11_spill] sm:$0xff] }
 0x6ca   :  { %v4719_v4 = vsel %vm4712_vm6, %v4715_v11, %v4718_v41  ;;  %v3989_v32 = vxor.u32 2147483648, %v15288_v0  ;;  %v5325_v34 = vxor.u32 2147483648, %v5324_v44  ;;  %v3987_v43 = vsel %vm3985_vm1, %v15288_v0, %v3986_v10 }
 0x6cb   :  { %v4720_v6 = vsel %vm4709_vm4, nan, %v4719_v4  ;;  %vm3988_vm14 = vcmp.eq.s32.totalorder %v15287_v35, 2  ;;  %8336 = vsinq.f32 %v13089_v37  ;;  %v13231_v21 = vsub.s32 %v5509_v54, %v5512_v53  ;;  %v15297_v53 = vld [vmem:[#allocation38_spill] sm:$0xff] }
 0x6cc   :  { %v7881_v8 = vpack.c.bf16 %v4720_v6, %v4304_v47  ;;  %v3990_v40 = vsel %vm3988_vm14, %v3989_v32, %v15286_v14  ;;  %v5434_v38 = vsel %vm13198_vm7, 0, %v13100_v1  ;;  %v5326_v57 = vsel %vm5243_vm12, %v5325_v34, %v5324_v44  ;;  %v15296_v47 = vld [vmem:[#allocation29_spill] sm:$0xff] }
 0x6cd   :  { %v13240_v26 = vand.u32 3, %v13161_v22  ;;  %vm3984_vm8 = vcmp.lt.s32.totalorder %v15287_v35, 2  ;;  %v5429_v30 = vxor.u32 2147483648, %v13173_v7  ;;  %v5329_v37 = vsel %vm13110_vm3, %v12374_v39, %v5326_v57 }
 0x6ce   :  { %v5515_v17 = vsub.s32 0, %v13231_v21  ;;  %7882 = vmatprep.subr.bf16.mxu1 %v7881_v8  ;;  %v3991_v59 = vsel %vm3984_vm8, %v3987_v43, %v3990_v40  ;;  %vm4189_vm10 = vweird.f32 %v15289_v61  ;;  %8338 = vcosq.f32 %v5329_v37 }
 0x6cf   :  { %vm4400_vm12 = vcmp.lt.s32.totalorder %v15290_v33, 2  ;;  %v4402_v22 = vxor.u32 2147483648, %v12611_v62  ;;  %v4405_v54 = vxor.u32 2147483648, %v15291_v51  ;;  %vm4605_vm4 = vweird.f32 %v15292_v50 }
 0x6d0   :  { %8340 = vsinq.f32 %v5329_v37  ;;  %v7766_v31 = vmin.u32 %v5515_v17, %v13231_v21  ;;  %vm4401_vm3 = vcmp.eq.s32.totalorder %v15290_v33, 0  ;;  %vm4404_vm15 = vcmp.eq.s32.totalorder %v15290_v33, 2 }
 0x6d1   :  { %v3992_v25 = vsel %vm3981_vm0, nan, %v3991_v59  ;;  %v4403_v36 = vsel %vm4401_vm3, %v15291_v51, %v4402_v22  ;;  %v4406_v63 = vsel %vm4404_vm15, %v4405_v54, %v12611_v62  ;;  %v4194_v15 = vxor.u32 2147483648, %v15293_v48 }
 0x6d2   :  { %v5517_v23 = vclz %v7766_v31  ;;  %v4407_v55 = vsel %vm4400_vm12, %v4403_v36, %v4406_v63  ;;  %vm4193_vm6 = vcmp.eq.s32.totalorder %v15294_v20, 0  ;;  %v4197_v42 = vxor.u32 2147483648, %v15295_v28 }
 0x6d3   :  { %v4408_v13 = vsel %vm4397_vm9, nan, %v4407_v55  ;;  %vm4192_vm2 = vcmp.lt.s32.totalorder %v15294_v20, 2  ;;  %v4195_v12 = vsel %vm4193_vm6, %v15295_v28, %v4194_v15  ;;  %vm4196_vm0 = vcmp.eq.s32.totalorder %v15294_v20, 2  ;;  %v15300_v28 = vld [vmem:[#allocation14_spill] sm:$0xff] }
 0x6d4   :  { %v7767_v11 = vadd.s32 4294967294, %v5517_v23  ;;  %v7875_v44 = vpack.c.bf16 %v4408_v13, %v3992_v25  ;;  %v4198_v62 = vsel %vm4196_vm0, %v4197_v42, %v15293_v48  ;;  %v4610_v41 = vxor.u32 2147483648, %v15296_v47 }
 0x6d5   :  { %v5430_v14 = vsel %vm5347_vm13, %v5429_v30, %v13173_v7  ;;  %v4199_v10 = vsel %vm4192_vm2, %v4195_v12, %v4198_v62  ;;  %vm4609_vm1 = vcmp.eq.s32.totalorder %v15297_v53, 0  ;;  %v4613_v4 = vxor.u32 2147483648, %v15298_v19  ;;  %v13275_v35 = vpop.eup %8336 }
 0x6d6   :  { %v5505_v0 = vadd.s32 %v13169_v2, %v13165_v5  ;;  %vm7768_vm9 = vcmp.lt.s32.totalorder %v7767_v11, 0  ;;  %7876 = vmatpush1.bf16.msra.mxu0 %v7875_v44  ;;  %v4611_v32 = vsel %vm4609_vm1, %v15298_v19, %v4610_v41  ;;  %vm4612_vm14 = vcmp.eq.s32.totalorder %v15297_v53, 2  ;;  %v15309_v19 = vld [vmem:[#allocation16_spill] sm:$0xff]  ;;  %v15316_v41 = vld [vmem:[#allocation26_spill] sm:$0xff] }
 0x6d7   :  { %v5520_v34 = vsel %vm7768_vm9, 0, %v7767_v11  ;;  %vm4608_vm8 = vcmp.lt.s32.totalorder %v15297_v53, 2  ;;  %v4614_v7 = vsel %vm4612_vm14, %v4613_v4, %v15296_v47  ;;  %v4922_v6 = vxor.u32 2147483648, %v13121_v46  ;;  %v15310_v4 = vld [vmem:[#allocation37_spill] sm:$0xff] }
 0x6d8   :  { %vm5451_vm13 = vcmp.lt.s32.totalorder %v12475_v3, 0  ;;  %v5521_v43 = vsub.s32 32, %v5520_v34  ;;  %v5525_v8 = vsub.s32 4294967266, %v5520_v34  ;;  %v4200_v5 = vsel %vm4189_vm10, nan, %v4199_v10  ;;  %v8339_v40 = vpop.eup %8338 }
 0x6d9   :  { %v4615_v2 = vsel %vm4608_vm8, %v4611_v32, %v4614_v7  ;;  %v5522_v57 = vshll.u32 %v13231_v21, %v5520_v34  ;;  %vm4921_vm12 = vcmp.eq.s32.totalorder %v12930_v60, 0  ;;  %v4925_v37 = vxor.u32 2147483648, %v13051_v27 }
 0x6da   :  { %v4616_v30 = vsel %vm4605_vm4, nan, %v4615_v2  ;;  %v8341_v17 = vpop.eup %8340  ;;  %v5523_v59 = vshrl.u32 %v5505_v0, %v5521_v43  ;;  %v5526_v33 = vadd.s32 127, %v5525_v8  ;;  %vm4924_vm3 = vcmp.eq.s32.totalorder %v12930_v60, 2 }
 0x6db   :  { %v7883_v22 = vpack.c.bf16 %v4616_v30, %v4200_v5  ;;  %v5433_v61 = vsel %vm13198_vm7, %v12242_v52, %v5430_v14  ;;  %v4923_v51 = vsel %vm4921_vm12, %v13051_v27, %v4922_v6  ;;  %v4926_v21 = vsel %vm4924_vm3, %v4925_v37, %v13121_v46  ;;  %v15311_v30 = vld [vmem:[#allocation39_spill] sm:$0xff] }
 0x6dc   :  { %v5338_v54 = vxor.u32 2147483648, %v8341_v17  ;;  %v5438_v50 = vadd.s32 3, %v5434_v38  ;;  %v5524_v31 = vor.u32 %v5523_v59, %v5522_v57  ;;  %v5527_v25 = vshll.u32 %v5526_v33, 23  ;;  %v15312_v33 = vld [vmem:[#allocation23_spill] sm:$0xff] }
 0x6dd   :  { %7884 = vmatpush1.bf16.msra.mxu1 %v7883_v22  ;;  %vm5337_vm10 = vcmp.eq.s32.totalorder %v13240_v26, 0  ;;  %v5535_v36 = vsub.s32 4, %v13213_v45  ;;  %vm4920_vm4 = vcmp.lt.s32.totalorder %v12930_v60, 2  ;;  %v5341_v48 = vxor.u32 2147483648, %v8339_v40  ;;  %v15299_v60 = vld [vmem:[#allocation41_spill] sm:$0xff]  ;;  %v15313_v22 = vld [vmem:[#allocation15_spill] sm:$0xff] }
 0x6de   :  { %v5339_v63 = vsel %vm5337_vm10, %v8339_v40, %v5338_v54  ;;  %8342 = vsinq.f32 %v5433_v61  ;;  %v5528_v27 = vor.u32 4788187, %v5527_v25  ;;  %v4927_v46 = vsel %vm4920_vm4, %v4923_v51, %v4926_v21 }
 0x6df   :  { %vm5340_vm15 = vcmp.eq.s32.totalorder %v13240_v26, 2  ;;  %8344 = vcosq.f32 %v5433_v61  ;;  %vm4917_vm7 = vweird.f32 %v11980_v58  ;;  %vm5336_vm6 = vcmp.lt.s32.totalorder %v13240_v26, 2  ;;  %v15301_v58 = vld [vmem:[#allocation42_spill] sm:$0xff] }
 0x6e0   :  { %v5342_v1 = vsel %vm5340_vm15, %v5341_v48, %v8341_v17  ;;  %v5529_v9 = vand.u32 2147483647, %v5528_v27  ;;  %v5531_v38 = vcvt.s32.f32 %v5524_v31  ;;  %vm5333_vm2 = vweird.f32 %v12374_v39  ;;  %v15303_v39 = vld [vmem:[#allocation12_spill] sm:$0xff] }
 0x6e1   :  { %v5343_v15 = vsel %vm5336_vm6, %v5339_v63, %v5342_v1  ;;  %vm4813_vm0 = vweird.f32 %v11817_v24  ;;  %8346 = vsinq.f32 %v15299_v60  ;;  %v5536_v23 = vsel %vm5451_vm13, %v5535_v36, %v13213_v45  ;;  %v15308_v45 = vld [vmem:[#allocation13_spill] sm:$0xff] }
 0x6e2   :  { %v4928_v55 = vsel %vm4917_vm7, nan, %v4927_v46  ;;  %v5344_v20 = vsel %vm5333_vm2, nan, %v5343_v15  ;;  %vm5229_vm1 = vweird.f32 %v15300_v28  ;;  %v5231_v26 = vand.u32 3, %v15301_v58  ;;  %v5570_v27 = vld [vmem:[#allocation3 + $0x40] sm:$0xff]  ;;  %v5571_v58 = vld [vmem:[#allocation3 + $0x48] sm:$0xff] }
 0x6e3   :  { %v5532_v42 = vmul.f32 %v5531_v38, %v5529_v9  ;;  %v7877_v13 = vpack.c.bf16 %v5344_v20, %v4928_v55  ;;  %v15304_v11 = vsel %vm13041_vm11, 0, %v15303_v39  ;;  %v5439_v62 = vand.u32 3, %v5438_v50  ;;  %v15314_v38 = vld [vmem:[#allocation28_spill] sm:$0xff] }
 0x6e4   :  { %v5126_v44 = vadd.s32 3, %v15304_v11  ;;  %v15305_v47 = vand.u32 2147483647, %v12475_v3  ;;  %v4818_v14 = vxor.u32 2147483648, %v15308_v45  ;;  %vm4817_vm14 = vcmp.eq.s32.totalorder %v15309_v19, 0 }
 0x6e5   :  { %v5533_v10 = vxor.u32 2147483648, %v5532_v42  ;;  %7878 = vmatprep.subr.bf16.mxu0 %v7877_v13  ;;  %v4821_v0 = vxor.u32 2147483648, %v15310_v4  ;;  %vm4816_vm11 = vcmp.lt.s32.totalorder %v15309_v19, 2  ;;  %vm4820_vm8 = vcmp.eq.s32.totalorder %v15309_v19, 2 }
 0x6e6   :  { %vm13322_vm9 = vcmp.le.f32.partialorder %v15305_v47, 0.7853982  ;;  %v4819_v32 = vsel %vm4817_vm14, %v15310_v4, %v4818_v14  ;;  %v5234_v34 = vxor.u32 2147483648, %v13275_v35  ;;  %vm5233_vm12 = vcmp.eq.s32.totalorder %v5231_v26, 0 }
 0x6e7   :  { %v5538_v53 = vsel %vm13322_vm9, 0, %v5536_v23  ;;  %v5534_v7 = vsel %vm5451_vm13, %v5533_v10, %v5532_v42  ;;  %v4822_v6 = vsel %vm4820_vm8, %v4821_v0, %v15308_v45  ;;  %v5237_v43 = vxor.u32 2147483648, %v13137_v56 }
 0x6e8   :  { %v5537_v8 = vsel %vm13322_vm9, %v12475_v3, %v5534_v7  ;;  %v4823_v5 = vsel %vm4816_vm11, %v4819_v32, %v4822_v6  ;;  %v5235_v2 = vsel %vm5233_vm12, %v13137_v56, %v5234_v34  ;;  %vm5236_vm3 = vcmp.eq.s32.totalorder %v5231_v26, 2  ;;  %v8343_v40 = vpop.eup %8342 }
 0x6e9   :  { %8348 = vcosq.f32 %v5537_v8  ;;  %vm5232_vm10 = vcmp.lt.s32.totalorder %v5231_v26, 2  ;;  %v5238_v57 = vsel %vm5236_vm3, %v5237_v43, %v13275_v35  ;;  %v5026_v37 = vxor.u32 2147483648, %v15311_v30  ;;  %v8345_v17 = vpop.eup %8344 }
 0x6ea   :  { %8350 = vsinq.f32 %v5537_v8  ;;  %v5239_v59 = vsel %vm5232_vm10, %v5235_v2, %v5238_v57  ;;  %vm5025_vm13 = vcmp.eq.s32.totalorder %v15312_v33, 0  ;;  %v5029_v61 = vxor.u32 2147483648, %v15313_v22 }
 0x6eb   :  { %v4824_v51 = vsel %vm4813_vm0, nan, %v4823_v5  ;;  %v5240_v56 = vsel %vm5229_vm1, nan, %v5239_v59  ;;  %v5027_v21 = vsel %vm5025_vm13, %v15313_v22, %v5026_v37  ;;  %vm5028_vm4 = vcmp.eq.s32.totalorder %v15312_v33, 2  ;;  %v8347_v35 = vpop.eup %8346 }
 0x6ec   :  { %v7879_v54 = vpack.c.bf16 %v5240_v56, %v4824_v51  ;;  %v5030_v50 = vsel %vm5028_vm4, %v5029_v61, %v15311_v30  ;;  %v5442_v31 = vxor.u32 2147483648, %v8343_v40  ;;  %v5542_v25 = vadd.s32 3, %v5538_v53  ;;  %v5573_v53 = vld [vmem:[#allocation3 + $0x58] sm:$0xff] }
 0x6ed   :  { %vm5024_vm15 = vcmp.lt.s32.totalorder %v15312_v33, 2  ;;  %vm5441_vm7 = vcmp.eq.s32.totalorder %v5439_v62, 0  ;;  %v5445_v36 = vxor.u32 2147483648, %v8345_v17  ;;  %v5127_v63 = vand.u32 3, %v5126_v44 }
 0x6ee   :  { %7880 = vmatpush1.bf16.msra.mxu0 %v7879_v54  ;;  %v5031_v24 = vsel %vm5024_vm15, %v5027_v21, %v5030_v50  ;;  %v5443_v48 = vsel %vm5441_vm7, %v8345_v17, %v5442_v31  ;;  %vm5444_vm6 = vcmp.eq.s32.totalorder %v5439_v62, 2  ;;  %v5130_v46 = vxor.u32 2147483648, %v8347_v35 }
 0x6ef   :  { %v5133_v1 = vxor.u32 2147483648, %v13132_v16  ;;  %vm5440_vm2 = vcmp.lt.s32.totalorder %v5439_v62, 2  ;;  %v5446_v9 = vsel %vm5444_vm6, %v5445_v36, %v8343_v40  ;;  %vm5021_vm0 = vweird.f32 %v15314_v38  ;;  %v5572_v62 = vld [vmem:[#allocation3 + $0x50] sm:$0xff] }
 0x6f0   :  { %vm5437_vm1 = vweird.f32 %v12242_v52  ;;  %v5447_v15 = vsel %vm5440_vm2, %v5443_v48, %v5446_v9  ;;  %v5543_v60 = vand.u32 3, %v5542_v25  ;;  %v5032_v23 = vsel %vm5021_vm0, nan, %v5031_v24 }
 0x6f1   :  { %v5448_v55 = vsel %vm5437_vm1, nan, %v5447_v15  ;;  %7769 = vmatmul.mubr.msk.f32.vlgmr.msra.gmra.mrb[16].mxu0 %vm1807_vm5, %v5570_v27  ;;  %vm5129_vm9 = vcmp.eq.s32.totalorder %v5127_v63, 0  ;;  %vm5132_vm14 = vcmp.eq.s32.totalorder %v5127_v63, 2  ;;  %v15315_v28 = vmov 0.0  }
 0x6f2   :  { %v7887_v20 = vpack.c.bf16 %v5448_v55, %v5032_v23  ;;  %5672 = vmatprep.mubr.f32.mxu0 %v15315_v28  ;;  %v5131_v42 = vsel %vm5129_vm9, %v13132_v16, %v5130_v46  ;;  %v5134_v13 = vsel %vm5132_vm14, %v5133_v1, %v8347_v35  ;;  %vm5128_vm11 = vcmp.lt.s32.totalorder %v5127_v63, 2 }
 0x6f3   :  { %v8349_v26 = vpop.eup %8348  ;;  %vm5548_vm8 = vcmp.eq.s32.totalorder %v5543_v60, 2  ;;  %v5135_v11 = vsel %vm5128_vm11, %v5131_v42, %v5134_v13  ;;  %vm5545_vm12 = vcmp.eq.s32.totalorder %v5543_v60, 0  ;;  %vm5544_vm3 = vcmp.lt.s32.totalorder %v5543_v60, 2 }
 0x6f4   :  { %v8351_v12 = vpop.eup %8350  ;;  %v5549_v39 = vxor.u32 2147483648, %v8349_v26  ;;  %vm5125_vm10 = vweird.f32 %v15316_v41  ;;  %vm5541_vm13 = vweird.f32 %v12475_v3  ;;  %v15317_v54 = vmov 2475754826  }
 0x6f5   :  { %v5546_v52 = vxor.u32 2147483648, %v8351_v12  ;;  %7770 = vmatmul.mubr.msk.f32.gmra.mrb[18].mxu0 %vm1807_vm5, %v5571_v58  ;;  %v5136_v45 = vsel %vm5125_vm10, nan, %v5135_v11  ;;  %v15318_v31 = vmov 2131351028   ;;  %v15319_v48 = vmov 2102212464  }
 0x6f6   :  { %v5550_v44 = vsel %vm5548_vm8, %v5549_v39, %v8351_v12  ;;  %5678 = vmatprep.mubr.f32.mxu0 %v15315_v28 }
 0x6f7   :  { %v5547_v47 = vsel %vm5545_vm12, %v8349_v26, %v5546_v52 }
 0x6f8   :  { %v5551_v16 = vsel %vm5544_vm3, %v5547_v47, %v5550_v44 }
 0x6f9   :  { %v5552_v14 = vsel %vm5541_vm13, nan, %v5551_v16  ;;  %7771 = vmatmul.mubr.msk.f32.gmra.mrb[20].mxu0 %vm1807_vm5, %v5572_v62 }
 0x6fa   :  { %v7885_v10 = vpack.c.bf16 %v5552_v14, %v5136_v45  ;;  %5684 = vmatprep.mubr.f32.mxu0 %v15315_v28 }
 0x6fc   :  { %7886 = vmatprep.subr.bf16.mxu1 %v7885_v10 }
 0x6fd   :  { %7888 = vmatpush1.bf16.msra.mxu1 %v7887_v20  ;;  %7772 = vmatmul.mubr.msk.f32.gmra.mrb[22].mxu0 %vm1807_vm5, %v5573_v53 }
 0x700   :  { %7773 = vmatmul.mubr.msk.f32.vlgmr.msra.gmra.mrb[16].mxu1 %vm1807_vm5, %v5570_v27 }
 0x701   :  { %5761 = vmatprep.mubr.f32.mxu1 %v15315_v28 }
 0x704   :  { %7774 = vmatmul.mubr.msk.f32.gmra.mrb[18].mxu1 %vm1807_vm5, %v5571_v58 }
 0x705   :  { %5767 = vmatprep.mubr.f32.mxu1 %v15315_v28 }
 0x708   :  { %7775 = vmatmul.mubr.msk.f32.gmra.mrb[20].mxu1 %vm1807_vm5, %v5572_v62 }
 0x709   :  { %5773 = vmatprep.mubr.f32.mxu1 %v15315_v28 }
 0x70c   :  { %7776 = vmatmul.mubr.msk.f32.gmra.mrb[22].mxu1 %vm1807_vm5, %v5573_v53 }
 0x7c4   :  { %v13375_v3 = vpop.f32.mrb[16].mxu0 }
 0x7c5   :  { %v5780_v19 = vand.u32 2147483647, %v13375_v3  ;;  %v5783_v4 = vand.u32 2139095040, %v13375_v3  ;;  %v13379_v0 = vpop.f32.mrb[17].mxu0 }
 0x7c6   :  { %v5887_v32 = vand.u32 2139095040, %v13379_v0  ;;  %v5884_v5 = vand.u32 2147483647, %v13379_v0 }
 0x7c7   :  { %v5784_v34 = vshrl.u32 %v5783_v4, 23  ;;  %v5787_v8 = vand.u32 8388607, %v5780_v19 }
 0x7c8   :  { %v5888_v7 = vshrl.u32 %v5887_v32, 23  ;;  %v13382_v6 = vpop.f32.mrb[18].mxu0  ;;  %v5891_v17 = vand.u32 8388607, %v5884_v5 }
 0x7c9   :  { %v7777_v43 = vadd.s32 4294967169, %v5784_v34  ;;  %v13387_v2 = vpop.f32.mrb[19].mxu0  ;;  %v5788_v37 = vor.u32 8388608, %v5787_v8 }
 0x7ca   :  { %v7781_v40 = vadd.s32 4294967169, %v5888_v7  ;;  %v5892_v21 = vor.u32 8388608, %v5891_v17 }
 0x7cb   :  { %v5790_v57 = vadd.s32 1, %v7777_v43  ;;  %v13393_v56 = vshll.u32 %v5788_v37, 8 }
 0x7cc   :  { %v5894_v30 = vadd.s32 1, %v7781_v40 }
 0x7cd   :  { %vm5791_vm5 = vcmp.gt.s32.totalorder %v5790_v57, 0 }
 0x7ce   :  { %v5792_v59 = vsel %vm5791_vm5, %v5790_v57, 0  ;;  %vm5895_vm4 = vcmp.gt.s32.totalorder %v5894_v30, 0 }
 0x7cf   :  { %v5794_v33 = vand.u32 31, %v5792_v59  ;;  %v13391_v22 = vsel %vm5895_vm4, %v5894_v30, 0  ;;  %v5793_v61 = vshrl.u32 %v5792_v59, 5  ;;  %v6199_v30 = vand.u32 2139095040, %v13382_v6 }
 0x7d0   :  { %v13399_v36 = vand.u32 31, %v13391_v22  ;;  %v13440_v59 = vshll.u32 %v5892_v21, 8 }
 0x7d1   :  { %v5795_v51 = vsub.s32 32, %v5794_v33  ;;  %v5797_v35 = vshll.u32 %v14995_v49, %v5794_v33  ;;  %v5800_v50 = vshll.u32 %v15317_v54, %v5794_v33  ;;  %v5803_v25 = vshll.u32 %v15318_v31, %v5794_v33 }
 0x7d2   :  { %v5806_v46 = vshll.u32 %v15319_v48, %v5794_v33  ;;  %v5809_v38 = vshll.u32 %v14999_v29, %v5794_v33  ;;  %vm5812_vm15 = vcmp.lt.s32.totalorder %v5793_v61, 1  ;;  %vm5815_vm7 = vcmp.lt.s32.totalorder %v5793_v61, 4 }
 0x7d3   :  { %v5798_v63 = vshrl.u32 %v15317_v54, %v5795_v51  ;;  %v5801_v24 = vshrl.u32 %v15318_v31, %v5795_v51  ;;  %v5804_v27 = vshrl.u32 %v15319_v48, %v5795_v51  ;;  %v13405_v1 = vpop.f32.mrb[16].mxu1  ;;  %v5807_v9 = vshrl.u32 %v14999_v29, %v5795_v51 }
 0x7d4   :  { %v5810_v15 = vshrl.u32 %v15193_v18, %v5795_v51  ;;  %v13410_v60 = vpop.f32.mrb[17].mxu1  ;;  %v5988_v26 = vand.u32 2147483647, %v13405_v1  ;;  %v5991_v42 = vand.u32 2139095040, %v13405_v1  ;;  %v5796_v13 = vshrl.u32 %v14995_v49, %v5795_v51 }
 0x7d5   :  { %v5799_v23 = vor.u32 %v5798_v63, %v5797_v35  ;;  %v5802_v55 = vor.u32 %v5801_v24, %v5800_v50  ;;  %v5805_v20 = vor.u32 %v5804_v27, %v5803_v25  ;;  %v5808_v28 = vor.u32 %v5807_v9, %v5806_v46 }
 0x7d6   :  { %v5811_v58 = vor.u32 %v5810_v15, %v5809_v38  ;;  %vm5813_vm6 = vcmp.lt.s32.totalorder %v5793_v61, 2  ;;  %vm5814_vm2 = vcmp.lt.s32.totalorder %v5793_v61, 3  ;;  %v5992_v45 = vshrl.u32 %v5991_v42, 23 }
 0x7d7   :  { %v5817_v12 = vsel %vm5815_vm7, %v5805_v20, 2102212464  ;;  %v5820_v39 = vsel %vm5812_vm15, %v5799_v23, %v5802_v55  ;;  %v5824_v52 = vsel %vm5812_vm15, %v5802_v55, %v5805_v20  ;;  %v13417_v11 = vpop.f32.mrb[18].mxu1  ;;  %v5821_v44 = vsel %vm5815_vm7, %v5808_v28, 920167782 }
 0x7d8   :  { %v5825_v62 = vsel %vm5815_vm7, %v5811_v58, 1326507024  ;;  %v5816_v47 = vsel %vm5812_vm15, %v5796_v13, %v5799_v23  ;;  %v5822_v41 = vsel %vm5814_vm2, %v5805_v20, %v5821_v44  ;;  %v13420_v14 = vpop.f32.mrb[19].mxu1  ;;  %v5818_v10 = vsel %vm5814_vm2, %v5802_v55, %v5817_v12 }
 0x7d9   :  { %v5826_v16 = vsel %vm5814_vm2, %v5808_v28, %v5825_v62  ;;  %v5823_v53 = vsel %vm5813_vm6, %v5820_v39, %v5822_v41  ;;  %v5995_v32 = vand.u32 8388607, %v5988_v26  ;;  %v7785_v40 = vadd.s32 4294967169, %v5992_v45 }
 0x7da   :  { %v5827_v4 = vsel %vm5813_vm6, %v5824_v52, %v5826_v16  ;;  %v13431_v43 = vmul.u32.u64.low %v13393_v56, %v5823_v53  ;;  %v13432_v8 = vmul.u32.u64.high %v13393_v56, %v5823_v53, %v13431_v43  ;;  %v13436_v57 = vsub.s32 32, %v13399_v36 }
 0x7db   :  { %v13427_v34 = vmul.u32.u64.low %v13393_v56, %v5827_v4  ;;  %v13428_v7 = vmul.u32.u64.high %v13393_v56, %v5827_v4, %v13427_v34  ;;  %v5819_v37 = vsel %vm5813_vm6, %v5816_v47, %v5818_v10  ;;  %v5998_v17 = vadd.s32 1, %v7785_v40 }
 0x7dc   :  { %v5838_v33 = vadd.s32 1, %v13432_v8  ;;  %v5996_v51 = vor.u32 8388608, %v5995_v32  ;;  %v5902_v35 = vshrl.u32 %v15317_v54, %v13436_v57  ;;  %v5835_v50 = vmul.u32 %v13393_v56, %v5819_v37 }
 0x7dd   :  { %vm5837_vm0 = vc.u32 %v13428_v7, %v13431_v43  ;;  %vm5999_vm1 = vcmp.gt.s32.totalorder %v5998_v17, 0  ;;  %v5905_v25 = vshrl.u32 %v15318_v31, %v13436_v57  ;;  %v13450_v61 = vshrl.u32 %v6199_v30, 23 }
 0x7de   :  { %v5839_v21 = vsel %vm5837_vm0, %v5838_v33, %v13432_v8  ;;  %v6000_v63 = vsel %vm5999_vm1, %v5998_v17, 0  ;;  %v13454_v24 = vshrl.u32 %v13391_v22, 5  ;;  %v5901_v27 = vshll.u32 %v14995_v49, %v13399_v36  ;;  %v13489_v17 = vpop.f32.mrb[20].mxu0 }
 0x7df   :  { %v5840_v46 = vadd.s32 %v5839_v21, %v5835_v50  ;;  %v6002_v9 = vand.u32 31, %v6000_v63  ;;  %v5904_v56 = vshll.u32 %v15317_v54, %v13399_v36  ;;  %v5907_v38 = vshll.u32 %v15318_v31, %v13399_v36 }
 0x7e0   :  { %v13462_v15 = vshll.u32 %v5996_v51, 8  ;;  %v13464_v23 = vor.u32 %v5902_v35, %v5901_v27  ;;  %v5908_v55 = vshrl.u32 %v15319_v48, %v13436_v57  ;;  %v5910_v22 = vshll.u32 %v15319_v48, %v13399_v36 }
 0x7e1   :  { %v5841_v20 = vadd.s32 536870912, %v5840_v46  ;;  %v6003_v28 = vsub.s32 32, %v6002_v9  ;;  %v13470_v58 = vor.u32 %v5905_v25, %v5904_v56  ;;  %v5911_v42 = vshrl.u32 %v14999_v29, %v13436_v57 }
 0x7e2   :  { %v6001_v13 = vshrl.u32 %v6000_v63, 5  ;;  %v6005_v12 = vshll.u32 %v14995_v49, %v6002_v9  ;;  %v6008_v39 = vshll.u32 %v15317_v54, %v6002_v9  ;;  %v6011_v52 = vshll.u32 %v15318_v31, %v6002_v9 }
 0x7e3   :  { %v13477_v44 = vshrl.u32 %v5841_v20, 30  ;;  %v6006_v62 = vshrl.u32 %v15317_v54, %v6003_v28  ;;  %v6009_v47 = vshrl.u32 %v15318_v31, %v6003_v28  ;;  %v6014_v41 = vshll.u32 %v15319_v48, %v6002_v9 }
 0x7e4   :  { %v6012_v16 = vshrl.u32 %v15319_v48, %v6003_v28  ;;  %v6015_v45 = vshrl.u32 %v14999_v29, %v6003_v28  ;;  %v6017_v10 = vshll.u32 %v14999_v29, %v6002_v9  ;;  %v6018_v53 = vshrl.u32 %v15193_v18, %v6003_v28 }
 0x7e5   :  { %v5843_v4 = vshll.u32 %v13477_v44, 30  ;;  %v6007_v32 = vor.u32 %v6006_v62, %v6005_v12  ;;  %v6010_v34 = vor.u32 %v6009_v47, %v6008_v39  ;;  %v5914_v8 = vshrl.u32 %v15193_v18, %v13436_v57 }
 0x7e6   :  { %v6013_v40 = vor.u32 %v6012_v16, %v6011_v52  ;;  %v6016_v30 = vor.u32 %v6015_v45, %v6014_v41  ;;  %v6019_v37 = vor.u32 %v6018_v53, %v6017_v10  ;;  %vm6020_vm9 = vcmp.lt.s32.totalorder %v6001_v13, 1 }
 0x7e7   :  { %v13491_v33 = vsub.s32 %v5840_v46, %v5843_v4  ;;  %v6004_v51 = vshrl.u32 %v14995_v49, %v6003_v28  ;;  %vm6021_vm14 = vcmp.lt.s32.totalorder %v6001_v13, 2  ;;  %vm6023_vm11 = vcmp.lt.s32.totalorder %v6001_v13, 4 }
 0x7e8   :  { %vm6022_vm8 = vcmp.lt.s32.totalorder %v6001_v13, 3  ;;  %v6025_v35 = vsel %vm6023_vm11, %v6013_v40, 2102212464  ;;  %v6028_v50 = vsel %vm6020_vm9, %v6007_v32, %v6010_v34  ;;  %v6029_v25 = vsel %vm6023_vm11, %v6016_v30, 920167782 }
 0x7e9   :  { %v5846_v21 = vsub.s32 0, %v13491_v33  ;;  %v6024_v63 = vsel %vm6020_vm9, %v6004_v51, %v6007_v32  ;;  %v6026_v27 = vsel %vm6022_vm8, %v6010_v34, %v6025_v35  ;;  %v6030_v9 = vsel %vm6022_vm8, %v6013_v40, %v6029_v25 }
 0x7ea   :  { %v6031_v56 = vsel %vm6021_vm14, %v6028_v50, %v6030_v9  ;;  %v6032_v20 = vsel %vm6020_vm9, %v6010_v34, %v6013_v40  ;;  %v6033_v12 = vsel %vm6023_vm11, %v6019_v37, 1326507024  ;;  %v5913_v46 = vshll.u32 %v14999_v29, %v13399_v36 }
 0x7eb   :  { %v7778_v28 = vmin.u32 %v5846_v21, %v13491_v33  ;;  %v6034_v39 = vsel %vm6022_vm8, %v6016_v30, %v6033_v12  ;;  %v5909_v52 = vor.u32 %v5908_v55, %v5907_v38  ;;  %v5912_v62 = vor.u32 %v5911_v42, %v5910_v22 }
 0x7ec   :  { %v6027_v47 = vsel %vm6021_vm14, %v6024_v63, %v6026_v27  ;;  %v6035_v41 = vsel %vm6021_vm14, %v6032_v20, %v6034_v39  ;;  %v13502_v16 = vmul.u32.u64.low %v13462_v15, %v6031_v56  ;;  %v13503_v45 = vmul.u32.u64.high %v13462_v15, %v6031_v56, %v13502_v16 }
 0x7ed   :  { %v5836_v10 = vadd.s32 %v13431_v43, %v13428_v7  ;;  %v5848_v53 = vclz %v7778_v28  ;;  %v5900_v36 = vshrl.u32 %v14995_v49, %v13436_v57  ;;  %v5915_v4 = vor.u32 %v5914_v8, %v5913_v46 }
 0x7ee   :  { %v13511_v38 = vmul.u32.u64.low %v13462_v15, %v6035_v41  ;;  %v13512_v55 = vmul.u32.u64.high %v13462_v15, %v6035_v41, %v13511_v38  ;;  %vm5916_vm12 = vcmp.lt.s32.totalorder %v13454_v24, 1  ;;  %vm5917_vm3 = vcmp.lt.s32.totalorder %v13454_v24, 2 }
 0x7ef   :  { %v7779_v22 = vadd.s32 4294967294, %v5848_v53  ;;  %v6043_v42 = vmul.u32 %v13462_v15, %v6027_v47  ;;  %vm5919_vm10 = vcmp.lt.s32.totalorder %v13454_v24, 4  ;;  %v5924_v7 = vsel %vm5916_vm12, %v13464_v23, %v13470_v58 }
 0x7f0   :  { %v6046_v43 = vadd.s32 1, %v13503_v45  ;;  %vm5918_vm13 = vcmp.lt.s32.totalorder %v13454_v24, 3  ;;  %v5921_v57 = vsel %vm5919_vm10, %v5909_v52, 2102212464  ;;  %v5925_v13 = vsel %vm5919_vm10, %v5912_v62, 920167782 }
 0x7f1   :  { %vm7780_vm5 = vcmp.lt.s32.totalorder %v7779_v22, 0  ;;  %v5920_v32 = vsel %vm5916_vm12, %v5900_v36, %v13464_v23  ;;  %v5926_v15 = vsel %vm5918_vm13, %v5909_v52, %v5925_v13  ;;  %v5929_v34 = vsel %vm5919_vm10, %v5915_v4, 1326507024  ;;  %v13561_v4 = vpop.f32.mrb[20].mxu1 }
 0x7f2   :  { %v5851_v8 = vsel %vm7780_vm5, 0, %v7779_v22  ;;  %vm6045_vm4 = vc.u32 %v13512_v55, %v13502_v16  ;;  %v5927_v40 = vsel %vm5917_vm3, %v5924_v7, %v5926_v15  ;;  %v5928_v30 = vsel %vm5916_vm12, %v13470_v58, %v5909_v52 }
 0x7f3   :  { %v5852_v37 = vsub.s32 32, %v5851_v8  ;;  %v5856_v51 = vsub.s32 4294967266, %v5851_v8  ;;  %v6047_v35 = vsel %vm6045_vm4, %v6046_v43, %v13503_v45  ;;  %v5922_v23 = vsel %vm5918_vm13, %v13470_v58, %v5921_v57 }
 0x7f4   :  { %v6048_v50 = vadd.s32 %v6047_v35, %v6043_v42  ;;  %v5930_v25 = vsel %vm5918_vm13, %v5912_v62, %v5929_v34  ;;  %v13543_v21 = vmul.u32.u64.low %v13440_v59, %v5927_v40  ;;  %v13544_v63 = vmul.u32.u64.high %v13440_v59, %v5927_v40, %v13543_v21 }
 0x7f5   :  { %v5857_v27 = vadd.s32 127, %v5856_v51  ;;  %v5931_v9 = vsel %vm5917_vm3, %v5928_v30, %v5930_v25  ;;  %v5854_v56 = vshrl.u32 %v5836_v10, %v5852_v37  ;;  %v5923_v28 = vsel %vm5917_vm3, %v5920_v32, %v5922_v23 }
 0x7f6   :  { %v6049_v20 = vadd.s32 536870912, %v6048_v50  ;;  %v13550_v12 = vmul.u32.u64.low %v13440_v59, %v5931_v9  ;;  %v13551_v46 = vmul.u32.u64.high %v13440_v59, %v5931_v9, %v13550_v12  ;;  %v6095_v39 = vand.u32 2139095040, %v13410_v60 }
 0x7f7   :  { %v5858_v58 = vshll.u32 %v5857_v27, 23  ;;  %v7793_v52 = vadd.s32 4294967169, %v13450_v61  ;;  %v5853_v62 = vshll.u32 %v13491_v33, %v5851_v8  ;;  %v5942_v41 = vadd.s32 1, %v13544_v63 }
 0x7f8   :  { %v6050_v47 = vshrl.u32 %v6049_v20, 30  ;;  %v6196_v45 = vand.u32 2147483647, %v13382_v6  ;;  %v5866_v53 = vsub.s32 4, %v13477_v44  ;;  %v6096_v36 = vshrl.u32 %v6095_v39, 23 }
 0x7f9   :  { %v5859_v10 = vor.u32 4788187, %v5858_v58  ;;  %v5855_v38 = vor.u32 %v5854_v56, %v5853_v62  ;;  %v5939_v22 = vmul.u32 %v13440_v59, %v5923_v28  ;;  %vm5941_vm15 = vc.u32 %v13551_v46, %v13543_v21 }
 0x7fa   :  { %v6051_v24 = vshll.u32 %v6050_v47, 30  ;;  %v5943_v61 = vsel %vm5941_vm15, %v5942_v41, %v13544_v63  ;;  %v6092_v33 = vand.u32 2147483647, %v13410_v60  ;;  %v7789_v42 = vadd.s32 4294967169, %v6096_v36 }
 0x7fb   :  { %v6206_v7 = vadd.s32 1, %v7793_v52  ;;  %v5860_v43 = vand.u32 2147483647, %v5859_v10  ;;  %v5944_v13 = vadd.s32 %v5943_v61, %v5939_v22  ;;  %vm5782_vm7 = vcmp.lt.s32.totalorder %v13375_v3, 0 }
 0x7fc   :  { %v6052_v57 = vsub.s32 %v6048_v50, %v6051_v24  ;;  %v6102_v32 = vadd.s32 1, %v7789_v42  ;;  %v13571_v15 = vand.u32 8388607, %v6196_v45  ;;  %v5862_v59 = vcvt.s32.f32 %v5855_v38 }
 0x7fd   :  { %v5867_v34 = vsel %vm5782_vm7, %v5866_v53, %v13477_v44  ;;  %v5945_v40 = vadd.s32 536870912, %v5944_v13  ;;  %v6074_v30 = vsub.s32 4, %v6050_v47  ;;  %v6099_v37 = vand.u32 8388607, %v6092_v33 }
 0x7fe   :  { %v6054_v8 = vsub.s32 0, %v6052_v57  ;;  %vm6103_vm6 = vcmp.gt.s32.totalorder %v6102_v32, 0  ;;  %vm6207_vm2 = vcmp.gt.s32.totalorder %v6206_v7, 0  ;;  %v5863_v51 = vmul.f32 %v5862_v59, %v5860_v43 }
 0x7ff   :  { %v13578_v23 = vshrl.u32 %v5945_v40, 30  ;;  %v6104_v50 = vsel %vm6103_vm6, %v6102_v32, 0  ;;  %vm13582_vm0 = vcmp.le.f32.partialorder %v5780_v19, 0.7853982  ;;  %v13586_v27 = vsel %vm6207_vm2, %v6206_v7, 0 }
 0x800   :  { %v7786_v35 = vmin.u32 %v6054_v8, %v6052_v57  ;;  %v6106_v25 = vand.u32 31, %v6104_v50  ;;  %v6300_v9 = vand.u32 2147483647, %v13387_v2  ;;  %v5869_v56 = vsel %vm13582_vm0, 0, %v5867_v34 }
 0x801   :  { %vm5990_vm1 = vcmp.lt.s32.totalorder %v13405_v1, 0  ;;  %v5947_v20 = vshll.u32 %v13578_v23, 30  ;;  %v6204_v12 = vor.u32 8388608, %v13571_v15  ;;  %v5864_v58 = vxor.u32 2147483648, %v5863_v51 }
 0x802   :  { %v6056_v44 = vclz %v7786_v35  ;;  %v13596_v19 = vsel %vm5990_vm1, %v6074_v30, %v6050_v47  ;;  %v6100_v39 = vor.u32 8388608, %v6099_v37  ;;  %v6107_v62 = vsub.s32 32, %v6106_v25 }
 0x803   :  { %v13598_v52 = vsub.s32 %v5944_v13, %v5947_v20  ;;  %v13601_v41 = vand.u32 31, %v13586_v27  ;;  %v6303_v10 = vand.u32 2139095040, %v13387_v2  ;;  %v13604_v53 = vadd.s32 3, %v5869_v56 }
 0x804   :  { %v7787_v28 = vadd.s32 4294967294, %v6056_v44  ;;  %vm13608_vm9 = vcmp.le.f32.partialorder %v5988_v26, 0.7853982  ;;  %v6044_v47 = vadd.s32 %v13502_v16, %v13512_v55  ;;  %v5940_v22 = vadd.s32 %v13543_v21, %v13551_v46 }
 0x805   :  { %v6077_v24 = vsel %vm13608_vm9, 0, %v13596_v19  ;;  %v5950_v61 = vsub.s32 0, %v13598_v52  ;;  %v5865_v26 = vsel %vm5782_vm7, %v5864_v58, %v5863_v51  ;;  %v13622_v43 = vshll.u32 %v6100_v39, 8 }
 0x806   :  { %vm7788_vm14 = vcmp.lt.s32.totalorder %v7787_v28, 0  ;;  %v13625_v55 = vshrl.u32 %v6104_v50, 5  ;;  %v6110_v13 = vshrl.u32 %v15317_v54, %v6107_v62  ;;  %v13629_v32 = vsub.s32 32, %v13601_v41 }
 0x807   :  { %v6059_v38 = vsel %vm7788_vm14, 0, %v7787_v28  ;;  %v7782_v16 = vmin.u32 %v5950_v61, %v13598_v52  ;;  %v6116_v34 = vshrl.u32 %v15319_v48, %v6107_v62  ;;  %v5868_v8 = vsel %vm13582_vm0, %v13375_v3, %v5865_v26 }
 0x808   :  { %v6060_v42 = vsub.s32 32, %v6059_v38  ;;  %v6064_v7 = vsub.s32 4294967266, %v6059_v38  ;;  %v6061_v59 = vshll.u32 %v6052_v57, %v6059_v38  ;;  %v6113_v30 = vshrl.u32 %v15318_v31, %v6107_v62 }
 0x809   :  { %v5952_v40 = vclz %v7782_v16  ;;  %v6119_v37 = vshrl.u32 %v14999_v29, %v6107_v62  ;;  %v6109_v50 = vshll.u32 %v14995_v49, %v6106_v25  ;;  %v6115_v44 = vshll.u32 %v15318_v31, %v6106_v25 }
 0x80a   :  { %v6062_v21 = vshrl.u32 %v6044_v47, %v6060_v42  ;;  %v6065_v46 = vadd.s32 127, %v6064_v7  ;;  %v6108_v56 = vshrl.u32 %v14995_v49, %v6107_v62  ;;  %v6112_v20 = vshll.u32 %v15317_v54, %v6106_v25 }
 0x80b   :  { %v7783_v57 = vadd.s32 4294967294, %v5952_v40  ;;  %v6118_v58 = vshll.u32 %v15319_v48, %v6106_v25  ;;  %v6111_v28 = vor.u32 %v6110_v13, %v6109_v50  ;;  %v6117_v39 = vor.u32 %v6116_v34, %v6115_v44 }
 0x80c   :  { %v6063_v51 = vor.u32 %v6062_v21, %v6061_v59  ;;  %v6066_v35 = vshll.u32 %v6065_v46, 23  ;;  %v6122_v47 = vshrl.u32 %v15193_v18, %v6107_v62  ;;  %v6114_v38 = vor.u32 %v6113_v30, %v6112_v20  ;;  %v13663_v20 = vpop.f32.mrb[21].mxu0 }
 0x80d   :  { %vm7784_vm11 = vcmp.lt.s32.totalorder %v7783_v57, 0  ;;  %v6120_v61 = vor.u32 %v6119_v37, %v6118_v58  ;;  %v6121_v26 = vshll.u32 %v14999_v29, %v6106_v25  ;;  %vm6124_vm8 = vcmp.lt.s32.totalorder %v13625_v55, 1 }
 0x80e   :  { %v6067_v63 = vor.u32 4788187, %v6066_v35  ;;  %v6070_v7 = vcvt.s32.f32 %v6063_v51  ;;  %v5955_v16 = vsel %vm7784_vm11, 0, %v7783_v57  ;;  %vm6125_vm12 = vcmp.lt.s32.totalorder %v13625_v55, 2 }
 0x80f   :  { %v5956_v59 = vsub.s32 32, %v5955_v16  ;;  %v5960_v21 = vsub.s32 4294967266, %v5955_v16  ;;  %vm6127_vm3 = vcmp.lt.s32.totalorder %v13625_v55, 4  ;;  %v6123_v46 = vor.u32 %v6122_v47, %v6121_v26 }
 0x810   :  { %v6068_v42 = vand.u32 2147483647, %v6067_v63  ;;  %vm6126_vm10 = vcmp.lt.s32.totalorder %v13625_v55, 3  ;;  %v6129_v62 = vsel %vm6127_vm3, %v6117_v39, 2102212464  ;;  %v5957_v25 = vshll.u32 %v13598_v52, %v5955_v16 }
 0x811   :  { %v5958_v34 = vshrl.u32 %v5940_v22, %v5956_v59  ;;  %v5961_v40 = vadd.s32 127, %v5960_v21  ;;  %v6128_v30 = vsel %vm6124_vm8, %v6108_v56, %v6111_v28  ;;  %v6130_v51 = vsel %vm6126_vm10, %v6114_v38, %v6129_v62 }
 0x812   :  { %v6071_v13 = vmul.f32 %v6070_v7, %v6068_v42  ;;  %v6132_v35 = vsel %vm6124_vm8, %v6111_v28, %v6114_v38  ;;  %v6133_v50 = vsel %vm6127_vm3, %v6120_v61, 920167782  ;;  %v6136_v22 = vsel %vm6124_vm8, %v6114_v38, %v6117_v39 }
 0x813   :  { %v5959_v44 = vor.u32 %v5958_v34, %v5957_v25  ;;  %v5962_v57 = vshll.u32 %v5961_v40, 23  ;;  %v6134_v52 = vsel %vm6126_vm10, %v6117_v39, %v6133_v50  ;;  %8352 = vcosq.f32 %v5868_v8 }
 0x814   :  { %v6072_v37 = vxor.u32 2147483648, %v6071_v13  ;;  %v6135_v58 = vsel %vm6125_vm12, %v6132_v35, %v6134_v52  ;;  %v6137_v63 = vsel %vm6127_vm3, %v6123_v46, 1326507024  ;;  %v6131_v39 = vsel %vm6125_vm12, %v6128_v30, %v6130_v51 }
 0x815   :  { %v5963_v47 = vor.u32 4788187, %v5962_v57  ;;  %v6138_v38 = vsel %vm6126_vm10, %v6120_v61, %v6137_v63  ;;  %8354 = vsinq.f32 %v5868_v8  ;;  %v5966_v59 = vcvt.s32.f32 %v5959_v44 }
 0x816   :  { %v6073_v56 = vsel %vm5990_vm1, %v6072_v37, %v6071_v13  ;;  %v6139_v26 = vsel %vm6125_vm12, %v6136_v22, %v6138_v38  ;;  %v13681_v42 = vmul.u32.u64.low %v13622_v43, %v6135_v58  ;;  %v13682_v7 = vmul.u32.u64.high %v13622_v43, %v6135_v58, %v13681_v42 }
 0x817   :  { %v6076_v28 = vsel %vm13608_vm9, %v13405_v1, %v6073_v56  ;;  %v5964_v16 = vand.u32 2147483647, %v5963_v47  ;;  %v13686_v21 = vmul.u32.u64.low %v13622_v43, %v6139_v26  ;;  %v13687_v13 = vmul.u32.u64.high %v13622_v43, %v6139_v26, %v13686_v21 }
 0x818   :  { %8356 = vcosq.f32 %v6076_v28  ;;  %vm5886_vm13 = vcmp.lt.s32.totalorder %v13379_v0, 0  ;;  %v6147_v61 = vmul.u32 %v13622_v43, %v6131_v39  ;;  %v13692_v8 = vshrl.u32 %v13586_v27, 5 }
 0x819   :  { %v6214_v55 = vshrl.u32 %v15317_v54, %v13629_v32  ;;  %v5967_v46 = vmul.f32 %v5966_v59, %v5964_v16  ;;  %v6213_v62 = vshll.u32 %v14995_v49, %v13601_v41  ;;  %v6217_v25 = vshrl.u32 %v15318_v31, %v13629_v32 }
 0x81a   :  { %v6220_v34 = vshrl.u32 %v15319_v48, %v13629_v32  ;;  %v6150_v40 = vadd.s32 1, %v13682_v7  ;;  %v6216_v43 = vshll.u32 %v15317_v54, %v13601_v41  ;;  %v6222_v27 = vshll.u32 %v15319_v48, %v13601_v41 }
 0x81b   :  { %v6223_v30 = vshrl.u32 %v14999_v29, %v13629_v32  ;;  %8358 = vsinq.f32 %v6076_v28  ;;  %vm13711_vm5 = vcmp.le.f32.partialorder %v5884_v5, 0.7853982  ;;  %vm6149_vm4 = vc.u32 %v13687_v13, %v13681_v42 }
 0x81c   :  { %v6215_v51 = vor.u32 %v6214_v55, %v6213_v62  ;;  %v6219_v35 = vshll.u32 %v15318_v31, %v13601_v41  ;;  %v5968_v50 = vxor.u32 2147483648, %v5967_v46  ;;  %v6151_v44 = vsel %vm6149_vm4, %v6150_v40, %v13682_v7 }
 0x81d   :  { %v6218_v57 = vor.u32 %v6217_v25, %v6216_v43  ;;  %v6224_v52 = vor.u32 %v6223_v30, %v6222_v27  ;;  %v6152_v22 = vadd.s32 %v6151_v44, %v6147_v61  ;;  %v6225_v5 = vshll.u32 %v14999_v29, %v13601_v41  ;;  %v13724_v63 = vpop.eup %8352 }
 0x81e   :  { %v6221_v56 = vor.u32 %v6220_v34, %v6219_v35  ;;  %v6226_v58 = vshrl.u32 %v15193_v18, %v13629_v32  ;;  %v6081_v28 = vadd.s32 3, %v6077_v24  ;;  %v5970_v47 = vsub.s32 4, %v13578_v23 }
 0x81f   :  { %v13733_v39 = vshll.u32 %v6204_v12, 8  ;;  %v13737_v38 = vshrl.u32 %v6303_v10, 23  ;;  %v6153_v41 = vadd.s32 536870912, %v6152_v22  ;;  %vm6228_vm15 = vcmp.lt.s32.totalorder %v13692_v8, 1  ;;  %v8355_v36 = vpop.eup %8354 }
 0x820   :  { %v6227_v26 = vor.u32 %v6226_v58, %v6225_v5  ;;  %vm6231_vm7 = vcmp.lt.s32.totalorder %v13692_v8, 4  ;;  %v13742_v19 = vand.u32 3, %v13604_v53  ;;  %vm6230_vm6 = vcmp.lt.s32.totalorder %v13692_v8, 3 }
 0x821   :  { %v6236_v15 = vsel %vm6228_vm15, %v6215_v51, %v6218_v57  ;;  %v6237_v12 = vsel %vm6231_vm7, %v6224_v52, 920167782  ;;  %v5969_v10 = vsel %vm5886_vm13, %v5968_v50, %v5967_v46  ;;  %v13751_v24 = vshrl.u32 %v6153_v41, 30 }
 0x822   :  { %vm6229_vm2 = vcmp.lt.s32.totalorder %v13692_v8, 2  ;;  %v6238_v7 = vsel %vm6230_vm6, %v6221_v56, %v6237_v12  ;;  %v8357_v53 = vpop.eup %8356  ;;  %v13756_v16 = vand.u32 3, %v6081_v28  ;;  %v6233_v59 = vsel %vm6231_vm7, %v6221_v56, 2102212464 }
 0x823   :  { %v6239_v21 = vsel %vm6229_vm2, %v6236_v15, %v6238_v7  ;;  %v6240_v61 = vsel %vm6228_vm15, %v6218_v57, %v6221_v56  ;;  %v5971_v55 = vsel %vm5886_vm13, %v5970_v47, %v13578_v23  ;;  %v6155_v46 = vshll.u32 %v13751_v24, 30 }
 0x824   :  { %v6212_v62 = vshrl.u32 %v14995_v49, %v13629_v32  ;;  %v6241_v25 = vsel %vm6231_vm7, %v6227_v26, 1326507024  ;;  %v5972_v34 = vsel %vm13711_vm5, %v13379_v0, %v5969_v10  ;;  %v6234_v35 = vsel %vm6230_vm6, %v6218_v57, %v6233_v59 }
 0x825   :  { %v6242_v40 = vsel %vm6230_vm6, %v6224_v52, %v6241_v25  ;;  %v13778_v43 = vmul.u32.u64.low %v13733_v39, %v6239_v21  ;;  %v13779_v27 = vmul.u32.u64.high %v13733_v39, %v6239_v21, %v13778_v43  ;;  %v8359_v23 = vpop.eup %8358  ;;  %v13782_v30 = vsub.s32 %v6152_v22, %v6155_v46  ;;  %v13802_v22 = vpop.f32.mrb[21].mxu1 }
 0x826   :  { %v6232_v32 = vsel %vm6228_vm15, %v6212_v62, %v6215_v51  ;;  %v6243_v50 = vsel %vm6229_vm2, %v6240_v61, %v6242_v40  ;;  %vm5876_vm0 = vcmp.eq.s32.totalorder %v13742_v19, 0  ;;  %vm5879_vm1 = vcmp.eq.s32.totalorder %v13742_v19, 2 }
 0x827   :  { %v13793_v44 = vmul.u32.u64.low %v13733_v39, %v6243_v50  ;;  %v13794_v52 = vmul.u32.u64.high %v13733_v39, %v6243_v50, %v13793_v44  ;;  %vm5875_vm9 = vcmp.lt.s32.totalorder %v13742_v19, 2  ;;  %vm6084_vm14 = vcmp.eq.s32.totalorder %v13756_v16, 0 }
 0x828   :  { %v5973_v51 = vsel %vm13711_vm5, 0, %v5971_v55  ;;  %vm6094_vm11 = vcmp.lt.s32.totalorder %v13410_v60, 0  ;;  %v6158_v57 = vsub.s32 0, %v13782_v30  ;;  %8360 = vcosq.f32 %v5972_v34 }
 0x829   :  { %v6235_v56 = vsel %vm6229_vm2, %v6232_v32, %v6234_v35  ;;  %v6254_v5 = vadd.s32 1, %v13779_v27  ;;  %v6407_v58 = vand.u32 2139095040, %v13417_v11  ;;  %v5877_v28 = vxor.u32 2147483648, %v8355_v36 }
 0x82a   :  { %v5880_v47 = vxor.u32 2147483648, %v13724_v63  ;;  %8362 = vsinq.f32 %v5972_v34  ;;  %v7790_v37 = vmin.u32 %v6158_v57, %v13782_v30  ;;  %vm5872_vm8 = vweird.f32 %v13375_v3 }
 0x82b   :  { %v6085_v41 = vxor.u32 2147483648, %v8359_v23  ;;  %v6088_v26 = vxor.u32 2147483648, %v8357_v53  ;;  %vm6253_vm12 = vc.u32 %v13794_v52, %v13778_v43  ;;  %v6408_v15 = vshrl.u32 %v6407_v58, 23 }
 0x82c   :  { %v6160_v8 = vclz %v7790_v37  ;;  %v6178_v12 = vsub.s32 4, %v13751_v24  ;;  %v6251_v10 = vmul.u32 %v13733_v39, %v6235_v56  ;;  %v6404_v7 = vand.u32 2147483647, %v13417_v11 }
 0x82d   :  { %vm6080_vm3 = vweird.f32 %v13405_v1  ;;  %vm6087_vm10 = vcmp.eq.s32.totalorder %v13756_v16, 2  ;;  %v5977_v59 = vadd.s32 3, %v5973_v51  ;;  %v6255_v21 = vsel %vm6253_vm12, %v6254_v5, %v13779_v27 }
 0x82e   :  { %v7801_v61 = vadd.s32 4294967169, %v6408_v15  ;;  %v5878_v55 = vsel %vm5876_vm0, %v13724_v63, %v5877_v28  ;;  %v5881_v46 = vsel %vm5879_vm1, %v5880_v47, %v8355_v36  ;;  %v7791_v62 = vadd.s32 4294967294, %v6160_v8 }
 0x82f   :  { %v6256_v25 = vadd.s32 %v6255_v21, %v6251_v10  ;;  %v6086_v39 = vsel %vm6084_vm14, %v8357_v53, %v6085_v41  ;;  %v6089_v34 = vsel %vm6087_vm10, %v6088_v26, %v8359_v23  ;;  %vm13828_vm13 = vcmp.le.f32.partialorder %v6092_v33, 0.7853982 }
 0x830   :  { %v6414_v27 = vadd.s32 1, %v7801_v61  ;;  %vm7792_vm5 = vcmp.lt.s32.totalorder %v7791_v62, 0  ;;  %v6179_v63 = vsel %vm6094_vm11, %v6178_v12, %v13751_v24  ;;  %vm6198_vm4 = vcmp.lt.s32.totalorder %v13382_v6, 0 }
 0x831   :  { %v6257_v36 = vadd.s32 536870912, %v6256_v25  ;;  %v6411_v32 = vand.u32 8388607, %v6404_v7  ;;  %v5882_v53 = vsel %vm5875_vm9, %v5878_v55, %v5881_v46  ;;  %v6163_v23 = vsel %vm7792_vm5, 0, %v7791_v62 }
 0x832   :  { %vm6415_vm15 = vcmp.gt.s32.totalorder %v6414_v27, 0  ;;  %v7797_v33 = vadd.s32 4294967169, %v13737_v38  ;;  %vm6083_vm7 = vcmp.lt.s32.totalorder %v13756_v16, 2  ;;  %v13842_v35 = vand.u32 3, %v5977_v59  ;;  %v13844_v24 = vpop.eup %8360 }
 0x833   :  { %v6168_v50 = vsub.s32 4294967266, %v6163_v23  ;;  %v6258_v44 = vshrl.u32 %v6257_v36, 30  ;;  %v6090_v51 = vsel %vm6083_vm7, %v6086_v39, %v6089_v34  ;;  %v6164_v57 = vsub.s32 32, %v6163_v23 }
 0x834   :  { %v6181_v56 = vsel %vm13828_vm13, 0, %v6179_v63  ;;  %vm13850_vm6 = vcmp.le.f32.partialorder %v6196_v45, 0.7853982  ;;  %v6416_v38 = vsel %vm6415_vm15, %v6414_v27, 0  ;;  %v13854_v5 = vpop.eup %8362  ;;  %v13858_v16 = vsel %vm5872_vm8, nan, %v5882_v53 }
 0x835   :  { %v6148_v58 = vadd.s32 %v13681_v42, %v13687_v13  ;;  %v6259_v28 = vshll.u32 %v6258_v44, 30  ;;  %v6412_v47 = vor.u32 8388608, %v6411_v32  ;;  %v6169_v37 = vadd.s32 127, %v6168_v50 }
 0x836   :  { %v6282_v41 = vsub.s32 4, %v6258_v44  ;;  %v6418_v26 = vand.u32 31, %v6416_v38  ;;  %v6310_v15 = vadd.s32 1, %v7797_v33  ;;  %v13864_v45 = vsel %vm6080_vm3, nan, %v6090_v51 }
 0x837   :  { %v5984_v8 = vxor.u32 2147483648, %v13844_v24  ;;  %v13867_v12 = vadd.s32 3, %v6181_v56  ;;  %v13869_v3 = vsub.s32 %v6256_v25, %v6259_v28  ;;  %v5981_v10 = vxor.u32 2147483648, %v13854_v5 }
 0x838   :  { %v6166_v59 = vshrl.u32 %v6148_v58, %v6164_v57  ;;  %v6252_v42 = vadd.s32 %v13778_v43, %v13794_v52  ;;  %v6419_v13 = vsub.s32 32, %v6418_v26  ;;  %v6165_v21 = vshll.u32 %v13782_v30, %v6163_v23 }
 0x839   :  { %v6262_v61 = vsub.s32 0, %v13869_v3  ;;  %v13876_v1 = vshll.u32 %v6412_v47, 8  ;;  %v13880_v55 = vand.u32 8388607, %v6300_v9  ;;  %v6170_v46 = vshll.u32 %v6169_v37, 23 }
 0x83a   :  { %v13884_v62 = vsel %vm6198_vm4, %v6282_v41, %v6258_v44  ;;  %v6422_v25 = vshrl.u32 %v15317_v54, %v6419_v13  ;;  %vm6311_vm2 = vcmp.gt.s32.totalorder %v6310_v15, 0  ;;  %v6417_v52 = vshrl.u32 %v6416_v38, 5 }
 0x83b   :  { %v7794_v43 = vmin.u32 %v6262_v61, %v13869_v3  ;;  %v6425_v30 = vshrl.u32 %v15318_v31, %v6419_v13  ;;  %v6428_v39 = vshrl.u32 %v15319_v48, %v6419_v13  ;;  %v6167_v34 = vor.u32 %v6166_v59, %v6165_v21 }
 0x83c   :  { %v6421_v27 = vshll.u32 %v14995_v49, %v6418_v26  ;;  %v6427_v63 = vshll.u32 %v15318_v31, %v6418_v26  ;;  %v6431_v36 = vshrl.u32 %v14999_v29, %v6419_v13  ;;  %v6285_v53 = vsel %vm13850_vm6, 0, %v13884_v62 }
 0x83d   :  { %v6264_v32 = vclz %v7794_v43  ;;  %v6424_v23 = vshll.u32 %v15317_v54, %v6418_v26  ;;  %v6312_v33 = vsel %vm6311_vm2, %v6310_v15, 0  ;;  %v6171_v50 = vor.u32 4788187, %v6170_v46 }
 0x83e   :  { %v6423_v44 = vor.u32 %v6422_v25, %v6421_v27  ;;  %v6429_v51 = vor.u32 %v6428_v39, %v6427_v63  ;;  %v6430_v57 = vshll.u32 %v15319_v48, %v6418_v26  ;;  %v6433_v58 = vshll.u32 %v14999_v29, %v6418_v26 }
 0x83f   :  { %v7795_v56 = vadd.s32 4294967294, %v6264_v32  ;;  %v6426_v38 = vor.u32 %v6425_v30, %v6424_v23  ;;  %v6434_v28 = vshrl.u32 %v15193_v18, %v6419_v13  ;;  %vm5980_vm0 = vcmp.eq.s32.totalorder %v13842_v35, 0 }
 0x840   :  { %vm5983_vm1 = vcmp.eq.s32.totalorder %v13842_v35, 2  ;;  %v6174_v47 = vcvt.s32.f32 %v6167_v34  ;;  %v6420_v37 = vshrl.u32 %v14995_v49, %v6419_v13  ;;  %v6432_v41 = vor.u32 %v6431_v36, %v6430_v57 }
 0x841   :  { %vm6439_vm9 = vcmp.lt.s32.totalorder %v6417_v52, 4  ;;  %vm7796_vm14 = vcmp.lt.s32.totalorder %v7795_v56, 0  ;;  %v6435_v15 = vor.u32 %v6434_v28, %v6433_v58  ;;  %vm6436_vm8 = vcmp.lt.s32.totalorder %v6417_v52, 1 }
 0x842   :  { %v6441_v59 = vsel %vm6439_vm9, %v6429_v51, 2102212464  ;;  %v6172_v21 = vand.u32 2147483647, %v6171_v50  ;;  %v6267_v61 = vsel %vm7796_vm14, 0, %v7795_v56  ;;  %vm6438_vm12 = vcmp.lt.s32.totalorder %v6417_v52, 3 }
 0x843   :  { %v6440_v26 = vsel %vm6436_vm8, %v6420_v37, %v6423_v44  ;;  %v6268_v46 = vsub.s32 32, %v6267_v61  ;;  %v6272_v62 = vsub.s32 4294967266, %v6267_v61  ;;  %v6442_v25 = vsel %vm6438_vm12, %v6426_v38, %v6441_v59 }
 0x844   :  { %v6444_v43 = vsel %vm6436_vm8, %v6423_v44, %v6426_v38  ;;  %v6269_v30 = vshll.u32 %v13869_v3, %v6267_v61  ;;  %vm6437_vm3 = vcmp.lt.s32.totalorder %v6417_v52, 2  ;;  %v6445_v13 = vsel %vm6439_vm9, %v6432_v41, 920167782 }
 0x845   :  { %v6448_v39 = vsel %vm6436_vm8, %v6426_v38, %v6429_v51  ;;  %v6270_v34 = vshrl.u32 %v6252_v42, %v6268_v46  ;;  %v6273_v27 = vadd.s32 127, %v6272_v62  ;;  %v6446_v63 = vsel %vm6438_vm12, %v6429_v51, %v6445_v13 }
 0x846   :  { %v6449_v36 = vsel %vm6439_vm9, %v6435_v15, 1326507024  ;;  %v6175_v32 = vmul.f32 %v6174_v47, %v6172_v21  ;;  %v6443_v23 = vsel %vm6437_vm3, %v6440_v26, %v6442_v25  ;;  %v6447_v50 = vsel %vm6437_vm3, %v6444_v43, %v6446_v63  ;;  %v13938_v25 = vpop.f32.mrb[22].mxu0 }
 0x847   :  { %v6450_v57 = vsel %vm6438_vm12, %v6432_v41, %v6449_v36  ;;  %v6271_v56 = vor.u32 %v6270_v34, %v6269_v30  ;;  %v6274_v58 = vshll.u32 %v6273_v27, 23  ;;  %v6314_v28 = vand.u32 31, %v6312_v33 }
 0x848   :  { %v6451_v44 = vsel %vm6437_vm3, %v6448_v39, %v6450_v57  ;;  %v13915_v42 = vmul.u32.u64.low %v13876_v1, %v6447_v50  ;;  %v13916_v38 = vmul.u32.u64.high %v13876_v1, %v6447_v50, %v13915_v42  ;;  %v13924_v52 = vsel %vm5980_vm0, %v13844_v24, %v5981_v10 }
 0x849   :  { %v13911_v3 = vmul.u32.u64.low %v13876_v1, %v6451_v44  ;;  %v13912_v37 = vmul.u32.u64.high %v13876_v1, %v6451_v44, %v13911_v3  ;;  %v13931_v51 = vsel %vm5983_vm1, %v5984_v8, %v13854_v5  ;;  %v6275_v47 = vor.u32 4788187, %v6274_v58 }
 0x84a   :  { %v6315_v41 = vsub.s32 32, %v6314_v28  ;;  %v6176_v15 = vxor.u32 2147483648, %v6175_v32  ;;  %v6289_v59 = vadd.s32 3, %v6285_v53  ;;  %v6459_v21 = vmul.u32 %v13876_v1, %v6443_v23 }
 0x84b   :  { %v6308_v61 = vor.u32 8388608, %v13880_v55  ;;  %v6276_v26 = vand.u32 2147483647, %v6275_v47  ;;  %v6278_v46 = vcvt.s32.f32 %v6271_v56  ;;  %v13935_v62 = vshrl.u32 %v6312_v33, 5 }
 0x84c   :  { %v6318_v10 = vshrl.u32 %v15317_v54, %v6315_v41  ;;  %vm6461_vm10 = vc.u32 %v13912_v37, %v13915_v42  ;;  %v6462_v24 = vadd.s32 1, %v13916_v38  ;;  %v6321_v5 = vshrl.u32 %v15318_v31, %v6315_v41 }
 0x84d   :  { %v6324_v8 = vshrl.u32 %v15319_v48, %v6315_v41  ;;  %v6279_v1 = vmul.f32 %v6278_v46, %v6276_v26  ;;  %v6317_v55 = vshll.u32 %v14995_v49, %v6314_v28  ;;  %v6320_v53 = vshll.u32 %v15317_v54, %v6314_v28 }
 0x84e   :  { %v6327_v33 = vshrl.u32 %v14999_v29, %v6315_v41  ;;  %v6463_v43 = vsel %vm6461_vm10, %v6462_v24, %v13916_v38  ;;  %v6323_v30 = vshll.u32 %v15318_v31, %v6314_v28  ;;  %v6326_v13 = vshll.u32 %v15319_v48, %v6314_v28 }
 0x84f   :  { %v6330_v39 = vshrl.u32 %v15193_v18, %v6315_v41  ;;  %v6280_v34 = vxor.u32 2147483648, %v6279_v1  ;;  %v6464_v27 = vadd.s32 %v6463_v43, %v6459_v21  ;;  %v6329_v63 = vshll.u32 %v14999_v29, %v6314_v28 }
 0x850   :  { %v13953_v36 = vshll.u32 %v6308_v61, 8  ;;  %v6319_v23 = vor.u32 %v6318_v10, %v6317_v55  ;;  %v6322_v50 = vor.u32 %v6321_v5, %v6320_v53  ;;  %v6325_v57 = vor.u32 %v6324_v8, %v6323_v30 }
 0x851   :  { %v6328_v56 = vor.u32 %v6327_v33, %v6326_v13  ;;  %v6177_v58 = vsel %vm6094_vm11, %v6176_v15, %v6175_v32  ;;  %v6281_v44 = vsel %vm6198_vm4, %v6280_v34, %v6279_v1  ;;  %v13959_v3 = vand.u32 3, %v6289_v59 }
 0x852   :  { %v6465_v38 = vadd.s32 536870912, %v6464_v27  ;;  %vm5979_vm5 = vcmp.lt.s32.totalorder %v13842_v35, 2  ;;  %v6284_v28 = vsel %vm13850_vm6, %v13382_v6, %v6281_v44  ;;  %vm6406_vm15 = vcmp.lt.s32.totalorder %v13417_v11, 0 }
 0x853   :  { %v6316_v47 = vshrl.u32 %v14995_v49, %v6315_v41  ;;  %v6331_v21 = vor.u32 %v6330_v39, %v6329_v63  ;;  %vm6332_vm7 = vcmp.lt.s32.totalorder %v13935_v62, 1  ;;  %8364 = vcosq.f32 %v6284_v28 }
 0x854   :  { %v6466_v32 = vshrl.u32 %v6465_v38, 30  ;;  %vm6334_vm11 = vcmp.lt.s32.totalorder %v13935_v62, 3  ;;  %vm6335_vm4 = vcmp.lt.s32.totalorder %v13935_v62, 4  ;;  %8366 = vsinq.f32 %v6284_v28 }
 0x855   :  { %v6337_v15 = vsel %vm6335_vm4, %v6325_v57, 2102212464  ;;  %v6340_v59 = vsel %vm6332_vm7, %v6319_v23, %v6322_v50  ;;  %v6341_v61 = vsel %vm6335_vm4, %v6328_v56, 920167782  ;;  %v6180_v19 = vsel %vm13828_vm13, %v13410_v60, %v6177_v58 }
 0x856   :  { %v6467_v26 = vshll.u32 %v6466_v32, 30  ;;  %vm6333_vm6 = vcmp.lt.s32.totalorder %v13935_v62, 2  ;;  %v6342_v41 = vsel %vm6334_vm11, %v6325_v57, %v6341_v61  ;;  %v6336_v46 = vsel %vm6332_vm7, %v6316_v47, %v6319_v23 }
 0x857   :  { %v6343_v10 = vsel %vm6333_vm6, %v6340_v59, %v6342_v41  ;;  %v6344_v24 = vsel %vm6332_vm7, %v6322_v50, %v6325_v57  ;;  %v6345_v5 = vsel %vm6335_vm4, %v6331_v21, 1326507024  ;;  %v6490_v1 = vsub.s32 4, %v6466_v32 }
 0x858   :  { %v13978_v8 = vsub.s32 %v6464_v27, %v6467_v26  ;;  %v6338_v55 = vsel %vm6334_vm11, %v6322_v50, %v6337_v15  ;;  %v6346_v40 = vsel %vm6334_vm11, %v6328_v56, %v6345_v5  ;;  %8368 = vcosq.f32 %v6180_v19  ;;  %v14017_v56 = vpop.f32.mrb[22].mxu1 }
 0x859   :  { %v6347_v53 = vsel %vm6333_vm6, %v6344_v24, %v6346_v40  ;;  %v13987_v33 = vmul.u32.u64.low %v13953_v36, %v6343_v10  ;;  %v13988_v43 = vmul.u32.u64.high %v13953_v36, %v6343_v10, %v13987_v33  ;;  %8370 = vsinq.f32 %v6180_v19 }
 0x85a   :  { %v6470_v30 = vsub.s32 0, %v13978_v8  ;;  %v13993_v13 = vmul.u32.u64.low %v13953_v36, %v6347_v53  ;;  %v13994_v39 = vmul.u32.u64.high %v13953_v36, %v6347_v53, %v13993_v13  ;;  %v13997_v34 = vand.u32 3, %v13867_v12 }
 0x85b   :  { %vm6288_vm13 = vweird.f32 %v13382_v6  ;;  %vm14002_vm2 = vcmp.le.f32.partialorder %v6404_v7, 0.7853982  ;;  %v6339_v63 = vsel %vm6333_vm6, %v6336_v46, %v6338_v55  ;;  %v6511_v23 = vand.u32 2139095040, %v13420_v14 }
 0x85c   :  { %v5986_v50 = vsel %vm5979_vm5, %v13924_v52, %v13931_v51  ;;  %v7802_v12 = vmin.u32 %v6470_v30, %v13978_v8  ;;  %v6491_v57 = vsel %vm6406_vm15, %v6490_v1, %v6466_v32  ;;  %v6508_v7 = vand.u32 2147483647, %v13420_v14 }
 0x85d   :  { %vm6291_vm0 = vcmp.lt.s32.totalorder %v13959_v3, 2  ;;  %vm6292_vm1 = vcmp.eq.s32.totalorder %v13959_v3, 0  ;;  %v6358_v62 = vadd.s32 1, %v13988_v43  ;;  %v6512_v58 = vshrl.u32 %v6511_v23, 23  ;;  %v8365_v44 = vpop.eup %8364 }
 0x85e   :  { %vm5976_vm9 = vweird.f32 %v13379_v0  ;;  %vm6295_vm14 = vcmp.eq.s32.totalorder %v13959_v3, 2  ;;  %v6460_v35 = vadd.s32 %v13915_v42, %v13912_v37  ;;  %v6472_v52 = vclz %v7802_v12  ;;  %v8367_v38 = vpop.eup %8366 }
 0x85f   :  { %v6355_v51 = vmul.u32 %v13953_v36, %v6339_v63  ;;  %v6296_v28 = vxor.u32 2147483648, %v8365_v44  ;;  %v6493_v47 = vsel %vm14002_vm2, 0, %v6491_v57  ;;  %vm6357_vm8 = vc.u32 %v13994_v39, %v13987_v33 }
 0x860   :  { %v7805_v21 = vadd.s32 4294967169, %v6512_v58  ;;  %v6293_v32 = vxor.u32 2147483648, %v8367_v38  ;;  %v7803_v15 = vadd.s32 4294967294, %v6472_v52  ;;  %v6359_v59 = vsel %vm6357_vm8, %v6358_v62, %v13988_v43 }
 0x861   :  { %v6515_v61 = vand.u32 8388607, %v6508_v7  ;;  %v6297_v37 = vsel %vm6295_vm14, %v6296_v28, %v8367_v38  ;;  %v6360_v42 = vadd.s32 %v6359_v59, %v6355_v51  ;;  %v6615_v36 = vand.u32 2139095040, %v13489_v17 }
 0x862   :  { %v6518_v19 = vadd.s32 1, %v7805_v21  ;;  %v6294_v26 = vsel %vm6292_vm1, %v8365_v44, %v6293_v32  ;;  %vm7804_vm12 = vcmp.lt.s32.totalorder %v7803_v15, 0  ;;  %v6497_v41 = vadd.s32 3, %v6493_v47  ;;  %v14038_v10 = vpop.eup %8368 }
 0x863   :  { %v6612_v46 = vand.u32 2147483647, %v13489_v17  ;;  %v6298_v24 = vsel %vm6291_vm0, %v6294_v26, %v6297_v37  ;;  %v6475_v5 = vsel %vm7804_vm12, 0, %v7803_v15  ;;  %v6361_v1 = vadd.s32 536870912, %v6360_v42  ;;  %v14042_v55 = vpop.eup %8370 }
 0x864   :  { %vm6519_vm3 = vcmp.gt.s32.totalorder %v6518_v19, 0  ;;  %v6299_v40 = vsel %vm6288_vm13, nan, %v6298_v24  ;;  %v6476_v53 = vsub.s32 32, %v6475_v5  ;;  %v6480_v43 = vsub.s32 4294967266, %v6475_v5 }
 0x865   :  { %v6516_v30 = vor.u32 8388608, %v6515_v61  ;;  %v14047_v13 = vadd.f32 %v6299_v40, %v13858_v16  ;;  %vm6302_vm10 = vcmp.lt.s32.totalorder %v13387_v2, 0  ;;  %v6362_v63 = vshrl.u32 %v6361_v1, 30 }
 0x866   :  { %v6520_v23 = vsel %vm6519_vm3, %v6518_v19, 0  ;;  %v6616_v3 = vshrl.u32 %v6615_v36, 23  ;;  %v6477_v12 = vshll.u32 %v13978_v8, %v6475_v5  ;;  %v6478_v57 = vshrl.u32 %v6460_v35, %v6476_v53 }
 0x867   :  { %v6481_v62 = vadd.s32 127, %v6480_v43  ;;  %v6522_v58 = vand.u32 31, %v6520_v23  ;;  %v14053_v6 = vsel %vm5976_vm9, nan, %v5986_v50  ;;  %v6189_v44 = vxor.u32 2147483648, %v14042_v55 }
 0x868   :  { %v6192_v52 = vxor.u32 2147483648, %v14038_v10  ;;  %v6363_v16 = vshll.u32 %v6362_v63, 30  ;;  %v6479_v51 = vor.u32 %v6478_v57, %v6477_v12  ;;  %v14057_v28 = vand.u32 3, %v6497_v41 }
 0x869   :  { %v6482_v38 = vshll.u32 %v6481_v62, 23  ;;  %v6523_v47 = vsub.s32 32, %v6522_v58  ;;  %v6356_v8 = vadd.s32 %v13987_v33, %v13994_v39  ;;  %v14063_v21 = vshll.u32 %v6516_v30, 8 }
 0x86a   :  { %v14061_v35 = vsub.s32 %v6360_v42, %v6363_v16  ;;  %v14067_v0 = vand.u32 8388607, %v6612_v46  ;;  %v6386_v32 = vsub.s32 4, %v6362_v63  ;;  %v14069_v15 = vshrl.u32 %v6520_v23, 5 }
 0x86b   :  { %v6483_v50 = vor.u32 4788187, %v6482_v38  ;;  %v7809_v59 = vadd.s32 4294967169, %v6616_v3  ;;  %v6526_v37 = vshrl.u32 %v15317_v54, %v6523_v47  ;;  %v6529_v19 = vshrl.u32 %v15318_v31, %v6523_v47 }
 0x86c   :  { %v6366_v61 = vsub.s32 0, %v14061_v35  ;;  %v6531_v33 = vshll.u32 %v15318_v31, %v6522_v58  ;;  %v6486_v42 = vcvt.s32.f32 %v6479_v51  ;;  %v6532_v36 = vshrl.u32 %v15319_v48, %v6523_v47 }
 0x86d   :  { %v6484_v39 = vand.u32 2147483647, %v6483_v50  ;;  %v6535_v26 = vshrl.u32 %v14999_v29, %v6523_v47  ;;  %v6525_v24 = vshll.u32 %v14995_v49, %v6522_v58  ;;  %v6528_v5 = vshll.u32 %v15317_v54, %v6522_v58 }
 0x86e   :  { %v7798_v41 = vmin.u32 %v6366_v61, %v14061_v35  ;;  %v6534_v1 = vshll.u32 %v15319_v48, %v6522_v58  ;;  %v14083_v53 = vsel %vm6302_vm10, %v6386_v32, %v6362_v63  ;;  %v6533_v43 = vor.u32 %v6532_v36, %v6531_v33 }
 0x86f   :  { %v6487_v40 = vmul.f32 %v6486_v42, %v6484_v39  ;;  %v6622_v30 = vadd.s32 1, %v7809_v59  ;;  %v6527_v3 = vor.u32 %v6526_v37, %v6525_v24  ;;  %v6530_v12 = vor.u32 %v6529_v19, %v6528_v5 }
 0x870   :  { %v6368_v23 = vclz %v7798_v41  ;;  %v6536_v57 = vor.u32 %v6535_v26, %v6534_v1  ;;  %v6524_v16 = vshrl.u32 %v14995_v49, %v6523_v47  ;;  %v6537_v51 = vshll.u32 %v14999_v29, %v6522_v58 }
 0x871   :  { %v6488_v62 = vxor.u32 2147483648, %v6487_v40  ;;  %v6538_v38 = vshrl.u32 %v15193_v18, %v6523_v47  ;;  %vm6188_vm5 = vcmp.eq.s32.totalorder %v13997_v34, 0  ;;  %vm6191_vm7 = vcmp.eq.s32.totalorder %v13997_v34, 2 }
 0x872   :  { %v7799_v50 = vadd.s32 4294967294, %v6368_v23  ;;  %vm6540_vm11 = vcmp.lt.s32.totalorder %v14069_v15, 1  ;;  %vm6541_vm4 = vcmp.lt.s32.totalorder %v14069_v15, 2  ;;  %vm6543_vm6 = vcmp.lt.s32.totalorder %v14069_v15, 4 }
 0x873   :  { %v6489_v63 = vsel %vm6406_vm15, %v6488_v62, %v6487_v40  ;;  %v6539_v32 = vor.u32 %v6538_v38, %v6537_v51  ;;  %vm6542_vm13 = vcmp.lt.s32.totalorder %v14069_v15, 3  ;;  %v6545_v58 = vsel %vm6543_vm6, %v6533_v43, 2102212464  ;;  %v14160_v15 = vpop.f32.mrb[23].mxu0 }
 0x874   :  { %v6492_v47 = vsel %vm14002_vm2, %v13417_v11, %v6489_v63  ;;  %vm14103_vm0 = vcmp.le.f32.partialorder %v6300_v9, 0.7853982  ;;  %vm7800_vm1 = vcmp.lt.s32.totalorder %v7799_v50, 0  ;;  %v6548_v61 = vsel %vm6540_vm11, %v6527_v3, %v6530_v12 }
 0x875   :  { %v6549_v37 = vsel %vm6543_vm6, %v6536_v57, 920167782  ;;  %8372 = vcosq.f32 %v6492_v47  ;;  %v6371_v19 = vsel %vm7800_vm1, 0, %v7799_v50  ;;  %v6544_v33 = vsel %vm6540_vm11, %v6524_v16, %v6527_v3 }
 0x876   :  { %v6550_v27 = vsel %vm6542_vm13, %v6533_v43, %v6549_v37  ;;  %8374 = vsinq.f32 %v6492_v47  ;;  %v6372_v9 = vsub.s32 32, %v6371_v19  ;;  %v6376_v39 = vsub.s32 4294967266, %v6371_v19 }
 0x877   :  { %v6546_v42 = vsel %vm6542_vm13, %v6530_v12, %v6545_v58  ;;  %v6373_v36 = vshll.u32 %v14061_v35, %v6371_v19  ;;  %v6551_v26 = vsel %vm6541_vm4, %v6548_v61, %v6550_v27  ;;  %v6552_v41 = vsel %vm6540_vm11, %v6530_v12, %v6533_v43 }
 0x878   :  { %v6553_v24 = vsel %vm6543_vm6, %v6539_v32, 1326507024  ;;  %v6374_v5 = vshrl.u32 %v6356_v8, %v6372_v9  ;;  %v6377_v1 = vadd.s32 127, %v6376_v39  ;;  %vm6623_vm15 = vcmp.gt.s32.totalorder %v6622_v30, 0 }
 0x879   :  { %v6554_v40 = vsel %vm6542_vm13, %v6536_v57, %v6553_v24  ;;  %v14129_v35 = vmul.u32.u64.low %v14063_v21, %v6551_v26  ;;  %v14130_v3 = vmul.u32.u64.high %v14063_v21, %v6551_v26, %v14129_v35  ;;  %v6624_v62 = vsel %vm6623_vm15, %v6622_v30, 0 }
 0x87a   :  { %v6555_v23 = vsel %vm6541_vm4, %v6552_v41, %v6554_v40  ;;  %v6375_v16 = vor.u32 %v6374_v5, %v6373_v36  ;;  %v6378_v43 = vshll.u32 %v6377_v1, 23  ;;  %v6190_v8 = vsel %vm6188_vm5, %v14038_v10, %v6189_v44 }
 0x87b   :  { %v14134_v12 = vmul.u32.u64.low %v14063_v21, %v6555_v23  ;;  %v14135_v51 = vmul.u32.u64.high %v14063_v21, %v6555_v23, %v14134_v12  ;;  %v6193_v57 = vsel %vm6191_vm7, %v6192_v52, %v14042_v55  ;;  %v6547_v30 = vsel %vm6541_vm4, %v6544_v33, %v6546_v42 }
 0x87c   :  { %v6626_v38 = vand.u32 31, %v6624_v62  ;;  %vm6496_vm2 = vweird.f32 %v13417_v11  ;;  %vm6499_vm9 = vcmp.lt.s32.totalorder %v14057_v28, 2  ;;  %vm6500_vm14 = vcmp.eq.s32.totalorder %v14057_v28, 0 }
 0x87d   :  { %vm6503_vm8 = vcmp.eq.s32.totalorder %v14057_v28, 2  ;;  %v6379_v50 = vor.u32 4788187, %v6378_v43  ;;  %v6389_v10 = vsel %vm14103_vm0, 0, %v14083_v53  ;;  %v6566_v44 = vadd.s32 1, %v14130_v3 }
 0x87e   :  { %v6620_v55 = vor.u32 8388608, %v14067_v0  ;;  %v14158_v52 = vsub.s32 32, %v6626_v38  ;;  %vm6187_vm12 = vcmp.lt.s32.totalorder %v13997_v34, 2  ;;  %v6382_v32 = vcvt.s32.f32 %v6375_v16 }
 0x87f   :  { %v6380_v63 = vand.u32 2147483647, %v6379_v50  ;;  %v6563_v58 = vmul.u32 %v14063_v21, %v6547_v30  ;;  %vm6565_vm3 = vc.u32 %v14135_v51, %v14129_v35  ;;  %v8373_v47 = vpop.eup %8372  ;;  %v14167_v61 = vshrl.u32 %v6624_v62, 5 }
 0x880   :  { %v6567_v53 = vsel %vm6565_vm3, %v6566_v44, %v14130_v3  ;;  %v6629_v0 = vshll.u32 %v14995_v49, %v6626_v38  ;;  %v6630_v37 = vshrl.u32 %v15317_v54, %v14158_v52  ;;  %v8375_v19 = vpop.eup %8374  ;;  %v6504_v33 = vxor.u32 2147483648, %v8373_v47 }
 0x881   :  { %v6383_v27 = vmul.f32 %v6382_v32, %v6380_v63  ;;  %v6568_v9 = vadd.s32 %v6567_v53, %v6563_v58  ;;  %v6633_v21 = vshrl.u32 %v15318_v31, %v14158_v52  ;;  %v6501_v39 = vxor.u32 2147483648, %v8375_v19 }
 0x882   :  { %v6632_v42 = vshll.u32 %v15317_v54, %v6626_v38  ;;  %v6635_v36 = vshll.u32 %v15318_v31, %v6626_v38  ;;  %v6636_v26 = vshrl.u32 %v15319_v48, %v14158_v52  ;;  %v6505_v41 = vsel %vm6503_vm8, %v6504_v33, %v8375_v19 }
 0x883   :  { %v6384_v24 = vxor.u32 2147483648, %v6383_v27  ;;  %v6569_v5 = vadd.s32 536870912, %v6568_v9  ;;  %v6631_v1 = vor.u32 %v6630_v37, %v6629_v0  ;;  %v6502_v40 = vsel %vm6500_vm14, %v8373_v47, %v6501_v39 }
 0x884   :  { %v6638_v23 = vshll.u32 %v15319_v48, %v6626_v38  ;;  %v6639_v3 = vshrl.u32 %v14999_v29, %v14158_v52  ;;  %v6642_v62 = vshrl.u32 %v15193_v18, %v14158_v52  ;;  %v6506_v16 = vsel %vm6499_vm9, %v6502_v40, %v6505_v41 }
 0x885   :  { %v6385_v43 = vsel %vm6302_vm10, %v6384_v24, %v6383_v27  ;;  %v6570_v12 = vshrl.u32 %v6569_v5, 30  ;;  %v6634_v30 = vor.u32 %v6633_v21, %v6632_v42  ;;  %v6507_v50 = vsel %vm6496_vm2, nan, %v6506_v16 }
 0x886   :  { %v6388_v44 = vsel %vm14103_vm0, %v13387_v2, %v6385_v43  ;;  %v6640_v63 = vor.u32 %v6639_v3, %v6638_v23  ;;  %v6641_v32 = vshll.u32 %v14999_v29, %v6626_v38  ;;  %v14198_v58 = vadd.f32 %v6507_v50, %v13864_v45  ;;  %v14248_v43 = vpop.f32.mrb[23].mxu1 }
 0x887   :  { %8376 = vcosq.f32 %v6388_v44  ;;  %v6571_v28 = vshll.u32 %v6570_v12, 30  ;;  %v6637_v47 = vor.u32 %v6636_v26, %v6635_v36  ;;  %v14202_v53 = vsel %vm6187_vm12, %v6190_v8, %v6193_v57 }
 0x888   :  { %8378 = vsinq.f32 %v6388_v44  ;;  %vm6510_vm10 = vcmp.lt.s32.totalorder %v13420_v14, 0  ;;  %v6643_v11 = vor.u32 %v6642_v62, %v6641_v32  ;;  %v6393_v0 = vadd.s32 3, %v6389_v10 }
 0x889   :  { %v14205_v59 = vsub.s32 %v6568_v9, %v6571_v28  ;;  %vm6644_vm5 = vcmp.lt.s32.totalorder %v14167_v61, 1  ;;  %vm6647_vm7 = vcmp.lt.s32.totalorder %v14167_v61, 4  ;;  %vm14211_vm11 = vcmp.le.f32.partialorder %v6508_v7, 0.7853982 }
 0x88a   :  { %vm6646_vm4 = vcmp.lt.s32.totalorder %v14167_v61, 3  ;;  %v6652_v34 = vsel %vm6644_vm5, %v6631_v1, %v6634_v30  ;;  %v6653_v8 = vsel %vm6647_vm7, %v6640_v63, 920167782  ;;  %v6660_v57 = vshll.u32 %v6620_v55, 8 }
 0x88b   :  { %v6574_v38 = vsub.s32 0, %v14205_v59  ;;  %v6594_v10 = vsub.s32 4, %v6570_v12  ;;  %vm6645_vm6 = vcmp.lt.s32.totalorder %v14167_v61, 2  ;;  %v6654_v37 = vsel %vm6646_vm4, %v6637_v47, %v6653_v8 }
 0x88c   :  { %v6649_v19 = vsel %vm6647_vm7, %v6637_v47, 2102212464  ;;  %v6655_v7 = vsel %vm6645_vm6, %v6652_v34, %v6654_v37  ;;  %v6656_v33 = vsel %vm6644_vm5, %v6634_v30, %v6637_v47  ;;  %v6657_v27 = vsel %vm6647_vm7, %v6643_v11, 1326507024 }
 0x88d   :  { %v6394_v9 = vand.u32 3, %v6393_v0  ;;  %v7806_v21 = vmin.u32 %v6574_v38, %v14205_v59  ;;  %v6628_v55 = vshrl.u32 %v14995_v49, %v14158_v52  ;;  %v6658_v39 = vsel %vm6646_vm4, %v6640_v63, %v6657_v27 }
 0x88e   :  { %vm6392_vm13 = vweird.f32 %v13387_v2  ;;  %v6659_v42 = vsel %vm6645_vm6, %v6656_v33, %v6658_v39  ;;  %v14234_v36 = vmul.u32.u64.low %v6660_v57, %v6655_v7  ;;  %v14235_v26 = vmul.u32.u64.high %v6660_v57, %v6655_v7, %v14234_v36 }
 0x88f   :  { %v6823_v41 = vand.u32 2139095040, %v13561_v4  ;;  %v6576_v24 = vclz %v7806_v21  ;;  %v6648_v5 = vsel %vm6644_vm5, %v6628_v55, %v6631_v1  ;;  %v6650_v52 = vsel %vm6646_vm4, %v6634_v30, %v6649_v19 }
 0x890   :  { %v6820_v40 = vand.u32 2147483647, %v13561_v4  ;;  %v6595_v23 = vsel %vm6510_vm10, %v6594_v10, %v6570_v12  ;;  %v14245_v3 = vmul.u32.u64.low %v6660_v57, %v6659_v42  ;;  %v14246_v62 = vmul.u32.u64.high %v6660_v57, %v6659_v42, %v14245_v3 }
 0x891   :  { %v6824_v16 = vshrl.u32 %v6823_v41, 23  ;;  %v8377_v50 = vpop.eup %8376  ;;  %vm6395_vm0 = vcmp.lt.s32.totalorder %v6394_v9, 2  ;;  %vm6396_vm1 = vcmp.eq.s32.totalorder %v6394_v9, 0  ;;  %vm6399_vm15 = vcmp.eq.s32.totalorder %v6394_v9, 2 }
 0x892   :  { %v7807_v44 = vadd.s32 4294967294, %v6576_v24  ;;  %v8379_v1 = vpop.eup %8378  ;;  %v6400_v63 = vxor.u32 2147483648, %v8377_v50  ;;  %v6651_v30 = vsel %vm6645_vm6, %v6648_v5, %v6650_v52  ;;  %v6670_v32 = vadd.s32 1, %v14235_v26 }
 0x893   :  { %v7817_v28 = vadd.s32 4294967169, %v6824_v16  ;;  %v6397_v12 = vxor.u32 2147483648, %v8379_v1  ;;  %v6564_v47 = vadd.s32 %v14129_v35, %v14135_v51  ;;  %v6597_v11 = vsel %vm14211_vm11, 0, %v6595_v23 }
 0x894   :  { %vm7808_vm2 = vcmp.lt.s32.totalorder %v7807_v44, 0  ;;  %v6401_v0 = vsel %vm6399_vm15, %v6400_v63, %v8379_v1  ;;  %vm6669_vm9 = vc.u32 %v14246_v62, %v14234_v36  ;;  %v6827_v8 = vand.u32 8388607, %v6820_v40 }
 0x895   :  { %v6579_v34 = vsel %vm7808_vm2, 0, %v7807_v44  ;;  %v6398_v61 = vsel %vm6396_vm1, %v8377_v50, %v6397_v12  ;;  %v6667_v37 = vmul.u32 %v6660_v57, %v6651_v30  ;;  %v6671_v51 = vsel %vm6669_vm9, %v6670_v32, %v14235_v26 }
 0x896   :  { %v6580_v38 = vsub.s32 32, %v6579_v34  ;;  %v6584_v10 = vsub.s32 4294967266, %v6579_v34  ;;  %v6402_v19 = vsel %vm6395_vm0, %v6398_v61, %v6401_v0  ;;  %v6581_v35 = vshll.u32 %v14205_v59, %v6579_v34 }
 0x897   :  { %v6830_v7 = vadd.s32 1, %v7817_v28  ;;  %v6403_v33 = vsel %vm6392_vm13, nan, %v6402_v19  ;;  %v6672_v55 = vadd.s32 %v6671_v51, %v6667_v37  ;;  %v6601_v42 = vadd.s32 3, %v6597_v11 }
 0x898   :  { %v6582_v27 = vshrl.u32 %v6564_v47, %v6580_v38  ;;  %v6585_v21 = vadd.s32 127, %v6584_v10  ;;  %v14267_v39 = vadd.f32 %v6403_v33, %v14053_v6  ;;  %v6828_v41 = vor.u32 8388608, %v6827_v8 }
 0x899   :  { %vm6831_vm14 = vcmp.gt.s32.totalorder %v6830_v7, 0  ;;  %v6673_v24 = vadd.s32 536870912, %v6672_v55  ;;  %vm6184_vm8 = vweird.f32 %v13410_v60  ;;  %v6719_v26 = vand.u32 2139095040, %v13663_v20 }
 0x89a   :  { %v6583_v57 = vor.u32 %v6582_v27, %v6581_v35  ;;  %v6586_v9 = vshll.u32 %v6585_v21, 23  ;;  %v6832_v5 = vsel %vm6831_vm14, %v6830_v7, 0  ;;  %v14272_v2 = vsel %vm6184_vm8, nan, %v14202_v53 }
 0x89b   :  { %v6834_v59 = vand.u32 31, %v6832_v5  ;;  %v14274_v23 = vshrl.u32 %v6673_v24, 30  ;;  %v14276_v6 = vand.u32 3, %v6601_v42  ;;  %v14279_v3 = vadd.s32 %v14234_v36, %v14246_v62 }
 0x89c   :  { %v6587_v52 = vor.u32 4788187, %v6586_v9  ;;  %v6716_v50 = vand.u32 2147483647, %v13663_v20  ;;  %v6590_v1 = vcvt.s32.f32 %v6583_v57  ;;  %v14283_v63 = vshll.u32 %v6828_v41, 8 }
 0x89d   :  { %v6835_v16 = vsub.s32 32, %v6834_v59  ;;  %v6675_v60 = vshll.u32 %v14274_v23, 30  ;;  %v6720_v28 = vshrl.u32 %v6719_v26, 23  ;;  %v6837_v36 = vshll.u32 %v14995_v49, %v6834_v59 }
 0x89e   :  { %v6588_v44 = vand.u32 2147483647, %v6587_v52  ;;  %v6833_v11 = vshrl.u32 %v6832_v5, 5  ;;  %v6840_v0 = vshll.u32 %v15317_v54, %v6834_v59  ;;  %v6843_v34 = vshll.u32 %v15318_v31, %v6834_v59 }
 0x89f   :  { %v6838_v53 = vshrl.u32 %v15317_v54, %v6835_v16  ;;  %v6841_v30 = vshrl.u32 %v15318_v31, %v6835_v16  ;;  %v6844_v32 = vshrl.u32 %v15319_v48, %v6835_v16  ;;  %v14288_v47 = vsub.s32 %v6672_v55, %v6675_v60 }
 0x8a0   :  { %v6591_v12 = vmul.f32 %v6590_v1, %v6588_v44  ;;  %v6847_v62 = vshrl.u32 %v14999_v29, %v6835_v16  ;;  %v14296_v8 = vand.u32 8388607, %v6716_v50  ;;  %v6846_v37 = vshll.u32 %v15319_v48, %v6834_v59 }
 0x8a1   :  { %v6678_v38 = vsub.s32 0, %v14288_v47  ;;  %v6839_v10 = vor.u32 %v6838_v53, %v6837_v36  ;;  %vm6614_vm12 = vcmp.lt.s32.totalorder %v13489_v17, 0  ;;  %v6842_v19 = vor.u32 %v6841_v30, %v6840_v0 }
 0x8a2   :  { %v6592_v61 = vxor.u32 2147483648, %v6591_v12  ;;  %v6845_v35 = vor.u32 %v6844_v32, %v6843_v34  ;;  %v6849_v51 = vshll.u32 %v14999_v29, %v6834_v59  ;;  %v6850_v7 = vshrl.u32 %v15193_v18, %v6835_v16 }
 0x8a3   :  { %v7810_v27 = vmin.u32 %v6678_v38, %v14288_v47  ;;  %v6848_v21 = vor.u32 %v6847_v62, %v6846_v37  ;;  %v7813_v55 = vadd.s32 4294967169, %v6720_v28  ;;  %v6698_v41 = vsub.s32 4, %v14274_v23 }
 0x8a4   :  { %v6593_v33 = vsel %vm6510_vm10, %v6592_v61, %v6591_v12  ;;  %v6836_v57 = vshrl.u32 %v14995_v49, %v6835_v16  ;;  %v6851_v9 = vor.u32 %v6850_v7, %v6849_v51  ;;  %vm14313_vm3 = vcmp.le.f32.partialorder %v6612_v46, 0.7853982 }
 0x8a5   :  { %v6596_v42 = vsel %vm14211_vm11, %v13420_v14, %v6593_v33  ;;  %v6680_v5 = vclz %v7810_v27  ;;  %vm6852_vm10 = vcmp.lt.s32.totalorder %v6833_v11, 1  ;;  %vm6855_vm5 = vcmp.lt.s32.totalorder %v6833_v11, 4 }
 0x8a6   :  { %8380 = vcosq.f32 %v6596_v42  ;;  %vm6853_vm7 = vcmp.lt.s32.totalorder %v6833_v11, 2  ;;  %v6857_v59 = vsel %vm6855_vm5, %v6845_v35, 2102212464  ;;  %v6860_v45 = vsel %vm6852_vm10, %v6839_v10, %v6842_v19 }
 0x8a7   :  { %8382 = vsinq.f32 %v6596_v42  ;;  %v7811_v26 = vadd.s32 4294967294, %v6680_v5  ;;  %vm6854_vm11 = vcmp.lt.s32.totalorder %v6833_v11, 3  ;;  %v6861_v52 = vsel %vm6855_vm5, %v6848_v21, 920167782 }
 0x8a8   :  { %v6864_v44 = vsel %vm6852_vm10, %v6842_v19, %v6845_v35  ;;  %v6856_v16 = vsel %vm6852_vm10, %v6836_v57, %v6839_v10  ;;  %v6862_v1 = vsel %vm6854_vm11, %v6845_v35, %v6861_v52  ;;  %v6865_v60 = vsel %vm6855_vm5, %v6851_v9, 1326507024 }
 0x8a9   :  { %v6726_v53 = vadd.s32 1, %v7813_v55  ;;  %vm7812_vm4 = vcmp.lt.s32.totalorder %v7811_v26, 0  ;;  %v6858_v46 = vsel %vm6854_vm11, %v6842_v19, %v6857_v59  ;;  %v6863_v30 = vsel %vm6853_vm7, %v6860_v45, %v6862_v1 }
 0x8aa   :  { %v6866_v32 = vsel %vm6854_vm11, %v6848_v21, %v6865_v60  ;;  %v6683_v28 = vsel %vm7812_vm4, 0, %v7811_v26  ;;  %v14320_v36 = vmul.u32.u64.low %v14283_v63, %v6863_v30  ;;  %v14321_v62 = vmul.u32.u64.high %v14283_v63, %v6863_v30, %v14320_v36 }
 0x8ab   :  { %v6867_v12 = vsel %vm6853_vm7, %v6864_v44, %v6866_v32  ;;  %v6684_v0 = vsub.s32 32, %v6683_v28  ;;  %v6688_v34 = vsub.s32 4294967266, %v6683_v28  ;;  %v6699_v61 = vsel %vm6614_vm12, %v6698_v41, %v14274_v23 }
 0x8ac   :  { %vm6727_vm6 = vcmp.gt.s32.totalorder %v6726_v53, 0  ;;  %vm6600_vm13 = vweird.f32 %v13420_v14  ;;  %v6859_v38 = vsel %vm6853_vm7, %v6856_v16, %v6858_v46  ;;  %v6685_v35 = vshll.u32 %v14288_v47, %v6683_v28 }
 0x8ad   :  { %v14330_v10 = vmul.u32.u64.low %v14283_v63, %v6867_v12  ;;  %v14331_v37 = vmul.u32.u64.high %v14283_v63, %v6867_v12, %v14330_v10  ;;  %v6728_v19 = vsel %vm6727_vm6, %v6726_v53, 0  ;;  %v6686_v51 = vshrl.u32 %v14279_v3, %v6684_v0 }
 0x8ae   :  { %v6689_v7 = vadd.s32 127, %v6688_v34  ;;  %v6730_v33 = vand.u32 31, %v6728_v19  ;;  %vm6603_vm0 = vcmp.lt.s32.totalorder %v14276_v6, 2  ;;  %vm6604_vm1 = vcmp.eq.s32.totalorder %v14276_v6, 0 }
 0x8af   :  { %v6701_v23 = vsel %vm14313_vm3, 0, %v6699_v61  ;;  %v6878_v11 = vadd.s32 1, %v14321_v62  ;;  %vm6607_vm15 = vcmp.eq.s32.totalorder %v14276_v6, 2  ;;  %v6687_v21 = vor.u32 %v6686_v51, %v6685_v35 }
 0x8b0   :  { %v8381_v27 = vpop.eup %8380  ;;  %v6690_v55 = vshll.u32 %v6689_v7, 23  ;;  %v6731_v42 = vsub.s32 32, %v6730_v33  ;;  %v6875_v3 = vmul.u32 %v14283_v63, %v6859_v38  ;;  %vm6877_vm2 = vc.u32 %v14331_v37, %v14320_v36 }
 0x8b1   :  { %v8383_v47 = vpop.eup %8382  ;;  %v6608_v41 = vxor.u32 2147483648, %v8381_v27  ;;  %v6724_v57 = vor.u32 8388608, %v14296_v8  ;;  %v6705_v59 = vadd.s32 3, %v6701_v23  ;;  %v6879_v45 = vsel %vm6877_vm2, %v6878_v11, %v14321_v62 }
 0x8b2   :  { %v6605_v9 = vxor.u32 2147483648, %v8383_v47  ;;  %v6691_v5 = vor.u32 4788187, %v6690_v55  ;;  %v6880_v52 = vadd.s32 %v6879_v45, %v6875_v3  ;;  %v6729_v44 = vshrl.u32 %v6728_v19, 5 }
 0x8b3   :  { %v6609_v26 = vsel %vm6607_vm15, %v6608_v41, %v8383_v47  ;;  %v6733_v16 = vshll.u32 %v14995_v49, %v6730_v33  ;;  %v6694_v63 = vcvt.s32.f32 %v6687_v21  ;;  %v6734_v53 = vshrl.u32 %v15317_v54, %v6731_v42 }
 0x8b4   :  { %v6606_v1 = vsel %vm6604_vm1, %v8381_v27, %v6605_v9  ;;  %v6692_v60 = vand.u32 2147483647, %v6691_v5  ;;  %v6881_v46 = vadd.s32 536870912, %v6880_v52  ;;  %v6737_v30 = vshrl.u32 %v15318_v31, %v6731_v42 }
 0x8b5   :  { %v6610_v8 = vsel %vm6603_vm0, %v6606_v1, %v6609_v26  ;;  %v6740_v32 = vshrl.u32 %v15319_v48, %v6731_v42  ;;  %v6736_v62 = vshll.u32 %v15317_v54, %v6730_v33  ;;  %v6739_v0 = vshll.u32 %v15318_v31, %v6730_v33 }
 0x8b6   :  { %v6611_v28 = vsel %vm6600_vm13, nan, %v6610_v8  ;;  %v6695_v12 = vmul.f32 %v6694_v63, %v6692_v60  ;;  %v6882_v61 = vshrl.u32 %v6881_v46, 30  ;;  %v6742_v6 = vshll.u32 %v15319_v48, %v6730_v33 }
 0x8b7   :  { %v14359_v34 = vadd.f32 %v6611_v28, %v14272_v2  ;;  %v6743_v38 = vshrl.u32 %v14999_v29, %v6731_v42  ;;  %vm6822_vm9 = vcmp.lt.s32.totalorder %v13561_v4, 0  ;;  %v6741_v19 = vor.u32 %v6740_v32, %v6739_v0 }
 0x8b8   :  { %v6696_v10 = vxor.u32 2147483648, %v6695_v12  ;;  %v6745_v14 = vshll.u32 %v14999_v29, %v6730_v33  ;;  %v6746_v35 = vshrl.u32 %v15193_v18, %v6731_v42  ;;  %v6883_v51 = vshll.u32 %v6882_v61, 30 }
 0x8b9   :  { %v6735_v7 = vor.u32 %v6734_v53, %v6733_v16  ;;  %v6738_v23 = vor.u32 %v6737_v30, %v6736_v62  ;;  %v6927_v11 = vand.u32 2139095040, %v13802_v22  ;;  %v6732_v27 = vshrl.u32 %v14995_v49, %v6731_v42 }
 0x8ba   :  { %v6697_v2 = vsel %vm6614_vm12, %v6696_v10, %v6695_v12  ;;  %v6744_v21 = vor.u32 %v6743_v38, %v6742_v6  ;;  %v6747_v55 = vor.u32 %v6746_v35, %v6745_v14  ;;  %v14373_v41 = vsub.s32 %v6880_v52, %v6883_v51 }
 0x8bb   :  { %v6700_v47 = vsel %vm14313_vm3, %v13489_v17, %v6697_v2  ;;  %vm6748_vm14 = vcmp.lt.s32.totalorder %v6729_v44, 1  ;;  %vm6751_vm8 = vcmp.lt.s32.totalorder %v6729_v44, 4  ;;  %v6906_v33 = vsub.s32 4, %v6882_v61 }
 0x8bc   :  { %8384 = vcosq.f32 %v6700_v47  ;;  %vm6750_vm10 = vcmp.lt.s32.totalorder %v6729_v44, 3  ;;  %v6753_v3 = vsel %vm6751_vm8, %v6741_v19, 2102212464  ;;  %v6886_v9 = vsub.s32 0, %v14373_v41 }
 0x8bd   :  { %8386 = vsinq.f32 %v6700_v47  ;;  %v6752_v5 = vsel %vm6748_vm14, %v6732_v27, %v6735_v7  ;;  %v6756_v45 = vsel %vm6748_vm14, %v6735_v7, %v6738_v23  ;;  %v6754_v42 = vsel %vm6750_vm10, %v6738_v23, %v6753_v3 }
 0x8be   :  { %v6757_v26 = vsel %vm6751_vm8, %v6744_v21, 920167782  ;;  %v6760_v16 = vsel %vm6748_vm14, %v6738_v23, %v6741_v19  ;;  %v6761_v1 = vsel %vm6751_vm8, %v6747_v55, 1326507024  ;;  %v7818_v24 = vmin.u32 %v6886_v9, %v14373_v41 }
 0x8bf   :  { %vm6749_vm12 = vcmp.lt.s32.totalorder %v6729_v44, 2  ;;  %v6758_v52 = vsel %vm6750_vm10, %v6741_v19, %v6757_v26  ;;  %v6762_v60 = vsel %vm6750_vm10, %v6744_v21, %v6761_v1  ;;  %v6706_v63 = vand.u32 3, %v6705_v59 }
 0x8c0   :  { %v6759_v53 = vsel %vm6749_vm12, %v6756_v45, %v6758_v52  ;;  %v6763_v8 = vsel %vm6749_vm12, %v6760_v16, %v6762_v60  ;;  %v6764_v46 = vshll.u32 %v6724_v57, 8  ;;  %v6888_v30 = vclz %v7818_v24 }
 0x8c1   :  { %v6907_v32 = vsel %vm6822_vm9, %v6906_v33, %v6882_v61  ;;  %v6755_v28 = vsel %vm6749_vm12, %v6752_v5, %v6754_v42  ;;  %v6924_v12 = vand.u32 2147483647, %v13802_v22  ;;  %vm6704_vm3 = vweird.f32 %v13489_v17 }
 0x8c2   :  { %v14380_v62 = vmul.u32.u64.low %v6764_v46, %v6763_v8  ;;  %v14381_v0 = vmul.u32.u64.high %v6764_v46, %v6763_v8, %v14380_v62  ;;  %v14383_v6 = vmul.u32.u64.low %v6764_v46, %v6759_v53  ;;  %v14384_v38 = vmul.u32.u64.high %v6764_v46, %v6759_v53, %v14383_v6 }
 0x8c3   :  { %v7819_v44 = vadd.s32 4294967294, %v6888_v30  ;;  %v6928_v59 = vshrl.u32 %v6927_v11, 23  ;;  %vm6708_vm5 = vcmp.eq.s32.totalorder %v6706_v63, 0  ;;  %vm6711_vm7 = vcmp.eq.s32.totalorder %v6706_v63, 2 }
 0x8c4   :  { %vm14389_vm11 = vcmp.le.f32.partialorder %v6820_v40, 0.7853982  ;;  %v6876_v61 = vadd.s32 %v14320_v36, %v14331_v37  ;;  %v6771_v19 = vmul.u32 %v6764_v46, %v6755_v28  ;;  %vm6773_vm6 = vc.u32 %v14381_v0, %v14383_v6 }
 0x8c5   :  { %vm7820_vm4 = vcmp.lt.s32.totalorder %v7819_v44, 0  ;;  %v6909_v10 = vsel %vm14389_vm11, 0, %v6907_v32  ;;  %v7821_v14 = vadd.s32 4294967169, %v6928_v59  ;;  %v6774_v7 = vadd.s32 1, %v14384_v38 }
 0x8c6   :  { %v8385_v35 = vpop.eup %8384  ;;  %v6891_v51 = vsel %vm7820_vm4, 0, %v7819_v44  ;;  %v6931_v40 = vand.u32 8388607, %v6924_v12  ;;  %v7031_v36 = vand.u32 2139095040, %v13938_v25  ;;  %vm6707_vm13 = vcmp.lt.s32.totalorder %v6706_v63, 2 }
 0x8c7   :  { %v8387_v23 = vpop.eup %8386  ;;  %v6712_v11 = vxor.u32 2147483648, %v8385_v35  ;;  %v6892_v2 = vsub.s32 32, %v6891_v51  ;;  %v6896_v27 = vsub.s32 4294967266, %v6891_v51  ;;  %v6893_v21 = vshll.u32 %v14373_v41, %v6891_v51 }
 0x8c8   :  { %v6709_v37 = vxor.u32 2147483648, %v8387_v23  ;;  %v6775_v55 = vsel %vm6773_vm6, %v6774_v7, %v14384_v38  ;;  %v6934_v47 = vadd.s32 1, %v7821_v14  ;;  %v6913_v42 = vadd.s32 3, %v6909_v10 }
 0x8c9   :  { %v6713_v33 = vsel %vm6711_vm7, %v6712_v11, %v8387_v23  ;;  %v6894_v3 = vshrl.u32 %v6876_v61, %v6892_v2  ;;  %v6897_v9 = vadd.s32 127, %v6896_v27  ;;  %v6776_v5 = vadd.s32 %v6775_v55, %v6771_v19 }
 0x8ca   :  { %v6710_v45 = vsel %vm6708_vm5, %v8385_v35, %v6709_v37  ;;  %vm6935_vm0 = vcmp.gt.s32.totalorder %v6934_v47, 0  ;;  %v6932_v52 = vor.u32 8388608, %v6931_v40  ;;  %v7032_v30 = vshrl.u32 %v7031_v36, 23 }
 0x8cb   :  { %v6714_v26 = vsel %vm6707_vm13, %v6710_v45, %v6713_v33  ;;  %v6895_v16 = vor.u32 %v6894_v3, %v6893_v21  ;;  %v6898_v1 = vshll.u32 %v6897_v9, 23  ;;  %v6777_v24 = vadd.s32 536870912, %v6776_v5 }
 0x8cc   :  { %v6715_v41 = vsel %vm6704_vm3, nan, %v6714_v26  ;;  %v6936_v60 = vsel %vm6935_vm0, %v6934_v47, 0  ;;  %v14411_v62 = vand.u32 3, %v6913_v42  ;;  %vm6718_vm1 = vcmp.lt.s32.totalorder %v13663_v20, 0 }
 0x8cd   :  { %v14409_v53 = vadd.f32 %v14047_v13, %v6715_v41  ;;  %v6899_v8 = vor.u32 4788187, %v6898_v1  ;;  %v6778_v46 = vshrl.u32 %v6777_v24, 30  ;;  %v6938_v32 = vand.u32 31, %v6936_v60 }
 0x8ce   :  { %v6902_v28 = vcvt.s32.f32 %v6895_v16  ;;  %v6772_v44 = vadd.s32 %v14383_v6, %v14381_v0  ;;  %v14415_v59 = vshll.u32 %v6932_v52, 8  ;;  %v7028_v61 = vand.u32 2147483647, %v13938_v25 }
 0x8cf   :  { %v6900_v63 = vand.u32 2147483647, %v6899_v8  ;;  %v6779_v38 = vshll.u32 %v6778_v46, 30  ;;  %v6939_v17 = vsub.s32 32, %v6938_v32  ;;  %v14420_v19 = vshrl.u32 %v6936_v60, 5 }
 0x8d0   :  { %v7825_v14 = vadd.s32 4294967169, %v7032_v30  ;;  %v6802_v35 = vsub.s32 4, %v6778_v46  ;;  %v6941_v51 = vshll.u32 %v14995_v49, %v6938_v32  ;;  %v6944_v6 = vshll.u32 %v15317_v54, %v6938_v32 }
 0x8d1   :  { %v6903_v13 = vmul.f32 %v6902_v28, %v6900_v63  ;;  %v14418_v10 = vsub.s32 %v6776_v5, %v6779_v38  ;;  %v6942_v7 = vshrl.u32 %v15317_v54, %v6939_v17  ;;  %v6945_v40 = vshrl.u32 %v15318_v31, %v6939_v17 }
 0x8d2   :  { %v6948_v11 = vshrl.u32 %v15319_v48, %v6939_v17  ;;  %v6947_v27 = vshll.u32 %v15318_v31, %v6938_v32  ;;  %v6950_v36 = vshll.u32 %v15319_v48, %v6938_v32  ;;  %v6951_v37 = vshrl.u32 %v14999_v29, %v6939_v17 }
 0x8d3   :  { %v6904_v23 = vxor.u32 2147483648, %v6903_v13  ;;  %v6782_v0 = vsub.s32 0, %v14418_v10  ;;  %v6943_v2 = vor.u32 %v6942_v7, %v6941_v51  ;;  %v6946_v47 = vor.u32 %v6945_v40, %v6944_v6 }
 0x8d4   :  { %v6953_v33 = vshll.u32 %v14999_v29, %v6938_v32  ;;  %v6949_v9 = vor.u32 %v6948_v11, %v6947_v27  ;;  %v6952_v5 = vor.u32 %v6951_v37, %v6950_v36  ;;  %v6954_v45 = vshrl.u32 %v15193_v18, %v6939_v17 }
 0x8d5   :  { %v6905_v21 = vsel %vm6822_vm9, %v6904_v23, %v6903_v13  ;;  %v7814_v55 = vmin.u32 %v6782_v0, %v14418_v10  ;;  %v14441_v26 = vand.u32 8388607, %v7028_v61  ;;  %v7038_v16 = vadd.s32 1, %v7825_v14 }
 0x8d6   :  { %v6908_v3 = vsel %vm14389_vm11, %v13561_v4, %v6905_v21  ;;  %vm14445_vm15 = vcmp.le.f32.partialorder %v6716_v50, 0.7853982  ;;  %v6803_v57 = vsel %vm6718_vm1, %v6802_v35, %v6778_v46  ;;  %v6940_v24 = vshrl.u32 %v14995_v49, %v6939_v17 }
 0x8d7   :  { %8388 = vcosq.f32 %v6908_v3  ;;  %v6784_v42 = vclz %v7814_v55  ;;  %v6955_v41 = vor.u32 %v6954_v45, %v6953_v33  ;;  %vm6956_vm2 = vcmp.lt.s32.totalorder %v14420_v19, 1 }
 0x8d8   :  { %8390 = vsinq.f32 %v6908_v3  ;;  %vm6958_vm9 = vcmp.lt.s32.totalorder %v14420_v19, 3  ;;  %vm6959_vm14 = vcmp.lt.s32.totalorder %v14420_v19, 4  ;;  %v6964_v8 = vsel %vm6956_vm2, %v6943_v2, %v6946_v47 }
 0x8d9   :  { %v7815_v52 = vadd.s32 4294967294, %v6784_v42  ;;  %v6961_v60 = vsel %vm6959_vm14, %v6949_v9, 2102212464  ;;  %v6965_v30 = vsel %vm6959_vm14, %v6952_v5, 920167782  ;;  %v6968_v50 = vsel %vm6956_vm2, %v6946_v47, %v6949_v9 }
 0x8da   :  { %vm6957_vm10 = vcmp.lt.s32.totalorder %v14420_v19, 2  ;;  %v6966_v46 = vsel %vm6958_vm9, %v6949_v9, %v6965_v30  ;;  %v6969_v32 = vsel %vm6959_vm14, %v6955_v41, 1326507024  ;;  %v6960_v28 = vsel %vm6956_vm2, %v6940_v24, %v6943_v2 }
 0x8db   :  { %vm7816_vm8 = vcmp.lt.s32.totalorder %v7815_v52, 0  ;;  %v6967_v38 = vsel %vm6957_vm10, %v6964_v8, %v6966_v46  ;;  %v6970_v17 = vsel %vm6958_vm9, %v6952_v5, %v6969_v32  ;;  %vm6915_vm12 = vcmp.lt.s32.totalorder %v14411_v62, 2 }
 0x8dc   :  { %v6787_v63 = vsel %vm7816_vm8, 0, %v7815_v52  ;;  %v6962_v35 = vsel %vm6958_vm9, %v6946_v47, %v6961_v60  ;;  %v6971_v51 = vsel %vm6957_vm10, %v6968_v50, %v6970_v17  ;;  %vm6912_vm3 = vweird.f32 %v13561_v4 }
 0x8dd   :  { %v6788_v13 = vsub.s32 32, %v6787_v63  ;;  %v6792_v14 = vsub.s32 4294967266, %v6787_v63  ;;  %v14469_v7 = vmul.u32.u64.low %v14415_v59, %v6971_v51  ;;  %v14470_v40 = vmul.u32.u64.high %v14415_v59, %v6971_v51, %v14469_v7 }
 0x8de   :  { %v14473_v23 = vmul.u32.u64.low %v14415_v59, %v6967_v38  ;;  %v14474_v0 = vmul.u32.u64.high %v14415_v59, %v6967_v38, %v14473_v23  ;;  %v6789_v6 = vshll.u32 %v14418_v10, %v6787_v63  ;;  %vm7039_vm5 = vcmp.gt.s32.totalorder %v7038_v16, 0 }
 0x8df   :  { %v6790_v11 = vshrl.u32 %v6772_v44, %v6788_v13  ;;  %v6793_v2 = vadd.s32 127, %v6792_v14  ;;  %vm6916_vm7 = vcmp.eq.s32.totalorder %v14411_v62, 0  ;;  %vm6919_vm11 = vcmp.eq.s32.totalorder %v14411_v62, 2 }
 0x8e0   :  { %v6963_v27 = vsel %vm6957_vm10, %v6960_v28, %v6962_v35  ;;  %v7040_v36 = vsel %vm7039_vm5, %v7038_v16, 0  ;;  %v6805_v47 = vsel %vm14445_vm15, 0, %v6803_v57  ;;  %vm6981_vm4 = vc.u32 %v14470_v40, %v14473_v23 }
 0x8e1   :  { %v8389_v37 = vpop.eup %8388  ;;  %v6791_v21 = vor.u32 %v6790_v11, %v6789_v6  ;;  %v6794_v55 = vshll.u32 %v6793_v2, 23  ;;  %v7042_v33 = vand.u32 31, %v7040_v36  ;;  %v6982_v44 = vadd.s32 1, %v14474_v0 }
 0x8e2   :  { %v8391_v3 = vpop.eup %8390  ;;  %v6920_v10 = vxor.u32 2147483648, %v8389_v37  ;;  %v7036_v9 = vor.u32 8388608, %v14441_v26  ;;  %v6979_v45 = vmul.u32 %v14415_v59, %v6963_v27  ;;  %v6809_v24 = vadd.s32 3, %v6805_v47 }
 0x8e3   :  { %v6917_v5 = vxor.u32 2147483648, %v8391_v3  ;;  %v6795_v19 = vor.u32 4788187, %v6794_v55  ;;  %v7043_v42 = vsub.s32 32, %v7042_v33  ;;  %v6983_v57 = vsel %vm6981_vm4, %v6982_v44, %v14474_v0 }
 0x8e4   :  { %v6921_v16 = vsel %vm6919_vm11, %v6920_v10, %v8391_v3  ;;  %v7041_v41 = vshrl.u32 %v7040_v36, 5  ;;  %v6798_v8 = vcvt.s32.f32 %v6791_v21  ;;  %v6984_v30 = vadd.s32 %v6983_v57, %v6979_v45 }
 0x8e5   :  { %v6918_v52 = vsel %vm6916_vm7, %v8389_v37, %v6917_v5  ;;  %v6796_v60 = vand.u32 2147483647, %v6795_v19  ;;  %v7045_v50 = vshll.u32 %v14995_v49, %v7042_v33  ;;  %v7046_v59 = vshrl.u32 %v15317_v54, %v7043_v42 }
 0x8e6   :  { %v6922_v26 = vsel %vm6915_vm12, %v6918_v52, %v6921_v16  ;;  %v7049_v46 = vshrl.u32 %v15318_v31, %v7043_v42  ;;  %v6985_v28 = vadd.s32 536870912, %v6984_v30  ;;  %v7052_v38 = vshrl.u32 %v15319_v48, %v7043_v42 }
 0x8e7   :  { %v6923_v32 = vsel %vm6912_vm3, nan, %v6922_v26  ;;  %v6799_v63 = vmul.f32 %v6798_v8, %v6796_v60  ;;  %v7047_v13 = vor.u32 %v7046_v59, %v7045_v50  ;;  %v7048_v62 = vshll.u32 %v15317_v54, %v7042_v33 }
 0x8e8   :  { %v14503_v17 = vadd.f32 %v14198_v58, %v6923_v32  ;;  %v7051_v14 = vshll.u32 %v15318_v31, %v7042_v33  ;;  %v6986_v51 = vshrl.u32 %v6985_v28, 30  ;;  %v7054_v7 = vshll.u32 %v15319_v48, %v7042_v33 }
 0x8e9   :  { %v6800_v35 = vxor.u32 2147483648, %v6799_v63  ;;  %v7055_v0 = vshrl.u32 %v14999_v29, %v7043_v42  ;;  %v7050_v4 = vor.u32 %v7049_v46, %v7048_v62  ;;  %v7057_v11 = vshll.u32 %v14999_v29, %v7042_v33 }
 0x8ea   :  { %v7053_v6 = vor.u32 %v7052_v38, %v7051_v14  ;;  %v7058_v2 = vshrl.u32 %v15193_v18, %v7043_v42  ;;  %v14513_v27 = vand.u32 3, %v6809_v24  ;;  %v6987_v36 = vshll.u32 %v6986_v51, 30 }
 0x8eb   :  { %v6801_v58 = vsel %vm6718_vm1, %v6800_v35, %v6799_v63  ;;  %v7056_v37 = vor.u32 %v7055_v0, %v7054_v7  ;;  %v7076_v47 = vshll.u32 %v7036_v9, 8  ;;  %v7239_v3 = vand.u32 2139095040, %v14017_v56 }
 0x8ec   :  { %v6804_v21 = vsel %vm14445_vm15, %v13663_v20, %v6801_v58  ;;  %v7059_v55 = vor.u32 %v7058_v2, %v7057_v11  ;;  %v14519_v10 = vsub.s32 %v6984_v30, %v6987_v36  ;;  %vm7060_vm6 = vcmp.lt.s32.totalorder %v7041_v41, 1 }
 0x8ed   :  { %8392 = vcosq.f32 %v6804_v21  ;;  %vm7063_vm13 = vcmp.lt.s32.totalorder %v7041_v41, 4  ;;  %v7044_v33 = vshrl.u32 %v14995_v49, %v7043_v42  ;;  %v7068_v5 = vsel %vm7060_vm6, %v7047_v13, %v7050_v4 }
 0x8ee   :  { %8394 = vsinq.f32 %v6804_v21  ;;  %v7065_v44 = vsel %vm7063_vm13, %v7053_v6, 2102212464  ;;  %v6990_v19 = vsub.s32 0, %v14519_v10  ;;  %vm7061_vm0 = vcmp.lt.s32.totalorder %v7041_v41, 2 }
 0x8ef   :  { %vm7062_vm1 = vcmp.lt.s32.totalorder %v7041_v41, 3  ;;  %v7069_v1 = vsel %vm7063_vm13, %v7056_v37, 920167782  ;;  %v7064_v45 = vsel %vm7060_vm6, %v7044_v33, %v7047_v13  ;;  %v7072_v9 = vsel %vm7060_vm6, %v7050_v4, %v7053_v6 }
 0x8f0   :  { %v7070_v16 = vsel %vm7062_vm1, %v7053_v6, %v7069_v1  ;;  %v7073_v24 = vsel %vm7063_vm13, %v7059_v55, 1326507024  ;;  %v7822_v57 = vmin.u32 %v6990_v19, %v14519_v10  ;;  %v7066_v52 = vsel %vm7062_vm1, %v7050_v4, %v7065_v44 }
 0x8f1   :  { %v7071_v60 = vsel %vm7061_vm0, %v7068_v5, %v7070_v16  ;;  %v7074_v8 = vsel %vm7062_vm1, %v7056_v37, %v7073_v24  ;;  %v7010_v59 = vsub.s32 4, %v6986_v51  ;;  %v7236_v46 = vand.u32 2147483647, %v14017_v56 }
 0x8f2   :  { %v7075_v30 = vsel %vm7061_vm0, %v7072_v9, %v7074_v8  ;;  %v14526_v42 = vmul.u32.u64.low %v7076_v47, %v7071_v60  ;;  %v14527_v26 = vmul.u32.u64.high %v7076_v47, %v7071_v60, %v14526_v42  ;;  %v6992_v50 = vclz %v7822_v57 }
 0x8f3   :  { %v7067_v32 = vsel %vm7061_vm0, %v7064_v45, %v7066_v52  ;;  %v14531_v63 = vmul.u32.u64.low %v7076_v47, %v7075_v30  ;;  %v14532_v28 = vmul.u32.u64.high %v7076_v47, %v7075_v30, %v14531_v63  ;;  %v7240_v38 = vshrl.u32 %v7239_v3, 23 }
 0x8f4   :  { %vm6811_vm15 = vcmp.lt.s32.totalorder %v14513_v27, 2  ;;  %vm6926_vm2 = vcmp.lt.s32.totalorder %v13802_v22, 0  ;;  %v7823_v13 = vadd.s32 4294967294, %v6992_v50  ;;  %vm6812_vm9 = vcmp.eq.s32.totalorder %v14513_v27, 0 }
 0x8f5   :  { %vm6815_vm14 = vcmp.eq.s32.totalorder %v14513_v27, 2  ;;  %v7086_v62 = vadd.s32 1, %v14527_v26  ;;  %v7833_v14 = vadd.s32 4294967169, %v7240_v38  ;;  %v6980_v41 = vadd.s32 %v14473_v23, %v14470_v40 }
 0x8f6   :  { %vm7824_vm8 = vcmp.lt.s32.totalorder %v7823_v13, 0  ;;  %v7011_v7 = vsel %vm6926_vm2, %v7010_v59, %v6986_v51  ;;  %v7083_v0 = vmul.u32 %v7076_v47, %v7067_v32  ;;  %vm7085_vm10 = vc.u32 %v14532_v28, %v14526_v42 }
 0x8f7   :  { %v8393_v35 = vpop.eup %8392  ;;  %v6995_v11 = vsel %vm7824_vm8, 0, %v7823_v13  ;;  %v7243_v2 = vand.u32 8388607, %v7236_v46  ;;  %v7135_v21 = vand.u32 2139095040, %v14160_v15  ;;  %v7087_v51 = vsel %vm7085_vm10, %v7086_v62, %v14527_v26 }
 0x8f8   :  { %v8395_v4 = vpop.eup %8394  ;;  %v6816_v6 = vxor.u32 2147483648, %v8393_v35  ;;  %v6996_v36 = vsub.s32 32, %v6995_v11  ;;  %v7000_v37 = vsub.s32 4294967266, %v6995_v11  ;;  %v6997_v23 = vshll.u32 %v14519_v10, %v6995_v11 }
 0x8f9   :  { %v6813_v58 = vxor.u32 2147483648, %v8395_v4  ;;  %v7246_v55 = vadd.s32 1, %v7833_v14  ;;  %v7088_v44 = vadd.s32 %v7087_v51, %v7083_v0  ;;  %vm6808_vm12 = vweird.f32 %v13663_v20 }
 0x8fa   :  { %v6817_v40 = vsel %vm6815_vm14, %v6816_v6, %v8395_v4  ;;  %v6998_v3 = vshrl.u32 %v6980_v41, %v6996_v36  ;;  %v7001_v33 = vadd.s32 127, %v7000_v37  ;;  %vm14558_vm3 = vcmp.le.f32.partialorder %v6924_v12, 0.7853982 }
 0x8fb   :  { %v6814_v47 = vsel %vm6812_vm9, %v8393_v35, %v6813_v58  ;;  %vm7247_vm5 = vcmp.gt.s32.totalorder %v7246_v55, 0  ;;  %v7089_v16 = vadd.s32 536870912, %v7088_v44  ;;  %v7013_v9 = vsel %vm14558_vm3, 0, %v7011_v7 }
 0x8fc   :  { %v6818_v5 = vsel %vm6811_vm15, %v6814_v47, %v6817_v40  ;;  %v6999_v1 = vor.u32 %v6998_v3, %v6997_v23  ;;  %v7002_v45 = vshll.u32 %v7001_v33, 23  ;;  %v7248_v24 = vsel %vm7247_vm5, %v7246_v55, 0 }
 0x8fd   :  { %v6819_v10 = vsel %vm6808_vm12, nan, %v6818_v5  ;;  %v7132_v20 = vand.u32 2147483647, %v14160_v15  ;;  %v7090_v52 = vshrl.u32 %v7089_v16, 30  ;;  %v7244_v12 = vor.u32 8388608, %v7243_v2 }
 0x8fe   :  { %v14566_v27 = vadd.f32 %v14267_v39, %v6819_v10  ;;  %v7003_v57 = vor.u32 4788187, %v7002_v45  ;;  %v7136_v60 = vshrl.u32 %v7135_v21, 23  ;;  %v7250_v8 = vand.u32 31, %v7248_v24 }
 0x8ff   :  { %v7006_v26 = vcvt.s32.f32 %v6999_v1  ;;  %v7091_v50 = vshll.u32 %v7090_v52, 30  ;;  %v7017_v59 = vadd.s32 3, %v7013_v9  ;;  %v7084_v32 = vadd.s32 %v14526_v42, %v14532_v28 }
 0x900   :  { %v7004_v30 = vand.u32 2147483647, %v7003_v57  ;;  %v7251_v63 = vsub.s32 32, %v7250_v8  ;;  %v14571_v38 = vand.u32 8388607, %v7132_v20  ;;  %v14575_v39 = vshll.u32 %v7244_v12, 8 }
 0x901   :  { %v14573_v62 = vsub.s32 %v7088_v44, %v7091_v50  ;;  %v7829_v14 = vadd.s32 4294967169, %v7136_v60  ;;  %v7249_v35 = vshrl.u32 %v7248_v24, 5  ;;  %v7253_v41 = vshll.u32 %v14995_v49, %v7250_v8 }
 0x902   :  { %v7007_v13 = vmul.f32 %v7006_v26, %v7004_v30  ;;  %v7254_v7 = vshrl.u32 %v15317_v54, %v7251_v63  ;;  %v7257_v0 = vshrl.u32 %v15318_v31, %v7251_v63  ;;  %vm7030_vm7 = vcmp.lt.s32.totalorder %v13938_v25, 0 }
 0x903   :  { %v7094_v42 = vsub.s32 0, %v14573_v62  ;;  %v7256_v28 = vshll.u32 %v15317_v54, %v7250_v8  ;;  %v7260_v6 = vshrl.u32 %v15319_v48, %v7251_v63  ;;  %v7259_v2 = vshll.u32 %v15318_v31, %v7250_v8 }
 0x904   :  { %v7008_v4 = vxor.u32 2147483648, %v7007_v13  ;;  %v7255_v11 = vor.u32 %v7254_v7, %v7253_v41  ;;  %v7262_v58 = vshll.u32 %v15319_v48, %v7250_v8  ;;  %v7263_v36 = vshrl.u32 %v14999_v29, %v7251_v63 }
 0x905   :  { %v7826_v21 = vmin.u32 %v7094_v42, %v14573_v62  ;;  %v7258_v40 = vor.u32 %v7257_v0, %v7256_v28  ;;  %v7265_v23 = vshll.u32 %v14999_v29, %v7250_v8  ;;  %v7261_v55 = vor.u32 %v7260_v6, %v7259_v2 }
 0x906   :  { %v7009_v37 = vsel %vm6926_vm2, %v7008_v4, %v7007_v13  ;;  %v7264_v47 = vor.u32 %v7263_v36, %v7262_v58  ;;  %v7266_v3 = vshrl.u32 %v15193_v18, %v7251_v63  ;;  %v7114_v44 = vsub.s32 4, %v7090_v52 }
 0x907   :  { %v7012_v51 = vsel %vm14558_vm3, %v13802_v22, %v7009_v37  ;;  %v7096_v33 = vclz %v7826_v21  ;;  %v7142_v5 = vadd.s32 1, %v7829_v14  ;;  %v7252_v10 = vshrl.u32 %v14995_v49, %v7251_v63 }
 0x908   :  { %8396 = vcosq.f32 %v7012_v51  ;;  %v7267_v1 = vor.u32 %v7266_v3, %v7265_v23  ;;  %vm7268_vm11 = vcmp.lt.s32.totalorder %v7249_v35, 1  ;;  %vm7270_vm4 = vcmp.lt.s32.totalorder %v7249_v35, 3 }
 0x909   :  { %8398 = vsinq.f32 %v7012_v51  ;;  %v7827_v45 = vadd.s32 4294967294, %v7096_v33  ;;  %vm7271_vm6 = vcmp.lt.s32.totalorder %v7249_v35, 4  ;;  %v7276_v16 = vsel %vm7268_vm11, %v7255_v11, %v7258_v40 }
 0x90a   :  { %v7273_v19 = vsel %vm7271_vm6, %v7261_v55, 2102212464  ;;  %v7277_v9 = vsel %vm7271_vm6, %v7264_v47, 920167782  ;;  %v7280_v24 = vsel %vm7268_vm11, %v7258_v40, %v7261_v55  ;;  %v7281_v57 = vsel %vm7271_vm6, %v7267_v1, 1326507024 }
 0x90b   :  { %vm7828_vm13 = vcmp.lt.s32.totalorder %v7827_v45, 0  ;;  %vm7269_vm0 = vcmp.lt.s32.totalorder %v7249_v35, 2  ;;  %v7278_v12 = vsel %vm7270_vm4, %v7261_v55, %v7277_v9  ;;  %v7282_v60 = vsel %vm7270_vm4, %v7264_v47, %v7281_v57 }
 0x90c   :  { %v7099_v8 = vsel %vm7828_vm13, 0, %v7827_v45  ;;  %v7115_v30 = vsel %vm7030_vm7, %v7114_v44, %v7090_v52  ;;  %v7279_v26 = vsel %vm7269_vm0, %v7276_v16, %v7278_v12  ;;  %v7283_v50 = vsel %vm7269_vm0, %v7280_v24, %v7282_v60 }
 0x90d   :  { %v7100_v63 = vsub.s32 32, %v7099_v8  ;;  %v7104_v13 = vsub.s32 4294967266, %v7099_v8  ;;  %v7272_v14 = vsel %vm7268_vm11, %v7252_v10, %v7255_v11  ;;  %v7274_v41 = vsel %vm7270_vm4, %v7258_v40, %v7273_v19 }
 0x90e   :  { %v14607_v7 = vmul.u32.u64.low %v14575_v39, %v7283_v50  ;;  %v14608_v0 = vmul.u32.u64.high %v14575_v39, %v7283_v50, %v14607_v7  ;;  %v14611_v4 = vmul.u32.u64.low %v14575_v39, %v7279_v26  ;;  %v14612_v42 = vmul.u32.u64.high %v14575_v39, %v7279_v26, %v14611_v4 }
 0x90f   :  { %v7101_v52 = vshll.u32 %v14573_v62, %v7099_v8  ;;  %v7102_v28 = vshrl.u32 %v7084_v32, %v7100_v63  ;;  %v7105_v6 = vadd.s32 127, %v7104_v13  ;;  %vm7143_vm1 = vcmp.gt.s32.totalorder %v7142_v5, 0 }
 0x910   :  { %v7018_v2 = vand.u32 3, %v7017_v59  ;;  %vm14618_vm15 = vcmp.le.f32.partialorder %v7028_v61, 0.7853982  ;;  %v7275_v58 = vsel %vm7269_vm0, %v7272_v14, %v7274_v41  ;;  %v7144_v36 = vsel %vm7143_vm1, %v7142_v5, 0 }
 0x911   :  { %v7103_v21 = vor.u32 %v7102_v28, %v7101_v52  ;;  %v7106_v40 = vshll.u32 %v7105_v6, 23  ;;  %v7140_v23 = vor.u32 8388608, %v14571_v38  ;;  %v7146_v51 = vand.u32 31, %v7144_v36 }
 0x912   :  { %v8397_v37 = vpop.eup %8396  ;;  %v7117_v32 = vsel %vm14618_vm15, 0, %v7115_v30  ;;  %vm7293_vm2 = vc.u32 %v14608_v0, %v14611_v4  ;;  %v7294_v61 = vadd.s32 1, %v14612_v42  ;;  %v7291_v35 = vmul.u32 %v14575_v39, %v7275_v58 }
 0x913   :  { %v8399_v62 = vpop.eup %8398  ;;  %v7024_v59 = vxor.u32 2147483648, %v8397_v37  ;;  %v7107_v55 = vor.u32 4788187, %v7106_v40  ;;  %v7147_v47 = vsub.s32 32, %v7146_v51  ;;  %vm7020_vm9 = vcmp.eq.s32.totalorder %v7018_v2, 0 }
 0x914   :  { %vm7023_vm14 = vcmp.eq.s32.totalorder %v7018_v2, 2  ;;  %v7295_v3 = vsel %vm7293_vm2, %v7294_v61, %v14612_v42  ;;  %vm7019_vm8 = vcmp.lt.s32.totalorder %v7018_v2, 2  ;;  %v7110_v33 = vcvt.s32.f32 %v7103_v21 }
 0x915   :  { %v7108_v38 = vand.u32 2147483647, %v7107_v55  ;;  %v7296_v44 = vadd.s32 %v7295_v3, %v7291_v35  ;;  %v14631_v5 = vshll.u32 %v7140_v23, 8  ;;  %v7121_v10 = vadd.s32 3, %v7117_v32 }
 0x916   :  { %v14633_v1 = vshrl.u32 %v7144_v36, 5  ;;  %v7150_v45 = vshrl.u32 %v15317_v54, %v7147_v47  ;;  %v7153_v16 = vshrl.u32 %v15318_v31, %v7147_v47  ;;  %v7021_v19 = vxor.u32 2147483648, %v8399_v62 }
 0x917   :  { %v7025_v39 = vsel %vm7023_vm14, %v7024_v59, %v8399_v62  ;;  %v7111_v9 = vmul.f32 %v7110_v33, %v7108_v38  ;;  %v7297_v24 = vadd.s32 536870912, %v7296_v44  ;;  %vm7016_vm10 = vweird.f32 %v13802_v22 }
 0x918   :  { %v7149_v57 = vshll.u32 %v14995_v49, %v7146_v51  ;;  %v7152_v12 = vshll.u32 %v15317_v54, %v7146_v51  ;;  %v7156_v60 = vshrl.u32 %v15319_v48, %v7147_v47  ;;  %v7159_v8 = vshrl.u32 %v14999_v29, %v7147_v47 }
 0x919   :  { %v7112_v30 = vxor.u32 2147483648, %v7111_v9  ;;  %v14642_v26 = vshrl.u32 %v7297_v24, 30  ;;  %v7155_v50 = vshll.u32 %v15318_v31, %v7146_v51  ;;  %v7158_v63 = vshll.u32 %v15319_v48, %v7146_v51 }
 0x91a   :  { %v7151_v13 = vor.u32 %v7150_v45, %v7149_v57  ;;  %v7154_v14 = vor.u32 %v7153_v16, %v7152_v12  ;;  %v7161_v41 = vshll.u32 %v14999_v29, %v7146_v51  ;;  %v7162_v7 = vshrl.u32 %v15193_v18, %v7147_v47 }
 0x91b   :  { %v7022_v42 = vsel %vm7020_vm9, %v8397_v37, %v7021_v19  ;;  %v7113_v52 = vsel %vm7030_vm7, %v7112_v30, %v7111_v9  ;;  %v7299_v28 = vshll.u32 %v14642_v26, 30  ;;  %v7160_v6 = vor.u32 %v7159_v8, %v7158_v63 }
 0x91c   :  { %v7116_v58 = vsel %vm14618_vm15, %v13938_v25, %v7113_v52  ;;  %v7157_v36 = vor.u32 %v7156_v60, %v7155_v50  ;;  %v7163_v21 = vor.u32 %v7162_v7, %v7161_v41  ;;  %v7343_v40 = vand.u32 2139095040, %v14248_v43 }
 0x91d   :  { %8400 = vcosq.f32 %v7116_v58  ;;  %v14656_v23 = vsub.s32 %v7296_v44, %v7299_v28  ;;  %v7148_v51 = vshrl.u32 %v14995_v49, %v7147_v47  ;;  %vm7164_vm12 = vcmp.lt.s32.totalorder %v14633_v1, 1 }
 0x91e   :  { %v7026_v37 = vsel %vm7019_vm8, %v7022_v42, %v7025_v39  ;;  %8402 = vsinq.f32 %v7116_v58  ;;  %vm7167_vm3 = vcmp.lt.s32.totalorder %v14633_v1, 4  ;;  %v7172_v11 = vsel %vm7164_vm12, %v7151_v13, %v7154_v14 }
 0x91f   :  { %v7302_v62 = vsub.s32 0, %v14656_v23  ;;  %vm7165_vm5 = vcmp.lt.s32.totalorder %v14633_v1, 2  ;;  %vm7166_vm7 = vcmp.lt.s32.totalorder %v14633_v1, 3  ;;  %v7173_v32 = vsel %vm7167_vm3, %v7160_v6, 920167782 }
 0x920   :  { %v7169_v61 = vsel %vm7167_vm3, %v7157_v36, 2102212464  ;;  %v7174_v59 = vsel %vm7166_vm7, %v7157_v36, %v7173_v32  ;;  %v7176_v2 = vsel %vm7164_vm12, %v7154_v14, %v7157_v36  ;;  %v7177_v55 = vsel %vm7167_vm3, %v7163_v21, 1326507024 }
 0x921   :  { %v7027_v35 = vsel %vm7016_vm10, nan, %v7026_v37  ;;  %v7834_v47 = vmin.u32 %v7302_v62, %v14656_v23  ;;  %v7175_v3 = vsel %vm7165_vm5, %v7172_v11, %v7174_v59  ;;  %v7178_v38 = vsel %vm7166_vm7, %v7160_v6, %v7177_v55 }
 0x922   :  { %v7179_v33 = vsel %vm7165_vm5, %v7176_v2, %v7178_v38  ;;  %v14681_v44 = vmul.u32.u64.low %v14631_v5, %v7175_v3  ;;  %v14682_v45 = vmul.u32.u64.high %v14631_v5, %v7175_v3, %v14681_v44  ;;  %v7344_v16 = vshrl.u32 %v7343_v40, 23 }
 0x923   :  { %v7122_v19 = vand.u32 3, %v7121_v10  ;;  %v7304_v22 = vclz %v7834_v47  ;;  %v7168_v39 = vsel %vm7164_vm12, %v7148_v51, %v7151_v13  ;;  %v7170_v9 = vsel %vm7166_vm7, %v7154_v14, %v7169_v61 }
 0x924   :  { %v14690_v24 = vmul.u32.u64.low %v14631_v5, %v7179_v33  ;;  %v14691_v57 = vmul.u32.u64.high %v14631_v5, %v7179_v33, %v14690_v24  ;;  %v7837_v12 = vadd.s32 4294967169, %v7344_v16  ;;  %v14694_v8 = vadd.f32 %v14359_v34, %v7027_v35 }
 0x925   :  { %v7835_v60 = vadd.s32 4294967294, %v7304_v22  ;;  %vm7120_vm11 = vweird.f32 %v13938_v25  ;;  %v7171_v10 = vsel %vm7165_vm5, %v7168_v39, %v7170_v9  ;;  %v7190_v30 = vadd.s32 1, %v14682_v45 }
 0x926   :  { %v7350_v50 = vadd.s32 1, %v7837_v12  ;;  %vm7123_vm4 = vcmp.lt.s32.totalorder %v7122_v19, 2  ;;  %vm7124_vm6 = vcmp.eq.s32.totalorder %v7122_v19, 0  ;;  %vm7127_vm13 = vcmp.eq.s32.totalorder %v7122_v19, 2 }
 0x927   :  { %v8401_v63 = vpop.eup %8400  ;;  %vm7836_vm0 = vcmp.lt.s32.totalorder %v7835_v60, 0  ;;  %v7292_v41 = vadd.s32 %v14611_v4, %v14608_v0  ;;  %vm7189_vm1 = vc.u32 %v14691_v57, %v14681_v44  ;;  %v7187_v52 = vmul.u32 %v14631_v5, %v7171_v10 }
 0x928   :  { %v8403_v13 = vpop.eup %8402  ;;  %v7128_v14 = vxor.u32 2147483648, %v8401_v63  ;;  %v7307_v34 = vsel %vm7836_vm0, 0, %v7835_v60  ;;  %v7191_v58 = vsel %vm7189_vm1, %v7190_v30, %v14682_v45  ;;  %vm7351_vm15 = vcmp.gt.s32.totalorder %v7350_v50, 0 }
 0x929   :  { %v7125_v7 = vxor.u32 2147483648, %v8403_v13  ;;  %v7308_v1 = vsub.s32 32, %v7307_v34  ;;  %v7312_v42 = vsub.s32 4294967266, %v7307_v34  ;;  %v7309_v6 = vshll.u32 %v14656_v23, %v7307_v34 }
 0x92a   :  { %v7129_v28 = vsel %vm7127_vm13, %v7128_v14, %v8403_v13  ;;  %v7192_v0 = vadd.s32 %v7191_v58, %v7187_v52  ;;  %v7322_v51 = vsub.s32 4, %v14642_v26  ;;  %v7340_v37 = vand.u32 2147483647, %v14248_v43 }
 0x92b   :  { %v7126_v36 = vsel %vm7124_vm6, %v8401_v63, %v7125_v7  ;;  %v7310_v21 = vshrl.u32 %v7292_v41, %v7308_v1  ;;  %v7313_v40 = vadd.s32 127, %v7312_v42  ;;  %v7352_v11 = vsel %vm7351_vm15, %v7350_v50, 0 }
 0x92c   :  { %v7130_v4 = vsel %vm7123_vm4, %v7126_v36, %v7129_v28  ;;  %v7193_v32 = vadd.s32 536870912, %v7192_v0  ;;  %v7354_v59 = vand.u32 31, %v7352_v11  ;;  %vm7238_vm2 = vcmp.lt.s32.totalorder %v14017_v56, 0 }
 0x92d   :  { %v7131_v5 = vsel %vm7120_vm11, nan, %v7130_v4  ;;  %v7311_v62 = vor.u32 %v7310_v21, %v7309_v6  ;;  %v7314_v23 = vshll.u32 %v7313_v40, 23  ;;  %v7347_v35 = vand.u32 8388607, %v7340_v37 }
 0x92e   :  { %v14714_v61 = vadd.f32 %v14409_v53, %v7131_v5  ;;  %v14716_v55 = vshrl.u32 %v7193_v32, 30  ;;  %v7355_v47 = vsub.s32 32, %v7354_v59  ;;  %v7323_v25 = vsel %vm7238_vm2, %v7322_v51, %v14642_v26 }
 0x92f   :  { %v7315_v2 = vor.u32 4788187, %v7314_v23  ;;  %v7318_v38 = vcvt.s32.f32 %v7311_v62  ;;  %vm14728_vm9 = vcmp.le.f32.partialorder %v7236_v46, 0.7853982  ;;  %v7348_v9 = vor.u32 8388608, %v7347_v35 }
 0x930   :  { %v7195_v33 = vshll.u32 %v14716_v55, 30  ;;  %v7358_v53 = vshrl.u32 %v15317_v54, %v7355_v47  ;;  %v7361_v22 = vshrl.u32 %v15318_v31, %v7355_v47  ;;  %v7325_v39 = vsel %vm14728_vm9, 0, %v7323_v25 }
 0x931   :  { %v7316_v3 = vand.u32 2147483647, %v7315_v2  ;;  %v7357_v26 = vshll.u32 %v14995_v49, %v7354_v59  ;;  %v7364_v24 = vshrl.u32 %v15319_v48, %v7355_v47  ;;  %v7353_v10 = vshrl.u32 %v7352_v11, 5 }
 0x932   :  { %v7196_v19 = vsub.s32 %v7192_v0, %v7195_v33  ;;  %v7360_v46 = vshll.u32 %v15317_v54, %v7354_v59  ;;  %v7363_v50 = vshll.u32 %v15318_v31, %v7354_v59  ;;  %v7366_v63 = vshll.u32 %v15319_v48, %v7354_v59 }
 0x933   :  { %v7319_v16 = vmul.f32 %v7318_v38, %v7316_v3  ;;  %v7359_v30 = vor.u32 %v7358_v53, %v7357_v26  ;;  %v7367_v13 = vshrl.u32 %v14999_v29, %v7355_v47  ;;  %v7370_v7 = vshrl.u32 %v15193_v18, %v7355_v47 }
 0x934   :  { %v7198_v60 = vsub.s32 0, %v7196_v19  ;;  %v7362_v34 = vor.u32 %v7361_v22, %v7360_v46  ;;  %v7365_v42 = vor.u32 %v7364_v24, %v7363_v50  ;;  %v7369_v52 = vshll.u32 %v14999_v29, %v7354_v59 }
 0x935   :  { %v7320_v12 = vxor.u32 2147483648, %v7319_v16  ;;  %v7368_v54 = vor.u32 %v7367_v13, %v7366_v63  ;;  %v7329_v31 = vadd.s32 3, %v7325_v39  ;;  %v7388_v28 = vshll.u32 %v7348_v9, 8 }
 0x936   :  { %v7830_v41 = vmin.u32 %v7198_v60, %v7196_v19  ;;  %v7356_v6 = vshrl.u32 %v14995_v49, %v7355_v47  ;;  %v7371_v58 = vor.u32 %v7370_v7, %v7369_v52  ;;  %vm7372_vm14 = vcmp.lt.s32.totalorder %v7353_v10, 1 }
 0x937   :  { %v7321_v14 = vsel %vm7238_vm2, %v7320_v12, %v7319_v16  ;;  %vm7374_vm8 = vcmp.lt.s32.totalorder %v7353_v10, 3  ;;  %vm7375_vm10 = vcmp.lt.s32.totalorder %v7353_v10, 4  ;;  %v7380_v18 = vsel %vm7372_vm14, %v7359_v30, %v7362_v34 }
 0x938   :  { %v7324_v1 = vsel %vm14728_vm9, %v14017_v56, %v7321_v14  ;;  %v7200_v48 = vclz %v7830_v41  ;;  %v7377_v21 = vsel %vm7375_vm10, %v7365_v42, 2102212464  ;;  %v7381_v40 = vsel %vm7375_vm10, %v7368_v54, 920167782 }
 0x939   :  { %8404 = vcosq.f32 %v7324_v1  ;;  %v7384_v0 = vsel %vm7372_vm14, %v7362_v34, %v7365_v42  ;;  %v7385_v4 = vsel %vm7375_vm10, %v7371_v58, 1326507024  ;;  %vm7373_vm3 = vcmp.lt.s32.totalorder %v7353_v10, 2 }
 0x93a   :  { %8406 = vsinq.f32 %v7324_v1  ;;  %v7831_v36 = vadd.s32 4294967294, %v7200_v48  ;;  %v7382_v29 = vsel %vm7374_vm8, %v7365_v42, %v7381_v40  ;;  %v7386_v51 = vsel %vm7374_vm8, %v7368_v54, %v7385_v4 }
 0x93b   :  { %v7188_v49 = vadd.s32 %v14681_v44, %v14691_v57  ;;  %v7383_v5 = vsel %vm7373_vm3, %v7380_v18, %v7382_v29  ;;  %v7387_v62 = vsel %vm7373_vm3, %v7384_v0, %v7386_v51  ;;  %v7376_v59 = vsel %vm7372_vm14, %v7356_v6, %v7359_v30 }
 0x93c   :  { %vm7832_vm12 = vcmp.lt.s32.totalorder %v7831_v36, 0  ;;  %v7378_v2 = vsel %vm7374_vm8, %v7362_v34, %v7377_v21  ;;  %v14759_v35 = vmul.u32.u64.low %v7388_v28, %v7387_v62  ;;  %v14760_v47 = vmul.u32.u64.high %v7388_v28, %v7387_v62, %v14759_v35 }
 0x93d   :  { %v7203_v11 = vsel %vm7832_vm12, 0, %v7831_v36  ;;  %v14762_v3 = vmul.u32.u64.low %v7388_v28, %v7383_v5  ;;  %v14763_v38 = vmul.u32.u64.high %v7388_v28, %v7383_v5, %v14762_v3  ;;  %v7330_v25 = vand.u32 3, %v7329_v31 }
 0x93e   :  { %v7204_v23 = vsub.s32 32, %v7203_v11  ;;  %v7208_v32 = vsub.s32 4294967266, %v7203_v11  ;;  %v7205_v33 = vshll.u32 %v7196_v19, %v7203_v11  ;;  %v7379_v53 = vsel %vm7373_vm3, %v7376_v59, %v7378_v2 }
 0x93f   :  { %vm7397_vm5 = vc.u32 %v14760_v47, %v14762_v3  ;;  %v7398_v26 = vadd.s32 1, %v14763_v38  ;;  %vm7335_vm7 = vcmp.eq.s32.totalorder %v7330_v25, 2  ;;  %v7395_v60 = vmul.u32 %v7388_v28, %v7379_v53 }
 0x940   :  { %v7206_v44 = vshrl.u32 %v7188_v49, %v7204_v23  ;;  %v7209_v57 = vadd.s32 127, %v7208_v32  ;;  %vm7331_vm11 = vcmp.lt.s32.totalorder %v7330_v25, 2  ;;  %vm7332_vm4 = vcmp.eq.s32.totalorder %v7330_v25, 0 }
 0x941   :  { %v7399_v46 = vsel %vm7397_vm5, %v7398_v26, %v14763_v38  ;;  %vm7328_vm6 = vweird.f32 %v14017_v56  ;;  %v7218_v14 = vsub.s32 4, %v14716_v55  ;;  %vm7134_vm13 = vcmp.lt.s32.totalorder %v14160_v15, 0 }
 0x942   :  { %v7207_v16 = vor.u32 %v7206_v44, %v7205_v33  ;;  %v7210_v22 = vshll.u32 %v7209_v57, 23  ;;  %v7400_v63 = vadd.s32 %v7399_v46, %v7395_v60  ;;  %vm7133_vm0 = vcmp.le.f32.partialorder %v7132_v20, 0.7853982 }
 0x943   :  { %v8405_v45 = vpop.eup %8404  ;;  %v7219_v52 = vsel %vm7134_vm13, %v7218_v14, %v14716_v55  ;;  %v7479_v21 = vrot.slane %v14714_v61, 4  ;;  %v7396_v11 = vadd.s32 %v14762_v3, %v14760_v47  ;;  %vm7224_vm14 = vweird.f32 %v14160_v15 }
 0x944   :  { %v8407_v39 = vpop.eup %8406  ;;  %v7336_v9 = vxor.u32 2147483648, %v8405_v45  ;;  %v7211_v12 = vor.u32 4788187, %v7210_v22  ;;  %v7214_v50 = vcvt.s32.f32 %v7207_v16  ;;  %v7401_v7 = vadd.s32 536870912, %v7400_v63 }
 0x945   :  { %v7333_v24 = vxor.u32 2147483648, %v8407_v39  ;;  %v7221_v28 = vsel %vm7133_vm0, 0, %v7219_v52  ;;  %v7480_v20 = vadd.f32 %v7479_v21, %v14714_v61  ;;  %vm7342_vm8 = vcmp.lt.s32.totalorder %v14248_v43, 0 }
 0x946   :  { %v7337_v19 = vsel %vm7335_vm7, %v7336_v9, %v8407_v39  ;;  %v7212_v30 = vand.u32 2147483647, %v7211_v12  ;;  %v7402_v54 = vshrl.u32 %v7401_v7, 30  ;;  %vm7341_vm10 = vcmp.le.f32.partialorder %v7340_v37, 0.7853982 }
 0x947   :  { %v7334_v10 = vsel %vm7332_vm4, %v8405_v45, %v7333_v24  ;;  %v7481_v38 = vrot.slane %v7480_v20, 2  ;;  %vm7432_vm7 = vweird.f32 %v14248_v43 }
 0x948   :  { %v7338_v13 = vsel %vm7331_vm11, %v7334_v10, %v7337_v19  ;;  %v7215_v34 = vmul.f32 %v7214_v50, %v7212_v30  ;;  %v7403_v56 = vshll.u32 %v7402_v54, 30  ;;  %v7426_v9 = vsub.s32 4, %v7402_v54 }
 0x949   :  { %v7339_v41 = vsel %vm7328_vm6, nan, %v7338_v13  ;;  %v7482_v47 = vadd.f32 %v7481_v38, %v7480_v20 }
 0x94a   :  { %v14772_v1 = vadd.f32 %v14503_v17, %v7339_v41  ;;  %v7216_v42 = vxor.u32 2147483648, %v7215_v34  ;;  %v7404_v6 = vsub.s32 %v7400_v63, %v7403_v56  ;;  %v7225_v17 = vadd.s32 3, %v7221_v28 }
 0x94b   :  { %v7483_v24 = vrot.slane %v7482_v47, 1  ;;  %v7427_v19 = vsel %vm7342_vm8, %v7426_v9, %v7402_v54 }
 0x94c   :  { %v7217_v31 = vsel %vm7134_vm13, %v7216_v42, %v7215_v34  ;;  %v7406_v58 = vsub.s32 0, %v7404_v6  ;;  %v7226_v40 = vand.u32 3, %v7225_v17  ;;  %v7429_v50 = vsel %vm7341_vm10, 0, %v7427_v19 }
 0x94d   :  { %v7220_v48 = vsel %vm7133_vm0, %v14160_v15, %v7217_v31  ;;  %v7484_v10 = vadd.f32 %v7483_v24, %v7482_v47  ;;  %v7433_v13 = vadd.s32 3, %v7429_v50  ;;  %v7497_v14 = vrot.slane %v14772_v1, 4 }
 0x94e   :  { %8408 = vcosq.f32 %v7220_v48  ;;  %v7838_v36 = vmin.u32 %v7406_v58, %v7404_v6  ;;  %vm7231_vm15 = vcmp.eq.s32.totalorder %v7226_v40, 2  ;;  %vm7227_vm2 = vcmp.lt.s32.totalorder %v7226_v40, 2 }
 0x94f   :  { %8410 = vsinq.f32 %v7220_v48  ;;  %vm7228_vm9 = vcmp.eq.s32.totalorder %v7226_v40, 0  ;;  %v7434_v41 = vand.u32 3, %v7433_v13  ;;  %v7498_v42 = vadd.f32 %v7497_v14, %v14772_v1 }
 0x950   :  { %v7408_v18 = vclz %v7838_v36  ;;  %v8475_v36 = vmov 1966171168  }
 0x951   :  { %vm7439_vm12 = vcmp.eq.s32.totalorder %v7434_v41, 2  ;;  %vm7436_vm3 = vcmp.eq.s32.totalorder %v7434_v41, 0  ;;  %vm7435_vm5 = vcmp.lt.s32.totalorder %v7434_v41, 2  ;;  %v7499_v56 = vrot.slane %v7498_v42, 2 }
 0x952   :  { %v7839_v0 = vadd.s32 4294967294, %v7408_v18  ;;  %v7519_v18 = vunpack.c.l.s4 %v8475_v36 }
 0x953   :  { %v7500_v58 = vadd.f32 %v7499_v56, %v7498_v42 }
 0x954   :  { %vm7840_vm1 = vcmp.lt.s32.totalorder %v7839_v0, 0 }
 0x955   :  { %v7411_v51 = vsel %vm7840_vm1, 0, %v7839_v0  ;;  %v7501_v40 = vrot.slane %v7500_v58, 1  ;;  %v7520_v0 = vunpack.c.0.s8 %v7519_v18 }
 0x956   :  { %v7412_v5 = vsub.s32 32, %v7411_v51  ;;  %v7416_v62 = vsub.s32 4294967266, %v7411_v51  ;;  %v7413_v59 = vshll.u32 %v7404_v6, %v7411_v51 }
 0x957   :  { %v7502_v20 = vadd.f32 %v7501_v40, %v7500_v58 }
 0x958   :  { %v8409_v55 = vpop.eup %8408  ;;  %v7414_v2 = vshrl.u32 %v7396_v11, %v7412_v5  ;;  %v7417_v35 = vadd.s32 127, %v7416_v62  ;;  %v15349_v62 = vlaneseq }
 0x959   :  { %v8411_v4 = vpop.eup %8410  ;;  %v7232_v29 = vxor.u32 2147483648, %v8409_v55 }
 0x95a   :  { %v7229_v49 = vxor.u32 2147483648, %v8411_v4  ;;  %v7415_v33 = vor.u32 %v7414_v2, %v7413_v59  ;;  %v7418_v44 = vshll.u32 %v7417_v35, 23  ;;  %vm7543_vm11 = vcmp.lt.s32.totalorder %v15349_v62, 512 }
 0x95b   :  { %v7233_v23 = vsel %vm7231_vm15, %v7232_v29, %v8411_v4  ;;  %v15348_v29 = vld [vmem:[#allocation9_spill] sm:$0xff] }
 0x95c   :  { %v7230_v32 = vsel %vm7228_vm9, %v8409_v55, %v7229_v49  ;;  %v7419_v53 = vor.u32 4788187, %v7418_v44  ;;  %v7422_v16 = vcvt.s32.f32 %v7415_v33  ;;  %v7523_v51 = vsub.s32 %v7520_v0, %v15348_v29 }
 0x95d   :  { %v7234_v25 = vsel %vm7227_vm2, %v7230_v32, %v7233_v23 }
 0x95e   :  { %v7235_v61 = vsel %vm7224_vm14, nan, %v7234_v25  ;;  %v7420_v45 = vand.u32 2147483647, %v7419_v53 }
 0x95f   :  { %v7487_v57 = vadd.f32 %v14566_v27, %v7235_v61 }
 0x960   :  { %v7423_v39 = vmul.f32 %v7422_v16, %v7420_v45 }
 0x961   :  { %v7488_v3 = vrot.slane %v7487_v57, 4 }
 0x962   :  { %v7424_v12 = vxor.u32 2147483648, %v7423_v39 }
 0x963   :  { %v7489_v22 = vadd.f32 %v7488_v3, %v7487_v57 }
 0x964   :  { %v7425_v15 = vsel %vm7342_vm8, %v7424_v12, %v7423_v39 }
 0x965   :  { %v7490_v26 = vrot.slane %v7489_v22, 2  ;;  %v7428_v46 = vsel %vm7341_vm10, %v14248_v43, %v7425_v15 }
 0x966   :  { %8412 = vcosq.f32 %v7428_v46 }
 0x967   :  { %v7491_v60 = vadd.f32 %v7490_v26, %v7489_v22  ;;  %8414 = vsinq.f32 %v7428_v46 }
 0x969   :  { %v7492_v27 = vrot.slane %v7491_v60, 1 }
 0x96b   :  { %v7493_v30 = vadd.f32 %v7492_v27, %v7491_v60 }
 0x96d   :  { %v7516_v63 = vcombine.low %v7484_v10, %v7493_v30 }
 0x96f   :  { %v7524_v43 = vrot.slane %v7516_v63, %v7523_v51 }
 0x970   :  { %v8413_v34 = vpop.eup %8412 }
 0x971   :  { %v8415_v7 = vpop.eup %8414  ;;  %v7440_v37 = vxor.u32 2147483648, %v8413_v34 }
 0x972   :  { %v7437_v52 = vxor.u32 2147483648, %v8415_v7 }
 0x973   :  { %v7441_v54 = vsel %vm7439_vm12, %v7440_v37, %v8415_v7 }
 0x974   :  { %v7438_v31 = vsel %vm7436_vm3, %v8413_v34, %v7437_v52 }
 0x975   :  { %v7442_v48 = vsel %vm7435_vm5, %v7438_v31, %v7441_v54 }
 0x976   :  { %v7443_v28 = vsel %vm7432_vm7, nan, %v7442_v48 }
 0x977   :  { %v7505_v6 = vadd.f32 %v14694_v8, %v7443_v28 }
 0x979   :  { %v7506_v17 = vrot.slane %v7505_v6, 4 }
 0x97b   :  { %v7507_v21 = vadd.f32 %v7506_v17, %v7505_v6 }
 0x97d   :  { %v7508_v1 = vrot.slane %v7507_v21, 2 }
 0x97f   :  { %v7509_v55 = vadd.f32 %v7508_v1, %v7507_v21 }
 0x981   :  { %v7510_v4 = vrot.slane %v7509_v55, 1 }
 0x983   :  { %v7511_v49 = vadd.f32 %v7510_v4, %v7509_v55 }
 0x985   :  { %v7517_v11 = vcombine.low %v7502_v20, %v7511_v49 }
 0x987   :  { %v7531_v5 = vrot.slane %v7517_v11, %v7523_v51 }
 0x989   :  { %v7532_v8 = vcombine.low %v7524_v43, %v7531_v5 }
 0x98b   :  { %v7539_v23 = vrot.slane %v7532_v8, %v7523_v51 }
 0x98d   :  { %7545 = vst.msk [vmem:[#allocation6] sm:$0xf] %vm7543_vm11, %v7539_v23 }
 0x98e   :  { %8449 = shalt.err (!%p8446_p12)
}
 0x98f   :  { %s8450_s11 = scalar_lea.hbm %s14809_s3, 64 }
 0x990   :  { %p8451_p13 = scmp.ne.s32.totalorder %s14809_s3, %s8450_s11  ;;  %p8454_p0 = scmp.lt.u32.totalorder %s8450_s11, %s14809_s3 }
 0x992   :  { %p8456_p1 = pnand %p8454_p0, %p8451_p13 }
 0x994   :  { %8459 = shalt.err (!%p8456_p1)
}
 0x995   :  { %7555 = dma.vmem_to_hbm [thread:$0]  %s7553_s1, 64, %s14809_s3, [#allocation5]  }
 0x996   :  { %8462 = dma.done.wait [#allocation5], 64  }
 0x997   :  { %8463 = vsyncadd [#allocation5], 4294967232 }
 0x998   :  { %7559 = vsyncpa [#allocation4], 1 }
 0x999   :  { %7560 = vsyncpa [#allocation5], 1 }

</bundles_post_ra>
